<compile_context>
chip_gen: v6e
topology: v6e:2x2x1
jax: 0.10.0
libtpu: 0.0.40
codegen_flags: <defaults>
</compile_context>

<pallas_src>
import functools
import math

import numpy as np
import jax
import jax.numpy as jnp
from jax.experimental import pallas as pl
from jax.experimental.pallas import tpu as pltpu

F32 = jnp.float32
BF16 = jnp.bfloat16
_EPS = 1e-6


def _tpu_defaults():
    """Generation-specific tile sizes and scoped-VMEM budget."""
    kind = ""
    try:
        kind = jax.devices()[0].device_kind.lower()
    except Exception:
        pass
    if ("v4" in kind) or ("v5" in kind) or ("v6" in kind):
        # 128 MiB VMEM parts: larger streaming tiles + higher scoped budget.
        return dict(vmem=64 * 1024 * 1024, tm=1024, tn=4096)
    # v7x (64 MiB VMEM per TC) and unknown chips: conservative settings.
    return dict(vmem=32 * 1024 * 1024, tm=512, tn=2048)


_DEF = _tpu_defaults()


def _cparams(n_axes):
    return pltpu.CompilerParams(
        dimension_semantics=("parallel",) * n_axes,
        vmem_limit_bytes=_DEF["vmem"])


# ------------------------------ Pallas kernels ------------------------------

def _linear_kernel(x_ref, w_ref, b_ref, o_ref):
    o_ref[...] = (jnp.dot(x_ref[...].astype(BF16), w_ref[...].astype(BF16),
                          preferred_element_type=F32) + b_ref[...]).astype(o_ref.dtype)


def pallas_linear(x, w, b, out_dtype=F32):
    """x: [..., K] @ w: [K, N] + b.  Row-tiled; bf16 MXU operands cast in-kernel,
    f32 accumulation, output dtype chosen by the consumer (no XLA recast pass)."""
    shp = x.shape
    K = shp[-1]
    N = w.shape[1]
    M = int(np.prod(shp[:-1]))
    TM = M if M <= _DEF["tm"] else _DEF["tm"]
    out = pl.pallas_call(
        _linear_kernel,
        out_shape=jax.ShapeDtypeStruct((M, N), out_dtype),
        grid_spec=pltpu.PrefetchScalarGridSpec(
            num_scalar_prefetch=0,
            grid=(pl.cdiv(M, TM),),
            in_specs=[pl.BlockSpec((TM, K), lambda i: (i, 0)),
                      pl.BlockSpec((K, N), lambda i: (0, 0)),
                      pl.BlockSpec((1, N), lambda i: (0, 0))],
            out_specs=pl.BlockSpec((TM, N), lambda i: (i, 0))),
        compiler_params=_cparams(1),
    )(x.reshape(M, K), w, b.reshape(1, N).astype(F32))
    return out.reshape(shp[:-1] + (N,))


def _linear_pe_kernel(x_ref, pe_ref, w_ref, b_ref, o_ref):
    xpe = (x_ref[0].astype(F32) + pe_ref[0].astype(F32)).astype(BF16)
    o_ref[0] = (jnp.dot(xpe, w_ref[...].astype(BF16), preferred_element_type=F32)
                + b_ref[...]).astype(o_ref.dtype)


def pallas_linear_pe(x, pe, w, b, out_dtype=BF16):
    """(x + pe) @ w + b with the positional-encoding add fused into the projection.
    `pe` may have batch 1 (shared dense PE) -- it is never broadcast-materialized."""
    B, N, C = x.shape
    Nout = w.shape[1]
    TR = N if N <= _DEF["tm"] else _DEF["tm"]
    pe_map = (lambda bb, i: (0, i, 0)) if pe.shape[0] == 1 else (lambda bb, i: (bb, i, 0))
    return pl.pallas_call(
        _linear_pe_kernel,
        out_shape=jax.ShapeDtypeStruct((B, N, Nout), out_dtype),
        grid_spec=pltpu.PrefetchScalarGridSpec(
            num_scalar_prefetch=0,
            grid=(B, pl.cdiv(N, TR)),
            in_specs=[pl.BlockSpec((1, TR, C), lambda bb, i: (bb, i, 0)),
                      pl.BlockSpec((1, TR, C), pe_map),
                      pl.BlockSpec((C, Nout), lambda bb, i: (0, 0)),
                      pl.BlockSpec((1, Nout), lambda bb, i: (0, 0))],
            out_specs=pl.BlockSpec((1, TR, Nout), lambda bb, i: (bb, i, 0))),
        compiler_params=_cparams(2),
    )(x, pe, w, b.reshape(1, Nout).astype(F32))


def _dual_proj_kernel(x_ref, pe_ref, wa_ref, ba_ref, wb_ref, bb_ref, ya_ref, yb_ref):
    x = x_ref[0].astype(F32)
    xpe = (x + pe_ref[0].astype(F32)).astype(BF16)
    ya_ref[0] = (jnp.dot(xpe, wa_ref[...].astype(BF16), preferred_element_type=F32)
                 + ba_ref[...]).astype(ya_ref.dtype)
    yb_ref[0] = (jnp.dot(x.astype(BF16), wb_ref[...].astype(BF16),
                         preferred_element_type=F32) + bb_ref[...]).astype(yb_ref.dtype)


def pallas_dual_proj(x, pe, wa, ba, wb, bb):
    """Fused pair of projections sharing a single HBM read of x (and pe):
         y_a = (x + pe) @ wa + ba ,  y_b = x @ wb + bb   (both bf16)."""
    B, N, C = x.shape
    Na = wa.shape[1]
    Nb = wb.shape[1]
    TR = N if N <= _DEF["tm"] else _DEF["tm"]
    pe_map = (lambda bb_, i: (0, i, 0)) if pe.shape[0] == 1 else (lambda bb_, i: (bb_, i, 0))
    return pl.pallas_call(
        _dual_proj_kernel,
        out_shape=(jax.ShapeDtypeStruct((B, N, Na), BF16),
                   jax.ShapeDtypeStruct((B, N, Nb), BF16)),
        grid_spec=pltpu.PrefetchScalarGridSpec(
            num_scalar_prefetch=0,
            grid=(B, pl.cdiv(N, TR)),
            in_specs=[pl.BlockSpec((1, TR, C), lambda bb_, i: (bb_, i, 0)),
                      pl.BlockSpec((1, TR, C), pe_map),
                      pl.BlockSpec((C, Na), lambda bb_, i: (0, 0)),
                      pl.BlockSpec((1, Na), lambda bb_, i: (0, 0)),
                      pl.BlockSpec((C, Nb), lambda bb_, i: (0, 0)),
                      pl.BlockSpec((1, Nb), lambda bb_, i: (0, 0))],
            out_specs=(pl.BlockSpec((1, TR, Na), lambda bb_, i: (bb_, i, 0)),
                       pl.BlockSpec((1, TR, Nb), lambda bb_, i: (bb_, i, 0)))),
        compiler_params=_cparams(2),
    )(x, pe, wa, ba.reshape(1, Na).astype(F32), wb, bb.reshape(1, Nb).astype(F32))


def _heads_per_group(num_heads, head_dim):
    C = num_heads * head_dim
    if C % 128 == 0 and 128 % head_dim == 0 and num_heads % (128 // head_dim) == 0:
        return 128 // head_dim          # lane-dense 128-wide output tiles
    return num_heads                    # one group spanning all heads (full C)


def _attn_kernel(q_ref, k_ref, v_ref, o_ref, *, head_dim, hpg, scale):
    q = q_ref[0]                        # (Nq, hpg*d)
    k = k_ref[0]                        # (Nk, hpg*d)
    v = v_ref[0]
    outs = []
    for h in range(hpg):
        sl = slice(h * head_dim, (h + 1) * head_dim)
        qh = q[:, sl].astype(BF16)
        kh = k[:, sl].astype(BF16)
        vh = v[:, sl].astype(BF16)
        s = jax.lax.dot_general(qh, kh, (((1,), (1,)), ((), ())),
                                preferred_element_type=F32) * scale
        s = s - jnp.max(s, axis=-1, keepdims=True)            # softmax in f32
        p = jnp.exp(s)
        p = p * pl.reciprocal(jnp.sum(p, axis=-1, keepdims=True), approx=True)
        outs.append(jnp.dot(p.astype(BF16), vh, preferred_element_type=F32))
    o = outs[0] if hpg == 1 else jnp.concatenate(outs, axis=-1)
    o_ref[0] = o.astype(o_ref.dtype)


def pallas_attention(q, k, v, num_heads, scale):
    """softmax(q k^T * scale) v, gridded over (batch, head-group).  q/k/v stay in
    (B, N, num_heads*d) layout -- no head-split HBM transposes; heads are packed
    per grid step so the output store is lane-dense.  Output is bf16 (feeds the
    bf16 out-projection matmul directly)."""
    B, Nq, C = q.shape
    Nk = k.shape[1]
    d = C // num_heads
    hpg = _heads_per_group(num_heads, d)
    G = num_heads // hpg
    GD = hpg * d
    return pl.pallas_call(
        functools.partial(_attn_kernel, head_dim=d, hpg=hpg, scale=scale),
        out_shape=jax.ShapeDtypeStruct((B, Nq, C), BF16),
        grid_spec=pltpu.PrefetchScalarGridSpec(
            num_scalar_prefetch=0,
            grid=(B, G),
            in_specs=[pl.BlockSpec((1, Nq, GD), lambda b, g: (b, 0, g)),
                      pl.BlockSpec((1, Nk, GD), lambda b, g: (b, 0, g)),
                      pl.BlockSpec((1, Nk, GD), lambda b, g: (b, 0, g))],
            out_specs=pl.BlockSpec((1, Nq, GD), lambda b, g: (b, 0, g))),
        compiler_params=_cparams(2),
    )(q, k, v)


def _outproj_res_ln_kernel(x_ref, res_ref, w_ref, b_ref, g_ref, beta_ref, o_ref, *, eps):
    y = jnp.dot(x_ref[0].astype(BF16), w_ref[...].astype(BF16),
                preferred_element_type=F32) + b_ref[...]
    y = y + res_ref[0].astype(F32)
    m = jnp.mean(y, axis=-1, keepdims=True)
    v = jnp.mean(jnp.square(y - m), axis=-1, keepdims=True)
    o_ref[0] = ((y - m) * jax.lax.rsqrt(v + eps) * g_ref[...] + beta_ref[...]).astype(o_ref.dtype)


def pallas_outproj_res_ln(x, res, w, b, gamma, beta, eps=_EPS):
    """LayerNorm(res + x @ w + b): attention output projection with the residual
    add and LayerNorm fused as an epilogue (one HBM round trip instead of three).
    Output stays f32 (it is the residual stream)."""
    B, N, C = x.shape
    Nout = w.shape[1]
    if res is None:
        res = jnp.zeros((B, N, Nout), F32)      # first-layer self-attn: no residual
    TR = N if N <= _DEF["tm"] else _DEF["tm"]
    return pl.pallas_call(
        functools.partial(_outproj_res_ln_kernel, eps=eps),
        out_shape=jax.ShapeDtypeStruct((B, N, Nout), F32),
        grid_spec=pltpu.PrefetchScalarGridSpec(
            num_scalar_prefetch=0,
            grid=(B, pl.cdiv(N, TR)),
            in_specs=[pl.BlockSpec((1, TR, C), lambda bb, i: (bb, i, 0)),
                      pl.BlockSpec((1, TR, Nout), lambda bb, i: (bb, i, 0)),
                      pl.BlockSpec((C, Nout), lambda bb, i: (0, 0)),
                      pl.BlockSpec((1, Nout), lambda bb, i: (0, 0)),
                      pl.BlockSpec((1, Nout), lambda bb, i: (0, 0)),
                      pl.BlockSpec((1, Nout), lambda bb, i: (0, 0))],
            out_specs=pl.BlockSpec((1, TR, Nout), lambda bb, i: (bb, i, 0))),
        compiler_params=_cparams(2),
    )(x, res, w, b.reshape(1, Nout).astype(F32),
      gamma.reshape(1, Nout).astype(F32), beta.reshape(1, Nout).astype(F32))


def _mlp_res_ln_kernel(x_ref, w1_ref, b1_ref, w2_ref, b2_ref, g_ref, beta_ref, o_ref, *, eps):
    x = x_ref[0].astype(F32)
    h = jnp.dot(x.astype(BF16), w1_ref[...].astype(BF16),
                preferred_element_type=F32) + b1_ref[...]
    h = jnp.maximum(h, 0.0)                                   # ReLU in f32
    y = jnp.dot(h.astype(BF16), w2_ref[...].astype(BF16),
                preferred_element_type=F32) + b2_ref[...]
    y = y + x
    m = jnp.mean(y, axis=-1, keepdims=True)
    v = jnp.mean(jnp.square(y - m), axis=-1, keepdims=True)
    o_ref[0] = ((y - m) * jax.lax.rsqrt(v + eps) * g_ref[...] + beta_ref[...]).astype(o_ref.dtype)


def pallas_mlp_res_ln(x, w1, b1, w2, b2, gamma, beta, eps=_EPS):
    """Fused transformer-block MLP: LayerNorm(x + relu(x@w1+b1)@w2 + b2)."""
    B, N, C = x.shape
    H = w1.shape[1]
    TR = N if N <= _DEF["tm"] else _DEF["tm"]
    return pl.pallas_call(
        functools.partial(_mlp_res_ln_kernel, eps=eps),
        out_shape=jax.ShapeDtypeStruct((B, N, C), F32),
        grid_spec=pltpu.PrefetchScalarGridSpec(
            num_scalar_prefetch=0,
            grid=(B, pl.cdiv(N, TR)),
            in_specs=[pl.BlockSpec((1, TR, C), lambda bb, i: (bb, i, 0)),
                      pl.BlockSpec((C, H), lambda bb, i: (0, 0)),
                      pl.BlockSpec((1, H), lambda bb, i: (0, 0)),
                      pl.BlockSpec((H, C), lambda bb, i: (0, 0)),
                      pl.BlockSpec((1, C), lambda bb, i: (0, 0)),
                      pl.BlockSpec((1, C), lambda bb, i: (0, 0)),
                      pl.BlockSpec((1, C), lambda bb, i: (0, 0))],
            out_specs=pl.BlockSpec((1, TR, C), lambda bb, i: (bb, i, 0))),
        compiler_params=_cparams(2),
    )(x, w1, b1.reshape(1, H).astype(F32), w2, b2.reshape(1, C).astype(F32),
      gamma.reshape(1, C).astype(F32), beta.reshape(1, C).astype(F32))


def _add_act_kernel(x_ref, s_ref, g_ref, beta_ref, o_ref, *, use_ln, eps):
    y = x_ref[...].astype(F32) + s_ref[...].astype(F32)
    if use_ln:
        m = jnp.mean(y, axis=-1, keepdims=True)
        v = jnp.mean(jnp.square(y - m), axis=-1, keepdims=True)
        y = (y - m) * jax.lax.rsqrt(v + eps) * g_ref[...] + beta_ref[...]
    o_ref[...] = jax.nn.gelu(y).astype(o_ref.dtype)


def pallas_add_act(x, skip, gamma=None, beta=None, use_ln=False, eps=_EPS, out_dtype=BF16):
    """Fused (x + skip) [-> LayerNorm] -> GELU on the mask-upscaling path."""
    shp = x.shape
    Cc = shp[-1]
    M = int(np.prod(shp[:-1]))
    TM = M if M <= _DEF["tm"] else _DEF["tm"]
    if gamma is None:
        gamma = jnp.ones((Cc,), F32)
        beta = jnp.zeros((Cc,), F32)
    out = pl.pallas_call(
        functools.partial(_add_act_kernel, use_ln=use_ln, eps=eps),
        out_shape=jax.ShapeDtypeStruct((M, Cc), out_dtype),
        grid_spec=pltpu.PrefetchScalarGridSpec(
            num_scalar_prefetch=0,
            grid=(pl.cdiv(M, TM),),
            in_specs=[pl.BlockSpec((TM, Cc), lambda i: (i, 0)),
                      pl.BlockSpec((TM, Cc), lambda i: (i, 0)),
                      pl.BlockSpec((1, Cc), lambda i: (0, 0)),
                      pl.BlockSpec((1, Cc), lambda i: (0, 0))],
            out_specs=pl.BlockSpec((TM, Cc), lambda i: (i, 0))),
        compiler_params=_cparams(1),
    )(x.reshape(M, Cc), skip.reshape(M, Cc),
      gamma.reshape(1, Cc).astype(F32), beta.reshape(1, Cc).astype(F32))
    return out.reshape(shp)


def _mask_product_kernel(a_ref, b_ref, o_ref):
    o_ref[...] = jax.lax.dot_general(
        a_ref[...].astype(BF16), b_ref[...].astype(BF16),
        (((2,), (2,)), ((0,), (0,))),
        preferred_element_type=F32)


def pallas_mask_product(hyper_in, up_flat):
    """hyper_in: (B, M, C//8)  x  up_flat: (B, Hm*Wm, C//8) -> (B, M, Hm*Wm).
    Contracts on the shared last dim (no HBM transpose of the upscaled embedding)
    with lane-dense output tiles along the spatial axis."""
    B, Mt, C8 = hyper_in.shape
    N = up_flat.shape[1]
    TN = N if N <= _DEF["tn"] else _DEF["tn"]
    return pl.pallas_call(
        _mask_product_kernel,
        out_shape=jax.ShapeDtypeStruct((B, Mt, N), F32),
        grid_spec=pltpu.PrefetchScalarGridSpec(
            num_scalar_prefetch=0,
            grid=(pl.cdiv(N, TN),),
            in_specs=[pl.BlockSpec((B, Mt, C8), lambda i: (0, 0, 0)),
                      pl.BlockSpec((B, TN, C8), lambda i: (0, i, 0))],
            out_specs=pl.BlockSpec((B, Mt, TN), lambda i: (0, 0, i))),
        compiler_params=_cparams(1),
    )(hyper_in, up_flat)


# ------------------------------ JAX glue ops --------------------------------

def layer_norm_affine(x, g, b, eps=_EPS):
    m = jnp.mean(x, axis=-1, keepdims=True)
    v = jnp.mean(jnp.square(x - m), axis=-1, keepdims=True)
    return (x - m) * jax.lax.rsqrt(v + eps) * g + b


def get_dense_pe(pe_gauss, Hf, Wf):
    ys = (jnp.arange(Hf, dtype=F32) + 0.5) / Hf
    xs = (jnp.arange(Wf, dtype=F32) + 0.5) / Wf
    gy, gx = jnp.meshgrid(ys, xs, indexing='ij')
    coords = 2.0 * jnp.stack([gx, gy], axis=-1) - 1.0           # (Hf, Wf, 2)
    proj = 2.0 * jnp.pi * (coords @ pe_gauss)                   # (Hf, Wf, C//2)
    return jnp.concatenate([jnp.sin(proj), jnp.cos(proj)], axis=-1)


def conv2x2_s2_jax(x, w, b):
    """2x2 stride-2 conv as patchify + matmul (plain XLA: 4/16 output channels are
    far below the 128-lane tile, so a Pallas kernel would be padding-dominated)."""
    B, H, W, Cin = x.shape
    xp = x.reshape(B, H // 2, 2, W // 2, 2, Cin).transpose(0, 1, 3, 2, 4, 5)
    xp = xp.reshape(B, H // 2, W // 2, 4 * Cin)
    return jnp.dot(xp, w) + b


def conv_transpose_2x(x, w, b):
    """2x2 stride-2 transposed conv: Pallas matmul (bf16 out) + pixel shuffle."""
    B, H, W, Cin = x.shape
    Cout = w.shape[1] // 4
    y = pallas_linear(x, w, b, out_dtype=BF16)                  # (B, H, W, 2*2*Cout)
    y = y.reshape(B, H, W, 2, 2, Cout).transpose(0, 1, 3, 2, 4, 5)
    return y.reshape(B, 2 * H, 2 * W, Cout)


def hyper_mlps(x, hw):
    """Batched per-mask-token hypernetwork MLPs (tiny (B, M, C) operands: XLA)."""
    h = jnp.einsum('bmc,mcd->bmd', x, hw['w1']) + hw['b1'][None]
    h = jnp.maximum(h, 0.0)
    h = jnp.einsum('bmc,mcd->bmd', h, hw['w2']) + hw['b2'][None]
    h = jnp.maximum(h, 0.0)
    return jnp.einsum('bmc,mcd->bmd', h, hw['w3']) + hw['b3'][None]


# --------------------------- TwoWayTransformer -------------------------------

def _mha(p, q, k, v, residual, norm, num_heads):
    d = q.shape[-1] // num_heads
    o = pallas_attention(q, k, v, num_heads, 1.0 / math.sqrt(d))
    return pallas_outproj_res_ln(o, residual, p['wo'], p['bo'], norm['g'], norm['b'])


def two_way_block(p, queries, keys, query_pe, key_pe, num_heads, skip_first_layer_pe):
    C = queries.shape[-1]
    sa = p['self_attn']
    if skip_first_layer_pe:
        # q = k = v = queries, no PE, no residual: one fused QKV matmul.
        qkv = pallas_linear(queries,
                            jnp.concatenate([sa['wq'], sa['wk'], sa['wv']], axis=1),
                            jnp.concatenate([sa['bq'], sa['bk'], sa['bv']], axis=0),
                            out_dtype=BF16)
        q, k, v = qkv[..., :C], qkv[..., C:2 * C], qkv[..., 2 * C:]
        queries = _mha(sa, q, k, v, None, p['norm1'], num_heads)
    else:
        # q = k = queries + query_pe, v = queries: fused dual projection.
        qk, v = pallas_dual_proj(queries, query_pe,
                                 jnp.concatenate([sa['wq'], sa['wk']], axis=1),
                                 jnp.concatenate([sa['bq'], sa['bk']], axis=0),
                                 sa['wv'], sa['bv'])
        q, k = qk[..., :C], qk[..., C:]
        queries = _mha(sa, q, k, v, queries, p['norm1'], num_heads)

    # Cross attention: tokens -> image.  K/V of the image activation share one
    # fused kernel; the dense PE is added to the K half in-kernel (one HBM read).
    ca = p['cross_t2i']
    q = pallas_linear_pe(queries, query_pe, ca['wq'], ca['bq'])
    k, v = pallas_dual_proj(keys, key_pe, ca['wk'], ca['bk'], ca['wv'], ca['bv'])
    queries = _mha(ca, q, k, v, queries, p['norm2'], num_heads)

    # MLP block (fused linear -> ReLU -> linear -> +residual -> LayerNorm).
    mlp = p['mlp']
    queries = pallas_mlp_res_ln(queries, mlp['w1'], mlp['b1'], mlp['w2'], mlp['b2'],
                                p['norm3']['g'], p['norm3']['b'])

    # Cross attention: image -> tokens.  Image-side Q projection fuses the PE add.
    ci = p['cross_i2t']
    q_img = pallas_linear_pe(keys, key_pe, ci['wq'], ci['bq'])
    k_tok, v_tok = pallas_dual_proj(queries, query_pe, ci['wk'], ci['bk'],
                                    ci['wv'], ci['bv'])
    keys = _mha(ci, q_img, k_tok, v_tok, keys, p['norm4'], num_heads)
    return queries, keys


# --------------------------- PromptEncoder ----------------------------------

def prompt_encoder(p, text_emb, masks, sam_tokens_out, batch, Hf, Wf, C):
    # TODO(synk): the original PromptEncoder signature for (text_emb, masks,
    # sam_tokens_out) is not given; text / sam tokens are treated as sparse
    # prompt embeddings and fed-back masks go through a 4x mask-downscaling stack.
    parts = []
    if text_emb is not None:
        parts.append(text_emb.astype(F32))
    if sam_tokens_out is not None:
        parts.append(sam_tokens_out.astype(F32))
    if not parts:
        parts.append(jnp.broadcast_to(p['not_a_point_embed'][None], (batch, 1, C)))
    sparse = jnp.concatenate(parts, axis=1)

    if masks is None:
        dense = jnp.broadcast_to(p['no_mask_embed'][None, None, None, :], (batch, Hf, Wf, C))
    else:
        m = jnp.transpose(masks, (0, 2, 3, 1))                  # NCHW -> NHWC
        h = jax.nn.gelu(layer_norm_affine(conv2x2_s2_jax(m, p['mdw1'], p['mdb1']),
                                          p['ln1_g'], p['ln1_b']))
        h = jax.nn.gelu(layer_norm_affine(conv2x2_s2_jax(h, p['mdw2'], p['mdb2']),
                                          p['ln2_g'], p['ln2_b']))
        dense = jnp.dot(h, p['mdw3']) + p['mdb3']               # (B, Hf, Wf, C)
    return sparse, dense


# --------------------------- MaskDecoder_SAM2 --------------------------------

def mask_decoder(p, image_embedding, image_pe, sparse_prompt, dense_prompt,
                 high_res_features, num_heads, num_mask_tokens):
    B, Hf, Wf, C = image_embedding.shape
    N = Hf * Wf
    # TODO(synk): exact use of text_embedding inside MaskDecoder_SAM2 is not
    # specified in the reference snippet; text enters via the sparse prompts.

    output_tokens = jnp.concatenate([p['iou_token'], p['mask_tokens']], axis=0)
    output_tokens = jnp.broadcast_to(output_tokens[None], (B,) + output_tokens.shape)
    tokens = jnp.concatenate([output_tokens, sparse_prompt], axis=1)      # (B, Nt, C)

    src = (image_embedding + dense_prompt).reshape(B, N, C)
    key_pe = image_pe.reshape(1, N, C)       # never broadcast-materialized: fused
                                             # projection kernels index batch 0.
    queries, keys = tokens, src
    for i, lp in enumerate(p['layers']):
        queries, keys = two_way_block(lp, queries, keys, tokens, key_pe,
                                      num_heads, skip_first_layer_pe=(i == 0))

    # Final token -> image attention (fused projections + fused out-proj/LN).
    fa = p['final_attn']
    q = pallas_linear_pe(queries, tokens, fa['wq'], fa['bq'])
    k, v = pallas_dual_proj(keys, key_pe, fa['wk'], fa['bk'], fa['wv'], fa['bv'])
    queries = _mha(fa, q, k, v, queries, p['norm_final'], num_heads)

    mask_tokens_out = queries[:, 1:1 + num_mask_tokens, :]
    # TODO(synk): IoU prediction head omitted -- unused by DCF_SAM.forward.

    # Output upscaling with high-res skip features; skip-add / LayerNorm / GELU
    # are fused Pallas epilogues instead of separate XLA passes.
    src_img = keys.reshape(B, Hf, Wf, C)
    feat_s0, feat_s1 = high_res_features
    up = conv_transpose_2x(src_img, p['up1_w'], p['up1_b'])               # (B,2Hf,2Wf,C/4)
    up = pallas_add_act(up, feat_s1, p['up_ln_g'], p['up_ln_b'], use_ln=True)
    up = conv_transpose_2x(up, p['up2_w'], p['up2_b'])                    # (B,4Hf,4Wf,C/8)
    up = pallas_add_act(up, feat_s0, use_ln=False)

    hyper_in = hyper_mlps(mask_tokens_out, p['hyper'])                    # (B, M, C//8)
    Hm, Wm = 4 * Hf, 4 * Wf
    up_flat = up.reshape(B, Hm * Wm, C // 8)                              # bf16, no transpose
    masks = pallas_mask_product(hyper_in, up_flat).reshape(B, num_mask_tokens, Hm, Wm)
    return masks, mask_tokens_out


# ------------------------------ DCF_SAM.forward ------------------------------

def dcf_sam_forward(params, image_features, text_emb, *, pass_num, num_heads, num_mask_tokens):
    image_embedding = image_features[-1]
    high_res_features = [image_features[0], image_features[2]]
    B, Hf, Wf, C = image_embedding.shape
    # Dense sin/cos positional encoding computed once and shared by the rough
    # pass and every refine pass (depends only on pe_gauss / Hf / Wf).
    image_pe = get_dense_pe(params['pe']['pe_gauss'], Hf, Wf)

    # rough_decoder
    sparse, dense = prompt_encoder(params['pe'], text_emb, None, None, B, Hf, Wf, C)
    logits, sam_tokens_out = mask_decoder(params['md'], image_embedding, image_pe,
                                          sparse, dense, high_res_features,
                                          num_heads, num_mask_tokens)
    # refine_decoder passes
    for _ in range(pass_num):
        sparse, dense = prompt_encoder(params['pe'], text_emb, jax.nn.sigmoid(logits),
                                       sam_tokens_out, B, Hf, Wf, C)
        logits, sam_tokens_out = mask_decoder(params['md'], image_embedding, image_pe,
                                              sparse, dense, high_res_features,
                                              num_heads, num_mask_tokens)
    return logits


# ------------------------------ param init -----------------------------------

def _dense(key, fan_in, fan_out, scale=0.02):
    w = scale * jax.random.normal(key, (fan_in, fan_out), dtype=F32)
    b = jnp.zeros((fan_out,), dtype=F32)
    return w, b


def _attn_params(key, C):
    k = jax.random.split(key, 4)
    wq, bq = _dense(k[0], C, C)
    wk, bk = _dense(k[1], C, C)
    wv, bv = _dense(k[2], C, C)
    wo, bo = _dense(k[3], C, C)
    return dict(wq=wq, bq=bq, wk=wk, bk=bk, wv=wv, bv=bv, wo=wo, bo=bo)


def _norm_params(C):
    return dict(g=jnp.ones((C,), F32), b=jnp.zeros((C,), F32))


def init_params(key, C, mlp_dim, depth, num_mask_tokens):
    keys = iter(jax.random.split(key, 128))
    nk = lambda: next(keys)

    # prompt encoder
    mask_chans_in = num_mask_tokens      # sigmoid(logits) fed back: one channel per mask
    h1, h2 = 4, 16
    mdw1, mdb1 = _dense(nk(), 4 * mask_chans_in, h1)
    mdw2, mdb2 = _dense(nk(), 4 * h1, h2)
    mdw3, mdb3 = _dense(nk(), h2, C)
    pe = dict(
        pe_gauss=jax.random.normal(nk(), (2, C // 2), dtype=F32),
        no_mask_embed=0.02 * jax.random.normal(nk(), (C,), dtype=F32),
        not_a_point_embed=0.02 * jax.random.normal(nk(), (1, C), dtype=F32),
        mdw1=mdw1, mdb1=mdb1, mdw2=mdw2, mdb2=mdb2, mdw3=mdw3, mdb3=mdb3,
        ln1_g=jnp.ones((h1,), F32), ln1_b=jnp.zeros((h1,), F32),
        ln2_g=jnp.ones((h2,), F32), ln2_b=jnp.zeros((h2,), F32),
    )

    # mask decoder / two-way transformer
    layers = []
    for _ in range(depth):
        w1, b1 = _dense(nk(), C, mlp_dim)
        w2, b2 = _dense(nk(), mlp_dim, C)
        layers.append(dict(self_attn=_attn_params(nk(), C),
                           cross_t2i=_attn_params(nk(), C),
                           mlp=dict(w1=w1, b1=b1, w2=w2, b2=b2),
                           cross_i2t=_attn_params(nk(), C),
                           norm1=_norm_params(C), norm2=_norm_params(C),
                           norm3=_norm_params(C), norm4=_norm_params(C)))
    hyper = dict(
        w1=0.02 * jax.random.normal(nk(), (num_mask_tokens, C, C), dtype=F32),
        b1=jnp.zeros((num_mask_tokens, C), dtype=F32),
        w2=0.02 * jax.random.normal(nk(), (num_mask_tokens, C, C), dtype=F32),
        b2=jnp.zeros((num_mask_tokens, C), dtype=F32),
        w3=0.02 * jax.random.normal(nk(), (num_mask_tokens, C, C // 8), dtype=F32),
        b3=jnp.zeros((num_mask_tokens, C // 8), dtype=F32),
    )
    up1_w, up1_b = _dense(nk(), C, 4 * (C // 4))
    up2_w, up2_b = _dense(nk(), C // 4, 4 * (C // 8))
    md = dict(
        iou_token=0.02 * jax.random.normal(nk(), (1, C), dtype=F32),
        mask_tokens=0.02 * jax.random.normal(nk(), (num_mask_tokens, C), dtype=F32),
        layers=layers,
        final_attn=_attn_params(nk(), C),
        norm_final=_norm_params(C),
        up1_w=up1_w, up1_b=up1_b, up2_w=up2_w, up2_b=up2_b,
        up_ln_g=jnp.ones((C // 4,), F32), up_ln_b=jnp.zeros((C // 4,), F32),
        hyper=hyper,
    )
    return dict(pe=pe, md=md)


# --------------------------------- driver ------------------------------------

if __name__ == "__main__":
    key = jax.random.PRNGKey(0)
    k_par, k_in = jax.random.split(key)

    # small, forward-consistent shapes (scaled down from embed_dim=768 etc.)
    B = 2
    C = 32                 # embed_dim
    num_heads = 4
    mlp_dim = 64
    depth = 2              # transformer_depth
    num_mask_tokens = 4    # num_multimask_outputs + 1
    Hf, Wf = 4, 4          # feature grid
    pass_num = 1

    params = init_params(k_par, C, mlp_dim, depth, num_mask_tokens)

    k1, k2, k3, k4, k5 = jax.random.split(k_in, 5)
    feat_s0 = jax.random.normal(k1, (B, 4 * Hf, 4 * Wf, C // 8), dtype=F32)   # high-res skip 0
    feat_mid = jax.random.normal(k2, (B, 2 * Hf, 2 * Wf, C // 4), dtype=F32)  # unused (index 1)
    feat_s1 = jax.random.normal(k3, (B, 2 * Hf, 2 * Wf, C // 4), dtype=F32)   # high-res skip 1
    image_embedding = jax.random.normal(k4, (B, Hf, Wf, C), dtype=F32)        # image_features[-1]
    text_emb = jax.random.normal(k5, (B, 1, C), dtype=F32)
    image_features = [feat_s0, feat_mid, feat_s1, image_embedding]

    fwd = jax.jit(functools.partial(dcf_sam_forward,
                                    pass_num=pass_num,
                                    num_heads=num_heads,
                                    num_mask_tokens=num_mask_tokens))
    logits = fwd(params, image_features, text_emb)
    jax.block_until_ready(logits)
    assert logits.shape == (B, num_mask_tokens, 4 * Hf, 4 * Wf)
    assert bool(jnp.all(jnp.isfinite(logits)))
    print("KERNEL_OK")
</pallas_src>

<mosaic_0001>
module attributes {stable_mosaic.version = 11 : i64} {
  func.func @_linear_kernel(%arg0: i32, %arg1: memref<12x32xf32, #tpu.memory_space<vmem>>, %arg2: memref<32x96xf32, #tpu.memory_space<vmem>>, %arg3: memref<1x96xf32, #tpu.memory_space<vmem>>, %arg4: memref<12x96xbf16, #tpu.memory_space<vmem>>) attributes {dimension_semantics = [#tpu.dimension_semantics<parallel>], iteration_bounds = array<i64: 1>, scalar_prefetch = 0 : i64, scratch_operands = 0 : i64, tpu.core_type = #tpu.core_type<tc>, window_params = [{transform_indices = @transform_0, window_bounds = array<i64: 12, 32>}, {pipeline_mode = #tpu.pipeline_mode<synchronous>, transform_indices = @transform_1, window_bounds = array<i64: 32, 96>}, {pipeline_mode = #tpu.pipeline_mode<synchronous>, transform_indices = @transform_2, window_bounds = array<i64: 1, 96>}, {transform_indices = @transform_3, window_bounds = array<i64: 12, 96>}]} {
    %c0 = arith.constant 0 : index
    %c0_0 = arith.constant 0 : index
    %0 = vector.load %arg1[%c0, %c0_0] : memref<12x32xf32, #tpu.memory_space<vmem>>, vector<12x32xf32>
    %1 = arith.truncf %0 : vector<12x32xf32> to vector<12x32xbf16>
    %c0_1 = arith.constant 0 : index
    %c0_2 = arith.constant 0 : index
    %2 = vector.load %arg2[%c0_1, %c0_2] : memref<32x96xf32, #tpu.memory_space<vmem>>, vector<32x96xf32>
    %3 = arith.truncf %2 : vector<32x96xf32> to vector<32x96xbf16>
    %cst = arith.constant dense<0.000000e+00> : vector<12x96xf32>
    %4 = tpu.matmul %1, %3, %cst {dimension_numbers = #tpu.dot_dimension_numbers<[1], [0], [0], [1], [0, 0, 1, 1], [], []>} : vector<12x32xbf16>, vector<32x96xbf16>, vector<12x96xf32> -> vector<12x96xf32>
    %c0_3 = arith.constant 0 : index
    %c0_4 = arith.constant 0 : index
    %5 = vector.load %arg3[%c0_3, %c0_4] : memref<1x96xf32, #tpu.memory_space<vmem>>, vector<1x96xf32>
    %6 = vector.broadcast %5 : vector<1x96xf32> to vector<12x96xf32>
    %7 = arith.addf %4, %6 : vector<12x96xf32>
    %8 = arith.truncf %7 : vector<12x96xf32> to vector<12x96xbf16>
    %c0_5 = arith.constant 0 : index
    %c0_6 = arith.constant 0 : index
    %9 = vector.load %arg4[%c0_5, %c0_6] : memref<12x96xbf16, #tpu.memory_space<vmem>>, vector<12x96xbf16>
    tpu.vector_store %arg4[%c0_5, %c0_6], %8 {strides = array<i32>} : memref<12x96xbf16, #tpu.memory_space<vmem>>, vector<12x96xbf16>,
    return
  }
  func.func @transform_0(%arg0: i32) -> (i32, i32) {
    %c0_i32 = arith.constant 0 : i32
    %c0_i32_0 = arith.constant 0 : i32
    return %arg0, %c0_i32 : i32, i32
  }
  func.func @transform_1(%arg0: i32) -> (i32, i32) {
    %c0_i32 = arith.constant 0 : i32
    %c0_i32_0 = arith.constant 0 : i32
    %c0_i32_1 = arith.constant 0 : i32
    return %c0_i32, %c0_i32_0 : i32, i32
  }
  func.func @transform_2(%arg0: i32) -> (i32, i32) {
    %c0_i32 = arith.constant 0 : i32
    %c0_i32_0 = arith.constant 0 : i32
    %c0_i32_1 = arith.constant 0 : i32
    return %c0_i32, %c0_i32_0 : i32, i32
  }
  func.func @transform_3(%arg0: i32) -> (i32, i32) {
    %c0_i32 = arith.constant 0 : i32
    %c0_i32_0 = arith.constant 0 : i32
    return %arg0, %c0_i32 : i32, i32
  }
}

module attributes {stable_mosaic.version = 11 : i64} {
  func.func @_attn_kernel(%arg0: i32, %arg1: i32, %arg2: memref<1x6x32xbf16, #tpu.memory_space<vmem>>, %arg3: memref<1x6x32xbf16, #tpu.memory_space<vmem>>, %arg4: memref<1x6x32xbf16, #tpu.memory_space<vmem>>, %arg5: memref<1x6x32xbf16, #tpu.memory_space<vmem>>) attributes {dimension_semantics = [#tpu.dimension_semantics<parallel>, #tpu.dimension_semantics<parallel>], iteration_bounds = array<i64: 2, 1>, scalar_prefetch = 0 : i64, scratch_operands = 0 : i64, tpu.core_type = #tpu.core_type<tc>, window_params = [{transform_indices = @transform_0, window_bounds = array<i64: 1, 6, 32>}, {transform_indices = @transform_1, window_bounds = array<i64: 1, 6, 32>}, {transform_indices = @transform_2, window_bounds = array<i64: 1, 6, 32>}, {transform_indices = @transform_3, window_bounds = array<i64: 1, 6, 32>}]} {
    %c0 = arith.constant 0 : index
    %c0_0 = arith.constant 0 : index
    %c0_1 = arith.constant 0 : index
    %0 = vector.load %arg2[%c0, %c0_0, %c0_1] : memref<1x6x32xbf16, #tpu.memory_space<vmem>>, vector<1x6x32xbf16>
    %1 = vector.shape_cast %0 : vector<1x6x32xbf16> to vector<6x32xbf16>
    %c0_2 = arith.constant 0 : index
    %c0_3 = arith.constant 0 : index
    %c0_4 = arith.constant 0 : index
    %2 = vector.load %arg3[%c0_2, %c0_3, %c0_4] : memref<1x6x32xbf16, #tpu.memory_space<vmem>>, vector<1x6x32xbf16>
    %3 = vector.shape_cast %2 : vector<1x6x32xbf16> to vector<6x32xbf16>
    %c0_5 = arith.constant 0 : index
    %c0_6 = arith.constant 0 : index
    %c0_7 = arith.constant 0 : index
    %4 = vector.load %arg4[%c0_5, %c0_6, %c0_7] : memref<1x6x32xbf16, #tpu.memory_space<vmem>>, vector<1x6x32xbf16>
    %5 = vector.shape_cast %4 : vector<1x6x32xbf16> to vector<6x32xbf16>
    %6 = vector.extract_strided_slice %1 {offsets = [0, 0], sizes = [6, 8], strides = [1, 1]} : vector<6x32xbf16> to vector<6x8xbf16>
    %7 = vector.extract_strided_slice %3 {offsets = [0, 0], sizes = [6, 8], strides = [1, 1]} : vector<6x32xbf16> to vector<6x8xbf16>
    %8 = vector.extract_strided_slice %5 {offsets = [0, 0], sizes = [6, 8], strides = [1, 1]} : vector<6x32xbf16> to vector<6x8xbf16>
    %cst = arith.constant dense<0.000000e+00> : vector<6x6xf32>
    %9 = tpu.matmul %6, %7, %cst {dimension_numbers = #tpu.dot_dimension_numbers<[1], [1], [0], [0], [0, 0, 1, 0], [], []>} : vector<6x8xbf16>, vector<6x8xbf16>, vector<6x6xf32> -> vector<6x6xf32>
    %cst_8 = arith.constant 0.353553385 : f32
    %10 = vector.broadcast %cst_8 : f32 to vector<6x6xf32>
    %11 = arith.mulf %9, %10 : vector<6x6xf32>
    %cst_9 = arith.constant dense<0xFF800000> : vector<6xf32>
    %12 = vector.multi_reduction <maximumf>, %11, %cst_9 [1] : vector<6x6xf32> to vector<6xf32>
    %13 = vector.shape_cast %12 : vector<6xf32> to vector<6x1xf32>
    %14 = vector.broadcast %13 : vector<6x1xf32> to vector<6x6xf32>
    %15 = arith.subf %11, %14 : vector<6x6xf32>
    %16 = math.exp %15 : vector<6x6xf32>
    %cst_10 = arith.constant dense<0.000000e+00> : vector<6xf32>
    %17 = vector.multi_reduction <add>, %16, %cst_10 [1] : vector<6x6xf32> to vector<6xf32>
    %18 = vector.shape_cast %17 : vector<6xf32> to vector<6x1xf32>
    %19 = tpu.reciprocal %18 {approx = true} : vector<6x1xf32> -> vector<6x1xf32>
    %20 = vector.broadcast %19 : vector<6x1xf32> to vector<6x6xf32>
    %21 = arith.mulf %16, %20 : vector<6x6xf32>
    %22 = arith.truncf %21 : vector<6x6xf32> to vector<6x6xbf16>
    %cst_11 = arith.constant dense<0.000000e+00> : vector<6x8xf32>
    %23 = tpu.matmul %22, %8, %cst_11 {dimension_numbers = #tpu.dot_dimension_numbers<[1], [0], [0], [1], [0, 0, 1, 1], [], []>} : vector<6x6xbf16>, vector<6x8xbf16>, vector<6x8xf32> -> vector<6x8xf32>
    %24 = vector.extract_strided_slice %1 {offsets = [0, 8], sizes = [6, 8], strides = [1, 1]} : vector<6x32xbf16> to vector<6x8xbf16>
    %25 = vector.extract_strided_slice %3 {offsets = [0, 8], sizes = [6, 8], strides = [1, 1]} : vector<6x32xbf16> to vector<6x8xbf16>
    %26 = vector.extract_strided_slice %5 {offsets = [0, 8], sizes = [6, 8], strides = [1, 1]} : vector<6x32xbf16> to vector<6x8xbf16>
    %cst_12 = arith.constant dense<0.000000e+00> : vector<6x6xf32>
    %27 = tpu.matmul %24, %25, %cst_12 {dimension_numbers = #tpu.dot_dimension_numbers<[1], [1], [0], [0], [0, 0, 1, 0], [], []>} : vector<6x8xbf16>, vector<6x8xbf16>, vector<6x6xf32> -> vector<6x6xf32>
    %cst_13 = arith.constant 0.353553385 : f32
    %28 = vector.broadcast %cst_13 : f32 to vector<6x6xf32>
    %29 = arith.mulf %27, %28 : vector<6x6xf32>
    %cst_14 = arith.constant dense<0xFF800000> : vector<6xf32>
    %30 = vector.multi_reduction <maximumf>, %29, %cst_14 [1] : vector<6x6xf32> to vector<6xf32>
    %31 = vector.shape_cast %30 : vector<6xf32> to vector<6x1xf32>
    %32 = vector.broadcast %31 : vector<6x1xf32> to vector<6x6xf32>
    %33 = arith.subf %29, %32 : vector<6x6xf32>
    %34 = math.exp %33 : vector<6x6xf32>
    %cst_15 = arith.constant dense<0.000000e+00> : vector<6xf32>
    %35 = vector.multi_reduction <add>, %34, %cst_15 [1] : vector<6x6xf32> to vector<6xf32>
    %36 = vector.shape_cast %35 : vector<6xf32> to vector<6x1xf32>
    %37 = tpu.reciprocal %36 {approx = true} : vector<6x1xf32> -> vector<6x1xf32>
    %38 = vector.broadcast %37 : vector<6x1xf32> to vector<6x6xf32>
    %39 = arith.mulf %34, %38 : vector<6x6xf32>
    %40 = arith.truncf %39 : vector<6x6xf32> to vector<6x6xbf16>
    %cst_16 = arith.constant dense<0.000000e+00> : vector<6x8xf32>
    %41 = tpu.matmul %40, %26, %cst_16 {dimension_numbers = #tpu.dot_dimension_numbers<[1], [0], [0], [1], [0, 0, 1, 1], [], []>} : vector<6x6xbf16>, vector<6x8xbf16>, vector<6x8xf32> -> vector<6x8xf32>
    %42 = vector.extract_strided_slice %1 {offsets = [0, 16], sizes = [6, 8], strides = [1, 1]} : vector<6x32xbf16> to vector<6x8xbf16>
    %43 = vector.extract_strided_slice %3 {offsets = [0, 16], sizes = [6, 8], strides = [1, 1]} : vector<6x32xbf16> to vector<6x8xbf16>
    %44 = vector.extract_strided_slice %5 {offsets = [0, 16], sizes = [6, 8], strides = [1, 1]} : vector<6x32xbf16> to vector<6x8xbf16>
    %cst_17 = arith.constant dense<0.000000e+00> : vector<6x6xf32>
    %45 = tpu.matmul %42, %43, %cst_17 {dimension_numbers = #tpu.dot_dimension_numbers<[1], [1], [0], [0], [0, 0, 1, 0], [], []>} : vector<6x8xbf16>, vector<6x8xbf16>, vector<6x6xf32> -> vector<6x6xf32>
    %cst_18 = arith.constant 0.353553385 : f32
    %46 = vector.broadcast %cst_18 : f32 to vector<6x6xf32>
    %47 = arith.mulf %45, %46 : vector<6x6xf32>
    %cst_19 = arith.constant dense<0xFF800000> : vector<6xf32>
    %48 = vector.multi_reduction <maximumf>, %47, %cst_19 [1] : vector<6x6xf32> to vector<6xf32>
    %49 = vector.shape_cast %48 : vector<6xf32> to vector<6x1xf32>
    %50 = vector.broadcast %49 : vector<6x1xf32> to vector<6x6xf32>
    %51 = arith.subf %47, %50 : vector<6x6xf32>
    %52 = math.exp %51 : vector<6x6xf32>
    %cst_20 = arith.constant dense<0.000000e+00> : vector<6xf32>
    %53 = vector.multi_reduction <add>, %52, %cst_20 [1] : vector<6x6xf32> to vector<6xf32>
    %54 = vector.shape_cast %53 : vector<6xf32> to vector<6x1xf32>
    %55 = tpu.reciprocal %54 {approx = true} : vector<6x1xf32> -> vector<6x1xf32>
    %56 = vector.broadcast %55 : vector<6x1xf32> to vector<6x6xf32>
    %57 = arith.mulf %52, %56 : vector<6x6xf32>
    %58 = arith.truncf %57 : vector<6x6xf32> to vector<6x6xbf16>
    %cst_21 = arith.constant dense<0.000000e+00> : vector<6x8xf32>
    %59 = tpu.matmul %58, %44, %cst_21 {dimension_numbers = #tpu.dot_dimension_numbers<[1], [0], [0], [1], [0, 0, 1, 1], [], []>} : vector<6x6xbf16>, vector<6x8xbf16>, vector<6x8xf32> -> vector<6x8xf32>
    %60 = vector.extract_strided_slice %1 {offsets = [0, 24], sizes = [6, 8], strides = [1, 1]} : vector<6x32xbf16> to vector<6x8xbf16>
    %61 = vector.extract_strided_slice %3 {offsets = [0, 24], sizes = [6, 8], strides = [1, 1]} : vector<6x32xbf16> to vector<6x8xbf16>
    %62 = vector.extract_strided_slice %5 {offsets = [0, 24], sizes = [6, 8], strides = [1, 1]} : vector<6x32xbf16> to vector<6x8xbf16>
    %cst_22 = arith.constant dense<0.000000e+00> : vector<6x6xf32>
    %63 = tpu.matmul %60, %61, %cst_22 {dimension_numbers = #tpu.dot_dimension_numbers<[1], [1], [0], [0], [0, 0, 1, 0], [], []>} : vector<6x8xbf16>, vector<6x8xbf16>, vector<6x6xf32> -> vector<6x6xf32>
    %cst_23 = arith.constant 0.353553385 : f32
    %64 = vector.broadcast %cst_23 : f32 to vector<6x6xf32>
    %65 = arith.mulf %63, %64 : vector<6x6xf32>
    %cst_24 = arith.constant dense<0xFF800000> : vector<6xf32>
    %66 = vector.multi_reduction <maximumf>, %65, %cst_24 [1] : vector<6x6xf32> to vector<6xf32>
    %67 = vector.shape_cast %66 : vector<6xf32> to vector<6x1xf32>
    %68 = vector.broadcast %67 : vector<6x1xf32> to vector<6x6xf32>
    %69 = arith.subf %65, %68 : vector<6x6xf32>
    %70 = math.exp %69 : vector<6x6xf32>
    %cst_25 = arith.constant dense<0.000000e+00> : vector<6xf32>
    %71 = vector.multi_reduction <add>, %70, %cst_25 [1] : vector<6x6xf32> to vector<6xf32>
    %72 = vector.shape_cast %71 : vector<6xf32> to vector<6x1xf32>
    %73 = tpu.reciprocal %72 {approx = true} : vector<6x1xf32> -> vector<6x1xf32>
    %74 = vector.broadcast %73 : vector<6x1xf32> to vector<6x6xf32>
    %75 = arith.mulf %70, %74 : vector<6x6xf32>
    %76 = arith.truncf %75 : vector<6x6xf32> to vector<6x6xbf16>
    %cst_26 = arith.constant dense<0.000000e+00> : vector<6x8xf32>
    %77 = tpu.matmul %76, %62, %cst_26 {dimension_numbers = #tpu.dot_dimension_numbers<[1], [0], [0], [1], [0, 0, 1, 1], [], []>} : vector<6x6xbf16>, vector<6x8xbf16>, vector<6x8xf32> -> vector<6x8xf32>
    %78 = tpu.concatenate %23, %41, %59, %77 in 1 : vector<6x8xf32>, vector<6x8xf32>, vector<6x8xf32>, vector<6x8xf32> -> vector<6x32xf32>
    %79 = arith.truncf %78 : vector<6x32xf32> to vector<6x32xbf16>
    %c0_27 = arith.constant 0 : index
    %c0_28 = arith.constant 0 : index
    %c0_29 = arith.constant 0 : index
    %80 = vector.load %arg5[%c0_27, %c0_28, %c0_29] : memref<1x6x32xbf16, #tpu.memory_space<vmem>>, vector<1x6x32xbf16>
    %81 = vector.shape_cast %80 : vector<1x6x32xbf16> to vector<6x32xbf16>
    %82 = vector.shape_cast %79 : vector<6x32xbf16> to vector<1x6x32xbf16>
    tpu.vector_store %arg5[%c0_27, %c0_28, %c0_29], %82 {strides = array<i32>} : memref<1x6x32xbf16, #tpu.memory_space<vmem>>, vector<1x6x32xbf16>,
    return
  }
  func.func @transform_0(%arg0: i32, %arg1: i32) -> (i32, i32, i32) {
    %c0_i32 = arith.constant 0 : i32
    %c0_i32_0 = arith.constant 0 : i32
    return %arg0, %c0_i32, %arg1 : i32, i32, i32
  }
  func.func @transform_1(%arg0: i32, %arg1: i32) -> (i32, i32, i32) {
    %c0_i32 = arith.constant 0 : i32
    %c0_i32_0 = arith.constant 0 : i32
    return %arg0, %c0_i32, %arg1 : i32, i32, i32
  }
  func.func @transform_2(%arg0: i32, %arg1: i32) -> (i32, i32, i32) {
    %c0_i32 = arith.constant 0 : i32
    %c0_i32_0 = arith.constant 0 : i32
    return %arg0, %c0_i32, %arg1 : i32, i32, i32
  }
  func.func @transform_3(%arg0: i32, %arg1: i32) -> (i32, i32, i32) {
    %c0_i32 = arith.constant 0 : i32
    %c0_i32_0 = arith.constant 0 : i32
    return %arg0, %c0_i32, %arg1 : i32, i32, i32
  }
}

module attributes {stable_mosaic.version = 11 : i64} {
  func.func @_outproj_res_ln_kernel(%arg0: i32, %arg1: i32, %arg2: memref<1x6x32xbf16, #tpu.memory_space<vmem>>, %arg3: memref<1x6x32xf32, #tpu.memory_space<vmem>>, %arg4: memref<32x32xf32, #tpu.memory_space<vmem>>, %arg5: memref<1x32xf32, #tpu.memory_space<vmem>>, %arg6: memref<1x32xf32, #tpu.memory_space<vmem>>, %arg7: memref<1x32xf32, #tpu.memory_space<vmem>>, %arg8: memref<1x6x32xf32, #tpu.memory_space<vmem>>) attributes {dimension_semantics = [#tpu.dimension_semantics<parallel>, #tpu.dimension_semantics<parallel>], iteration_bounds = array<i64: 2, 1>, scalar_prefetch = 0 : i64, scratch_operands = 0 : i64, tpu.core_type = #tpu.core_type<tc>, window_params = [{transform_indices = @transform_0, window_bounds = array<i64: 1, 6, 32>}, {transform_indices = @transform_1, window_bounds = array<i64: 1, 6, 32>}, {pipeline_mode = #tpu.pipeline_mode<synchronous>, transform_indices = @transform_2, window_bounds = array<i64: 32, 32>}, {pipeline_mode = #tpu.pipeline_mode<synchronous>, transform_indices = @transform_3, window_bounds = array<i64: 1, 32>}, {pipeline_mode = #tpu.pipeline_mode<synchronous>, transform_indices = @transform_4, window_bounds = array<i64: 1, 32>}, {pipeline_mode = #tpu.pipeline_mode<synchronous>, transform_indices = @transform_5, window_bounds = array<i64: 1, 32>}, {transform_indices = @transform_6, window_bounds = array<i64: 1, 6, 32>}]} {
    %c0 = arith.constant 0 : index
    %c0_0 = arith.constant 0 : index
    %c0_1 = arith.constant 0 : index
    %0 = vector.load %arg2[%c0, %c0_0, %c0_1] : memref<1x6x32xbf16, #tpu.memory_space<vmem>>, vector<1x6x32xbf16>
    %1 = vector.shape_cast %0 : vector<1x6x32xbf16> to vector<6x32xbf16>
    %c0_2 = arith.constant 0 : index
    %c0_3 = arith.constant 0 : index
    %2 = vector.load %arg4[%c0_2, %c0_3] : memref<32x32xf32, #tpu.memory_space<vmem>>, vector<32x32xf32>
    %3 = arith.truncf %2 : vector<32x32xf32> to vector<32x32xbf16>
    %cst = arith.constant dense<0.000000e+00> : vector<6x32xf32>
    %4 = tpu.matmul %1, %3, %cst {dimension_numbers = #tpu.dot_dimension_numbers<[1], [0], [0], [1], [0, 0, 1, 1], [], []>} : vector<6x32xbf16>, vector<32x32xbf16>, vector<6x32xf32> -> vector<6x32xf32>
    %c0_4 = arith.constant 0 : index
    %c0_5 = arith.constant 0 : index
    %5 = vector.load %arg5[%c0_4, %c0_5] : memref<1x32xf32, #tpu.memory_space<vmem>>, vector<1x32xf32>
    %6 = vector.broadcast %5 : vector<1x32xf32> to vector<6x32xf32>
    %7 = arith.addf %4, %6 : vector<6x32xf32>
    %c0_6 = arith.constant 0 : index
    %c0_7 = arith.constant 0 : index
    %c0_8 = arith.constant 0 : index
    %8 = vector.load %arg3[%c0_6, %c0_7, %c0_8] : memref<1x6x32xf32, #tpu.memory_space<vmem>>, vector<1x6x32xf32>
    %9 = vector.shape_cast %8 : vector<1x6x32xf32> to vector<6x32xf32>
    %10 = arith.addf %7, %9 : vector<6x32xf32>
    %cst_9 = arith.constant dense<0.000000e+00> : vector<6xf32>
    %11 = vector.multi_reduction <add>, %10, %cst_9 [1] : vector<6x32xf32> to vector<6xf32>
    %12 = vector.shape_cast %11 : vector<6xf32> to vector<6x1xf32>
    %cst_10 = arith.constant 3.200000e+01 : f32
    %13 = vector.broadcast %cst_10 : f32 to vector<6x1xf32>
    %14 = arith.divf %12, %13 : vector<6x1xf32>
    %15 = vector.broadcast %14 : vector<6x1xf32> to vector<6x32xf32>
    %16 = arith.subf %10, %15 : vector<6x32xf32>
    %17 = arith.mulf %16, %16 : vector<6x32xf32>
    %cst_11 = arith.constant dense<0.000000e+00> : vector<6xf32>
    %18 = vector.multi_reduction <add>, %17, %cst_11 [1] : vector<6x32xf32> to vector<6xf32>
    %19 = vector.shape_cast %18 : vector<6xf32> to vector<6x1xf32>
    %cst_12 = arith.constant 3.200000e+01 : f32
    %20 = vector.broadcast %cst_12 : f32 to vector<6x1xf32>
    %21 = arith.divf %19, %20 : vector<6x1xf32>
    %22 = vector.broadcast %14 : vector<6x1xf32> to vector<6x32xf32>
    %23 = arith.subf %10, %22 : vector<6x32xf32>
    %cst_13 = arith.constant 9.99999997E-7 : f32
    %24 = vector.broadcast %cst_13 : f32 to vector<6x1xf32>
    %25 = arith.addf %21, %24 : vector<6x1xf32>
    %26 = math.rsqrt %25 : vector<6x1xf32>
    %27 = vector.broadcast %26 : vector<6x1xf32> to vector<6x32xf32>
    %28 = arith.mulf %23, %27 : vector<6x32xf32>
    %c0_14 = arith.constant 0 : index
    %c0_15 = arith.constant 0 : index
    %29 = vector.load %arg6[%c0_14, %c0_15] : memref<1x32xf32, #tpu.memory_space<vmem>>, vector<1x32xf32>
    %30 = vector.broadcast %29 : vector<1x32xf32> to vector<6x32xf32>
    %31 = arith.mulf %28, %30 : vector<6x32xf32>
    %c0_16 = arith.constant 0 : index
    %c0_17 = arith.constant 0 : index
    %32 = vector.load %arg7[%c0_16, %c0_17] : memref<1x32xf32, #tpu.memory_space<vmem>>, vector<1x32xf32>
    %33 = vector.broadcast %32 : vector<1x32xf32> to vector<6x32xf32>
    %34 = arith.addf %31, %33 : vector<6x32xf32>
    %c0_18 = arith.constant 0 : index
    %c0_19 = arith.constant 0 : index
    %c0_20 = arith.constant 0 : index
    %35 = vector.load %arg8[%c0_18, %c0_19, %c0_20] : memref<1x6x32xf32, #tpu.memory_space<vmem>>, vector<1x6x32xf32>
    %36 = vector.shape_cast %35 : vector<1x6x32xf32> to vector<6x32xf32>
    %37 = vector.shape_cast %34 : vector<6x32xf32> to vector<1x6x32xf32>
    tpu.vector_store %arg8[%c0_18, %c0_19, %c0_20], %37 {strides = array<i32>} : memref<1x6x32xf32, #tpu.memory_space<vmem>>, vector<1x6x32xf32>,
    return
  }
  func.func @transform_0(%arg0: i32, %arg1: i32) -> (i32, i32, i32) {
    %c0_i32 = arith.constant 0 : i32
    %c0_i32_0 = arith.constant 0 : i32
    return %arg0, %arg1, %c0_i32 : i32, i32, i32
  }
  func.func @transform_1(%arg0: i32, %arg1: i32) -> (i32, i32, i32) {
    %c0_i32 = arith.constant 0 : i32
    %c0_i32_0 = arith.constant 0 : i32
    return %arg0, %arg1, %c0_i32 : i32, i32, i32
  }
  func.func @transform_2(%arg0: i32, %arg1: i32) -> (i32, i32) {
    %c0_i32 = arith.constant 0 : i32
    %c0_i32_0 = arith.constant 0 : i32
    %c0_i32_1 = arith.constant 0 : i32
    return %c0_i32, %c0_i32_0 : i32, i32
  }
  func.func @transform_3(%arg0: i32, %arg1: i32) -> (i32, i32) {
    %c0_i32 = arith.constant 0 : i32
    %c0_i32_0 = arith.constant 0 : i32
    %c0_i32_1 = arith.constant 0 : i32
    return %c0_i32, %c0_i32_0 : i32, i32
  }
  func.func @transform_4(%arg0: i32, %arg1: i32) -> (i32, i32) {
    %c0_i32 = arith.constant 0 : i32
    %c0_i32_0 = arith.constant 0 : i32
    %c0_i32_1 = arith.constant 0 : i32
    return %c0_i32, %c0_i32_0 : i32, i32
  }
  func.func @transform_5(%arg0: i32, %arg1: i32) -> (i32, i32) {
    %c0_i32 = arith.constant 0 : i32
    %c0_i32_0 = arith.constant 0 : i32
    %c0_i32_1 = arith.constant 0 : i32
    return %c0_i32, %c0_i32_0 : i32, i32
  }
  func.func @transform_6(%arg0: i32, %arg1: i32) -> (i32, i32, i32) {
    %c0_i32 = arith.constant 0 : i32
    %c0_i32_0 = arith.constant 0 : i32
    return %arg0, %arg1, %c0_i32 : i32, i32, i32
  }
}

module attributes {stable_mosaic.version = 11 : i64} {
  func.func @_linear_pe_kernel(%arg0: i32, %arg1: i32, %arg2: memref<1x6x32xf32, #tpu.memory_space<vmem>>, %arg3: memref<1x6x32xf32, #tpu.memory_space<vmem>>, %arg4: memref<32x32xf32, #tpu.memory_space<vmem>>, %arg5: memref<1x32xf32, #tpu.memory_space<vmem>>, %arg6: memref<1x6x32xbf16, #tpu.memory_space<vmem>>) attributes {dimension_semantics = [#tpu.dimension_semantics<parallel>, #tpu.dimension_semantics<parallel>], iteration_bounds = array<i64: 2, 1>, scalar_prefetch = 0 : i64, scratch_operands = 0 : i64, tpu.core_type = #tpu.core_type<tc>, window_params = [{transform_indices = @transform_0, window_bounds = array<i64: 1, 6, 32>}, {transform_indices = @transform_1, window_bounds = array<i64: 1, 6, 32>}, {pipeline_mode = #tpu.pipeline_mode<synchronous>, transform_indices = @transform_2, window_bounds = array<i64: 32, 32>}, {pipeline_mode = #tpu.pipeline_mode<synchronous>, transform_indices = @transform_3, window_bounds = array<i64: 1, 32>}, {transform_indices = @transform_4, window_bounds = array<i64: 1, 6, 32>}]} {
    %c0 = arith.constant 0 : index
    %c0_0 = arith.constant 0 : index
    %c0_1 = arith.constant 0 : index
    %0 = vector.load %arg2[%c0, %c0_0, %c0_1] : memref<1x6x32xf32, #tpu.memory_space<vmem>>, vector<1x6x32xf32>
    %1 = vector.shape_cast %0 : vector<1x6x32xf32> to vector<6x32xf32>
    %c0_2 = arith.constant 0 : index
    %c0_3 = arith.constant 0 : index
    %c0_4 = arith.constant 0 : index
    %2 = vector.load %arg3[%c0_2, %c0_3, %c0_4] : memref<1x6x32xf32, #tpu.memory_space<vmem>>, vector<1x6x32xf32>
    %3 = vector.shape_cast %2 : vector<1x6x32xf32> to vector<6x32xf32>
    %4 = arith.addf %1, %3 : vector<6x32xf32>
    %5 = arith.truncf %4 : vector<6x32xf32> to vector<6x32xbf16>
    %c0_5 = arith.constant 0 : index
    %c0_6 = arith.constant 0 : index
    %6 = vector.load %arg4[%c0_5, %c0_6] : memref<32x32xf32, #tpu.memory_space<vmem>>, vector<32x32xf32>
    %7 = arith.truncf %6 : vector<32x32xf32> to vector<32x32xbf16>
    %cst = arith.constant dense<0.000000e+00> : vector<6x32xf32>
    %8 = tpu.matmul %5, %7, %cst {dimension_numbers = #tpu.dot_dimension_numbers<[1], [0], [0], [1], [0, 0, 1, 1], [], []>} : vector<6x32xbf16>, vector<32x32xbf16>, vector<6x32xf32> -> vector<6x32xf32>
    %c0_7 = arith.constant 0 : index
    %c0_8 = arith.constant 0 : index
    %9 = vector.load %arg5[%c0_7, %c0_8] : memref<1x32xf32, #tpu.memory_space<vmem>>, vector<1x32xf32>
    %10 = vector.broadcast %9 : vector<1x32xf32> to vector<6x32xf32>
    %11 = arith.addf %8, %10 : vector<6x32xf32>
    %12 = arith.truncf %11 : vector<6x32xf32> to vector<6x32xbf16>
    %c0_9 = arith.constant 0 : index
    %c0_10 = arith.constant 0 : index
    %c0_11 = arith.constant 0 : index
    %13 = vector.load %arg6[%c0_9, %c0_10, %c0_11] : memref<1x6x32xbf16, #tpu.memory_space<vmem>>, vector<1x6x32xbf16>
    %14 = vector.shape_cast %13 : vector<1x6x32xbf16> to vector<6x32xbf16>
    %15 = vector.shape_cast %12 : vector<6x32xbf16> to vector<1x6x32xbf16>
    tpu.vector_store %arg6[%c0_9, %c0_10, %c0_11], %15 {strides = array<i32>} : memref<1x6x32xbf16, #tpu.memory_space<vmem>>, vector<1x6x32xbf16>,
    return
  }
  func.func @transform_0(%arg0: i32, %arg1: i32) -> (i32, i32, i32) {
    %c0_i32 = arith.constant 0 : i32
    %c0_i32_0 = arith.constant 0 : i32
    return %arg0, %arg1, %c0_i32 : i32, i32, i32
  }
  func.func @transform_1(%arg0: i32, %arg1: i32) -> (i32, i32, i32) {
    %c0_i32 = arith.constant 0 : i32
    %c0_i32_0 = arith.constant 0 : i32
    return %arg0, %arg1, %c0_i32 : i32, i32, i32
  }
  func.func @transform_2(%arg0: i32, %arg1: i32) -> (i32, i32) {
    %c0_i32 = arith.constant 0 : i32
    %c0_i32_0 = arith.constant 0 : i32
    %c0_i32_1 = arith.constant 0 : i32
    return %c0_i32, %c0_i32_0 : i32, i32
  }
  func.func @transform_3(%arg0: i32, %arg1: i32) -> (i32, i32) {
    %c0_i32 = arith.constant 0 : i32
    %c0_i32_0 = arith.constant 0 : i32
    %c0_i32_1 = arith.constant 0 : i32
    return %c0_i32, %c0_i32_0 : i32, i32
  }
  func.func @transform_4(%arg0: i32, %arg1: i32) -> (i32, i32, i32) {
    %c0_i32 = arith.constant 0 : i32
    %c0_i32_0 = arith.constant 0 : i32
    return %arg0, %arg1, %c0_i32 : i32, i32, i32
  }
}

module attributes {stable_mosaic.version = 11 : i64} {
  func.func @_linear_pe_kernel(%arg0: i32, %arg1: i32, %arg2: memref<1x16x32xf32, #tpu.memory_space<vmem>>, %arg3: memref<1x16x32xf32, #tpu.memory_space<vmem>>, %arg4: memref<32x32xf32, #tpu.memory_space<vmem>>, %arg5: memref<1x32xf32, #tpu.memory_space<vmem>>, %arg6: memref<1x16x32xbf16, #tpu.memory_space<vmem>>) attributes {dimension_semantics = [#tpu.dimension_semantics<parallel>, #tpu.dimension_semantics<parallel>], iteration_bounds = array<i64: 2, 1>, scalar_prefetch = 0 : i64, scratch_operands = 0 : i64, tpu.core_type = #tpu.core_type<tc>, window_params = [{transform_indices = @transform_0, window_bounds = array<i64: 1, 16, 32>}, {transform_indices = @transform_1, window_bounds = array<i64: 1, 16, 32>}, {pipeline_mode = #tpu.pipeline_mode<synchronous>, transform_indices = @transform_2, window_bounds = array<i64: 32, 32>}, {pipeline_mode = #tpu.pipeline_mode<synchronous>, transform_indices = @transform_3, window_bounds = array<i64: 1, 32>}, {transform_indices = @transform_4, window_bounds = array<i64: 1, 16, 32>}]} {
    %c0 = arith.constant 0 : index
    %c0_0 = arith.constant 0 : index
    %c0_1 = arith.constant 0 : index
    %0 = vector.load %arg2[%c0, %c0_0, %c0_1] : memref<1x16x32xf32, #tpu.memory_space<vmem>>, vector<1x16x32xf32>
    %1 = vector.shape_cast %0 : vector<1x16x32xf32> to vector<16x32xf32>
    %c0_2 = arith.constant 0 : index
    %c0_3 = arith.constant 0 : index
    %c0_4 = arith.constant 0 : index
    %2 = vector.load %arg3[%c0_2, %c0_3, %c0_4] : memref<1x16x32xf32, #tpu.memory_space<vmem>>, vector<1x16x32xf32>
    %3 = vector.shape_cast %2 : vector<1x16x32xf32> to vector<16x32xf32>
    %4 = arith.addf %1, %3 : vector<16x32xf32>
    %5 = arith.truncf %4 : vector<16x32xf32> to vector<16x32xbf16>
    %c0_5 = arith.constant 0 : index
    %c0_6 = arith.constant 0 : index
    %6 = vector.load %arg4[%c0_5, %c0_6] : memref<32x32xf32, #tpu.memory_space<vmem>>, vector<32x32xf32>
    %7 = arith.truncf %6 : vector<32x32xf32> to vector<32x32xbf16>
    %cst = arith.constant dense<0.000000e+00> : vector<16x32xf32>
    %8 = tpu.matmul %5, %7, %cst {dimension_numbers = #tpu.dot_dimension_numbers<[1], [0], [0], [1], [0, 0, 1, 1], [], []>} : vector<16x32xbf16>, vector<32x32xbf16>, vector<16x32xf32> -> vector<16x32xf32>
    %c0_7 = arith.constant 0 : index
    %c0_8 = arith.constant 0 : index
    %9 = vector.load %arg5[%c0_7, %c0_8] : memref<1x32xf32, #tpu.memory_space<vmem>>, vector<1x32xf32>
    %10 = vector.broadcast %9 : vector<1x32xf32> to vector<16x32xf32>
    %11 = arith.addf %8, %10 : vector<16x32xf32>
    %12 = arith.truncf %11 : vector<16x32xf32> to vector<16x32xbf16>
    %c0_9 = arith.constant 0 : index
    %c0_10 = arith.constant 0 : index
    %c0_11 = arith.constant 0 : index
    %13 = vector.load %arg6[%c0_9, %c0_10, %c0_11] : memref<1x16x32xbf16, #tpu.memory_space<vmem>>, vector<1x16x32xbf16>
    %14 = vector.shape_cast %13 : vector<1x16x32xbf16> to vector<16x32xbf16>
    %15 = vector.shape_cast %12 : vector<16x32xbf16> to vector<1x16x32xbf16>
    tpu.vector_store %arg6[%c0_9, %c0_10, %c0_11], %15 {strides = array<i32>} : memref<1x16x32xbf16, #tpu.memory_space<vmem>>, vector<1x16x32xbf16>,
    return
  }
  func.func @transform_0(%arg0: i32, %arg1: i32) -> (i32, i32, i32) {
    %c0_i32 = arith.constant 0 : i32
    %c0_i32_0 = arith.constant 0 : i32
    return %arg0, %arg1, %c0_i32 : i32, i32, i32
  }
  func.func @transform_1(%arg0: i32, %arg1: i32) -> (i32, i32, i32) {
    %c0_i32 = arith.constant 0 : i32
    %c0_i32_0 = arith.constant 0 : i32
    %c0_i32_1 = arith.constant 0 : i32
    return %c0_i32, %arg1, %c0_i32_0 : i32, i32, i32
  }
  func.func @transform_2(%arg0: i32, %arg1: i32) -> (i32, i32) {
    %c0_i32 = arith.constant 0 : i32
    %c0_i32_0 = arith.constant 0 : i32
    %c0_i32_1 = arith.constant 0 : i32
    return %c0_i32, %c0_i32_0 : i32, i32
  }
  func.func @transform_3(%arg0: i32, %arg1: i32) -> (i32, i32) {
    %c0_i32 = arith.constant 0 : i32
    %c0_i32_0 = arith.constant 0 : i32
    %c0_i32_1 = arith.constant 0 : i32
    return %c0_i32, %c0_i32_0 : i32, i32
  }
  func.func @transform_4(%arg0: i32, %arg1: i32) -> (i32, i32, i32) {
    %c0_i32 = arith.constant 0 : i32
    %c0_i32_0 = arith.constant 0 : i32
    return %arg0, %arg1, %c0_i32 : i32, i32, i32
  }
}

module attributes {stable_mosaic.version = 11 : i64} {
  func.func @_dual_proj_kernel(%arg0: i32, %arg1: i32, %arg2: memref<1x16x32xf32, #tpu.memory_space<vmem>>, %arg3: memref<1x16x32xf32, #tpu.memory_space<vmem>>, %arg4: memref<32x32xf32, #tpu.memory_space<vmem>>, %arg5: memref<1x32xf32, #tpu.memory_space<vmem>>, %arg6: memref<32x32xf32, #tpu.memory_space<vmem>>, %arg7: memref<1x32xf32, #tpu.memory_space<vmem>>, %arg8: memref<1x16x32xbf16, #tpu.memory_space<vmem>>, %arg9: memref<1x16x32xbf16, #tpu.memory_space<vmem>>) attributes {dimension_semantics = [#tpu.dimension_semantics<parallel>, #tpu.dimension_semantics<parallel>], iteration_bounds = array<i64: 2, 1>, scalar_prefetch = 0 : i64, scratch_operands = 0 : i64, tpu.core_type = #tpu.core_type<tc>, window_params = [{transform_indices = @transform_0, window_bounds = array<i64: 1, 16, 32>}, {transform_indices = @transform_1, window_bounds = array<i64: 1, 16, 32>}, {pipeline_mode = #tpu.pipeline_mode<synchronous>, transform_indices = @transform_2, window_bounds = array<i64: 32, 32>}, {pipeline_mode = #tpu.pipeline_mode<synchronous>, transform_indices = @transform_3, window_bounds = array<i64: 1, 32>}, {pipeline_mode = #tpu.pipeline_mode<synchronous>, transform_indices = @transform_4, window_bounds = array<i64: 32, 32>}, {pipeline_mode = #tpu.pipeline_mode<synchronous>, transform_indices = @transform_5, window_bounds = array<i64: 1, 32>}, {transform_indices = @transform_6, window_bounds = array<i64: 1, 16, 32>}, {transform_indices = @transform_7, window_bounds = array<i64: 1, 16, 32>}]} {
    %c0 = arith.constant 0 : index
    %c0_0 = arith.constant 0 : index
    %c0_1 = arith.constant 0 : index
    %0 = vector.load %arg2[%c0, %c0_0, %c0_1] : memref<1x16x32xf32, #tpu.memory_space<vmem>>, vector<1x16x32xf32>
    %1 = vector.shape_cast %0 : vector<1x16x32xf32> to vector<16x32xf32>
    %c0_2 = arith.constant 0 : index
    %c0_3 = arith.constant 0 : index
    %c0_4 = arith.constant 0 : index
    %2 = vector.load %arg3[%c0_2, %c0_3, %c0_4] : memref<1x16x32xf32, #tpu.memory_space<vmem>>, vector<1x16x32xf32>
    %3 = vector.shape_cast %2 : vector<1x16x32xf32> to vector<16x32xf32>
    %4 = arith.addf %1, %3 : vector<16x32xf32>
    %5 = arith.truncf %4 : vector<16x32xf32> to vector<16x32xbf16>
    %c0_5 = arith.constant 0 : index
    %c0_6 = arith.constant 0 : index
    %6 = vector.load %arg4[%c0_5, %c0_6] : memref<32x32xf32, #tpu.memory_space<vmem>>, vector<32x32xf32>
    %7 = arith.truncf %6 : vector<32x32xf32> to vector<32x32xbf16>
    %cst = arith.constant dense<0.000000e+00> : vector<16x32xf32>
    %8 = tpu.matmul %5, %7, %cst {dimension_numbers = #tpu.dot_dimension_numbers<[1], [0], [0], [1], [0, 0, 1, 1], [], []>} : vector<16x32xbf16>, vector<32x32xbf16>, vector<16x32xf32> -> vector<16x32xf32>
    %c0_7 = arith.constant 0 : index
    %c0_8 = arith.constant 0 : index
    %9 = vector.load %arg5[%c0_7, %c0_8] : memref<1x32xf32, #tpu.memory_space<vmem>>, vector<1x32xf32>
    %10 = vector.broadcast %9 : vector<1x32xf32> to vector<16x32xf32>
    %11 = arith.addf %8, %10 : vector<16x32xf32>
    %12 = arith.truncf %11 : vector<16x32xf32> to vector<16x32xbf16>
    %c0_9 = arith.constant 0 : index
    %c0_10 = arith.constant 0 : index
    %c0_11 = arith.constant 0 : index
    %13 = vector.load %arg8[%c0_9, %c0_10, %c0_11] : memref<1x16x32xbf16, #tpu.memory_space<vmem>>, vector<1x16x32xbf16>
    %14 = vector.shape_cast %13 : vector<1x16x32xbf16> to vector<16x32xbf16>
    %15 = vector.shape_cast %12 : vector<16x32xbf16> to vector<1x16x32xbf16>
    tpu.vector_store %arg8[%c0_9, %c0_10, %c0_11], %15 {strides = array<i32>} : memref<1x16x32xbf16, #tpu.memory_space<vmem>>, vector<1x16x32xbf16>,
    %16 = arith.truncf %1 : vector<16x32xf32> to vector<16x32xbf16>
    %c0_12 = arith.constant 0 : index
    %c0_13 = arith.constant 0 : index
    %17 = vector.load %arg6[%c0_12, %c0_13] : memref<32x32xf32, #tpu.memory_space<vmem>>, vector<32x32xf32>
    %18 = arith.truncf %17 : vector<32x32xf32> to vector<32x32xbf16>
    %cst_14 = arith.constant dense<0.000000e+00> : vector<16x32xf32>
    %19 = tpu.matmul %16, %18, %cst_14 {dimension_numbers = #tpu.dot_dimension_numbers<[1], [0], [0], [1], [0, 0, 1, 1], [], []>} : vector<16x32xbf16>, vector<32x32xbf16>, vector<16x32xf32> -> vector<16x32xf32>
    %c0_15 = arith.constant 0 : index
    %c0_16 = arith.constant 0 : index
    %20 = vector.load %arg7[%c0_15, %c0_16] : memref<1x32xf32, #tpu.memory_space<vmem>>, vector<1x32xf32>
    %21 = vector.broadcast %20 : vector<1x32xf32> to vector<16x32xf32>
    %22 = arith.addf %19, %21 : vector<16x32xf32>
    %23 = arith.truncf %22 : vector<16x32xf32> to vector<16x32xbf16>
    %c0_17 = arith.constant 0 : index
    %c0_18 = arith.constant 0 : index
    %c0_19 = arith.constant 0 : index
    %24 = vector.load %arg9[%c0_17, %c0_18, %c0_19] : memref<1x16x32xbf16, #tpu.memory_space<vmem>>, vector<1x16x32xbf16>
    %25 = vector.shape_cast %24 : vector<1x16x32xbf16> to vector<16x32xbf16>
    %26 = vector.shape_cast %23 : vector<16x32xbf16> to vector<1x16x32xbf16>
    tpu.vector_store %arg9[%c0_17, %c0_18, %c0_19], %26 {strides = array<i32>} : memref<1x16x32xbf16, #tpu.memory_space<vmem>>, vector<1x16x32xbf16>,
    return
  }
  func.func @transform_0(%arg0: i32, %arg1: i32) -> (i32, i32, i32) {
    %c0_i32 = arith.constant 0 : i32
    %c0_i32_0 = arith.constant 0 : i32
    return %arg0, %arg1, %c0_i32 : i32, i32, i32
  }
  func.func @transform_1(%arg0: i32, %arg1: i32) -> (i32, i32, i32) {
    %c0_i32 = arith.constant 0 : i32
    %c0_i32_0 = arith.constant 0 : i32
    %c0_i32_1 = arith.constant 0 : i32
    return %c0_i32, %arg1, %c0_i32_0 : i32, i32, i32
  }
  func.func @transform_2(%arg0: i32, %arg1: i32) -> (i32, i32) {
    %c0_i32 = arith.constant 0 : i32
    %c0_i32_0 = arith.constant 0 : i32
    %c0_i32_1 = arith.constant 0 : i32
    return %c0_i32, %c0_i32_0 : i32, i32
  }
  func.func @transform_3(%arg0: i32, %arg1: i32) -> (i32, i32) {
    %c0_i32 = arith.constant 0 : i32
    %c0_i32_0 = arith.constant 0 : i32
    %c0_i32_1 = arith.constant 0 : i32
    return %c0_i32, %c0_i32_0 : i32, i32
  }
  func.func @transform_4(%arg0: i32, %arg1: i32) -> (i32, i32) {
    %c0_i32 = arith.constant 0 : i32
    %c0_i32_0 = arith.constant 0 : i32
    %c0_i32_1 = arith.constant 0 : i32
    return %c0_i32, %c0_i32_0 : i32, i32
  }
  func.func @transform_5(%arg0: i32, %arg1: i32) -> (i32, i32) {
    %c0_i32 = arith.constant 0 : i32
    %c0_i32_0 = arith.constant 0 : i32
    %c0_i32_1 = arith.constant 0 : i32
    return %c0_i32, %c0_i32_0 : i32, i32
  }
  func.func @transform_6(%arg0: i32, %arg1: i32) -> (i32, i32, i32) {
    %c0_i32 = arith.constant 0 : i32
    %c0_i32_0 = arith.constant 0 : i32
    return %arg0, %arg1, %c0_i32 : i32, i32, i32
  }
  func.func @transform_7(%arg0: i32, %arg1: i32) -> (i32, i32, i32) {
    %c0_i32 = arith.constant 0 : i32
    %c0_i32_0 = arith.constant 0 : i32
    return %arg0, %arg1, %c0_i32 : i32, i32, i32
  }
}

module attributes {stable_mosaic.version = 11 : i64} {
  func.func @_attn_kernel(%arg0: i32, %arg1: i32, %arg2: memref<1x6x32xbf16, #tpu.memory_space<vmem>>, %arg3: memref<1x16x32xbf16, #tpu.memory_space<vmem>>, %arg4: memref<1x16x32xbf16, #tpu.memory_space<vmem>>, %arg5: memref<1x6x32xbf16, #tpu.memory_space<vmem>>) attributes {dimension_semantics = [#tpu.dimension_semantics<parallel>, #tpu.dimension_semantics<parallel>], iteration_bounds = array<i64: 2, 1>, scalar_prefetch = 0 : i64, scratch_operands = 0 : i64, tpu.core_type = #tpu.core_type<tc>, window_params = [{transform_indices = @transform_0, window_bounds = array<i64: 1, 6, 32>}, {transform_indices = @transform_1, window_bounds = array<i64: 1, 16, 32>}, {transform_indices = @transform_2, window_bounds = array<i64: 1, 16, 32>}, {transform_indices = @transform_3, window_bounds = array<i64: 1, 6, 32>}]} {
    %c0 = arith.constant 0 : index
    %c0_0 = arith.constant 0 : index
    %c0_1 = arith.constant 0 : index
    %0 = vector.load %arg2[%c0, %c0_0, %c0_1] : memref<1x6x32xbf16, #tpu.memory_space<vmem>>, vector<1x6x32xbf16>
    %1 = vector.shape_cast %0 : vector<1x6x32xbf16> to vector<6x32xbf16>
    %c0_2 = arith.constant 0 : index
    %c0_3 = arith.constant 0 : index
    %c0_4 = arith.constant 0 : index
    %2 = vector.load %arg3[%c0_2, %c0_3, %c0_4] : memref<1x16x32xbf16, #tpu.memory_space<vmem>>, vector<1x16x32xbf16>
    %3 = vector.shape_cast %2 : vector<1x16x32xbf16> to vector<16x32xbf16>
    %c0_5 = arith.constant 0 : index
    %c0_6 = arith.constant 0 : index
    %c0_7 = arith.constant 0 : index
    %4 = vector.load %arg4[%c0_5, %c0_6, %c0_7] : memref<1x16x32xbf16, #tpu.memory_space<vmem>>, vector<1x16x32xbf16>
    %5 = vector.shape_cast %4 : vector<1x16x32xbf16> to vector<16x32xbf16>
    %6 = vector.extract_strided_slice %1 {offsets = [0, 0], sizes = [6, 8], strides = [1, 1]} : vector<6x32xbf16> to vector<6x8xbf16>
    %7 = vector.extract_strided_slice %3 {offsets = [0, 0], sizes = [16, 8], strides = [1, 1]} : vector<16x32xbf16> to vector<16x8xbf16>
    %8 = vector.extract_strided_slice %5 {offsets = [0, 0], sizes = [16, 8], strides = [1, 1]} : vector<16x32xbf16> to vector<16x8xbf16>
    %cst = arith.constant dense<0.000000e+00> : vector<6x16xf32>
    %9 = tpu.matmul %6, %7, %cst {dimension_numbers = #tpu.dot_dimension_numbers<[1], [1], [0], [0], [0, 0, 1, 0], [], []>} : vector<6x8xbf16>, vector<16x8xbf16>, vector<6x16xf32> -> vector<6x16xf32>
    %cst_8 = arith.constant 0.353553385 : f32
    %10 = vector.broadcast %cst_8 : f32 to vector<6x16xf32>
    %11 = arith.mulf %9, %10 : vector<6x16xf32>
    %cst_9 = arith.constant dense<0xFF800000> : vector<6xf32>
    %12 = vector.multi_reduction <maximumf>, %11, %cst_9 [1] : vector<6x16xf32> to vector<6xf32>
    %13 = vector.shape_cast %12 : vector<6xf32> to vector<6x1xf32>
    %14 = vector.broadcast %13 : vector<6x1xf32> to vector<6x16xf32>
    %15 = arith.subf %11, %14 : vector<6x16xf32>
    %16 = math.exp %15 : vector<6x16xf32>
    %cst_10 = arith.constant dense<0.000000e+00> : vector<6xf32>
    %17 = vector.multi_reduction <add>, %16, %cst_10 [1] : vector<6x16xf32> to vector<6xf32>
    %18 = vector.shape_cast %17 : vector<6xf32> to vector<6x1xf32>
    %19 = tpu.reciprocal %18 {approx = true} : vector<6x1xf32> -> vector<6x1xf32>
    %20 = vector.broadcast %19 : vector<6x1xf32> to vector<6x16xf32>
    %21 = arith.mulf %16, %20 : vector<6x16xf32>
    %22 = arith.truncf %21 : vector<6x16xf32> to vector<6x16xbf16>
    %cst_11 = arith.constant dense<0.000000e+00> : vector<6x8xf32>
    %23 = tpu.matmul %22, %8, %cst_11 {dimension_numbers = #tpu.dot_dimension_numbers<[1], [0], [0], [1], [0, 0, 1, 1], [], []>} : vector<6x16xbf16>, vector<16x8xbf16>, vector<6x8xf32> -> vector<6x8xf32>
    %24 = vector.extract_strided_slice %1 {offsets = [0, 8], sizes = [6, 8], strides = [1, 1]} : vector<6x32xbf16> to vector<6x8xbf16>
    %25 = vector.extract_strided_slice %3 {offsets = [0, 8], sizes = [16, 8], strides = [1, 1]} : vector<16x32xbf16> to vector<16x8xbf16>
    %26 = vector.extract_strided_slice %5 {offsets = [0, 8], sizes = [16, 8], strides = [1, 1]} : vector<16x32xbf16> to vector<16x8xbf16>
    %cst_12 = arith.constant dense<0.000000e+00> : vector<6x16xf32>
    %27 = tpu.matmul %24, %25, %cst_12 {dimension_numbers = #tpu.dot_dimension_numbers<[1], [1], [0], [0], [0, 0, 1, 0], [], []>} : vector<6x8xbf16>, vector<16x8xbf16>, vector<6x16xf32> -> vector<6x16xf32>
    %cst_13 = arith.constant 0.353553385 : f32
    %28 = vector.broadcast %cst_13 : f32 to vector<6x16xf32>
    %29 = arith.mulf %27, %28 : vector<6x16xf32>
    %cst_14 = arith.constant dense<0xFF800000> : vector<6xf32>
    %30 = vector.multi_reduction <maximumf>, %29, %cst_14 [1] : vector<6x16xf32> to vector<6xf32>
    %31 = vector.shape_cast %30 : vector<6xf32> to vector<6x1xf32>
    %32 = vector.broadcast %31 : vector<6x1xf32> to vector<6x16xf32>
    %33 = arith.subf %29, %32 : vector<6x16xf32>
    %34 = math.exp %33 : vector<6x16xf32>
    %cst_15 = arith.constant dense<0.000000e+00> : vector<6xf32>
    %35 = vector.multi_reduction <add>, %34, %cst_15 [1] : vector<6x16xf32> to vector<6xf32>
    %36 = vector.shape_cast %35 : vector<6xf32> to vector<6x1xf32>
    %37 = tpu.reciprocal %36 {approx = true} : vector<6x1xf32> -> vector<6x1xf32>
    %38 = vector.broadcast %37 : vector<6x1xf32> to vector<6x16xf32>
    %39 = arith.mulf %34, %38 : vector<6x16xf32>
    %40 = arith.truncf %39 : vector<6x16xf32> to vector<6x16xbf16>
    %cst_16 = arith.constant dense<0.000000e+00> : vector<6x8xf32>
    %41 = tpu.matmul %40, %26, %cst_16 {dimension_numbers = #tpu.dot_dimension_numbers<[1], [0], [0], [1], [0, 0, 1, 1], [], []>} : vector<6x16xbf16>, vector<16x8xbf16>, vector<6x8xf32> -> vector<6x8xf32>
    %42 = vector.extract_strided_slice %1 {offsets = [0, 16], sizes = [6, 8], strides = [1, 1]} : vector<6x32xbf16> to vector<6x8xbf16>
    %43 = vector.extract_strided_slice %3 {offsets = [0, 16], sizes = [16, 8], strides = [1, 1]} : vector<16x32xbf16> to vector<16x8xbf16>
    %44 = vector.extract_strided_slice %5 {offsets = [0, 16], sizes = [16, 8], strides = [1, 1]} : vector<16x32xbf16> to vector<16x8xbf16>
    %cst_17 = arith.constant dense<0.000000e+00> : vector<6x16xf32>
    %45 = tpu.matmul %42, %43, %cst_17 {dimension_numbers = #tpu.dot_dimension_numbers<[1], [1], [0], [0], [0, 0, 1, 0], [], []>} : vector<6x8xbf16>, vector<16x8xbf16>, vector<6x16xf32> -> vector<6x16xf32>
    %cst_18 = arith.constant 0.353553385 : f32
    %46 = vector.broadcast %cst_18 : f32 to vector<6x16xf32>
    %47 = arith.mulf %45, %46 : vector<6x16xf32>
    %cst_19 = arith.constant dense<0xFF800000> : vector<6xf32>
    %48 = vector.multi_reduction <maximumf>, %47, %cst_19 [1] : vector<6x16xf32> to vector<6xf32>
    %49 = vector.shape_cast %48 : vector<6xf32> to vector<6x1xf32>
    %50 = vector.broadcast %49 : vector<6x1xf32> to vector<6x16xf32>
    %51 = arith.subf %47, %50 : vector<6x16xf32>
    %52 = math.exp %51 : vector<6x16xf32>
    %cst_20 = arith.constant dense<0.000000e+00> : vector<6xf32>
    %53 = vector.multi_reduction <add>, %52, %cst_20 [1] : vector<6x16xf32> to vector<6xf32>
    %54 = vector.shape_cast %53 : vector<6xf32> to vector<6x1xf32>
    %55 = tpu.reciprocal %54 {approx = true} : vector<6x1xf32> -> vector<6x1xf32>
    %56 = vector.broadcast %55 : vector<6x1xf32> to vector<6x16xf32>
    %57 = arith.mulf %52, %56 : vector<6x16xf32>
    %58 = arith.truncf %57 : vector<6x16xf32> to vector<6x16xbf16>
    %cst_21 = arith.constant dense<0.000000e+00> : vector<6x8xf32>
    %59 = tpu.matmul %58, %44, %cst_21 {dimension_numbers = #tpu.dot_dimension_numbers<[1], [0], [0], [1], [0, 0, 1, 1], [], []>} : vector<6x16xbf16>, vector<16x8xbf16>, vector<6x8xf32> -> vector<6x8xf32>
    %60 = vector.extract_strided_slice %1 {offsets = [0, 24], sizes = [6, 8], strides = [1, 1]} : vector<6x32xbf16> to vector<6x8xbf16>
    %61 = vector.extract_strided_slice %3 {offsets = [0, 24], sizes = [16, 8], strides = [1, 1]} : vector<16x32xbf16> to vector<16x8xbf16>
    %62 = vector.extract_strided_slice %5 {offsets = [0, 24], sizes = [16, 8], strides = [1, 1]} : vector<16x32xbf16> to vector<16x8xbf16>
    %cst_22 = arith.constant dense<0.000000e+00> : vector<6x16xf32>
    %63 = tpu.matmul %60, %61, %cst_22 {dimension_numbers = #tpu.dot_dimension_numbers<[1], [1], [0], [0], [0, 0, 1, 0], [], []>} : vector<6x8xbf16>, vector<16x8xbf16>, vector<6x16xf32> -> vector<6x16xf32>
    %cst_23 = arith.constant 0.353553385 : f32
    %64 = vector.broadcast %cst_23 : f32 to vector<6x16xf32>
    %65 = arith.mulf %63, %64 : vector<6x16xf32>
    %cst_24 = arith.constant dense<0xFF800000> : vector<6xf32>
    %66 = vector.multi_reduction <maximumf>, %65, %cst_24 [1] : vector<6x16xf32> to vector<6xf32>
    %67 = vector.shape_cast %66 : vector<6xf32> to vector<6x1xf32>
    %68 = vector.broadcast %67 : vector<6x1xf32> to vector<6x16xf32>
    %69 = arith.subf %65, %68 : vector<6x16xf32>
    %70 = math.exp %69 : vector<6x16xf32>
    %cst_25 = arith.constant dense<0.000000e+00> : vector<6xf32>
    %71 = vector.multi_reduction <add>, %70, %cst_25 [1] : vector<6x16xf32> to vector<6xf32>
    %72 = vector.shape_cast %71 : vector<6xf32> to vector<6x1xf32>
    %73 = tpu.reciprocal %72 {approx = true} : vector<6x1xf32> -> vector<6x1xf32>
    %74 = vector.broadcast %73 : vector<6x1xf32> to vector<6x16xf32>
    %75 = arith.mulf %70, %74 : vector<6x16xf32>
    %76 = arith.truncf %75 : vector<6x16xf32> to vector<6x16xbf16>
    %cst_26 = arith.constant dense<0.000000e+00> : vector<6x8xf32>
    %77 = tpu.matmul %76, %62, %cst_26 {dimension_numbers = #tpu.dot_dimension_numbers<[1], [0], [0], [1], [0, 0, 1, 1], [], []>} : vector<6x16xbf16>, vector<16x8xbf16>, vector<6x8xf32> -> vector<6x8xf32>
    %78 = tpu.concatenate %23, %41, %59, %77 in 1 : vector<6x8xf32>, vector<6x8xf32>, vector<6x8xf32>, vector<6x8xf32> -> vector<6x32xf32>
    %79 = arith.truncf %78 : vector<6x32xf32> to vector<6x32xbf16>
    %c0_27 = arith.constant 0 : index
    %c0_28 = arith.constant 0 : index
    %c0_29 = arith.constant 0 : index
    %80 = vector.load %arg5[%c0_27, %c0_28, %c0_29] : memref<1x6x32xbf16, #tpu.memory_space<vmem>>, vector<1x6x32xbf16>
    %81 = vector.shape_cast %80 : vector<1x6x32xbf16> to vector<6x32xbf16>
    %82 = vector.shape_cast %79 : vector<6x32xbf16> to vector<1x6x32xbf16>
    tpu.vector_store %arg5[%c0_27, %c0_28, %c0_29], %82 {strides = array<i32>} : memref<1x6x32xbf16, #tpu.memory_space<vmem>>, vector<1x6x32xbf16>,
    return
  }
  func.func @transform_0(%arg0: i32, %arg1: i32) -> (i32, i32, i32) {
    %c0_i32 = arith.constant 0 : i32
    %c0_i32_0 = arith.constant 0 : i32
    return %arg0, %c0_i32, %arg1 : i32, i32, i32
  }
  func.func @transform_1(%arg0: i32, %arg1: i32) -> (i32, i32, i32) {
    %c0_i32 = arith.constant 0 : i32
    %c0_i32_0 = arith.constant 0 : i32
    return %arg0, %c0_i32, %arg1 : i32, i32, i32
  }
  func.func @transform_2(%arg0: i32, %arg1: i32) -> (i32, i32, i32) {
    %c0_i32 = arith.constant 0 : i32
    %c0_i32_0 = arith.constant 0 : i32
    return %arg0, %c0_i32, %arg1 : i32, i32, i32
  }
  func.func @transform_3(%arg0: i32, %arg1: i32) -> (i32, i32, i32) {
    %c0_i32 = arith.constant 0 : i32
    %c0_i32_0 = arith.constant 0 : i32
    return %arg0, %c0_i32, %arg1 : i32, i32, i32
  }
}

module attributes {stable_mosaic.version = 11 : i64} {
  func.func @_mlp_res_ln_kernel(%arg0: i32, %arg1: i32, %arg2: memref<1x6x32xf32, #tpu.memory_space<vmem>>, %arg3: memref<32x64xf32, #tpu.memory_space<vmem>>, %arg4: memref<1x64xf32, #tpu.memory_space<vmem>>, %arg5: memref<64x32xf32, #tpu.memory_space<vmem>>, %arg6: memref<1x32xf32, #tpu.memory_space<vmem>>, %arg7: memref<1x32xf32, #tpu.memory_space<vmem>>, %arg8: memref<1x32xf32, #tpu.memory_space<vmem>>, %arg9: memref<1x6x32xf32, #tpu.memory_space<vmem>>) attributes {dimension_semantics = [#tpu.dimension_semantics<parallel>, #tpu.dimension_semantics<parallel>], iteration_bounds = array<i64: 2, 1>, scalar_prefetch = 0 : i64, scratch_operands = 0 : i64, tpu.core_type = #tpu.core_type<tc>, window_params = [{transform_indices = @transform_0, window_bounds = array<i64: 1, 6, 32>}, {pipeline_mode = #tpu.pipeline_mode<synchronous>, transform_indices = @transform_1, window_bounds = array<i64: 32, 64>}, {pipeline_mode = #tpu.pipeline_mode<synchronous>, transform_indices = @transform_2, window_bounds = array<i64: 1, 64>}, {pipeline_mode = #tpu.pipeline_mode<synchronous>, transform_indices = @transform_3, window_bounds = array<i64: 64, 32>}, {pipeline_mode = #tpu.pipeline_mode<synchronous>, transform_indices = @transform_4, window_bounds = array<i64: 1, 32>}, {pipeline_mode = #tpu.pipeline_mode<synchronous>, transform_indices = @transform_5, window_bounds = array<i64: 1, 32>}, {pipeline_mode = #tpu.pipeline_mode<synchronous>, transform_indices = @transform_6, window_bounds = array<i64: 1, 32>}, {transform_indices = @transform_7, window_bounds = array<i64: 1, 6, 32>}]} {
    %c0 = arith.constant 0 : index
    %c0_0 = arith.constant 0 : index
    %c0_1 = arith.constant 0 : index
    %0 = vector.load %arg2[%c0, %c0_0, %c0_1] : memref<1x6x32xf32, #tpu.memory_space<vmem>>, vector<1x6x32xf32>
    %1 = vector.shape_cast %0 : vector<1x6x32xf32> to vector<6x32xf32>
    %2 = arith.truncf %1 : vector<6x32xf32> to vector<6x32xbf16>
    %c0_2 = arith.constant 0 : index
    %c0_3 = arith.constant 0 : index
    %3 = vector.load %arg3[%c0_2, %c0_3] : memref<32x64xf32, #tpu.memory_space<vmem>>, vector<32x64xf32>
    %4 = arith.truncf %3 : vector<32x64xf32> to vector<32x64xbf16>
    %cst = arith.constant dense<0.000000e+00> : vector<6x64xf32>
    %5 = tpu.matmul %2, %4, %cst {dimension_numbers = #tpu.dot_dimension_numbers<[1], [0], [0], [1], [0, 0, 1, 1], [], []>} : vector<6x32xbf16>, vector<32x64xbf16>, vector<6x64xf32> -> vector<6x64xf32>
    %c0_4 = arith.constant 0 : index
    %c0_5 = arith.constant 0 : index
    %6 = vector.load %arg4[%c0_4, %c0_5] : memref<1x64xf32, #tpu.memory_space<vmem>>, vector<1x64xf32>
    %7 = vector.broadcast %6 : vector<1x64xf32> to vector<6x64xf32>
    %8 = arith.addf %5, %7 : vector<6x64xf32>
    %cst_6 = arith.constant 0.000000e+00 : f32
    %9 = vector.broadcast %cst_6 : f32 to vector<6x64xf32>
    %10 = arith.maximumf %8, %9 : vector<6x64xf32>
    %11 = arith.truncf %10 : vector<6x64xf32> to vector<6x64xbf16>
    %c0_7 = arith.constant 0 : index
    %c0_8 = arith.constant 0 : index
    %12 = vector.load %arg5[%c0_7, %c0_8] : memref<64x32xf32, #tpu.memory_space<vmem>>, vector<64x32xf32>
    %13 = arith.truncf %12 : vector<64x32xf32> to vector<64x32xbf16>
    %cst_9 = arith.constant dense<0.000000e+00> : vector<6x32xf32>
    %14 = tpu.matmul %11, %13, %cst_9 {dimension_numbers = #tpu.dot_dimension_numbers<[1], [0], [0], [1], [0, 0, 1, 1], [], []>} : vector<6x64xbf16>, vector<64x32xbf16>, vector<6x32xf32> -> vector<6x32xf32>
    %c0_10 = arith.constant 0 : index
    %c0_11 = arith.constant 0 : index
    %15 = vector.load %arg6[%c0_10, %c0_11] : memref<1x32xf32, #tpu.memory_space<vmem>>, vector<1x32xf32>
    %16 = vector.broadcast %15 : vector<1x32xf32> to vector<6x32xf32>
    %17 = arith.addf %14, %16 : vector<6x32xf32>
    %18 = arith.addf %17, %1 : vector<6x32xf32>
    %cst_12 = arith.constant dense<0.000000e+00> : vector<6xf32>
    %19 = vector.multi_reduction <add>, %18, %cst_12 [1] : vector<6x32xf32> to vector<6xf32>
    %20 = vector.shape_cast %19 : vector<6xf32> to vector<6x1xf32>
    %cst_13 = arith.constant 3.200000e+01 : f32
    %21 = vector.broadcast %cst_13 : f32 to vector<6x1xf32>
    %22 = arith.divf %20, %21 : vector<6x1xf32>
    %23 = vector.broadcast %22 : vector<6x1xf32> to vector<6x32xf32>
    %24 = arith.subf %18, %23 : vector<6x32xf32>
    %25 = arith.mulf %24, %24 : vector<6x32xf32>
    %cst_14 = arith.constant dense<0.000000e+00> : vector<6xf32>
    %26 = vector.multi_reduction <add>, %25, %cst_14 [1] : vector<6x32xf32> to vector<6xf32>
    %27 = vector.shape_cast %26 : vector<6xf32> to vector<6x1xf32>
    %cst_15 = arith.constant 3.200000e+01 : f32
    %28 = vector.broadcast %cst_15 : f32 to vector<6x1xf32>
    %29 = arith.divf %27, %28 : vector<6x1xf32>
    %30 = vector.broadcast %22 : vector<6x1xf32> to vector<6x32xf32>
    %31 = arith.subf %18, %30 : vector<6x32xf32>
    %cst_16 = arith.constant 9.99999997E-7 : f32
    %32 = vector.broadcast %cst_16 : f32 to vector<6x1xf32>
    %33 = arith.addf %29, %32 : vector<6x1xf32>
    %34 = math.rsqrt %33 : vector<6x1xf32>
    %35 = vector.broadcast %34 : vector<6x1xf32> to vector<6x32xf32>
    %36 = arith.mulf %31, %35 : vector<6x32xf32>
    %c0_17 = arith.constant 0 : index
    %c0_18 = arith.constant 0 : index
    %37 = vector.load %arg7[%c0_17, %c0_18] : memref<1x32xf32, #tpu.memory_space<vmem>>, vector<1x32xf32>
    %38 = vector.broadcast %37 : vector<1x32xf32> to vector<6x32xf32>
    %39 = arith.mulf %36, %38 : vector<6x32xf32>
    %c0_19 = arith.constant 0 : index
    %c0_20 = arith.constant 0 : index
    %40 = vector.load %arg8[%c0_19, %c0_20] : memref<1x32xf32, #tpu.memory_space<vmem>>, vector<1x32xf32>
    %41 = vector.broadcast %40 : vector<1x32xf32> to vector<6x32xf32>
    %42 = arith.addf %39, %41 : vector<6x32xf32>
    %c0_21 = arith.constant 0 : index
    %c0_22 = arith.constant 0 : index
    %c0_23 = arith.constant 0 : index
    %43 = vector.load %arg9[%c0_21, %c0_22, %c0_23] : memref<1x6x32xf32, #tpu.memory_space<vmem>>, vector<1x6x32xf32>
    %44 = vector.shape_cast %43 : vector<1x6x32xf32> to vector<6x32xf32>
    %45 = vector.shape_cast %42 : vector<6x32xf32> to vector<1x6x32xf32>
    tpu.vector_store %arg9[%c0_21, %c0_22, %c0_23], %45 {strides = array<i32>} : memref<1x6x32xf32, #tpu.memory_space<vmem>>, vector<1x6x32xf32>,
    return
  }
  func.func @transform_0(%arg0: i32, %arg1: i32) -> (i32, i32, i32) {
    %c0_i32 = arith.constant 0 : i32
    %c0_i32_0 = arith.constant 0 : i32
    return %arg0, %arg1, %c0_i32 : i32, i32, i32
  }
  func.func @transform_1(%arg0: i32, %arg1: i32) -> (i32, i32) {
    %c0_i32 = arith.constant 0 : i32
    %c0_i32_0 = arith.constant 0 : i32
    %c0_i32_1 = arith.constant 0 : i32
    return %c0_i32, %c0_i32_0 : i32, i32
  }
  func.func @transform_2(%arg0: i32, %arg1: i32) -> (i32, i32) {
    %c0_i32 = arith.constant 0 : i32
    %c0_i32_0 = arith.constant 0 : i32
    %c0_i32_1 = arith.constant 0 : i32
    return %c0_i32, %c0_i32_0 : i32, i32
  }
  func.func @transform_3(%arg0: i32, %arg1: i32) -> (i32, i32) {
    %c0_i32 = arith.constant 0 : i32
    %c0_i32_0 = arith.constant 0 : i32
    %c0_i32_1 = arith.constant 0 : i32
    return %c0_i32, %c0_i32_0 : i32, i32
  }
  func.func @transform_4(%arg0: i32, %arg1: i32) -> (i32, i32) {
    %c0_i32 = arith.constant 0 : i32
    %c0_i32_0 = arith.constant 0 : i32
    %c0_i32_1 = arith.constant 0 : i32
    return %c0_i32, %c0_i32_0 : i32, i32
  }
  func.func @transform_5(%arg0: i32, %arg1: i32) -> (i32, i32) {
    %c0_i32 = arith.constant 0 : i32
    %c0_i32_0 = arith.constant 0 : i32
    %c0_i32_1 = arith.constant 0 : i32
    return %c0_i32, %c0_i32_0 : i32, i32
  }
  func.func @transform_6(%arg0: i32, %arg1: i32) -> (i32, i32) {
    %c0_i32 = arith.constant 0 : i32
    %c0_i32_0 = arith.constant 0 : i32
    %c0_i32_1 = arith.constant 0 : i32
    return %c0_i32, %c0_i32_0 : i32, i32
  }
  func.func @transform_7(%arg0: i32, %arg1: i32) -> (i32, i32, i32) {
    %c0_i32 = arith.constant 0 : i32
    %c0_i32_0 = arith.constant 0 : i32
    return %arg0, %arg1, %c0_i32 : i32, i32, i32
  }
}

module attributes {stable_mosaic.version = 11 : i64} {
  func.func @_dual_proj_kernel(%arg0: i32, %arg1: i32, %arg2: memref<1x6x32xf32, #tpu.memory_space<vmem>>, %arg3: memref<1x6x32xf32, #tpu.memory_space<vmem>>, %arg4: memref<32x32xf32, #tpu.memory_space<vmem>>, %arg5: memref<1x32xf32, #tpu.memory_space<vmem>>, %arg6: memref<32x32xf32, #tpu.memory_space<vmem>>, %arg7: memref<1x32xf32, #tpu.memory_space<vmem>>, %arg8: memref<1x6x32xbf16, #tpu.memory_space<vmem>>, %arg9: memref<1x6x32xbf16, #tpu.memory_space<vmem>>) attributes {dimension_semantics = [#tpu.dimension_semantics<parallel>, #tpu.dimension_semantics<parallel>], iteration_bounds = array<i64: 2, 1>, scalar_prefetch = 0 : i64, scratch_operands = 0 : i64, tpu.core_type = #tpu.core_type<tc>, window_params = [{transform_indices = @transform_0, window_bounds = array<i64: 1, 6, 32>}, {transform_indices = @transform_1, window_bounds = array<i64: 1, 6, 32>}, {pipeline_mode = #tpu.pipeline_mode<synchronous>, transform_indices = @transform_2, window_bounds = array<i64: 32, 32>}, {pipeline_mode = #tpu.pipeline_mode<synchronous>, transform_indices = @transform_3, window_bounds = array<i64: 1, 32>}, {pipeline_mode = #tpu.pipeline_mode<synchronous>, transform_indices = @transform_4, window_bounds = array<i64: 32, 32>}, {pipeline_mode = #tpu.pipeline_mode<synchronous>, transform_indices = @transform_5, window_bounds = array<i64: 1, 32>}, {transform_indices = @transform_6, window_bounds = array<i64: 1, 6, 32>}, {transform_indices = @transform_7, window_bounds = array<i64: 1, 6, 32>}]} {
    %c0 = arith.constant 0 : index
    %c0_0 = arith.constant 0 : index
    %c0_1 = arith.constant 0 : index
    %0 = vector.load %arg2[%c0, %c0_0, %c0_1] : memref<1x6x32xf32, #tpu.memory_space<vmem>>, vector<1x6x32xf32>
    %1 = vector.shape_cast %0 : vector<1x6x32xf32> to vector<6x32xf32>
    %c0_2 = arith.constant 0 : index
    %c0_3 = arith.constant 0 : index
    %c0_4 = arith.constant 0 : index
    %2 = vector.load %arg3[%c0_2, %c0_3, %c0_4] : memref<1x6x32xf32, #tpu.memory_space<vmem>>, vector<1x6x32xf32>
    %3 = vector.shape_cast %2 : vector<1x6x32xf32> to vector<6x32xf32>
    %4 = arith.addf %1, %3 : vector<6x32xf32>
    %5 = arith.truncf %4 : vector<6x32xf32> to vector<6x32xbf16>
    %c0_5 = arith.constant 0 : index
    %c0_6 = arith.constant 0 : index
    %6 = vector.load %arg4[%c0_5, %c0_6] : memref<32x32xf32, #tpu.memory_space<vmem>>, vector<32x32xf32>
    %7 = arith.truncf %6 : vector<32x32xf32> to vector<32x32xbf16>
    %cst = arith.constant dense<0.000000e+00> : vector<6x32xf32>
    %8 = tpu.matmul %5, %7, %cst {dimension_numbers = #tpu.dot_dimension_numbers<[1], [0], [0], [1], [0, 0, 1, 1], [], []>} : vector<6x32xbf16>, vector<32x32xbf16>, vector<6x32xf32> -> vector<6x32xf32>
    %c0_7 = arith.constant 0 : index
    %c0_8 = arith.constant 0 : index
    %9 = vector.load %arg5[%c0_7, %c0_8] : memref<1x32xf32, #tpu.memory_space<vmem>>, vector<1x32xf32>
    %10 = vector.broadcast %9 : vector<1x32xf32> to vector<6x32xf32>
    %11 = arith.addf %8, %10 : vector<6x32xf32>
    %12 = arith.truncf %11 : vector<6x32xf32> to vector<6x32xbf16>
    %c0_9 = arith.constant 0 : index
    %c0_10 = arith.constant 0 : index
    %c0_11 = arith.constant 0 : index
    %13 = vector.load %arg8[%c0_9, %c0_10, %c0_11] : memref<1x6x32xbf16, #tpu.memory_space<vmem>>, vector<1x6x32xbf16>
    %14 = vector.shape_cast %13 : vector<1x6x32xbf16> to vector<6x32xbf16>
    %15 = vector.shape_cast %12 : vector<6x32xbf16> to vector<1x6x32xbf16>
    tpu.vector_store %arg8[%c0_9, %c0_10, %c0_11], %15 {strides = array<i32>} : memref<1x6x32xbf16, #tpu.memory_space<vmem>>, vector<1x6x32xbf16>,
    %16 = arith.truncf %1 : vector<6x32xf32> to vector<6x32xbf16>
    %c0_12 = arith.constant 0 : index
    %c0_13 = arith.constant 0 : index
    %17 = vector.load %arg6[%c0_12, %c0_13] : memref<32x32xf32, #tpu.memory_space<vmem>>, vector<32x32xf32>
    %18 = arith.truncf %17 : vector<32x32xf32> to vector<32x32xbf16>
    %cst_14 = arith.constant dense<0.000000e+00> : vector<6x32xf32>
    %19 = tpu.matmul %16, %18, %cst_14 {dimension_numbers = #tpu.dot_dimension_numbers<[1], [0], [0], [1], [0, 0, 1, 1], [], []>} : vector<6x32xbf16>, vector<32x32xbf16>, vector<6x32xf32> -> vector<6x32xf32>
    %c0_15 = arith.constant 0 : index
    %c0_16 = arith.constant 0 : index
    %20 = vector.load %arg7[%c0_15, %c0_16] : memref<1x32xf32, #tpu.memory_space<vmem>>, vector<1x32xf32>
    %21 = vector.broadcast %20 : vector<1x32xf32> to vector<6x32xf32>
    %22 = arith.addf %19, %21 : vector<6x32xf32>
    %23 = arith.truncf %22 : vector<6x32xf32> to vector<6x32xbf16>
    %c0_17 = arith.constant 0 : index
    %c0_18 = arith.constant 0 : index
    %c0_19 = arith.constant 0 : index
    %24 = vector.load %arg9[%c0_17, %c0_18, %c0_19] : memref<1x6x32xbf16, #tpu.memory_space<vmem>>, vector<1x6x32xbf16>
    %25 = vector.shape_cast %24 : vector<1x6x32xbf16> to vector<6x32xbf16>
    %26 = vector.shape_cast %23 : vector<6x32xbf16> to vector<1x6x32xbf16>
    tpu.vector_store %arg9[%c0_17, %c0_18, %c0_19], %26 {strides = array<i32>} : memref<1x6x32xbf16, #tpu.memory_space<vmem>>, vector<1x6x32xbf16>,
    return
  }
  func.func @transform_0(%arg0: i32, %arg1: i32) -> (i32, i32, i32) {
    %c0_i32 = arith.constant 0 : i32
    %c0_i32_0 = arith.constant 0 : i32
    return %arg0, %arg1, %c0_i32 : i32, i32, i32
  }
  func.func @transform_1(%arg0: i32, %arg1: i32) -> (i32, i32, i32) {
    %c0_i32 = arith.constant 0 : i32
    %c0_i32_0 = arith.constant 0 : i32
    return %arg0, %arg1, %c0_i32 : i32, i32, i32
  }
  func.func @transform_2(%arg0: i32, %arg1: i32) -> (i32, i32) {
    %c0_i32 = arith.constant 0 : i32
    %c0_i32_0 = arith.constant 0 : i32
    %c0_i32_1 = arith.constant 0 : i32
    return %c0_i32, %c0_i32_0 : i32, i32
  }
  func.func @transform_3(%arg0: i32, %arg1: i32) -> (i32, i32) {
    %c0_i32 = arith.constant 0 : i32
    %c0_i32_0 = arith.constant 0 : i32
    %c0_i32_1 = arith.constant 0 : i32
    return %c0_i32, %c0_i32_0 : i32, i32
  }
  func.func @transform_4(%arg0: i32, %arg1: i32) -> (i32, i32) {
    %c0_i32 = arith.constant 0 : i32
    %c0_i32_0 = arith.constant 0 : i32
    %c0_i32_1 = arith.constant 0 : i32
    return %c0_i32, %c0_i32_0 : i32, i32
  }
  func.func @transform_5(%arg0: i32, %arg1: i32) -> (i32, i32) {
    %c0_i32 = arith.constant 0 : i32
    %c0_i32_0 = arith.constant 0 : i32
    %c0_i32_1 = arith.constant 0 : i32
    return %c0_i32, %c0_i32_0 : i32, i32
  }
  func.func @transform_6(%arg0: i32, %arg1: i32) -> (i32, i32, i32) {
    %c0_i32 = arith.constant 0 : i32
    %c0_i32_0 = arith.constant 0 : i32
    return %arg0, %arg1, %c0_i32 : i32, i32, i32
  }
  func.func @transform_7(%arg0: i32, %arg1: i32) -> (i32, i32, i32) {
    %c0_i32 = arith.constant 0 : i32
    %c0_i32_0 = arith.constant 0 : i32
    return %arg0, %arg1, %c0_i32 : i32, i32, i32
  }
}

module attributes {stable_mosaic.version = 11 : i64} {
  func.func @_attn_kernel(%arg0: i32, %arg1: i32, %arg2: memref<1x16x32xbf16, #tpu.memory_space<vmem>>, %arg3: memref<1x6x32xbf16, #tpu.memory_space<vmem>>, %arg4: memref<1x6x32xbf16, #tpu.memory_space<vmem>>, %arg5: memref<1x16x32xbf16, #tpu.memory_space<vmem>>) attributes {dimension_semantics = [#tpu.dimension_semantics<parallel>, #tpu.dimension_semantics<parallel>], iteration_bounds = array<i64: 2, 1>, scalar_prefetch = 0 : i64, scratch_operands = 0 : i64, tpu.core_type = #tpu.core_type<tc>, window_params = [{transform_indices = @transform_0, window_bounds = array<i64: 1, 16, 32>}, {transform_indices = @transform_1, window_bounds = array<i64: 1, 6, 32>}, {transform_indices = @transform_2, window_bounds = array<i64: 1, 6, 32>}, {transform_indices = @transform_3, window_bounds = array<i64: 1, 16, 32>}]} {
    %c0 = arith.constant 0 : index
    %c0_0 = arith.constant 0 : index
    %c0_1 = arith.constant 0 : index
    %0 = vector.load %arg2[%c0, %c0_0, %c0_1] : memref<1x16x32xbf16, #tpu.memory_space<vmem>>, vector<1x16x32xbf16>
    %1 = vector.shape_cast %0 : vector<1x16x32xbf16> to vector<16x32xbf16>
    %c0_2 = arith.constant 0 : index
    %c0_3 = arith.constant 0 : index
    %c0_4 = arith.constant 0 : index
    %2 = vector.load %arg3[%c0_2, %c0_3, %c0_4] : memref<1x6x32xbf16, #tpu.memory_space<vmem>>, vector<1x6x32xbf16>
    %3 = vector.shape_cast %2 : vector<1x6x32xbf16> to vector<6x32xbf16>
    %c0_5 = arith.constant 0 : index
    %c0_6 = arith.constant 0 : index
    %c0_7 = arith.constant 0 : index
    %4 = vector.load %arg4[%c0_5, %c0_6, %c0_7] : memref<1x6x32xbf16, #tpu.memory_space<vmem>>, vector<1x6x32xbf16>
    %5 = vector.shape_cast %4 : vector<1x6x32xbf16> to vector<6x32xbf16>
    %6 = vector.extract_strided_slice %1 {offsets = [0, 0], sizes = [16, 8], strides = [1, 1]} : vector<16x32xbf16> to vector<16x8xbf16>
    %7 = vector.extract_strided_slice %3 {offsets = [0, 0], sizes = [6, 8], strides = [1, 1]} : vector<6x32xbf16> to vector<6x8xbf16>
    %8 = vector.extract_strided_slice %5 {offsets = [0, 0], sizes = [6, 8], strides = [1, 1]} : vector<6x32xbf16> to vector<6x8xbf16>
    %cst = arith.constant dense<0.000000e+00> : vector<16x6xf32>
    %9 = tpu.matmul %6, %7, %cst {dimension_numbers = #tpu.dot_dimension_numbers<[1], [1], [0], [0], [0, 0, 1, 0], [], []>} : vector<16x8xbf16>, vector<6x8xbf16>, vector<16x6xf32> -> vector<16x6xf32>
    %cst_8 = arith.constant 0.353553385 : f32
    %10 = vector.broadcast %cst_8 : f32 to vector<16x6xf32>
    %11 = arith.mulf %9, %10 : vector<16x6xf32>
    %cst_9 = arith.constant dense<0xFF800000> : vector<16xf32>
    %12 = vector.multi_reduction <maximumf>, %11, %cst_9 [1] : vector<16x6xf32> to vector<16xf32>
    %13 = vector.shape_cast %12 : vector<16xf32> to vector<16x1xf32>
    %14 = vector.broadcast %13 : vector<16x1xf32> to vector<16x6xf32>
    %15 = arith.subf %11, %14 : vector<16x6xf32>
    %16 = math.exp %15 : vector<16x6xf32>
    %cst_10 = arith.constant dense<0.000000e+00> : vector<16xf32>
    %17 = vector.multi_reduction <add>, %16, %cst_10 [1] : vector<16x6xf32> to vector<16xf32>
    %18 = vector.shape_cast %17 : vector<16xf32> to vector<16x1xf32>
    %19 = tpu.reciprocal %18 {approx = true} : vector<16x1xf32> -> vector<16x1xf32>
    %20 = vector.broadcast %19 : vector<16x1xf32> to vector<16x6xf32>
    %21 = arith.mulf %16, %20 : vector<16x6xf32>
    %22 = arith.truncf %21 : vector<16x6xf32> to vector<16x6xbf16>
    %cst_11 = arith.constant dense<0.000000e+00> : vector<16x8xf32>
    %23 = tpu.matmul %22, %8, %cst_11 {dimension_numbers = #tpu.dot_dimension_numbers<[1], [0], [0], [1], [0, 0, 1, 1], [], []>} : vector<16x6xbf16>, vector<6x8xbf16>, vector<16x8xf32> -> vector<16x8xf32>
    %24 = vector.extract_strided_slice %1 {offsets = [0, 8], sizes = [16, 8], strides = [1, 1]} : vector<16x32xbf16> to vector<16x8xbf16>
    %25 = vector.extract_strided_slice %3 {offsets = [0, 8], sizes = [6, 8], strides = [1, 1]} : vector<6x32xbf16> to vector<6x8xbf16>
    %26 = vector.extract_strided_slice %5 {offsets = [0, 8], sizes = [6, 8], strides = [1, 1]} : vector<6x32xbf16> to vector<6x8xbf16>
    %cst_12 = arith.constant dense<0.000000e+00> : vector<16x6xf32>
    %27 = tpu.matmul %24, %25, %cst_12 {dimension_numbers = #tpu.dot_dimension_numbers<[1], [1], [0], [0], [0, 0, 1, 0], [], []>} : vector<16x8xbf16>, vector<6x8xbf16>, vector<16x6xf32> -> vector<16x6xf32>
    %cst_13 = arith.constant 0.353553385 : f32
    %28 = vector.broadcast %cst_13 : f32 to vector<16x6xf32>
    %29 = arith.mulf %27, %28 : vector<16x6xf32>
    %cst_14 = arith.constant dense<0xFF800000> : vector<16xf32>
    %30 = vector.multi_reduction <maximumf>, %29, %cst_14 [1] : vector<16x6xf32> to vector<16xf32>
    %31 = vector.shape_cast %30 : vector<16xf32> to vector<16x1xf32>
    %32 = vector.broadcast %31 : vector<16x1xf32> to vector<16x6xf32>
    %33 = arith.subf %29, %32 : vector<16x6xf32>
    %34 = math.exp %33 : vector<16x6xf32>
    %cst_15 = arith.constant dense<0.000000e+00> : vector<16xf32>
    %35 = vector.multi_reduction <add>, %34, %cst_15 [1] : vector<16x6xf32> to vector<16xf32>
    %36 = vector.shape_cast %35 : vector<16xf32> to vector<16x1xf32>
    %37 = tpu.reciprocal %36 {approx = true} : vector<16x1xf32> -> vector<16x1xf32>
    %38 = vector.broadcast %37 : vector<16x1xf32> to vector<16x6xf32>
    %39 = arith.mulf %34, %38 : vector<16x6xf32>
    %40 = arith.truncf %39 : vector<16x6xf32> to vector<16x6xbf16>
    %cst_16 = arith.constant dense<0.000000e+00> : vector<16x8xf32>
    %41 = tpu.matmul %40, %26, %cst_16 {dimension_numbers = #tpu.dot_dimension_numbers<[1], [0], [0], [1], [0, 0, 1, 1], [], []>} : vector<16x6xbf16>, vector<6x8xbf16>, vector<16x8xf32> -> vector<16x8xf32>
    %42 = vector.extract_strided_slice %1 {offsets = [0, 16], sizes = [16, 8], strides = [1, 1]} : vector<16x32xbf16> to vector<16x8xbf16>
    %43 = vector.extract_strided_slice %3 {offsets = [0, 16], sizes = [6, 8], strides = [1, 1]} : vector<6x32xbf16> to vector<6x8xbf16>
    %44 = vector.extract_strided_slice %5 {offsets = [0, 16], sizes = [6, 8], strides = [1, 1]} : vector<6x32xbf16> to vector<6x8xbf16>
    %cst_17 = arith.constant dense<0.000000e+00> : vector<16x6xf32>
    %45 = tpu.matmul %42, %43, %cst_17 {dimension_numbers = #tpu.dot_dimension_numbers<[1], [1], [0], [0], [0, 0, 1, 0], [], []>} : vector<16x8xbf16>, vector<6x8xbf16>, vector<16x6xf32> -> vector<16x6xf32>
    %cst_18 = arith.constant 0.353553385 : f32
    %46 = vector.broadcast %cst_18 : f32 to vector<16x6xf32>
    %47 = arith.mulf %45, %46 : vector<16x6xf32>
    %cst_19 = arith.constant dense<0xFF800000> : vector<16xf32>
    %48 = vector.multi_reduction <maximumf>, %47, %cst_19 [1] : vector<16x6xf32> to vector<16xf32>
    %49 = vector.shape_cast %48 : vector<16xf32> to vector<16x1xf32>
    %50 = vector.broadcast %49 : vector<16x1xf32> to vector<16x6xf32>
    %51 = arith.subf %47, %50 : vector<16x6xf32>
    %52 = math.exp %51 : vector<16x6xf32>
    %cst_20 = arith.constant dense<0.000000e+00> : vector<16xf32>
    %53 = vector.multi_reduction <add>, %52, %cst_20 [1] : vector<16x6xf32> to vector<16xf32>
    %54 = vector.shape_cast %53 : vector<16xf32> to vector<16x1xf32>
    %55 = tpu.reciprocal %54 {approx = true} : vector<16x1xf32> -> vector<16x1xf32>
    %56 = vector.broadcast %55 : vector<16x1xf32> to vector<16x6xf32>
    %57 = arith.mulf %52, %56 : vector<16x6xf32>
    %58 = arith.truncf %57 : vector<16x6xf32> to vector<16x6xbf16>
    %cst_21 = arith.constant dense<0.000000e+00> : vector<16x8xf32>
    %59 = tpu.matmul %58, %44, %cst_21 {dimension_numbers = #tpu.dot_dimension_numbers<[1], [0], [0], [1], [0, 0, 1, 1], [], []>} : vector<16x6xbf16>, vector<6x8xbf16>, vector<16x8xf32> -> vector<16x8xf32>
    %60 = vector.extract_strided_slice %1 {offsets = [0, 24], sizes = [16, 8], strides = [1, 1]} : vector<16x32xbf16> to vector<16x8xbf16>
    %61 = vector.extract_strided_slice %3 {offsets = [0, 24], sizes = [6, 8], strides = [1, 1]} : vector<6x32xbf16> to vector<6x8xbf16>
    %62 = vector.extract_strided_slice %5 {offsets = [0, 24], sizes = [6, 8], strides = [1, 1]} : vector<6x32xbf16> to vector<6x8xbf16>
    %cst_22 = arith.constant dense<0.000000e+00> : vector<16x6xf32>
    %63 = tpu.matmul %60, %61, %cst_22 {dimension_numbers = #tpu.dot_dimension_numbers<[1], [1], [0], [0], [0, 0, 1, 0], [], []>} : vector<16x8xbf16>, vector<6x8xbf16>, vector<16x6xf32> -> vector<16x6xf32>
    %cst_23 = arith.constant 0.353553385 : f32
    %64 = vector.broadcast %cst_23 : f32 to vector<16x6xf32>
    %65 = arith.mulf %63, %64 : vector<16x6xf32>
    %cst_24 = arith.constant dense<0xFF800000> : vector<16xf32>
    %66 = vector.multi_reduction <maximumf>, %65, %cst_24 [1] : vector<16x6xf32> to vector<16xf32>
    %67 = vector.shape_cast %66 : vector<16xf32> to vector<16x1xf32>
    %68 = vector.broadcast %67 : vector<16x1xf32> to vector<16x6xf32>
    %69 = arith.subf %65, %68 : vector<16x6xf32>
    %70 = math.exp %69 : vector<16x6xf32>
    %cst_25 = arith.constant dense<0.000000e+00> : vector<16xf32>
    %71 = vector.multi_reduction <add>, %70, %cst_25 [1] : vector<16x6xf32> to vector<16xf32>
    %72 = vector.shape_cast %71 : vector<16xf32> to vector<16x1xf32>
    %73 = tpu.reciprocal %72 {approx = true} : vector<16x1xf32> -> vector<16x1xf32>
    %74 = vector.broadcast %73 : vector<16x1xf32> to vector<16x6xf32>
    %75 = arith.mulf %70, %74 : vector<16x6xf32>
    %76 = arith.truncf %75 : vector<16x6xf32> to vector<16x6xbf16>
    %cst_26 = arith.constant dense<0.000000e+00> : vector<16x8xf32>
    %77 = tpu.matmul %76, %62, %cst_26 {dimension_numbers = #tpu.dot_dimension_numbers<[1], [0], [0], [1], [0, 0, 1, 1], [], []>} : vector<16x6xbf16>, vector<6x8xbf16>, vector<16x8xf32> -> vector<16x8xf32>
    %78 = tpu.concatenate %23, %41, %59, %77 in 1 : vector<16x8xf32>, vector<16x8xf32>, vector<16x8xf32>, vector<16x8xf32> -> vector<16x32xf32>
    %79 = arith.truncf %78 : vector<16x32xf32> to vector<16x32xbf16>
    %c0_27 = arith.constant 0 : index
    %c0_28 = arith.constant 0 : index
    %c0_29 = arith.constant 0 : index
    %80 = vector.load %arg5[%c0_27, %c0_28, %c0_29] : memref<1x16x32xbf16, #tpu.memory_space<vmem>>, vector<1x16x32xbf16>
    %81 = vector.shape_cast %80 : vector<1x16x32xbf16> to vector<16x32xbf16>
    %82 = vector.shape_cast %79 : vector<16x32xbf16> to vector<1x16x32xbf16>
    tpu.vector_store %arg5[%c0_27, %c0_28, %c0_29], %82 {strides = array<i32>} : memref<1x16x32xbf16, #tpu.memory_space<vmem>>, vector<1x16x32xbf16>,
    return
  }
  func.func @transform_0(%arg0: i32, %arg1: i32) -> (i32, i32, i32) {
    %c0_i32 = arith.constant 0 : i32
    %c0_i32_0 = arith.constant 0 : i32
    return %arg0, %c0_i32, %arg1 : i32, i32, i32
  }
  func.func @transform_1(%arg0: i32, %arg1: i32) -> (i32, i32, i32) {
    %c0_i32 = arith.constant 0 : i32
    %c0_i32_0 = arith.constant 0 : i32
    return %arg0, %c0_i32, %arg1 : i32, i32, i32
  }
  func.func @transform_2(%arg0: i32, %arg1: i32) -> (i32, i32, i32) {
    %c0_i32 = arith.constant 0 : i32
    %c0_i32_0 = arith.constant 0 : i32
    return %arg0, %c0_i32, %arg1 : i32, i32, i32
  }
  func.func @transform_3(%arg0: i32, %arg1: i32) -> (i32, i32, i32) {
    %c0_i32 = arith.constant 0 : i32
    %c0_i32_0 = arith.constant 0 : i32
    return %arg0, %c0_i32, %arg1 : i32, i32, i32
  }
}

module attributes {stable_mosaic.version = 11 : i64} {
  func.func @_outproj_res_ln_kernel(%arg0: i32, %arg1: i32, %arg2: memref<1x16x32xbf16, #tpu.memory_space<vmem>>, %arg3: memref<1x16x32xf32, #tpu.memory_space<vmem>>, %arg4: memref<32x32xf32, #tpu.memory_space<vmem>>, %arg5: memref<1x32xf32, #tpu.memory_space<vmem>>, %arg6: memref<1x32xf32, #tpu.memory_space<vmem>>, %arg7: memref<1x32xf32, #tpu.memory_space<vmem>>, %arg8: memref<1x16x32xf32, #tpu.memory_space<vmem>>) attributes {dimension_semantics = [#tpu.dimension_semantics<parallel>, #tpu.dimension_semantics<parallel>], iteration_bounds = array<i64: 2, 1>, scalar_prefetch = 0 : i64, scratch_operands = 0 : i64, tpu.core_type = #tpu.core_type<tc>, window_params = [{transform_indices = @transform_0, window_bounds = array<i64: 1, 16, 32>}, {transform_indices = @transform_1, window_bounds = array<i64: 1, 16, 32>}, {pipeline_mode = #tpu.pipeline_mode<synchronous>, transform_indices = @transform_2, window_bounds = array<i64: 32, 32>}, {pipeline_mode = #tpu.pipeline_mode<synchronous>, transform_indices = @transform_3, window_bounds = array<i64: 1, 32>}, {pipeline_mode = #tpu.pipeline_mode<synchronous>, transform_indices = @transform_4, window_bounds = array<i64: 1, 32>}, {pipeline_mode = #tpu.pipeline_mode<synchronous>, transform_indices = @transform_5, window_bounds = array<i64: 1, 32>}, {transform_indices = @transform_6, window_bounds = array<i64: 1, 16, 32>}]} {
    %c0 = arith.constant 0 : index
    %c0_0 = arith.constant 0 : index
    %c0_1 = arith.constant 0 : index
    %0 = vector.load %arg2[%c0, %c0_0, %c0_1] : memref<1x16x32xbf16, #tpu.memory_space<vmem>>, vector<1x16x32xbf16>
    %1 = vector.shape_cast %0 : vector<1x16x32xbf16> to vector<16x32xbf16>
    %c0_2 = arith.constant 0 : index
    %c0_3 = arith.constant 0 : index
    %2 = vector.load %arg4[%c0_2, %c0_3] : memref<32x32xf32, #tpu.memory_space<vmem>>, vector<32x32xf32>
    %3 = arith.truncf %2 : vector<32x32xf32> to vector<32x32xbf16>
    %cst = arith.constant dense<0.000000e+00> : vector<16x32xf32>
    %4 = tpu.matmul %1, %3, %cst {dimension_numbers = #tpu.dot_dimension_numbers<[1], [0], [0], [1], [0, 0, 1, 1], [], []>} : vector<16x32xbf16>, vector<32x32xbf16>, vector<16x32xf32> -> vector<16x32xf32>
    %c0_4 = arith.constant 0 : index
    %c0_5 = arith.constant 0 : index
    %5 = vector.load %arg5[%c0_4, %c0_5] : memref<1x32xf32, #tpu.memory_space<vmem>>, vector<1x32xf32>
    %6 = vector.broadcast %5 : vector<1x32xf32> to vector<16x32xf32>
    %7 = arith.addf %4, %6 : vector<16x32xf32>
    %c0_6 = arith.constant 0 : index
    %c0_7 = arith.constant 0 : index
    %c0_8 = arith.constant 0 : index
    %8 = vector.load %arg3[%c0_6, %c0_7, %c0_8] : memref<1x16x32xf32, #tpu.memory_space<vmem>>, vector<1x16x32xf32>
    %9 = vector.shape_cast %8 : vector<1x16x32xf32> to vector<16x32xf32>
    %10 = arith.addf %7, %9 : vector<16x32xf32>
    %cst_9 = arith.constant dense<0.000000e+00> : vector<16xf32>
    %11 = vector.multi_reduction <add>, %10, %cst_9 [1] : vector<16x32xf32> to vector<16xf32>
    %12 = vector.shape_cast %11 : vector<16xf32> to vector<16x1xf32>
    %cst_10 = arith.constant 3.200000e+01 : f32
    %13 = vector.broadcast %cst_10 : f32 to vector<16x1xf32>
    %14 = arith.divf %12, %13 : vector<16x1xf32>
    %15 = vector.broadcast %14 : vector<16x1xf32> to vector<16x32xf32>
    %16 = arith.subf %10, %15 : vector<16x32xf32>
    %17 = arith.mulf %16, %16 : vector<16x32xf32>
    %cst_11 = arith.constant dense<0.000000e+00> : vector<16xf32>
    %18 = vector.multi_reduction <add>, %17, %cst_11 [1] : vector<16x32xf32> to vector<16xf32>
    %19 = vector.shape_cast %18 : vector<16xf32> to vector<16x1xf32>
    %cst_12 = arith.constant 3.200000e+01 : f32
    %20 = vector.broadcast %cst_12 : f32 to vector<16x1xf32>
    %21 = arith.divf %19, %20 : vector<16x1xf32>
    %22 = vector.broadcast %14 : vector<16x1xf32> to vector<16x32xf32>
    %23 = arith.subf %10, %22 : vector<16x32xf32>
    %cst_13 = arith.constant 9.99999997E-7 : f32
    %24 = vector.broadcast %cst_13 : f32 to vector<16x1xf32>
    %25 = arith.addf %21, %24 : vector<16x1xf32>
    %26 = math.rsqrt %25 : vector<16x1xf32>
    %27 = vector.broadcast %26 : vector<16x1xf32> to vector<16x32xf32>
    %28 = arith.mulf %23, %27 : vector<16x32xf32>
    %c0_14 = arith.constant 0 : index
    %c0_15 = arith.constant 0 : index
    %29 = vector.load %arg6[%c0_14, %c0_15] : memref<1x32xf32, #tpu.memory_space<vmem>>, vector<1x32xf32>
    %30 = vector.broadcast %29 : vector<1x32xf32> to vector<16x32xf32>
    %31 = arith.mulf %28, %30 : vector<16x32xf32>
    %c0_16 = arith.constant 0 : index
    %c0_17 = arith.constant 0 : index
    %32 = vector.load %arg7[%c0_16, %c0_17] : memref<1x32xf32, #tpu.memory_space<vmem>>, vector<1x32xf32>
    %33 = vector.broadcast %32 : vector<1x32xf32> to vector<16x32xf32>
    %34 = arith.addf %31, %33 : vector<16x32xf32>
    %c0_18 = arith.constant 0 : index
    %c0_19 = arith.constant 0 : index
    %c0_20 = arith.constant 0 : index
    %35 = vector.load %arg8[%c0_18, %c0_19, %c0_20] : memref<1x16x32xf32, #tpu.memory_space<vmem>>, vector<1x16x32xf32>
    %36 = vector.shape_cast %35 : vector<1x16x32xf32> to vector<16x32xf32>
    %37 = vector.shape_cast %34 : vector<16x32xf32> to vector<1x16x32xf32>
    tpu.vector_store %arg8[%c0_18, %c0_19, %c0_20], %37 {strides = array<i32>} : memref<1x16x32xf32, #tpu.memory_space<vmem>>, vector<1x16x32xf32>,
    return
  }
  func.func @transform_0(%arg0: i32, %arg1: i32) -> (i32, i32, i32) {
    %c0_i32 = arith.constant 0 : i32
    %c0_i32_0 = arith.constant 0 : i32
    return %arg0, %arg1, %c0_i32 : i32, i32, i32
  }
  func.func @transform_1(%arg0: i32, %arg1: i32) -> (i32, i32, i32) {
    %c0_i32 = arith.constant 0 : i32
    %c0_i32_0 = arith.constant 0 : i32
    return %arg0, %arg1, %c0_i32 : i32, i32, i32
  }
  func.func @transform_2(%arg0: i32, %arg1: i32) -> (i32, i32) {
    %c0_i32 = arith.constant 0 : i32
    %c0_i32_0 = arith.constant 0 : i32
    %c0_i32_1 = arith.constant 0 : i32
    return %c0_i32, %c0_i32_0 : i32, i32
  }
  func.func @transform_3(%arg0: i32, %arg1: i32) -> (i32, i32) {
    %c0_i32 = arith.constant 0 : i32
    %c0_i32_0 = arith.constant 0 : i32
    %c0_i32_1 = arith.constant 0 : i32
    return %c0_i32, %c0_i32_0 : i32, i32
  }
  func.func @transform_4(%arg0: i32, %arg1: i32) -> (i32, i32) {
    %c0_i32 = arith.constant 0 : i32
    %c0_i32_0 = arith.constant 0 : i32
    %c0_i32_1 = arith.constant 0 : i32
    return %c0_i32, %c0_i32_0 : i32, i32
  }
  func.func @transform_5(%arg0: i32, %arg1: i32) -> (i32, i32) {
    %c0_i32 = arith.constant 0 : i32
    %c0_i32_0 = arith.constant 0 : i32
    %c0_i32_1 = arith.constant 0 : i32
    return %c0_i32, %c0_i32_0 : i32, i32
  }
  func.func @transform_6(%arg0: i32, %arg1: i32) -> (i32, i32, i32) {
    %c0_i32 = arith.constant 0 : i32
    %c0_i32_0 = arith.constant 0 : i32
    return %arg0, %arg1, %c0_i32 : i32, i32, i32
  }
}

module attributes {stable_mosaic.version = 11 : i64} {
  func.func @_dual_proj_kernel(%arg0: i32, %arg1: i32, %arg2: memref<1x6x32xf32, #tpu.memory_space<vmem>>, %arg3: memref<1x6x32xf32, #tpu.memory_space<vmem>>, %arg4: memref<32x64xf32, #tpu.memory_space<vmem>>, %arg5: memref<1x64xf32, #tpu.memory_space<vmem>>, %arg6: memref<32x32xf32, #tpu.memory_space<vmem>>, %arg7: memref<1x32xf32, #tpu.memory_space<vmem>>, %arg8: memref<1x6x64xbf16, #tpu.memory_space<vmem>>, %arg9: memref<1x6x32xbf16, #tpu.memory_space<vmem>>) attributes {dimension_semantics = [#tpu.dimension_semantics<parallel>, #tpu.dimension_semantics<parallel>], iteration_bounds = array<i64: 2, 1>, scalar_prefetch = 0 : i64, scratch_operands = 0 : i64, tpu.core_type = #tpu.core_type<tc>, window_params = [{transform_indices = @transform_0, window_bounds = array<i64: 1, 6, 32>}, {transform_indices = @transform_1, window_bounds = array<i64: 1, 6, 32>}, {pipeline_mode = #tpu.pipeline_mode<synchronous>, transform_indices = @transform_2, window_bounds = array<i64: 32, 64>}, {pipeline_mode = #tpu.pipeline_mode<synchronous>, transform_indices = @transform_3, window_bounds = array<i64: 1, 64>}, {pipeline_mode = #tpu.pipeline_mode<synchronous>, transform_indices = @transform_4, window_bounds = array<i64: 32, 32>}, {pipeline_mode = #tpu.pipeline_mode<synchronous>, transform_indices = @transform_5, window_bounds = array<i64: 1, 32>}, {transform_indices = @transform_6, window_bounds = array<i64: 1, 6, 64>}, {transform_indices = @transform_7, window_bounds = array<i64: 1, 6, 32>}]} {
    %c0 = arith.constant 0 : index
    %c0_0 = arith.constant 0 : index
    %c0_1 = arith.constant 0 : index
    %0 = vector.load %arg2[%c0, %c0_0, %c0_1] : memref<1x6x32xf32, #tpu.memory_space<vmem>>, vector<1x6x32xf32>
    %1 = vector.shape_cast %0 : vector<1x6x32xf32> to vector<6x32xf32>
    %c0_2 = arith.constant 0 : index
    %c0_3 = arith.constant 0 : index
    %c0_4 = arith.constant 0 : index
    %2 = vector.load %arg3[%c0_2, %c0_3, %c0_4] : memref<1x6x32xf32, #tpu.memory_space<vmem>>, vector<1x6x32xf32>
    %3 = vector.shape_cast %2 : vector<1x6x32xf32> to vector<6x32xf32>
    %4 = arith.addf %1, %3 : vector<6x32xf32>
    %5 = arith.truncf %4 : vector<6x32xf32> to vector<6x32xbf16>
    %c0_5 = arith.constant 0 : index
    %c0_6 = arith.constant 0 : index
    %6 = vector.load %arg4[%c0_5, %c0_6] : memref<32x64xf32, #tpu.memory_space<vmem>>, vector<32x64xf32>
    %7 = arith.truncf %6 : vector<32x64xf32> to vector<32x64xbf16>
    %cst = arith.constant dense<0.000000e+00> : vector<6x64xf32>
    %8 = tpu.matmul %5, %7, %cst {dimension_numbers = #tpu.dot_dimension_numbers<[1], [0], [0], [1], [0, 0, 1, 1], [], []>} : vector<6x32xbf16>, vector<32x64xbf16>, vector<6x64xf32> -> vector<6x64xf32>
    %c0_7 = arith.constant 0 : index
    %c0_8 = arith.constant 0 : index
    %9 = vector.load %arg5[%c0_7, %c0_8] : memref<1x64xf32, #tpu.memory_space<vmem>>, vector<1x64xf32>
    %10 = vector.broadcast %9 : vector<1x64xf32> to vector<6x64xf32>
    %11 = arith.addf %8, %10 : vector<6x64xf32>
    %12 = arith.truncf %11 : vector<6x64xf32> to vector<6x64xbf16>
    %c0_9 = arith.constant 0 : index
    %c0_10 = arith.constant 0 : index
    %c0_11 = arith.constant 0 : index
    %13 = vector.load %arg8[%c0_9, %c0_10, %c0_11] : memref<1x6x64xbf16, #tpu.memory_space<vmem>>, vector<1x6x64xbf16>
    %14 = vector.shape_cast %13 : vector<1x6x64xbf16> to vector<6x64xbf16>
    %15 = vector.shape_cast %12 : vector<6x64xbf16> to vector<1x6x64xbf16>
    tpu.vector_store %arg8[%c0_9, %c0_10, %c0_11], %15 {strides = array<i32>} : memref<1x6x64xbf16, #tpu.memory_space<vmem>>, vector<1x6x64xbf16>,
    %16 = arith.truncf %1 : vector<6x32xf32> to vector<6x32xbf16>
    %c0_12 = arith.constant 0 : index
    %c0_13 = arith.constant 0 : index
    %17 = vector.load %arg6[%c0_12, %c0_13] : memref<32x32xf32, #tpu.memory_space<vmem>>, vector<32x32xf32>
    %18 = arith.truncf %17 : vector<32x32xf32> to vector<32x32xbf16>
    %cst_14 = arith.constant dense<0.000000e+00> : vector<6x32xf32>
    %19 = tpu.matmul %16, %18, %cst_14 {dimension_numbers = #tpu.dot_dimension_numbers<[1], [0], [0], [1], [0, 0, 1, 1], [], []>} : vector<6x32xbf16>, vector<32x32xbf16>, vector<6x32xf32> -> vector<6x32xf32>
    %c0_15 = arith.constant 0 : index
    %c0_16 = arith.constant 0 : index
    %20 = vector.load %arg7[%c0_15, %c0_16] : memref<1x32xf32, #tpu.memory_space<vmem>>, vector<1x32xf32>
    %21 = vector.broadcast %20 : vector<1x32xf32> to vector<6x32xf32>
    %22 = arith.addf %19, %21 : vector<6x32xf32>
    %23 = arith.truncf %22 : vector<6x32xf32> to vector<6x32xbf16>
    %c0_17 = arith.constant 0 : index
    %c0_18 = arith.constant 0 : index
    %c0_19 = arith.constant 0 : index
    %24 = vector.load %arg9[%c0_17, %c0_18, %c0_19] : memref<1x6x32xbf16, #tpu.memory_space<vmem>>, vector<1x6x32xbf16>
    %25 = vector.shape_cast %24 : vector<1x6x32xbf16> to vector<6x32xbf16>
    %26 = vector.shape_cast %23 : vector<6x32xbf16> to vector<1x6x32xbf16>
    tpu.vector_store %arg9[%c0_17, %c0_18, %c0_19], %26 {strides = array<i32>} : memref<1x6x32xbf16, #tpu.memory_space<vmem>>, vector<1x6x32xbf16>,
    return
  }
  func.func @transform_0(%arg0: i32, %arg1: i32) -> (i32, i32, i32) {
    %c0_i32 = arith.constant 0 : i32
    %c0_i32_0 = arith.constant 0 : i32
    return %arg0, %arg1, %c0_i32 : i32, i32, i32
  }
  func.func @transform_1(%arg0: i32, %arg1: i32) -> (i32, i32, i32) {
    %c0_i32 = arith.constant 0 : i32
    %c0_i32_0 = arith.constant 0 : i32
    return %arg0, %arg1, %c0_i32 : i32, i32, i32
  }
  func.func @transform_2(%arg0: i32, %arg1: i32) -> (i32, i32) {
    %c0_i32 = arith.constant 0 : i32
    %c0_i32_0 = arith.constant 0 : i32
    %c0_i32_1 = arith.constant 0 : i32
    return %c0_i32, %c0_i32_0 : i32, i32
  }
  func.func @transform_3(%arg0: i32, %arg1: i32) -> (i32, i32) {
    %c0_i32 = arith.constant 0 : i32
    %c0_i32_0 = arith.constant 0 : i32
    %c0_i32_1 = arith.constant 0 : i32
    return %c0_i32, %c0_i32_0 : i32, i32
  }
  func.func @transform_4(%arg0: i32, %arg1: i32) -> (i32, i32) {
    %c0_i32 = arith.constant 0 : i32
    %c0_i32_0 = arith.constant 0 : i32
    %c0_i32_1 = arith.constant 0 : i32
    return %c0_i32, %c0_i32_0 : i32, i32
  }
  func.func @transform_5(%arg0: i32, %arg1: i32) -> (i32, i32) {
    %c0_i32 = arith.constant 0 : i32
    %c0_i32_0 = arith.constant 0 : i32
    %c0_i32_1 = arith.constant 0 : i32
    return %c0_i32, %c0_i32_0 : i32, i32
  }
  func.func @transform_6(%arg0: i32, %arg1: i32) -> (i32, i32, i32) {
    %c0_i32 = arith.constant 0 : i32
    %c0_i32_0 = arith.constant 0 : i32
    return %arg0, %arg1, %c0_i32 : i32, i32, i32
  }
  func.func @transform_7(%arg0: i32, %arg1: i32) -> (i32, i32, i32) {
    %c0_i32 = arith.constant 0 : i32
    %c0_i32_0 = arith.constant 0 : i32
    return %arg0, %arg1, %c0_i32 : i32, i32, i32
  }
}

module attributes {stable_mosaic.version = 11 : i64} {
  func.func @_linear_kernel(%arg0: i32, %arg1: memref<32x32xf32, #tpu.memory_space<vmem>>, %arg2: memref<32x32xf32, #tpu.memory_space<vmem>>, %arg3: memref<1x32xf32, #tpu.memory_space<vmem>>, %arg4: memref<32x32xbf16, #tpu.memory_space<vmem>>) attributes {dimension_semantics = [#tpu.dimension_semantics<parallel>], iteration_bounds = array<i64: 1>, scalar_prefetch = 0 : i64, scratch_operands = 0 : i64, tpu.core_type = #tpu.core_type<tc>, window_params = [{transform_indices = @transform_0, window_bounds = array<i64: 32, 32>}, {pipeline_mode = #tpu.pipeline_mode<synchronous>, transform_indices = @transform_1, window_bounds = array<i64: 32, 32>}, {pipeline_mode = #tpu.pipeline_mode<synchronous>, transform_indices = @transform_2, window_bounds = array<i64: 1, 32>}, {transform_indices = @transform_3, window_bounds = array<i64: 32, 32>}]} {
    %c0 = arith.constant 0 : index
    %c0_0 = arith.constant 0 : index
    %0 = vector.load %arg1[%c0, %c0_0] : memref<32x32xf32, #tpu.memory_space<vmem>>, vector<32x32xf32>
    %1 = arith.truncf %0 : vector<32x32xf32> to vector<32x32xbf16>
    %c0_1 = arith.constant 0 : index
    %c0_2 = arith.constant 0 : index
    %2 = vector.load %arg2[%c0_1, %c0_2] : memref<32x32xf32, #tpu.memory_space<vmem>>, vector<32x32xf32>
    %3 = arith.truncf %2 : vector<32x32xf32> to vector<32x32xbf16>
    %cst = arith.constant dense<0.000000e+00> : vector<32x32xf32>
    %4 = tpu.matmul %1, %3, %cst {dimension_numbers = #tpu.dot_dimension_numbers<[1], [0], [0], [1], [0, 0, 1, 1], [], []>} : vector<32x32xbf16>, vector<32x32xbf16>, vector<32x32xf32> -> vector<32x32xf32>
    %c0_3 = arith.constant 0 : index
    %c0_4 = arith.constant 0 : index
    %5 = vector.load %arg3[%c0_3, %c0_4] : memref<1x32xf32, #tpu.memory_space<vmem>>, vector<1x32xf32>
    %6 = vector.broadcast %5 : vector<1x32xf32> to vector<32x32xf32>
    %7 = arith.addf %4, %6 : vector<32x32xf32>
    %8 = arith.truncf %7 : vector<32x32xf32> to vector<32x32xbf16>
    %c0_5 = arith.constant 0 : index
    %c0_6 = arith.constant 0 : index
    %9 = vector.load %arg4[%c0_5, %c0_6] : memref<32x32xbf16, #tpu.memory_space<vmem>>, vector<32x32xbf16>
    tpu.vector_store %arg4[%c0_5, %c0_6], %8 {strides = array<i32>} : memref<32x32xbf16, #tpu.memory_space<vmem>>, vector<32x32xbf16>,
    return
  }
  func.func @transform_0(%arg0: i32) -> (i32, i32) {
    %c0_i32 = arith.constant 0 : i32
    %c0_i32_0 = arith.constant 0 : i32
    return %arg0, %c0_i32 : i32, i32
  }
  func.func @transform_1(%arg0: i32) -> (i32, i32) {
    %c0_i32 = arith.constant 0 : i32
    %c0_i32_0 = arith.constant 0 : i32
    %c0_i32_1 = arith.constant 0 : i32
    return %c0_i32, %c0_i32_0 : i32, i32
  }
  func.func @transform_2(%arg0: i32) -> (i32, i32) {
    %c0_i32 = arith.constant 0 : i32
    %c0_i32_0 = arith.constant 0 : i32
    %c0_i32_1 = arith.constant 0 : i32
    return %c0_i32, %c0_i32_0 : i32, i32
  }
  func.func @transform_3(%arg0: i32) -> (i32, i32) {
    %c0_i32 = arith.constant 0 : i32
    %c0_i32_0 = arith.constant 0 : i32
    return %arg0, %c0_i32 : i32, i32
  }
}

module attributes {stable_mosaic.version = 11 : i64} {
  func.func @_attn_kernel(%arg0: i32, %arg1: i32, %arg2: memref<1x10x32xbf16, #tpu.memory_space<vmem>>, %arg3: memref<1x10x32xbf16, #tpu.memory_space<vmem>>, %arg4: memref<1x10x32xbf16, #tpu.memory_space<vmem>>, %arg5: memref<1x10x32xbf16, #tpu.memory_space<vmem>>) attributes {dimension_semantics = [#tpu.dimension_semantics<parallel>, #tpu.dimension_semantics<parallel>], iteration_bounds = array<i64: 2, 1>, scalar_prefetch = 0 : i64, scratch_operands = 0 : i64, tpu.core_type = #tpu.core_type<tc>, window_params = [{transform_indices = @transform_0, window_bounds = array<i64: 1, 10, 32>}, {transform_indices = @transform_1, window_bounds = array<i64: 1, 10, 32>}, {transform_indices = @transform_2, window_bounds = array<i64: 1, 10, 32>}, {transform_indices = @transform_3, window_bounds = array<i64: 1, 10, 32>}]} {
    %c0 = arith.constant 0 : index
    %c0_0 = arith.constant 0 : index
    %c0_1 = arith.constant 0 : index
    %0 = vector.load %arg2[%c0, %c0_0, %c0_1] : memref<1x10x32xbf16, #tpu.memory_space<vmem>>, vector<1x10x32xbf16>
    %1 = vector.shape_cast %0 : vector<1x10x32xbf16> to vector<10x32xbf16>
    %c0_2 = arith.constant 0 : index
    %c0_3 = arith.constant 0 : index
    %c0_4 = arith.constant 0 : index
    %2 = vector.load %arg3[%c0_2, %c0_3, %c0_4] : memref<1x10x32xbf16, #tpu.memory_space<vmem>>, vector<1x10x32xbf16>
    %3 = vector.shape_cast %2 : vector<1x10x32xbf16> to vector<10x32xbf16>
    %c0_5 = arith.constant 0 : index
    %c0_6 = arith.constant 0 : index
    %c0_7 = arith.constant 0 : index
    %4 = vector.load %arg4[%c0_5, %c0_6, %c0_7] : memref<1x10x32xbf16, #tpu.memory_space<vmem>>, vector<1x10x32xbf16>
    %5 = vector.shape_cast %4 : vector<1x10x32xbf16> to vector<10x32xbf16>
    %6 = vector.extract_strided_slice %1 {offsets = [0, 0], sizes = [10, 8], strides = [1, 1]} : vector<10x32xbf16> to vector<10x8xbf16>
    %7 = vector.extract_strided_slice %3 {offsets = [0, 0], sizes = [10, 8], strides = [1, 1]} : vector<10x32xbf16> to vector<10x8xbf16>
    %8 = vector.extract_strided_slice %5 {offsets = [0, 0], sizes = [10, 8], strides = [1, 1]} : vector<10x32xbf16> to vector<10x8xbf16>
    %cst = arith.constant dense<0.000000e+00> : vector<10x10xf32>
    %9 = tpu.matmul %6, %7, %cst {dimension_numbers = #tpu.dot_dimension_numbers<[1], [1], [0], [0], [0, 0, 1, 0], [], []>} : vector<10x8xbf16>, vector<10x8xbf16>, vector<10x10xf32> -> vector<10x10xf32>
    %cst_8 = arith.constant 0.353553385 : f32
    %10 = vector.broadcast %cst_8 : f32 to vector<10x10xf32>
    %11 = arith.mulf %9, %10 : vector<10x10xf32>
    %cst_9 = arith.constant dense<0xFF800000> : vector<10xf32>
    %12 = vector.multi_reduction <maximumf>, %11, %cst_9 [1] : vector<10x10xf32> to vector<10xf32>
    %13 = vector.shape_cast %12 : vector<10xf32> to vector<10x1xf32>
    %14 = vector.broadcast %13 : vector<10x1xf32> to vector<10x10xf32>
    %15 = arith.subf %11, %14 : vector<10x10xf32>
    %16 = math.exp %15 : vector<10x10xf32>
    %cst_10 = arith.constant dense<0.000000e+00> : vector<10xf32>
    %17 = vector.multi_reduction <add>, %16, %cst_10 [1] : vector<10x10xf32> to vector<10xf32>
    %18 = vector.shape_cast %17 : vector<10xf32> to vector<10x1xf32>
    %19 = tpu.reciprocal %18 {approx = true} : vector<10x1xf32> -> vector<10x1xf32>
    %20 = vector.broadcast %19 : vector<10x1xf32> to vector<10x10xf32>
    %21 = arith.mulf %16, %20 : vector<10x10xf32>
    %22 = arith.truncf %21 : vector<10x10xf32> to vector<10x10xbf16>
    %cst_11 = arith.constant dense<0.000000e+00> : vector<10x8xf32>
    %23 = tpu.matmul %22, %8, %cst_11 {dimension_numbers = #tpu.dot_dimension_numbers<[1], [0], [0], [1], [0, 0, 1, 1], [], []>} : vector<10x10xbf16>, vector<10x8xbf16>, vector<10x8xf32> -> vector<10x8xf32>
    %24 = vector.extract_strided_slice %1 {offsets = [0, 8], sizes = [10, 8], strides = [1, 1]} : vector<10x32xbf16> to vector<10x8xbf16>
    %25 = vector.extract_strided_slice %3 {offsets = [0, 8], sizes = [10, 8], strides = [1, 1]} : vector<10x32xbf16> to vector<10x8xbf16>
    %26 = vector.extract_strided_slice %5 {offsets = [0, 8], sizes = [10, 8], strides = [1, 1]} : vector<10x32xbf16> to vector<10x8xbf16>
    %cst_12 = arith.constant dense<0.000000e+00> : vector<10x10xf32>
    %27 = tpu.matmul %24, %25, %cst_12 {dimension_numbers = #tpu.dot_dimension_numbers<[1], [1], [0], [0], [0, 0, 1, 0], [], []>} : vector<10x8xbf16>, vector<10x8xbf16>, vector<10x10xf32> -> vector<10x10xf32>
    %cst_13 = arith.constant 0.353553385 : f32
    %28 = vector.broadcast %cst_13 : f32 to vector<10x10xf32>
    %29 = arith.mulf %27, %28 : vector<10x10xf32>
    %cst_14 = arith.constant dense<0xFF800000> : vector<10xf32>
    %30 = vector.multi_reduction <maximumf>, %29, %cst_14 [1] : vector<10x10xf32> to vector<10xf32>
    %31 = vector.shape_cast %30 : vector<10xf32> to vector<10x1xf32>
    %32 = vector.broadcast %31 : vector<10x1xf32> to vector<10x10xf32>
    %33 = arith.subf %29, %32 : vector<10x10xf32>
    %34 = math.exp %33 : vector<10x10xf32>
    %cst_15 = arith.constant dense<0.000000e+00> : vector<10xf32>
    %35 = vector.multi_reduction <add>, %34, %cst_15 [1] : vector<10x10xf32> to vector<10xf32>
    %36 = vector.shape_cast %35 : vector<10xf32> to vector<10x1xf32>
    %37 = tpu.reciprocal %36 {approx = true} : vector<10x1xf32> -> vector<10x1xf32>
    %38 = vector.broadcast %37 : vector<10x1xf32> to vector<10x10xf32>
    %39 = arith.mulf %34, %38 : vector<10x10xf32>
    %40 = arith.truncf %39 : vector<10x10xf32> to vector<10x10xbf16>
    %cst_16 = arith.constant dense<0.000000e+00> : vector<10x8xf32>
    %41 = tpu.matmul %40, %26, %cst_16 {dimension_numbers = #tpu.dot_dimension_numbers<[1], [0], [0], [1], [0, 0, 1, 1], [], []>} : vector<10x10xbf16>, vector<10x8xbf16>, vector<10x8xf32> -> vector<10x8xf32>
    %42 = vector.extract_strided_slice %1 {offsets = [0, 16], sizes = [10, 8], strides = [1, 1]} : vector<10x32xbf16> to vector<10x8xbf16>
    %43 = vector.extract_strided_slice %3 {offsets = [0, 16], sizes = [10, 8], strides = [1, 1]} : vector<10x32xbf16> to vector<10x8xbf16>
    %44 = vector.extract_strided_slice %5 {offsets = [0, 16], sizes = [10, 8], strides = [1, 1]} : vector<10x32xbf16> to vector<10x8xbf16>
    %cst_17 = arith.constant dense<0.000000e+00> : vector<10x10xf32>
    %45 = tpu.matmul %42, %43, %cst_17 {dimension_numbers = #tpu.dot_dimension_numbers<[1], [1], [0], [0], [0, 0, 1, 0], [], []>} : vector<10x8xbf16>, vector<10x8xbf16>, vector<10x10xf32> -> vector<10x10xf32>
    %cst_18 = arith.constant 0.353553385 : f32
    %46 = vector.broadcast %cst_18 : f32 to vector<10x10xf32>
    %47 = arith.mulf %45, %46 : vector<10x10xf32>
    %cst_19 = arith.constant dense<0xFF800000> : vector<10xf32>
    %48 = vector.multi_reduction <maximumf>, %47, %cst_19 [1] : vector<10x10xf32> to vector<10xf32>
    %49 = vector.shape_cast %48 : vector<10xf32> to vector<10x1xf32>
    %50 = vector.broadcast %49 : vector<10x1xf32> to vector<10x10xf32>
    %51 = arith.subf %47, %50 : vector<10x10xf32>
    %52 = math.exp %51 : vector<10x10xf32>
    %cst_20 = arith.constant dense<0.000000e+00> : vector<10xf32>
    %53 = vector.multi_reduction <add>, %52, %cst_20 [1] : vector<10x10xf32> to vector<10xf32>
    %54 = vector.shape_cast %53 : vector<10xf32> to vector<10x1xf32>
    %55 = tpu.reciprocal %54 {approx = true} : vector<10x1xf32> -> vector<10x1xf32>
    %56 = vector.broadcast %55 : vector<10x1xf32> to vector<10x10xf32>
    %57 = arith.mulf %52, %56 : vector<10x10xf32>
    %58 = arith.truncf %57 : vector<10x10xf32> to vector<10x10xbf16>
    %cst_21 = arith.constant dense<0.000000e+00> : vector<10x8xf32>
    %59 = tpu.matmul %58, %44, %cst_21 {dimension_numbers = #tpu.dot_dimension_numbers<[1], [0], [0], [1], [0, 0, 1, 1], [], []>} : vector<10x10xbf16>, vector<10x8xbf16>, vector<10x8xf32> -> vector<10x8xf32>
    %60 = vector.extract_strided_slice %1 {offsets = [0, 24], sizes = [10, 8], strides = [1, 1]} : vector<10x32xbf16> to vector<10x8xbf16>
    %61 = vector.extract_strided_slice %3 {offsets = [0, 24], sizes = [10, 8], strides = [1, 1]} : vector<10x32xbf16> to vector<10x8xbf16>
    %62 = vector.extract_strided_slice %5 {offsets = [0, 24], sizes = [10, 8], strides = [1, 1]} : vector<10x32xbf16> to vector<10x8xbf16>
    %cst_22 = arith.constant dense<0.000000e+00> : vector<10x10xf32>
    %63 = tpu.matmul %60, %61, %cst_22 {dimension_numbers = #tpu.dot_dimension_numbers<[1], [1], [0], [0], [0, 0, 1, 0], [], []>} : vector<10x8xbf16>, vector<10x8xbf16>, vector<10x10xf32> -> vector<10x10xf32>
    %cst_23 = arith.constant 0.353553385 : f32
    %64 = vector.broadcast %cst_23 : f32 to vector<10x10xf32>
    %65 = arith.mulf %63, %64 : vector<10x10xf32>
    %cst_24 = arith.constant dense<0xFF800000> : vector<10xf32>
    %66 = vector.multi_reduction <maximumf>, %65, %cst_24 [1] : vector<10x10xf32> to vector<10xf32>
    %67 = vector.shape_cast %66 : vector<10xf32> to vector<10x1xf32>
    %68 = vector.broadcast %67 : vector<10x1xf32> to vector<10x10xf32>
    %69 = arith.subf %65, %68 : vector<10x10xf32>
    %70 = math.exp %69 : vector<10x10xf32>
    %cst_25 = arith.constant dense<0.000000e+00> : vector<10xf32>
    %71 = vector.multi_reduction <add>, %70, %cst_25 [1] : vector<10x10xf32> to vector<10xf32>
    %72 = vector.shape_cast %71 : vector<10xf32> to vector<10x1xf32>
    %73 = tpu.reciprocal %72 {approx = true} : vector<10x1xf32> -> vector<10x1xf32>
    %74 = vector.broadcast %73 : vector<10x1xf32> to vector<10x10xf32>
    %75 = arith.mulf %70, %74 : vector<10x10xf32>
    %76 = arith.truncf %75 : vector<10x10xf32> to vector<10x10xbf16>
    %cst_26 = arith.constant dense<0.000000e+00> : vector<10x8xf32>
    %77 = tpu.matmul %76, %62, %cst_26 {dimension_numbers = #tpu.dot_dimension_numbers<[1], [0], [0], [1], [0, 0, 1, 1], [], []>} : vector<10x10xbf16>, vector<10x8xbf16>, vector<10x8xf32> -> vector<10x8xf32>
    %78 = tpu.concatenate %23, %41, %59, %77 in 1 : vector<10x8xf32>, vector<10x8xf32>, vector<10x8xf32>, vector<10x8xf32> -> vector<10x32xf32>
    %79 = arith.truncf %78 : vector<10x32xf32> to vector<10x32xbf16>
    %c0_27 = arith.constant 0 : index
    %c0_28 = arith.constant 0 : index
    %c0_29 = arith.constant 0 : index
    %80 = vector.load %arg5[%c0_27, %c0_28, %c0_29] : memref<1x10x32xbf16, #tpu.memory_space<vmem>>, vector<1x10x32xbf16>
    %81 = vector.shape_cast %80 : vector<1x10x32xbf16> to vector<10x32xbf16>
    %82 = vector.shape_cast %79 : vector<10x32xbf16> to vector<1x10x32xbf16>
    tpu.vector_store %arg5[%c0_27, %c0_28, %c0_29], %82 {strides = array<i32>} : memref<1x10x32xbf16, #tpu.memory_space<vmem>>, vector<1x10x32xbf16>,
    return
  }
  func.func @transform_0(%arg0: i32, %arg1: i32) -> (i32, i32, i32) {
    %c0_i32 = arith.constant 0 : i32
    %c0_i32_0 = arith.constant 0 : i32
    return %arg0, %c0_i32, %arg1 : i32, i32, i32
  }
  func.func @transform_1(%arg0: i32, %arg1: i32) -> (i32, i32, i32) {
    %c0_i32 = arith.constant 0 : i32
    %c0_i32_0 = arith.constant 0 : i32
    return %arg0, %c0_i32, %arg1 : i32, i32, i32
  }
  func.func @transform_2(%arg0: i32, %arg1: i32) -> (i32, i32, i32) {
    %c0_i32 = arith.constant 0 : i32
    %c0_i32_0 = arith.constant 0 : i32
    return %arg0, %c0_i32, %arg1 : i32, i32, i32
  }
  func.func @transform_3(%arg0: i32, %arg1: i32) -> (i32, i32, i32) {
    %c0_i32 = arith.constant 0 : i32
    %c0_i32_0 = arith.constant 0 : i32
    return %arg0, %c0_i32, %arg1 : i32, i32, i32
  }
}

module attributes {stable_mosaic.version = 11 : i64} {
  func.func @_linear_kernel(%arg0: i32, %arg1: memref<20x32xf32, #tpu.memory_space<vmem>>, %arg2: memref<32x96xf32, #tpu.memory_space<vmem>>, %arg3: memref<1x96xf32, #tpu.memory_space<vmem>>, %arg4: memref<20x96xbf16, #tpu.memory_space<vmem>>) attributes {dimension_semantics = [#tpu.dimension_semantics<parallel>], iteration_bounds = array<i64: 1>, scalar_prefetch = 0 : i64, scratch_operands = 0 : i64, tpu.core_type = #tpu.core_type<tc>, window_params = [{transform_indices = @transform_0, window_bounds = array<i64: 20, 32>}, {pipeline_mode = #tpu.pipeline_mode<synchronous>, transform_indices = @transform_1, window_bounds = array<i64: 32, 96>}, {pipeline_mode = #tpu.pipeline_mode<synchronous>, transform_indices = @transform_2, window_bounds = array<i64: 1, 96>}, {transform_indices = @transform_3, window_bounds = array<i64: 20, 96>}]} {
    %c0 = arith.constant 0 : index
    %c0_0 = arith.constant 0 : index
    %0 = vector.load %arg1[%c0, %c0_0] : memref<20x32xf32, #tpu.memory_space<vmem>>, vector<20x32xf32>
    %1 = arith.truncf %0 : vector<20x32xf32> to vector<20x32xbf16>
    %c0_1 = arith.constant 0 : index
    %c0_2 = arith.constant 0 : index
    %2 = vector.load %arg2[%c0_1, %c0_2] : memref<32x96xf32, #tpu.memory_space<vmem>>, vector<32x96xf32>
    %3 = arith.truncf %2 : vector<32x96xf32> to vector<32x96xbf16>
    %cst = arith.constant dense<0.000000e+00> : vector<20x96xf32>
    %4 = tpu.matmul %1, %3, %cst {dimension_numbers = #tpu.dot_dimension_numbers<[1], [0], [0], [1], [0, 0, 1, 1], [], []>} : vector<20x32xbf16>, vector<32x96xbf16>, vector<20x96xf32> -> vector<20x96xf32>
    %c0_3 = arith.constant 0 : index
    %c0_4 = arith.constant 0 : index
    %5 = vector.load %arg3[%c0_3, %c0_4] : memref<1x96xf32, #tpu.memory_space<vmem>>, vector<1x96xf32>
    %6 = vector.broadcast %5 : vector<1x96xf32> to vector<20x96xf32>
    %7 = arith.addf %4, %6 : vector<20x96xf32>
    %8 = arith.truncf %7 : vector<20x96xf32> to vector<20x96xbf16>
    %c0_5 = arith.constant 0 : index
    %c0_6 = arith.constant 0 : index
    %9 = vector.load %arg4[%c0_5, %c0_6] : memref<20x96xbf16, #tpu.memory_space<vmem>>, vector<20x96xbf16>
    tpu.vector_store %arg4[%c0_5, %c0_6], %8 {strides = array<i32>} : memref<20x96xbf16, #tpu.memory_space<vmem>>, vector<20x96xbf16>,
    return
  }
  func.func @transform_0(%arg0: i32) -> (i32, i32) {
    %c0_i32 = arith.constant 0 : i32
    %c0_i32_0 = arith.constant 0 : i32
    return %arg0, %c0_i32 : i32, i32
  }
  func.func @transform_1(%arg0: i32) -> (i32, i32) {
    %c0_i32 = arith.constant 0 : i32
    %c0_i32_0 = arith.constant 0 : i32
    %c0_i32_1 = arith.constant 0 : i32
    return %c0_i32, %c0_i32_0 : i32, i32
  }
  func.func @transform_2(%arg0: i32) -> (i32, i32) {
    %c0_i32 = arith.constant 0 : i32
    %c0_i32_0 = arith.constant 0 : i32
    %c0_i32_1 = arith.constant 0 : i32
    return %c0_i32, %c0_i32_0 : i32, i32
  }
  func.func @transform_3(%arg0: i32) -> (i32, i32) {
    %c0_i32 = arith.constant 0 : i32
    %c0_i32_0 = arith.constant 0 : i32
    return %arg0, %c0_i32 : i32, i32
  }
}

module attributes {stable_mosaic.version = 11 : i64} {
  func.func @_linear_pe_kernel(%arg0: i32, %arg1: i32, %arg2: memref<1x10x32xf32, #tpu.memory_space<vmem>>, %arg3: memref<1x10x32xf32, #tpu.memory_space<vmem>>, %arg4: memref<32x32xf32, #tpu.memory_space<vmem>>, %arg5: memref<1x32xf32, #tpu.memory_space<vmem>>, %arg6: memref<1x10x32xbf16, #tpu.memory_space<vmem>>) attributes {dimension_semantics = [#tpu.dimension_semantics<parallel>, #tpu.dimension_semantics<parallel>], iteration_bounds = array<i64: 2, 1>, scalar_prefetch = 0 : i64, scratch_operands = 0 : i64, tpu.core_type = #tpu.core_type<tc>, window_params = [{transform_indices = @transform_0, window_bounds = array<i64: 1, 10, 32>}, {transform_indices = @transform_1, window_bounds = array<i64: 1, 10, 32>}, {pipeline_mode = #tpu.pipeline_mode<synchronous>, transform_indices = @transform_2, window_bounds = array<i64: 32, 32>}, {pipeline_mode = #tpu.pipeline_mode<synchronous>, transform_indices = @transform_3, window_bounds = array<i64: 1, 32>}, {transform_indices = @transform_4, window_bounds = array<i64: 1, 10, 32>}]} {
    %c0 = arith.constant 0 : index
    %c0_0 = arith.constant 0 : index
    %c0_1 = arith.constant 0 : index
    %0 = vector.load %arg2[%c0, %c0_0, %c0_1] : memref<1x10x32xf32, #tpu.memory_space<vmem>>, vector<1x10x32xf32>
    %1 = vector.shape_cast %0 : vector<1x10x32xf32> to vector<10x32xf32>
    %c0_2 = arith.constant 0 : index
    %c0_3 = arith.constant 0 : index
    %c0_4 = arith.constant 0 : index
    %2 = vector.load %arg3[%c0_2, %c0_3, %c0_4] : memref<1x10x32xf32, #tpu.memory_space<vmem>>, vector<1x10x32xf32>
    %3 = vector.shape_cast %2 : vector<1x10x32xf32> to vector<10x32xf32>
    %4 = arith.addf %1, %3 : vector<10x32xf32>
    %5 = arith.truncf %4 : vector<10x32xf32> to vector<10x32xbf16>
    %c0_5 = arith.constant 0 : index
    %c0_6 = arith.constant 0 : index
    %6 = vector.load %arg4[%c0_5, %c0_6] : memref<32x32xf32, #tpu.memory_space<vmem>>, vector<32x32xf32>
    %7 = arith.truncf %6 : vector<32x32xf32> to vector<32x32xbf16>
    %cst = arith.constant dense<0.000000e+00> : vector<10x32xf32>
    %8 = tpu.matmul %5, %7, %cst {dimension_numbers = #tpu.dot_dimension_numbers<[1], [0], [0], [1], [0, 0, 1, 1], [], []>} : vector<10x32xbf16>, vector<32x32xbf16>, vector<10x32xf32> -> vector<10x32xf32>
    %c0_7 = arith.constant 0 : index
    %c0_8 = arith.constant 0 : index
    %9 = vector.load %arg5[%c0_7, %c0_8] : memref<1x32xf32, #tpu.memory_space<vmem>>, vector<1x32xf32>
    %10 = vector.broadcast %9 : vector<1x32xf32> to vector<10x32xf32>
    %11 = arith.addf %8, %10 : vector<10x32xf32>
    %12 = arith.truncf %11 : vector<10x32xf32> to vector<10x32xbf16>
    %c0_9 = arith.constant 0 : index
    %c0_10 = arith.constant 0 : index
    %c0_11 = arith.constant 0 : index
    %13 = vector.load %arg6[%c0_9, %c0_10, %c0_11] : memref<1x10x32xbf16, #tpu.memory_space<vmem>>, vector<1x10x32xbf16>
    %14 = vector.shape_cast %13 : vector<1x10x32xbf16> to vector<10x32xbf16>
    %15 = vector.shape_cast %12 : vector<10x32xbf16> to vector<1x10x32xbf16>
    tpu.vector_store %arg6[%c0_9, %c0_10, %c0_11], %15 {strides = array<i32>} : memref<1x10x32xbf16, #tpu.memory_space<vmem>>, vector<1x10x32xbf16>,
    return
  }
  func.func @transform_0(%arg0: i32, %arg1: i32) -> (i32, i32, i32) {
    %c0_i32 = arith.constant 0 : i32
    %c0_i32_0 = arith.constant 0 : i32
    return %arg0, %arg1, %c0_i32 : i32, i32, i32
  }
  func.func @transform_1(%arg0: i32, %arg1: i32) -> (i32, i32, i32) {
    %c0_i32 = arith.constant 0 : i32
    %c0_i32_0 = arith.constant 0 : i32
    return %arg0, %arg1, %c0_i32 : i32, i32, i32
  }
  func.func @transform_2(%arg0: i32, %arg1: i32) -> (i32, i32) {
    %c0_i32 = arith.constant 0 : i32
    %c0_i32_0 = arith.constant 0 : i32
    %c0_i32_1 = arith.constant 0 : i32
    return %c0_i32, %c0_i32_0 : i32, i32
  }
  func.func @transform_3(%arg0: i32, %arg1: i32) -> (i32, i32) {
    %c0_i32 = arith.constant 0 : i32
    %c0_i32_0 = arith.constant 0 : i32
    %c0_i32_1 = arith.constant 0 : i32
    return %c0_i32, %c0_i32_0 : i32, i32
  }
  func.func @transform_4(%arg0: i32, %arg1: i32) -> (i32, i32, i32) {
    %c0_i32 = arith.constant 0 : i32
    %c0_i32_0 = arith.constant 0 : i32
    return %arg0, %arg1, %c0_i32 : i32, i32, i32
  }
}

module attributes {stable_mosaic.version = 11 : i64} {
  func.func @_outproj_res_ln_kernel(%arg0: i32, %arg1: i32, %arg2: memref<1x10x32xbf16, #tpu.memory_space<vmem>>, %arg3: memref<1x10x32xf32, #tpu.memory_space<vmem>>, %arg4: memref<32x32xf32, #tpu.memory_space<vmem>>, %arg5: memref<1x32xf32, #tpu.memory_space<vmem>>, %arg6: memref<1x32xf32, #tpu.memory_space<vmem>>, %arg7: memref<1x32xf32, #tpu.memory_space<vmem>>, %arg8: memref<1x10x32xf32, #tpu.memory_space<vmem>>) attributes {dimension_semantics = [#tpu.dimension_semantics<parallel>, #tpu.dimension_semantics<parallel>], iteration_bounds = array<i64: 2, 1>, scalar_prefetch = 0 : i64, scratch_operands = 0 : i64, tpu.core_type = #tpu.core_type<tc>, window_params = [{transform_indices = @transform_0, window_bounds = array<i64: 1, 10, 32>}, {transform_indices = @transform_1, window_bounds = array<i64: 1, 10, 32>}, {pipeline_mode = #tpu.pipeline_mode<synchronous>, transform_indices = @transform_2, window_bounds = array<i64: 32, 32>}, {pipeline_mode = #tpu.pipeline_mode<synchronous>, transform_indices = @transform_3, window_bounds = array<i64: 1, 32>}, {pipeline_mode = #tpu.pipeline_mode<synchronous>, transform_indices = @transform_4, window_bounds = array<i64: 1, 32>}, {pipeline_mode = #tpu.pipeline_mode<synchronous>, transform_indices = @transform_5, window_bounds = array<i64: 1, 32>}, {transform_indices = @transform_6, window_bounds = array<i64: 1, 10, 32>}]} {
    %c0 = arith.constant 0 : index
    %c0_0 = arith.constant 0 : index
    %c0_1 = arith.constant 0 : index
    %0 = vector.load %arg2[%c0, %c0_0, %c0_1] : memref<1x10x32xbf16, #tpu.memory_space<vmem>>, vector<1x10x32xbf16>
    %1 = vector.shape_cast %0 : vector<1x10x32xbf16> to vector<10x32xbf16>
    %c0_2 = arith.constant 0 : index
    %c0_3 = arith.constant 0 : index
    %2 = vector.load %arg4[%c0_2, %c0_3] : memref<32x32xf32, #tpu.memory_space<vmem>>, vector<32x32xf32>
    %3 = arith.truncf %2 : vector<32x32xf32> to vector<32x32xbf16>
    %cst = arith.constant dense<0.000000e+00> : vector<10x32xf32>
    %4 = tpu.matmul %1, %3, %cst {dimension_numbers = #tpu.dot_dimension_numbers<[1], [0], [0], [1], [0, 0, 1, 1], [], []>} : vector<10x32xbf16>, vector<32x32xbf16>, vector<10x32xf32> -> vector<10x32xf32>
    %c0_4 = arith.constant 0 : index
    %c0_5 = arith.constant 0 : index
    %5 = vector.load %arg5[%c0_4, %c0_5] : memref<1x32xf32, #tpu.memory_space<vmem>>, vector<1x32xf32>
    %6 = vector.broadcast %5 : vector<1x32xf32> to vector<10x32xf32>
    %7 = arith.addf %4, %6 : vector<10x32xf32>
    %c0_6 = arith.constant 0 : index
    %c0_7 = arith.constant 0 : index
    %c0_8 = arith.constant 0 : index
    %8 = vector.load %arg3[%c0_6, %c0_7, %c0_8] : memref<1x10x32xf32, #tpu.memory_space<vmem>>, vector<1x10x32xf32>
    %9 = vector.shape_cast %8 : vector<1x10x32xf32> to vector<10x32xf32>
    %10 = arith.addf %7, %9 : vector<10x32xf32>
    %cst_9 = arith.constant dense<0.000000e+00> : vector<10xf32>
    %11 = vector.multi_reduction <add>, %10, %cst_9 [1] : vector<10x32xf32> to vector<10xf32>
    %12 = vector.shape_cast %11 : vector<10xf32> to vector<10x1xf32>
    %cst_10 = arith.constant 3.200000e+01 : f32
    %13 = vector.broadcast %cst_10 : f32 to vector<10x1xf32>
    %14 = arith.divf %12, %13 : vector<10x1xf32>
    %15 = vector.broadcast %14 : vector<10x1xf32> to vector<10x32xf32>
    %16 = arith.subf %10, %15 : vector<10x32xf32>
    %17 = arith.mulf %16, %16 : vector<10x32xf32>
    %cst_11 = arith.constant dense<0.000000e+00> : vector<10xf32>
    %18 = vector.multi_reduction <add>, %17, %cst_11 [1] : vector<10x32xf32> to vector<10xf32>
    %19 = vector.shape_cast %18 : vector<10xf32> to vector<10x1xf32>
    %cst_12 = arith.constant 3.200000e+01 : f32
    %20 = vector.broadcast %cst_12 : f32 to vector<10x1xf32>
    %21 = arith.divf %19, %20 : vector<10x1xf32>
    %22 = vector.broadcast %14 : vector<10x1xf32> to vector<10x32xf32>
    %23 = arith.subf %10, %22 : vector<10x32xf32>
    %cst_13 = arith.constant 9.99999997E-7 : f32
    %24 = vector.broadcast %cst_13 : f32 to vector<10x1xf32>
    %25 = arith.addf %21, %24 : vector<10x1xf32>
    %26 = math.rsqrt %25 : vector<10x1xf32>
    %27 = vector.broadcast %26 : vector<10x1xf32> to vector<10x32xf32>
    %28 = arith.mulf %23, %27 : vector<10x32xf32>
    %c0_14 = arith.constant 0 : index
    %c0_15 = arith.constant 0 : index
    %29 = vector.load %arg6[%c0_14, %c0_15] : memref<1x32xf32, #tpu.memory_space<vmem>>, vector<1x32xf32>
    %30 = vector.broadcast %29 : vector<1x32xf32> to vector<10x32xf32>
    %31 = arith.mulf %28, %30 : vector<10x32xf32>
    %c0_16 = arith.constant 0 : index
    %c0_17 = arith.constant 0 : index
    %32 = vector.load %arg7[%c0_16, %c0_17] : memref<1x32xf32, #tpu.memory_space<vmem>>, vector<1x32xf32>
    %33 = vector.broadcast %32 : vector<1x32xf32> to vector<10x32xf32>
    %34 = arith.addf %31, %33 : vector<10x32xf32>
    %c0_18 = arith.constant 0 : index
    %c0_19 = arith.constant 0 : index
    %c0_20 = arith.constant 0 : index
    %35 = vector.load %arg8[%c0_18, %c0_19, %c0_20] : memref<1x10x32xf32, #tpu.memory_space<vmem>>, vector<1x10x32xf32>
    %36 = vector.shape_cast %35 : vector<1x10x32xf32> to vector<10x32xf32>
    %37 = vector.shape_cast %34 : vector<10x32xf32> to vector<1x10x32xf32>
    tpu.vector_store %arg8[%c0_18, %c0_19, %c0_20], %37 {strides = array<i32>} : memref<1x10x32xf32, #tpu.memory_space<vmem>>, vector<1x10x32xf32>,
    return
  }
  func.func @transform_0(%arg0: i32, %arg1: i32) -> (i32, i32, i32) {
    %c0_i32 = arith.constant 0 : i32
    %c0_i32_0 = arith.constant 0 : i32
    return %arg0, %arg1, %c0_i32 : i32, i32, i32
  }
  func.func @transform_1(%arg0: i32, %arg1: i32) -> (i32, i32, i32) {
    %c0_i32 = arith.constant 0 : i32
    %c0_i32_0 = arith.constant 0 : i32
    return %arg0, %arg1, %c0_i32 : i32, i32, i32
  }
  func.func @transform_2(%arg0: i32, %arg1: i32) -> (i32, i32) {
    %c0_i32 = arith.constant 0 : i32
    %c0_i32_0 = arith.constant 0 : i32
    %c0_i32_1 = arith.constant 0 : i32
    return %c0_i32, %c0_i32_0 : i32, i32
  }
  func.func @transform_3(%arg0: i32, %arg1: i32) -> (i32, i32) {
    %c0_i32 = arith.constant 0 : i32
    %c0_i32_0 = arith.constant 0 : i32
    %c0_i32_1 = arith.constant 0 : i32
    return %c0_i32, %c0_i32_0 : i32, i32
  }
  func.func @transform_4(%arg0: i32, %arg1: i32) -> (i32, i32) {
    %c0_i32 = arith.constant 0 : i32
    %c0_i32_0 = arith.constant 0 : i32
    %c0_i32_1 = arith.constant 0 : i32
    return %c0_i32, %c0_i32_0 : i32, i32
  }
  func.func @transform_5(%arg0: i32, %arg1: i32) -> (i32, i32) {
    %c0_i32 = arith.constant 0 : i32
    %c0_i32_0 = arith.constant 0 : i32
    %c0_i32_1 = arith.constant 0 : i32
    return %c0_i32, %c0_i32_0 : i32, i32
  }
  func.func @transform_6(%arg0: i32, %arg1: i32) -> (i32, i32, i32) {
    %c0_i32 = arith.constant 0 : i32
    %c0_i32_0 = arith.constant 0 : i32
    return %arg0, %arg1, %c0_i32 : i32, i32, i32
  }
}

module attributes {stable_mosaic.version = 11 : i64} {
  func.func @_add_act_kernel(%arg0: i32, %arg1: memref<128x8xbf16, #tpu.memory_space<vmem>>, %arg2: memref<128x8xf32, #tpu.memory_space<vmem>>, %arg3: memref<1x8xf32, #tpu.memory_space<vmem>>, %arg4: memref<1x8xf32, #tpu.memory_space<vmem>>, %arg5: memref<128x8xbf16, #tpu.memory_space<vmem>>) attributes {dimension_semantics = [#tpu.dimension_semantics<parallel>], iteration_bounds = array<i64: 1>, scalar_prefetch = 0 : i64, scratch_operands = 0 : i64, tpu.core_type = #tpu.core_type<tc>, window_params = [{transform_indices = @transform_0, window_bounds = array<i64: 128, 8>}, {transform_indices = @transform_1, window_bounds = array<i64: 128, 8>}, {pipeline_mode = #tpu.pipeline_mode<synchronous>, transform_indices = @transform_2, window_bounds = array<i64: 1, 8>}, {pipeline_mode = #tpu.pipeline_mode<synchronous>, transform_indices = @transform_3, window_bounds = array<i64: 1, 8>}, {transform_indices = @transform_4, window_bounds = array<i64: 128, 8>}]} {
    %c0 = arith.constant 0 : index
    %c0_0 = arith.constant 0 : index
    %0 = vector.load %arg1[%c0, %c0_0] : memref<128x8xbf16, #tpu.memory_space<vmem>>, vector<128x8xbf16>
    %1 = arith.extf %0 : vector<128x8xbf16> to vector<128x8xf32>
    %c0_1 = arith.constant 0 : index
    %c0_2 = arith.constant 0 : index
    %2 = vector.load %arg2[%c0_1, %c0_2] : memref<128x8xf32, #tpu.memory_space<vmem>>, vector<128x8xf32>
    %3 = arith.addf %1, %2 : vector<128x8xf32>
    %cst = arith.constant dense<0.000000e+00> : vector<128xf32>
    %4 = vector.multi_reduction <add>, %3, %cst [1] : vector<128x8xf32> to vector<128xf32>
    %5 = vector.shape_cast %4 : vector<128xf32> to vector<128x1xf32>
    %cst_3 = arith.constant 8.000000e+00 : f32
    %6 = vector.broadcast %cst_3 : f32 to vector<128x1xf32>
    %7 = arith.divf %5, %6 : vector<128x1xf32>
    %8 = vector.broadcast %7 : vector<128x1xf32> to vector<128x8xf32>
    %9 = arith.subf %3, %8 : vector<128x8xf32>
    %10 = arith.mulf %9, %9 : vector<128x8xf32>
    %cst_4 = arith.constant dense<0.000000e+00> : vector<128xf32>
    %11 = vector.multi_reduction <add>, %10, %cst_4 [1] : vector<128x8xf32> to vector<128xf32>
    %12 = vector.shape_cast %11 : vector<128xf32> to vector<128x1xf32>
    %cst_5 = arith.constant 8.000000e+00 : f32
    %13 = vector.broadcast %cst_5 : f32 to vector<128x1xf32>
    %14 = arith.divf %12, %13 : vector<128x1xf32>
    %15 = vector.broadcast %7 : vector<128x1xf32> to vector<128x8xf32>
    %16 = arith.subf %3, %15 : vector<128x8xf32>
    %cst_6 = arith.constant 9.99999997E-7 : f32
    %17 = vector.broadcast %cst_6 : f32 to vector<128x1xf32>
    %18 = arith.addf %14, %17 : vector<128x1xf32>
    %19 = math.rsqrt %18 : vector<128x1xf32>
    %20 = vector.broadcast %19 : vector<128x1xf32> to vector<128x8xf32>
    %21 = arith.mulf %16, %20 : vector<128x8xf32>
    %c0_7 = arith.constant 0 : index
    %c0_8 = arith.constant 0 : index
    %22 = vector.load %arg3[%c0_7, %c0_8] : memref<1x8xf32, #tpu.memory_space<vmem>>, vector<1x8xf32>
    %23 = vector.broadcast %22 : vector<1x8xf32> to vector<128x8xf32>
    %24 = arith.mulf %21, %23 : vector<128x8xf32>
    %c0_9 = arith.constant 0 : index
    %c0_10 = arith.constant 0 : index
    %25 = vector.load %arg4[%c0_9, %c0_10] : memref<1x8xf32, #tpu.memory_space<vmem>>, vector<1x8xf32>
    %26 = vector.broadcast %25 : vector<1x8xf32> to vector<128x8xf32>
    %27 = arith.addf %24, %26 : vector<128x8xf32>
    %28 = arith.mulf %27, %27 : vector<128x8xf32>
    %29 = arith.mulf %27, %28 : vector<128x8xf32>
    %cst_11 = arith.constant 4.471500e-02 : f32
    %30 = vector.broadcast %cst_11 : f32 to vector<128x8xf32>
    %31 = arith.mulf %30, %29 : vector<128x8xf32>
    %32 = arith.addf %27, %31 : vector<128x8xf32>
    %cst_12 = arith.constant 0.797884583 : f32
    %33 = vector.broadcast %cst_12 : f32 to vector<128x8xf32>
    %34 = arith.mulf %33, %32 : vector<128x8xf32>
    %35 = math.tanh %34 : vector<128x8xf32>
    %cst_13 = arith.constant 1.000000e+00 : f32
    %36 = vector.broadcast %cst_13 : f32 to vector<128x8xf32>
    %37 = arith.addf %36, %35 : vector<128x8xf32>
    %cst_14 = arith.constant 5.000000e-01 : f32
    %38 = vector.broadcast %cst_14 : f32 to vector<128x8xf32>
    %39 = arith.mulf %38, %37 : vector<128x8xf32>
    %40 = arith.mulf %27, %39 : vector<128x8xf32>
    %41 = arith.truncf %40 : vector<128x8xf32> to vector<128x8xbf16>
    %c0_15 = arith.constant 0 : index
    %c0_16 = arith.constant 0 : index
    %42 = vector.load %arg5[%c0_15, %c0_16] : memref<128x8xbf16, #tpu.memory_space<vmem>>, vector<128x8xbf16>
    tpu.vector_store %arg5[%c0_15, %c0_16], %41 {strides = array<i32>} : memref<128x8xbf16, #tpu.memory_space<vmem>>, vector<128x8xbf16>,
    return
  }
  func.func @transform_0(%arg0: i32) -> (i32, i32) {
    %c0_i32 = arith.constant 0 : i32
    %c0_i32_0 = arith.constant 0 : i32
    return %arg0, %c0_i32 : i32, i32
  }
  func.func @transform_1(%arg0: i32) -> (i32, i32) {
    %c0_i32 = arith.constant 0 : i32
    %c0_i32_0 = arith.constant 0 : i32
    return %arg0, %c0_i32 : i32, i32
  }
  func.func @transform_2(%arg0: i32) -> (i32, i32) {
    %c0_i32 = arith.constant 0 : i32
    %c0_i32_0 = arith.constant 0 : i32
    %c0_i32_1 = arith.constant 0 : i32
    return %c0_i32, %c0_i32_0 : i32, i32
  }
  func.func @transform_3(%arg0: i32) -> (i32, i32) {
    %c0_i32 = arith.constant 0 : i32
    %c0_i32_0 = arith.constant 0 : i32
    %c0_i32_1 = arith.constant 0 : i32
    return %c0_i32, %c0_i32_0 : i32, i32
  }
  func.func @transform_4(%arg0: i32) -> (i32, i32) {
    %c0_i32 = arith.constant 0 : i32
    %c0_i32_0 = arith.constant 0 : i32
    return %arg0, %c0_i32 : i32, i32
  }
}

module attributes {stable_mosaic.version = 11 : i64} {
  func.func @_linear_kernel(%arg0: i32, %arg1: memref<128x8xbf16, #tpu.memory_space<vmem>>, %arg2: memref<8x16xf32, #tpu.memory_space<vmem>>, %arg3: memref<1x16xf32, #tpu.memory_space<vmem>>, %arg4: memref<128x16xbf16, #tpu.memory_space<vmem>>) attributes {dimension_semantics = [#tpu.dimension_semantics<parallel>], iteration_bounds = array<i64: 1>, scalar_prefetch = 0 : i64, scratch_operands = 0 : i64, tpu.core_type = #tpu.core_type<tc>, window_params = [{transform_indices = @transform_0, window_bounds = array<i64: 128, 8>}, {pipeline_mode = #tpu.pipeline_mode<synchronous>, transform_indices = @transform_1, window_bounds = array<i64: 8, 16>}, {pipeline_mode = #tpu.pipeline_mode<synchronous>, transform_indices = @transform_2, window_bounds = array<i64: 1, 16>}, {transform_indices = @transform_3, window_bounds = array<i64: 128, 16>}]} {
    %c0 = arith.constant 0 : index
    %c0_0 = arith.constant 0 : index
    %0 = vector.load %arg1[%c0, %c0_0] : memref<128x8xbf16, #tpu.memory_space<vmem>>, vector<128x8xbf16>
    %c0_1 = arith.constant 0 : index
    %c0_2 = arith.constant 0 : index
    %1 = vector.load %arg2[%c0_1, %c0_2] : memref<8x16xf32, #tpu.memory_space<vmem>>, vector<8x16xf32>
    %2 = arith.truncf %1 : vector<8x16xf32> to vector<8x16xbf16>
    %cst = arith.constant dense<0.000000e+00> : vector<128x16xf32>
    %3 = tpu.matmul %0, %2, %cst {dimension_numbers = #tpu.dot_dimension_numbers<[1], [0], [0], [1], [0, 0, 1, 1], [], []>} : vector<128x8xbf16>, vector<8x16xbf16>, vector<128x16xf32> -> vector<128x16xf32>
    %c0_3 = arith.constant 0 : index
    %c0_4 = arith.constant 0 : index
    %4 = vector.load %arg3[%c0_3, %c0_4] : memref<1x16xf32, #tpu.memory_space<vmem>>, vector<1x16xf32>
    %5 = vector.broadcast %4 : vector<1x16xf32> to vector<128x16xf32>
    %6 = arith.addf %3, %5 : vector<128x16xf32>
    %7 = arith.truncf %6 : vector<128x16xf32> to vector<128x16xbf16>
    %c0_5 = arith.constant 0 : index
    %c0_6 = arith.constant 0 : index
    %8 = vector.load %arg4[%c0_5, %c0_6] : memref<128x16xbf16, #tpu.memory_space<vmem>>, vector<128x16xbf16>
    tpu.vector_store %arg4[%c0_5, %c0_6], %7 {strides = array<i32>} : memref<128x16xbf16, #tpu.memory_space<vmem>>, vector<128x16xbf16>,
    return
  }
  func.func @transform_0(%arg0: i32) -> (i32, i32) {
    %c0_i32 = arith.constant 0 : i32
    %c0_i32_0 = arith.constant 0 : i32
    return %arg0, %c0_i32 : i32, i32
  }
  func.func @transform_1(%arg0: i32) -> (i32, i32) {
    %c0_i32 = arith.constant 0 : i32
    %c0_i32_0 = arith.constant 0 : i32
    %c0_i32_1 = arith.constant 0 : i32
    return %c0_i32, %c0_i32_0 : i32, i32
  }
  func.func @transform_2(%arg0: i32) -> (i32, i32) {
    %c0_i32 = arith.constant 0 : i32
    %c0_i32_0 = arith.constant 0 : i32
    %c0_i32_1 = arith.constant 0 : i32
    return %c0_i32, %c0_i32_0 : i32, i32
  }
  func.func @transform_3(%arg0: i32) -> (i32, i32) {
    %c0_i32 = arith.constant 0 : i32
    %c0_i32_0 = arith.constant 0 : i32
    return %arg0, %c0_i32 : i32, i32
  }
}

module attributes {stable_mosaic.version = 11 : i64} {
  func.func @_add_act_kernel(%arg0: i32, %arg1: memref<512x4xbf16, #tpu.memory_space<vmem>>, %arg2: memref<512x4xf32, #tpu.memory_space<vmem>>, %arg3: memref<1x4xf32, #tpu.memory_space<vmem>>, %arg4: memref<1x4xf32, #tpu.memory_space<vmem>>, %arg5: memref<512x4xbf16, #tpu.memory_space<vmem>>) attributes {dimension_semantics = [#tpu.dimension_semantics<parallel>], iteration_bounds = array<i64: 1>, scalar_prefetch = 0 : i64, scratch_operands = 0 : i64, tpu.core_type = #tpu.core_type<tc>, window_params = [{transform_indices = @transform_0, window_bounds = array<i64: 512, 4>}, {transform_indices = @transform_1, window_bounds = array<i64: 512, 4>}, {pipeline_mode = #tpu.pipeline_mode<synchronous>, transform_indices = @transform_2, window_bounds = array<i64: 1, 4>}, {pipeline_mode = #tpu.pipeline_mode<synchronous>, transform_indices = @transform_3, window_bounds = array<i64: 1, 4>}, {transform_indices = @transform_4, window_bounds = array<i64: 512, 4>}]} {
    %c0 = arith.constant 0 : index
    %c0_0 = arith.constant 0 : index
    %0 = vector.load %arg1[%c0, %c0_0] : memref<512x4xbf16, #tpu.memory_space<vmem>>, vector<512x4xbf16>
    %1 = arith.extf %0 : vector<512x4xbf16> to vector<512x4xf32>
    %c0_1 = arith.constant 0 : index
    %c0_2 = arith.constant 0 : index
    %2 = vector.load %arg2[%c0_1, %c0_2] : memref<512x4xf32, #tpu.memory_space<vmem>>, vector<512x4xf32>
    %3 = arith.addf %1, %2 : vector<512x4xf32>
    %4 = arith.mulf %3, %3 : vector<512x4xf32>
    %5 = arith.mulf %3, %4 : vector<512x4xf32>
    %cst = arith.constant 4.471500e-02 : f32
    %6 = vector.broadcast %cst : f32 to vector<512x4xf32>
    %7 = arith.mulf %6, %5 : vector<512x4xf32>
    %8 = arith.addf %3, %7 : vector<512x4xf32>
    %cst_3 = arith.constant 0.797884583 : f32
    %9 = vector.broadcast %cst_3 : f32 to vector<512x4xf32>
    %10 = arith.mulf %9, %8 : vector<512x4xf32>
    %11 = math.tanh %10 : vector<512x4xf32>
    %cst_4 = arith.constant 1.000000e+00 : f32
    %12 = vector.broadcast %cst_4 : f32 to vector<512x4xf32>
    %13 = arith.addf %12, %11 : vector<512x4xf32>
    %cst_5 = arith.constant 5.000000e-01 : f32
    %14 = vector.broadcast %cst_5 : f32 to vector<512x4xf32>
    %15 = arith.mulf %14, %13 : vector<512x4xf32>
    %16 = arith.mulf %3, %15 : vector<512x4xf32>
    %17 = arith.truncf %16 : vector<512x4xf32> to vector<512x4xbf16>
    %c0_6 = arith.constant 0 : index
    %c0_7 = arith.constant 0 : index
    %18 = vector.load %arg5[%c0_6, %c0_7] : memref<512x4xbf16, #tpu.memory_space<vmem>>, vector<512x4xbf16>
    tpu.vector_store %arg5[%c0_6, %c0_7], %17 {strides = array<i32>} : memref<512x4xbf16, #tpu.memory_space<vmem>>, vector<512x4xbf16>,
    return
  }
  func.func @transform_0(%arg0: i32) -> (i32, i32) {
    %c0_i32 = arith.constant 0 : i32
    %c0_i32_0 = arith.constant 0 : i32
    return %arg0, %c0_i32 : i32, i32
  }
  func.func @transform_1(%arg0: i32) -> (i32, i32) {
    %c0_i32 = arith.constant 0 : i32
    %c0_i32_0 = arith.constant 0 : i32
    return %arg0, %c0_i32 : i32, i32
  }
  func.func @transform_2(%arg0: i32) -> (i32, i32) {
    %c0_i32 = arith.constant 0 : i32
    %c0_i32_0 = arith.constant 0 : i32
    %c0_i32_1 = arith.constant 0 : i32
    return %c0_i32, %c0_i32_0 : i32, i32
  }
  func.func @transform_3(%arg0: i32) -> (i32, i32) {
    %c0_i32 = arith.constant 0 : i32
    %c0_i32_0 = arith.constant 0 : i32
    %c0_i32_1 = arith.constant 0 : i32
    return %c0_i32, %c0_i32_0 : i32, i32
  }
  func.func @transform_4(%arg0: i32) -> (i32, i32) {
    %c0_i32 = arith.constant 0 : i32
    %c0_i32_0 = arith.constant 0 : i32
    return %arg0, %c0_i32 : i32, i32
  }
}

module attributes {stable_mosaic.version = 11 : i64} {
  func.func @_mask_product_kernel(%arg0: i32, %arg1: memref<2x4x4xf32, #tpu.memory_space<vmem>>, %arg2: memref<2x256x4xbf16, #tpu.memory_space<vmem>>, %arg3: memref<2x4x256xf32, #tpu.memory_space<vmem>>) attributes {dimension_semantics = [#tpu.dimension_semantics<parallel>], iteration_bounds = array<i64: 1>, scalar_prefetch = 0 : i64, scratch_operands = 0 : i64, tpu.core_type = #tpu.core_type<tc>, window_params = [{pipeline_mode = #tpu.pipeline_mode<synchronous>, transform_indices = @transform_0, window_bounds = array<i64: 2, 4, 4>}, {transform_indices = @transform_1, window_bounds = array<i64: 2, 256, 4>}, {transform_indices = @transform_2, window_bounds = array<i64: 2, 4, 256>}]} {
    %c0 = arith.constant 0 : index
    %c0_0 = arith.constant 0 : index
    %c0_1 = arith.constant 0 : index
    %0 = vector.load %arg1[%c0, %c0_0, %c0_1] : memref<2x4x4xf32, #tpu.memory_space<vmem>>, vector<2x4x4xf32>
    %1 = arith.truncf %0 : vector<2x4x4xf32> to vector<2x4x4xbf16>
    %c0_2 = arith.constant 0 : index
    %c0_3 = arith.constant 0 : index
    %c0_4 = arith.constant 0 : index
    %2 = vector.load %arg2[%c0_2, %c0_3, %c0_4] : memref<2x256x4xbf16, #tpu.memory_space<vmem>>, vector<2x256x4xbf16>
    %cst = arith.constant dense<0.000000e+00> : vector<2x4x256xf32>
    %3 = tpu.matmul %1, %2, %cst {dimension_numbers = #tpu.dot_dimension_numbers<[2], [2], [1], [1], [0, 0, 0, 1, 1, 1], [0], [0]>} : vector<2x4x4xbf16>, vector<2x256x4xbf16>, vector<2x4x256xf32> -> vector<2x4x256xf32>
    %c0_5 = arith.constant 0 : index
    %c0_6 = arith.constant 0 : index
    %c0_7 = arith.constant 0 : index
    %4 = vector.load %arg3[%c0_5, %c0_6, %c0_7] : memref<2x4x256xf32, #tpu.memory_space<vmem>>, vector<2x4x256xf32>
    tpu.vector_store %arg3[%c0_5, %c0_6, %c0_7], %3 {strides = array<i32>} : memref<2x4x256xf32, #tpu.memory_space<vmem>>, vector<2x4x256xf32>,
    return
  }
  func.func @transform_0(%arg0: i32) -> (i32, i32, i32) {
    %c0_i32 = arith.constant 0 : i32
    %c0_i32_0 = arith.constant 0 : i32
    %c0_i32_1 = arith.constant 0 : i32
    %c0_i32_2 = arith.constant 0 : i32
    return %c0_i32, %c0_i32_0, %c0_i32_1 : i32, i32, i32
  }
  func.func @transform_1(%arg0: i32) -> (i32, i32, i32) {
    %c0_i32 = arith.constant 0 : i32
    %c0_i32_0 = arith.constant 0 : i32
    %c0_i32_1 = arith.constant 0 : i32
    return %c0_i32, %arg0, %c0_i32_0 : i32, i32, i32
  }
  func.func @transform_2(%arg0: i32) -> (i32, i32, i32) {
    %c0_i32 = arith.constant 0 : i32
    %c0_i32_0 = arith.constant 0 : i32
    %c0_i32_1 = arith.constant 0 : i32
    return %c0_i32, %c0_i32_0, %arg0 : i32, i32, i32
  }
}

module attributes {stable_mosaic.version = 11 : i64} {
  func.func @_attn_kernel(%arg0: i32, %arg1: i32, %arg2: memref<1x10x32xbf16, #tpu.memory_space<vmem>>, %arg3: memref<1x16x32xbf16, #tpu.memory_space<vmem>>, %arg4: memref<1x16x32xbf16, #tpu.memory_space<vmem>>, %arg5: memref<1x10x32xbf16, #tpu.memory_space<vmem>>) attributes {dimension_semantics = [#tpu.dimension_semantics<parallel>, #tpu.dimension_semantics<parallel>], iteration_bounds = array<i64: 2, 1>, scalar_prefetch = 0 : i64, scratch_operands = 0 : i64, tpu.core_type = #tpu.core_type<tc>, window_params = [{transform_indices = @transform_0, window_bounds = array<i64: 1, 10, 32>}, {transform_indices = @transform_1, window_bounds = array<i64: 1, 16, 32>}, {transform_indices = @transform_2, window_bounds = array<i64: 1, 16, 32>}, {transform_indices = @transform_3, window_bounds = array<i64: 1, 10, 32>}]} {
    %c0 = arith.constant 0 : index
    %c0_0 = arith.constant 0 : index
    %c0_1 = arith.constant 0 : index
    %0 = vector.load %arg2[%c0, %c0_0, %c0_1] : memref<1x10x32xbf16, #tpu.memory_space<vmem>>, vector<1x10x32xbf16>
    %1 = vector.shape_cast %0 : vector<1x10x32xbf16> to vector<10x32xbf16>
    %c0_2 = arith.constant 0 : index
    %c0_3 = arith.constant 0 : index
    %c0_4 = arith.constant 0 : index
    %2 = vector.load %arg3[%c0_2, %c0_3, %c0_4] : memref<1x16x32xbf16, #tpu.memory_space<vmem>>, vector<1x16x32xbf16>
    %3 = vector.shape_cast %2 : vector<1x16x32xbf16> to vector<16x32xbf16>
    %c0_5 = arith.constant 0 : index
    %c0_6 = arith.constant 0 : index
    %c0_7 = arith.constant 0 : index
    %4 = vector.load %arg4[%c0_5, %c0_6, %c0_7] : memref<1x16x32xbf16, #tpu.memory_space<vmem>>, vector<1x16x32xbf16>
    %5 = vector.shape_cast %4 : vector<1x16x32xbf16> to vector<16x32xbf16>
    %6 = vector.extract_strided_slice %1 {offsets = [0, 0], sizes = [10, 8], strides = [1, 1]} : vector<10x32xbf16> to vector<10x8xbf16>
    %7 = vector.extract_strided_slice %3 {offsets = [0, 0], sizes = [16, 8], strides = [1, 1]} : vector<16x32xbf16> to vector<16x8xbf16>
    %8 = vector.extract_strided_slice %5 {offsets = [0, 0], sizes = [16, 8], strides = [1, 1]} : vector<16x32xbf16> to vector<16x8xbf16>
    %cst = arith.constant dense<0.000000e+00> : vector<10x16xf32>
    %9 = tpu.matmul %6, %7, %cst {dimension_numbers = #tpu.dot_dimension_numbers<[1], [1], [0], [0], [0, 0, 1, 0], [], []>} : vector<10x8xbf16>, vector<16x8xbf16>, vector<10x16xf32> -> vector<10x16xf32>
    %cst_8 = arith.constant 0.353553385 : f32
    %10 = vector.broadcast %cst_8 : f32 to vector<10x16xf32>
    %11 = arith.mulf %9, %10 : vector<10x16xf32>
    %cst_9 = arith.constant dense<0xFF800000> : vector<10xf32>
    %12 = vector.multi_reduction <maximumf>, %11, %cst_9 [1] : vector<10x16xf32> to vector<10xf32>
    %13 = vector.shape_cast %12 : vector<10xf32> to vector<10x1xf32>
    %14 = vector.broadcast %13 : vector<10x1xf32> to vector<10x16xf32>
    %15 = arith.subf %11, %14 : vector<10x16xf32>
    %16 = math.exp %15 : vector<10x16xf32>
    %cst_10 = arith.constant dense<0.000000e+00> : vector<10xf32>
    %17 = vector.multi_reduction <add>, %16, %cst_10 [1] : vector<10x16xf32> to vector<10xf32>
    %18 = vector.shape_cast %17 : vector<10xf32> to vector<10x1xf32>
    %19 = tpu.reciprocal %18 {approx = true} : vector<10x1xf32> -> vector<10x1xf32>
    %20 = vector.broadcast %19 : vector<10x1xf32> to vector<10x16xf32>
    %21 = arith.mulf %16, %20 : vector<10x16xf32>
    %22 = arith.truncf %21 : vector<10x16xf32> to vector<10x16xbf16>
    %cst_11 = arith.constant dense<0.000000e+00> : vector<10x8xf32>
    %23 = tpu.matmul %22, %8, %cst_11 {dimension_numbers = #tpu.dot_dimension_numbers<[1], [0], [0], [1], [0, 0, 1, 1], [], []>} : vector<10x16xbf16>, vector<16x8xbf16>, vector<10x8xf32> -> vector<10x8xf32>
    %24 = vector.extract_strided_slice %1 {offsets = [0, 8], sizes = [10, 8], strides = [1, 1]} : vector<10x32xbf16> to vector<10x8xbf16>
    %25 = vector.extract_strided_slice %3 {offsets = [0, 8], sizes = [16, 8], strides = [1, 1]} : vector<16x32xbf16> to vector<16x8xbf16>
    %26 = vector.extract_strided_slice %5 {offsets = [0, 8], sizes = [16, 8], strides = [1, 1]} : vector<16x32xbf16> to vector<16x8xbf16>
    %cst_12 = arith.constant dense<0.000000e+00> : vector<10x16xf32>
    %27 = tpu.matmul %24, %25, %cst_12 {dimension_numbers = #tpu.dot_dimension_numbers<[1], [1], [0], [0], [0, 0, 1, 0], [], []>} : vector<10x8xbf16>, vector<16x8xbf16>, vector<10x16xf32> -> vector<10x16xf32>
    %cst_13 = arith.constant 0.353553385 : f32
    %28 = vector.broadcast %cst_13 : f32 to vector<10x16xf32>
    %29 = arith.mulf %27, %28 : vector<10x16xf32>
    %cst_14 = arith.constant dense<0xFF800000> : vector<10xf32>
    %30 = vector.multi_reduction <maximumf>, %29, %cst_14 [1] : vector<10x16xf32> to vector<10xf32>
    %31 = vector.shape_cast %30 : vector<10xf32> to vector<10x1xf32>
    %32 = vector.broadcast %31 : vector<10x1xf32> to vector<10x16xf32>
    %33 = arith.subf %29, %32 : vector<10x16xf32>
    %34 = math.exp %33 : vector<10x16xf32>
    %cst_15 = arith.constant dense<0.000000e+00> : vector<10xf32>
    %35 = vector.multi_reduction <add>, %34, %cst_15 [1] : vector<10x16xf32> to vector<10xf32>
    %36 = vector.shape_cast %35 : vector<10xf32> to vector<10x1xf32>
    %37 = tpu.reciprocal %36 {approx = true} : vector<10x1xf32> -> vector<10x1xf32>
    %38 = vector.broadcast %37 : vector<10x1xf32> to vector<10x16xf32>
    %39 = arith.mulf %34, %38 : vector<10x16xf32>
    %40 = arith.truncf %39 : vector<10x16xf32> to vector<10x16xbf16>
    %cst_16 = arith.constant dense<0.000000e+00> : vector<10x8xf32>
    %41 = tpu.matmul %40, %26, %cst_16 {dimension_numbers = #tpu.dot_dimension_numbers<[1], [0], [0], [1], [0, 0, 1, 1], [], []>} : vector<10x16xbf16>, vector<16x8xbf16>, vector<10x8xf32> -> vector<10x8xf32>
    %42 = vector.extract_strided_slice %1 {offsets = [0, 16], sizes = [10, 8], strides = [1, 1]} : vector<10x32xbf16> to vector<10x8xbf16>
    %43 = vector.extract_strided_slice %3 {offsets = [0, 16], sizes = [16, 8], strides = [1, 1]} : vector<16x32xbf16> to vector<16x8xbf16>
    %44 = vector.extract_strided_slice %5 {offsets = [0, 16], sizes = [16, 8], strides = [1, 1]} : vector<16x32xbf16> to vector<16x8xbf16>
    %cst_17 = arith.constant dense<0.000000e+00> : vector<10x16xf32>
    %45 = tpu.matmul %42, %43, %cst_17 {dimension_numbers = #tpu.dot_dimension_numbers<[1], [1], [0], [0], [0, 0, 1, 0], [], []>} : vector<10x8xbf16>, vector<16x8xbf16>, vector<10x16xf32> -> vector<10x16xf32>
    %cst_18 = arith.constant 0.353553385 : f32
    %46 = vector.broadcast %cst_18 : f32 to vector<10x16xf32>
    %47 = arith.mulf %45, %46 : vector<10x16xf32>
    %cst_19 = arith.constant dense<0xFF800000> : vector<10xf32>
    %48 = vector.multi_reduction <maximumf>, %47, %cst_19 [1] : vector<10x16xf32> to vector<10xf32>
    %49 = vector.shape_cast %48 : vector<10xf32> to vector<10x1xf32>
    %50 = vector.broadcast %49 : vector<10x1xf32> to vector<10x16xf32>
    %51 = arith.subf %47, %50 : vector<10x16xf32>
    %52 = math.exp %51 : vector<10x16xf32>
    %cst_20 = arith.constant dense<0.000000e+00> : vector<10xf32>
    %53 = vector.multi_reduction <add>, %52, %cst_20 [1] : vector<10x16xf32> to vector<10xf32>
    %54 = vector.shape_cast %53 : vector<10xf32> to vector<10x1xf32>
    %55 = tpu.reciprocal %54 {approx = true} : vector<10x1xf32> -> vector<10x1xf32>
    %56 = vector.broadcast %55 : vector<10x1xf32> to vector<10x16xf32>
    %57 = arith.mulf %52, %56 : vector<10x16xf32>
    %58 = arith.truncf %57 : vector<10x16xf32> to vector<10x16xbf16>
    %cst_21 = arith.constant dense<0.000000e+00> : vector<10x8xf32>
    %59 = tpu.matmul %58, %44, %cst_21 {dimension_numbers = #tpu.dot_dimension_numbers<[1], [0], [0], [1], [0, 0, 1, 1], [], []>} : vector<10x16xbf16>, vector<16x8xbf16>, vector<10x8xf32> -> vector<10x8xf32>
    %60 = vector.extract_strided_slice %1 {offsets = [0, 24], sizes = [10, 8], strides = [1, 1]} : vector<10x32xbf16> to vector<10x8xbf16>
    %61 = vector.extract_strided_slice %3 {offsets = [0, 24], sizes = [16, 8], strides = [1, 1]} : vector<16x32xbf16> to vector<16x8xbf16>
    %62 = vector.extract_strided_slice %5 {offsets = [0, 24], sizes = [16, 8], strides = [1, 1]} : vector<16x32xbf16> to vector<16x8xbf16>
    %cst_22 = arith.constant dense<0.000000e+00> : vector<10x16xf32>
    %63 = tpu.matmul %60, %61, %cst_22 {dimension_numbers = #tpu.dot_dimension_numbers<[1], [1], [0], [0], [0, 0, 1, 0], [], []>} : vector<10x8xbf16>, vector<16x8xbf16>, vector<10x16xf32> -> vector<10x16xf32>
    %cst_23 = arith.constant 0.353553385 : f32
    %64 = vector.broadcast %cst_23 : f32 to vector<10x16xf32>
    %65 = arith.mulf %63, %64 : vector<10x16xf32>
    %cst_24 = arith.constant dense<0xFF800000> : vector<10xf32>
    %66 = vector.multi_reduction <maximumf>, %65, %cst_24 [1] : vector<10x16xf32> to vector<10xf32>
    %67 = vector.shape_cast %66 : vector<10xf32> to vector<10x1xf32>
    %68 = vector.broadcast %67 : vector<10x1xf32> to vector<10x16xf32>
    %69 = arith.subf %65, %68 : vector<10x16xf32>
    %70 = math.exp %69 : vector<10x16xf32>
    %cst_25 = arith.constant dense<0.000000e+00> : vector<10xf32>
    %71 = vector.multi_reduction <add>, %70, %cst_25 [1] : vector<10x16xf32> to vector<10xf32>
    %72 = vector.shape_cast %71 : vector<10xf32> to vector<10x1xf32>
    %73 = tpu.reciprocal %72 {approx = true} : vector<10x1xf32> -> vector<10x1xf32>
    %74 = vector.broadcast %73 : vector<10x1xf32> to vector<10x16xf32>
    %75 = arith.mulf %70, %74 : vector<10x16xf32>
    %76 = arith.truncf %75 : vector<10x16xf32> to vector<10x16xbf16>
    %cst_26 = arith.constant dense<0.000000e+00> : vector<10x8xf32>
    %77 = tpu.matmul %76, %62, %cst_26 {dimension_numbers = #tpu.dot_dimension_numbers<[1], [0], [0], [1], [0, 0, 1, 1], [], []>} : vector<10x16xbf16>, vector<16x8xbf16>, vector<10x8xf32> -> vector<10x8xf32>
    %78 = tpu.concatenate %23, %41, %59, %77 in 1 : vector<10x8xf32>, vector<10x8xf32>, vector<10x8xf32>, vector<10x8xf32> -> vector<10x32xf32>
    %79 = arith.truncf %78 : vector<10x32xf32> to vector<10x32xbf16>
    %c0_27 = arith.constant 0 : index
    %c0_28 = arith.constant 0 : index
    %c0_29 = arith.constant 0 : index
    %80 = vector.load %arg5[%c0_27, %c0_28, %c0_29] : memref<1x10x32xbf16, #tpu.memory_space<vmem>>, vector<1x10x32xbf16>
    %81 = vector.shape_cast %80 : vector<1x10x32xbf16> to vector<10x32xbf16>
    %82 = vector.shape_cast %79 : vector<10x32xbf16> to vector<1x10x32xbf16>
    tpu.vector_store %arg5[%c0_27, %c0_28, %c0_29], %82 {strides = array<i32>} : memref<1x10x32xbf16, #tpu.memory_space<vmem>>, vector<1x10x32xbf16>,
    return
  }
  func.func @transform_0(%arg0: i32, %arg1: i32) -> (i32, i32, i32) {
    %c0_i32 = arith.constant 0 : i32
    %c0_i32_0 = arith.constant 0 : i32
    return %arg0, %c0_i32, %arg1 : i32, i32, i32
  }
  func.func @transform_1(%arg0: i32, %arg1: i32) -> (i32, i32, i32) {
    %c0_i32 = arith.constant 0 : i32
    %c0_i32_0 = arith.constant 0 : i32
    return %arg0, %c0_i32, %arg1 : i32, i32, i32
  }
  func.func @transform_2(%arg0: i32, %arg1: i32) -> (i32, i32, i32) {
    %c0_i32 = arith.constant 0 : i32
    %c0_i32_0 = arith.constant 0 : i32
    return %arg0, %c0_i32, %arg1 : i32, i32, i32
  }
  func.func @transform_3(%arg0: i32, %arg1: i32) -> (i32, i32, i32) {
    %c0_i32 = arith.constant 0 : i32
    %c0_i32_0 = arith.constant 0 : i32
    return %arg0, %c0_i32, %arg1 : i32, i32, i32
  }
}

module attributes {stable_mosaic.version = 11 : i64} {
  func.func @_dual_proj_kernel(%arg0: i32, %arg1: i32, %arg2: memref<1x10x32xf32, #tpu.memory_space<vmem>>, %arg3: memref<1x10x32xf32, #tpu.memory_space<vmem>>, %arg4: memref<32x64xf32, #tpu.memory_space<vmem>>, %arg5: memref<1x64xf32, #tpu.memory_space<vmem>>, %arg6: memref<32x32xf32, #tpu.memory_space<vmem>>, %arg7: memref<1x32xf32, #tpu.memory_space<vmem>>, %arg8: memref<1x10x64xbf16, #tpu.memory_space<vmem>>, %arg9: memref<1x10x32xbf16, #tpu.memory_space<vmem>>) attributes {dimension_semantics = [#tpu.dimension_semantics<parallel>, #tpu.dimension_semantics<parallel>], iteration_bounds = array<i64: 2, 1>, scalar_prefetch = 0 : i64, scratch_operands = 0 : i64, tpu.core_type = #tpu.core_type<tc>, window_params = [{transform_indices = @transform_0, window_bounds = array<i64: 1, 10, 32>}, {transform_indices = @transform_1, window_bounds = array<i64: 1, 10, 32>}, {pipeline_mode = #tpu.pipeline_mode<synchronous>, transform_indices = @transform_2, window_bounds = array<i64: 32, 64>}, {pipeline_mode = #tpu.pipeline_mode<synchronous>, transform_indices = @transform_3, window_bounds = array<i64: 1, 64>}, {pipeline_mode = #tpu.pipeline_mode<synchronous>, transform_indices = @transform_4, window_bounds = array<i64: 32, 32>}, {pipeline_mode = #tpu.pipeline_mode<synchronous>, transform_indices = @transform_5, window_bounds = array<i64: 1, 32>}, {transform_indices = @transform_6, window_bounds = array<i64: 1, 10, 64>}, {transform_indices = @transform_7, window_bounds = array<i64: 1, 10, 32>}]} {
    %c0 = arith.constant 0 : index
    %c0_0 = arith.constant 0 : index
    %c0_1 = arith.constant 0 : index
    %0 = vector.load %arg2[%c0, %c0_0, %c0_1] : memref<1x10x32xf32, #tpu.memory_space<vmem>>, vector<1x10x32xf32>
    %1 = vector.shape_cast %0 : vector<1x10x32xf32> to vector<10x32xf32>
    %c0_2 = arith.constant 0 : index
    %c0_3 = arith.constant 0 : index
    %c0_4 = arith.constant 0 : index
    %2 = vector.load %arg3[%c0_2, %c0_3, %c0_4] : memref<1x10x32xf32, #tpu.memory_space<vmem>>, vector<1x10x32xf32>
    %3 = vector.shape_cast %2 : vector<1x10x32xf32> to vector<10x32xf32>
    %4 = arith.addf %1, %3 : vector<10x32xf32>
    %5 = arith.truncf %4 : vector<10x32xf32> to vector<10x32xbf16>
    %c0_5 = arith.constant 0 : index
    %c0_6 = arith.constant 0 : index
    %6 = vector.load %arg4[%c0_5, %c0_6] : memref<32x64xf32, #tpu.memory_space<vmem>>, vector<32x64xf32>
    %7 = arith.truncf %6 : vector<32x64xf32> to vector<32x64xbf16>
    %cst = arith.constant dense<0.000000e+00> : vector<10x64xf32>
    %8 = tpu.matmul %5, %7, %cst {dimension_numbers = #tpu.dot_dimension_numbers<[1], [0], [0], [1], [0, 0, 1, 1], [], []>} : vector<10x32xbf16>, vector<32x64xbf16>, vector<10x64xf32> -> vector<10x64xf32>
    %c0_7 = arith.constant 0 : index
    %c0_8 = arith.constant 0 : index
    %9 = vector.load %arg5[%c0_7, %c0_8] : memref<1x64xf32, #tpu.memory_space<vmem>>, vector<1x64xf32>
    %10 = vector.broadcast %9 : vector<1x64xf32> to vector<10x64xf32>
    %11 = arith.addf %8, %10 : vector<10x64xf32>
    %12 = arith.truncf %11 : vector<10x64xf32> to vector<10x64xbf16>
    %c0_9 = arith.constant 0 : index
    %c0_10 = arith.constant 0 : index
    %c0_11 = arith.constant 0 : index
    %13 = vector.load %arg8[%c0_9, %c0_10, %c0_11] : memref<1x10x64xbf16, #tpu.memory_space<vmem>>, vector<1x10x64xbf16>
    %14 = vector.shape_cast %13 : vector<1x10x64xbf16> to vector<10x64xbf16>
    %15 = vector.shape_cast %12 : vector<10x64xbf16> to vector<1x10x64xbf16>
    tpu.vector_store %arg8[%c0_9, %c0_10, %c0_11], %15 {strides = array<i32>} : memref<1x10x64xbf16, #tpu.memory_space<vmem>>, vector<1x10x64xbf16>,
    %16 = arith.truncf %1 : vector<10x32xf32> to vector<10x32xbf16>
    %c0_12 = arith.constant 0 : index
    %c0_13 = arith.constant 0 : index
    %17 = vector.load %arg6[%c0_12, %c0_13] : memref<32x32xf32, #tpu.memory_space<vmem>>, vector<32x32xf32>
    %18 = arith.truncf %17 : vector<32x32xf32> to vector<32x32xbf16>
    %cst_14 = arith.constant dense<0.000000e+00> : vector<10x32xf32>
    %19 = tpu.matmul %16, %18, %cst_14 {dimension_numbers = #tpu.dot_dimension_numbers<[1], [0], [0], [1], [0, 0, 1, 1], [], []>} : vector<10x32xbf16>, vector<32x32xbf16>, vector<10x32xf32> -> vector<10x32xf32>
    %c0_15 = arith.constant 0 : index
    %c0_16 = arith.constant 0 : index
    %20 = vector.load %arg7[%c0_15, %c0_16] : memref<1x32xf32, #tpu.memory_space<vmem>>, vector<1x32xf32>
    %21 = vector.broadcast %20 : vector<1x32xf32> to vector<10x32xf32>
    %22 = arith.addf %19, %21 : vector<10x32xf32>
    %23 = arith.truncf %22 : vector<10x32xf32> to vector<10x32xbf16>
    %c0_17 = arith.constant 0 : index
    %c0_18 = arith.constant 0 : index
    %c0_19 = arith.constant 0 : index
    %24 = vector.load %arg9[%c0_17, %c0_18, %c0_19] : memref<1x10x32xbf16, #tpu.memory_space<vmem>>, vector<1x10x32xbf16>
    %25 = vector.shape_cast %24 : vector<1x10x32xbf16> to vector<10x32xbf16>
    %26 = vector.shape_cast %23 : vector<10x32xbf16> to vector<1x10x32xbf16>
    tpu.vector_store %arg9[%c0_17, %c0_18, %c0_19], %26 {strides = array<i32>} : memref<1x10x32xbf16, #tpu.memory_space<vmem>>, vector<1x10x32xbf16>,
    return
  }
  func.func @transform_0(%arg0: i32, %arg1: i32) -> (i32, i32, i32) {
    %c0_i32 = arith.constant 0 : i32
    %c0_i32_0 = arith.constant 0 : i32
    return %arg0, %arg1, %c0_i32 : i32, i32, i32
  }
  func.func @transform_1(%arg0: i32, %arg1: i32) -> (i32, i32, i32) {
    %c0_i32 = arith.constant 0 : i32
    %c0_i32_0 = arith.constant 0 : i32
    return %arg0, %arg1, %c0_i32 : i32, i32, i32
  }
  func.func @transform_2(%arg0: i32, %arg1: i32) -> (i32, i32) {
    %c0_i32 = arith.constant 0 : i32
    %c0_i32_0 = arith.constant 0 : i32
    %c0_i32_1 = arith.constant 0 : i32
    return %c0_i32, %c0_i32_0 : i32, i32
  }
  func.func @transform_3(%arg0: i32, %arg1: i32) -> (i32, i32) {
    %c0_i32 = arith.constant 0 : i32
    %c0_i32_0 = arith.constant 0 : i32
    %c0_i32_1 = arith.constant 0 : i32
    return %c0_i32, %c0_i32_0 : i32, i32
  }
  func.func @transform_4(%arg0: i32, %arg1: i32) -> (i32, i32) {
    %c0_i32 = arith.constant 0 : i32
    %c0_i32_0 = arith.constant 0 : i32
    %c0_i32_1 = arith.constant 0 : i32
    return %c0_i32, %c0_i32_0 : i32, i32
  }
  func.func @transform_5(%arg0: i32, %arg1: i32) -> (i32, i32) {
    %c0_i32 = arith.constant 0 : i32
    %c0_i32_0 = arith.constant 0 : i32
    %c0_i32_1 = arith.constant 0 : i32
    return %c0_i32, %c0_i32_0 : i32, i32
  }
  func.func @transform_6(%arg0: i32, %arg1: i32) -> (i32, i32, i32) {
    %c0_i32 = arith.constant 0 : i32
    %c0_i32_0 = arith.constant 0 : i32
    return %arg0, %arg1, %c0_i32 : i32, i32, i32
  }
  func.func @transform_7(%arg0: i32, %arg1: i32) -> (i32, i32, i32) {
    %c0_i32 = arith.constant 0 : i32
    %c0_i32_0 = arith.constant 0 : i32
    return %arg0, %arg1, %c0_i32 : i32, i32, i32
  }
}

module attributes {stable_mosaic.version = 11 : i64} {
  func.func @_mlp_res_ln_kernel(%arg0: i32, %arg1: i32, %arg2: memref<1x10x32xf32, #tpu.memory_space<vmem>>, %arg3: memref<32x64xf32, #tpu.memory_space<vmem>>, %arg4: memref<1x64xf32, #tpu.memory_space<vmem>>, %arg5: memref<64x32xf32, #tpu.memory_space<vmem>>, %arg6: memref<1x32xf32, #tpu.memory_space<vmem>>, %arg7: memref<1x32xf32, #tpu.memory_space<vmem>>, %arg8: memref<1x32xf32, #tpu.memory_space<vmem>>, %arg9: memref<1x10x32xf32, #tpu.memory_space<vmem>>) attributes {dimension_semantics = [#tpu.dimension_semantics<parallel>, #tpu.dimension_semantics<parallel>], iteration_bounds = array<i64: 2, 1>, scalar_prefetch = 0 : i64, scratch_operands = 0 : i64, tpu.core_type = #tpu.core_type<tc>, window_params = [{transform_indices = @transform_0, window_bounds = array<i64: 1, 10, 32>}, {pipeline_mode = #tpu.pipeline_mode<synchronous>, transform_indices = @transform_1, window_bounds = array<i64: 32, 64>}, {pipeline_mode = #tpu.pipeline_mode<synchronous>, transform_indices = @transform_2, window_bounds = array<i64: 1, 64>}, {pipeline_mode = #tpu.pipeline_mode<synchronous>, transform_indices = @transform_3, window_bounds = array<i64: 64, 32>}, {pipeline_mode = #tpu.pipeline_mode<synchronous>, transform_indices = @transform_4, window_bounds = array<i64: 1, 32>}, {pipeline_mode = #tpu.pipeline_mode<synchronous>, transform_indices = @transform_5, window_bounds = array<i64: 1, 32>}, {pipeline_mode = #tpu.pipeline_mode<synchronous>, transform_indices = @transform_6, window_bounds = array<i64: 1, 32>}, {transform_indices = @transform_7, window_bounds = array<i64: 1, 10, 32>}]} {
    %c0 = arith.constant 0 : index
    %c0_0 = arith.constant 0 : index
    %c0_1 = arith.constant 0 : index
    %0 = vector.load %arg2[%c0, %c0_0, %c0_1] : memref<1x10x32xf32, #tpu.memory_space<vmem>>, vector<1x10x32xf32>
    %1 = vector.shape_cast %0 : vector<1x10x32xf32> to vector<10x32xf32>
    %2 = arith.truncf %1 : vector<10x32xf32> to vector<10x32xbf16>
    %c0_2 = arith.constant 0 : index
    %c0_3 = arith.constant 0 : index
    %3 = vector.load %arg3[%c0_2, %c0_3] : memref<32x64xf32, #tpu.memory_space<vmem>>, vector<32x64xf32>
    %4 = arith.truncf %3 : vector<32x64xf32> to vector<32x64xbf16>
    %cst = arith.constant dense<0.000000e+00> : vector<10x64xf32>
    %5 = tpu.matmul %2, %4, %cst {dimension_numbers = #tpu.dot_dimension_numbers<[1], [0], [0], [1], [0, 0, 1, 1], [], []>} : vector<10x32xbf16>, vector<32x64xbf16>, vector<10x64xf32> -> vector<10x64xf32>
    %c0_4 = arith.constant 0 : index
    %c0_5 = arith.constant 0 : index
    %6 = vector.load %arg4[%c0_4, %c0_5] : memref<1x64xf32, #tpu.memory_space<vmem>>, vector<1x64xf32>
    %7 = vector.broadcast %6 : vector<1x64xf32> to vector<10x64xf32>
    %8 = arith.addf %5, %7 : vector<10x64xf32>
    %cst_6 = arith.constant 0.000000e+00 : f32
    %9 = vector.broadcast %cst_6 : f32 to vector<10x64xf32>
    %10 = arith.maximumf %8, %9 : vector<10x64xf32>
    %11 = arith.truncf %10 : vector<10x64xf32> to vector<10x64xbf16>
    %c0_7 = arith.constant 0 : index
    %c0_8 = arith.constant 0 : index
    %12 = vector.load %arg5[%c0_7, %c0_8] : memref<64x32xf32, #tpu.memory_space<vmem>>, vector<64x32xf32>
    %13 = arith.truncf %12 : vector<64x32xf32> to vector<64x32xbf16>
    %cst_9 = arith.constant dense<0.000000e+00> : vector<10x32xf32>
    %14 = tpu.matmul %11, %13, %cst_9 {dimension_numbers = #tpu.dot_dimension_numbers<[1], [0], [0], [1], [0, 0, 1, 1], [], []>} : vector<10x64xbf16>, vector<64x32xbf16>, vector<10x32xf32> -> vector<10x32xf32>
    %c0_10 = arith.constant 0 : index
    %c0_11 = arith.constant 0 : index
    %15 = vector.load %arg6[%c0_10, %c0_11] : memref<1x32xf32, #tpu.memory_space<vmem>>, vector<1x32xf32>
    %16 = vector.broadcast %15 : vector<1x32xf32> to vector<10x32xf32>
    %17 = arith.addf %14, %16 : vector<10x32xf32>
    %18 = arith.addf %17, %1 : vector<10x32xf32>
    %cst_12 = arith.constant dense<0.000000e+00> : vector<10xf32>
    %19 = vector.multi_reduction <add>, %18, %cst_12 [1] : vector<10x32xf32> to vector<10xf32>
    %20 = vector.shape_cast %19 : vector<10xf32> to vector<10x1xf32>
    %cst_13 = arith.constant 3.200000e+01 : f32
    %21 = vector.broadcast %cst_13 : f32 to vector<10x1xf32>
    %22 = arith.divf %20, %21 : vector<10x1xf32>
    %23 = vector.broadcast %22 : vector<10x1xf32> to vector<10x32xf32>
    %24 = arith.subf %18, %23 : vector<10x32xf32>
    %25 = arith.mulf %24, %24 : vector<10x32xf32>
    %cst_14 = arith.constant dense<0.000000e+00> : vector<10xf32>
    %26 = vector.multi_reduction <add>, %25, %cst_14 [1] : vector<10x32xf32> to vector<10xf32>
    %27 = vector.shape_cast %26 : vector<10xf32> to vector<10x1xf32>
    %cst_15 = arith.constant 3.200000e+01 : f32
    %28 = vector.broadcast %cst_15 : f32 to vector<10x1xf32>
    %29 = arith.divf %27, %28 : vector<10x1xf32>
    %30 = vector.broadcast %22 : vector<10x1xf32> to vector<10x32xf32>
    %31 = arith.subf %18, %30 : vector<10x32xf32>
    %cst_16 = arith.constant 9.99999997E-7 : f32
    %32 = vector.broadcast %cst_16 : f32 to vector<10x1xf32>
    %33 = arith.addf %29, %32 : vector<10x1xf32>
    %34 = math.rsqrt %33 : vector<10x1xf32>
    %35 = vector.broadcast %34 : vector<10x1xf32> to vector<10x32xf32>
    %36 = arith.mulf %31, %35 : vector<10x32xf32>
    %c0_17 = arith.constant 0 : index
    %c0_18 = arith.constant 0 : index
    %37 = vector.load %arg7[%c0_17, %c0_18] : memref<1x32xf32, #tpu.memory_space<vmem>>, vector<1x32xf32>
    %38 = vector.broadcast %37 : vector<1x32xf32> to vector<10x32xf32>
    %39 = arith.mulf %36, %38 : vector<10x32xf32>
    %c0_19 = arith.constant 0 : index
    %c0_20 = arith.constant 0 : index
    %40 = vector.load %arg8[%c0_19, %c0_20] : memref<1x32xf32, #tpu.memory_space<vmem>>, vector<1x32xf32>
    %41 = vector.broadcast %40 : vector<1x32xf32> to vector<10x32xf32>
    %42 = arith.addf %39, %41 : vector<10x32xf32>
    %c0_21 = arith.constant 0 : index
    %c0_22 = arith.constant 0 : index
    %c0_23 = arith.constant 0 : index
    %43 = vector.load %arg9[%c0_21, %c0_22, %c0_23] : memref<1x10x32xf32, #tpu.memory_space<vmem>>, vector<1x10x32xf32>
    %44 = vector.shape_cast %43 : vector<1x10x32xf32> to vector<10x32xf32>
    %45 = vector.shape_cast %42 : vector<10x32xf32> to vector<1x10x32xf32>
    tpu.vector_store %arg9[%c0_21, %c0_22, %c0_23], %45 {strides = array<i32>} : memref<1x10x32xf32, #tpu.memory_space<vmem>>, vector<1x10x32xf32>,
    return
  }
  func.func @transform_0(%arg0: i32, %arg1: i32) -> (i32, i32, i32) {
    %c0_i32 = arith.constant 0 : i32
    %c0_i32_0 = arith.constant 0 : i32
    return %arg0, %arg1, %c0_i32 : i32, i32, i32
  }
  func.func @transform_1(%arg0: i32, %arg1: i32) -> (i32, i32) {
    %c0_i32 = arith.constant 0 : i32
    %c0_i32_0 = arith.constant 0 : i32
    %c0_i32_1 = arith.constant 0 : i32
    return %c0_i32, %c0_i32_0 : i32, i32
  }
  func.func @transform_2(%arg0: i32, %arg1: i32) -> (i32, i32) {
    %c0_i32 = arith.constant 0 : i32
    %c0_i32_0 = arith.constant 0 : i32
    %c0_i32_1 = arith.constant 0 : i32
    return %c0_i32, %c0_i32_0 : i32, i32
  }
  func.func @transform_3(%arg0: i32, %arg1: i32) -> (i32, i32) {
    %c0_i32 = arith.constant 0 : i32
    %c0_i32_0 = arith.constant 0 : i32
    %c0_i32_1 = arith.constant 0 : i32
    return %c0_i32, %c0_i32_0 : i32, i32
  }
  func.func @transform_4(%arg0: i32, %arg1: i32) -> (i32, i32) {
    %c0_i32 = arith.constant 0 : i32
    %c0_i32_0 = arith.constant 0 : i32
    %c0_i32_1 = arith.constant 0 : i32
    return %c0_i32, %c0_i32_0 : i32, i32
  }
  func.func @transform_5(%arg0: i32, %arg1: i32) -> (i32, i32) {
    %c0_i32 = arith.constant 0 : i32
    %c0_i32_0 = arith.constant 0 : i32
    %c0_i32_1 = arith.constant 0 : i32
    return %c0_i32, %c0_i32_0 : i32, i32
  }
  func.func @transform_6(%arg0: i32, %arg1: i32) -> (i32, i32) {
    %c0_i32 = arith.constant 0 : i32
    %c0_i32_0 = arith.constant 0 : i32
    %c0_i32_1 = arith.constant 0 : i32
    return %c0_i32, %c0_i32_0 : i32, i32
  }
  func.func @transform_7(%arg0: i32, %arg1: i32) -> (i32, i32, i32) {
    %c0_i32 = arith.constant 0 : i32
    %c0_i32_0 = arith.constant 0 : i32
    return %arg0, %arg1, %c0_i32 : i32, i32, i32
  }
}

module attributes {stable_mosaic.version = 11 : i64} {
  func.func @_dual_proj_kernel(%arg0: i32, %arg1: i32, %arg2: memref<1x10x32xf32, #tpu.memory_space<vmem>>, %arg3: memref<1x10x32xf32, #tpu.memory_space<vmem>>, %arg4: memref<32x32xf32, #tpu.memory_space<vmem>>, %arg5: memref<1x32xf32, #tpu.memory_space<vmem>>, %arg6: memref<32x32xf32, #tpu.memory_space<vmem>>, %arg7: memref<1x32xf32, #tpu.memory_space<vmem>>, %arg8: memref<1x10x32xbf16, #tpu.memory_space<vmem>>, %arg9: memref<1x10x32xbf16, #tpu.memory_space<vmem>>) attributes {dimension_semantics = [#tpu.dimension_semantics<parallel>, #tpu.dimension_semantics<parallel>], iteration_bounds = array<i64: 2, 1>, scalar_prefetch = 0 : i64, scratch_operands = 0 : i64, tpu.core_type = #tpu.core_type<tc>, window_params = [{transform_indices = @transform_0, window_bounds = array<i64: 1, 10, 32>}, {transform_indices = @transform_1, window_bounds = array<i64: 1, 10, 32>}, {pipeline_mode = #tpu.pipeline_mode<synchronous>, transform_indices = @transform_2, window_bounds = array<i64: 32, 32>}, {pipeline_mode = #tpu.pipeline_mode<synchronous>, transform_indices = @transform_3, window_bounds = array<i64: 1, 32>}, {pipeline_mode = #tpu.pipeline_mode<synchronous>, transform_indices = @transform_4, window_bounds = array<i64: 32, 32>}, {pipeline_mode = #tpu.pipeline_mode<synchronous>, transform_indices = @transform_5, window_bounds = array<i64: 1, 32>}, {transform_indices = @transform_6, window_bounds = array<i64: 1, 10, 32>}, {transform_indices = @transform_7, window_bounds = array<i64: 1, 10, 32>}]} {
    %c0 = arith.constant 0 : index
    %c0_0 = arith.constant 0 : index
    %c0_1 = arith.constant 0 : index
    %0 = vector.load %arg2[%c0, %c0_0, %c0_1] : memref<1x10x32xf32, #tpu.memory_space<vmem>>, vector<1x10x32xf32>
    %1 = vector.shape_cast %0 : vector<1x10x32xf32> to vector<10x32xf32>
    %c0_2 = arith.constant 0 : index
    %c0_3 = arith.constant 0 : index
    %c0_4 = arith.constant 0 : index
    %2 = vector.load %arg3[%c0_2, %c0_3, %c0_4] : memref<1x10x32xf32, #tpu.memory_space<vmem>>, vector<1x10x32xf32>
    %3 = vector.shape_cast %2 : vector<1x10x32xf32> to vector<10x32xf32>
    %4 = arith.addf %1, %3 : vector<10x32xf32>
    %5 = arith.truncf %4 : vector<10x32xf32> to vector<10x32xbf16>
    %c0_5 = arith.constant 0 : index
    %c0_6 = arith.constant 0 : index
    %6 = vector.load %arg4[%c0_5, %c0_6] : memref<32x32xf32, #tpu.memory_space<vmem>>, vector<32x32xf32>
    %7 = arith.truncf %6 : vector<32x32xf32> to vector<32x32xbf16>
    %cst = arith.constant dense<0.000000e+00> : vector<10x32xf32>
    %8 = tpu.matmul %5, %7, %cst {dimension_numbers = #tpu.dot_dimension_numbers<[1], [0], [0], [1], [0, 0, 1, 1], [], []>} : vector<10x32xbf16>, vector<32x32xbf16>, vector<10x32xf32> -> vector<10x32xf32>
    %c0_7 = arith.constant 0 : index
    %c0_8 = arith.constant 0 : index
    %9 = vector.load %arg5[%c0_7, %c0_8] : memref<1x32xf32, #tpu.memory_space<vmem>>, vector<1x32xf32>
    %10 = vector.broadcast %9 : vector<1x32xf32> to vector<10x32xf32>
    %11 = arith.addf %8, %10 : vector<10x32xf32>
    %12 = arith.truncf %11 : vector<10x32xf32> to vector<10x32xbf16>
    %c0_9 = arith.constant 0 : index
    %c0_10 = arith.constant 0 : index
    %c0_11 = arith.constant 0 : index
    %13 = vector.load %arg8[%c0_9, %c0_10, %c0_11] : memref<1x10x32xbf16, #tpu.memory_space<vmem>>, vector<1x10x32xbf16>
    %14 = vector.shape_cast %13 : vector<1x10x32xbf16> to vector<10x32xbf16>
    %15 = vector.shape_cast %12 : vector<10x32xbf16> to vector<1x10x32xbf16>
    tpu.vector_store %arg8[%c0_9, %c0_10, %c0_11], %15 {strides = array<i32>} : memref<1x10x32xbf16, #tpu.memory_space<vmem>>, vector<1x10x32xbf16>,
    %16 = arith.truncf %1 : vector<10x32xf32> to vector<10x32xbf16>
    %c0_12 = arith.constant 0 : index
    %c0_13 = arith.constant 0 : index
    %17 = vector.load %arg6[%c0_12, %c0_13] : memref<32x32xf32, #tpu.memory_space<vmem>>, vector<32x32xf32>
    %18 = arith.truncf %17 : vector<32x32xf32> to vector<32x32xbf16>
    %cst_14 = arith.constant dense<0.000000e+00> : vector<10x32xf32>
    %19 = tpu.matmul %16, %18, %cst_14 {dimension_numbers = #tpu.dot_dimension_numbers<[1], [0], [0], [1], [0, 0, 1, 1], [], []>} : vector<10x32xbf16>, vector<32x32xbf16>, vector<10x32xf32> -> vector<10x32xf32>
    %c0_15 = arith.constant 0 : index
    %c0_16 = arith.constant 0 : index
    %20 = vector.load %arg7[%c0_15, %c0_16] : memref<1x32xf32, #tpu.memory_space<vmem>>, vector<1x32xf32>
    %21 = vector.broadcast %20 : vector<1x32xf32> to vector<10x32xf32>
    %22 = arith.addf %19, %21 : vector<10x32xf32>
    %23 = arith.truncf %22 : vector<10x32xf32> to vector<10x32xbf16>
    %c0_17 = arith.constant 0 : index
    %c0_18 = arith.constant 0 : index
    %c0_19 = arith.constant 0 : index
    %24 = vector.load %arg9[%c0_17, %c0_18, %c0_19] : memref<1x10x32xbf16, #tpu.memory_space<vmem>>, vector<1x10x32xbf16>
    %25 = vector.shape_cast %24 : vector<1x10x32xbf16> to vector<10x32xbf16>
    %26 = vector.shape_cast %23 : vector<10x32xbf16> to vector<1x10x32xbf16>
    tpu.vector_store %arg9[%c0_17, %c0_18, %c0_19], %26 {strides = array<i32>} : memref<1x10x32xbf16, #tpu.memory_space<vmem>>, vector<1x10x32xbf16>,
    return
  }
  func.func @transform_0(%arg0: i32, %arg1: i32) -> (i32, i32, i32) {
    %c0_i32 = arith.constant 0 : i32
    %c0_i32_0 = arith.constant 0 : i32
    return %arg0, %arg1, %c0_i32 : i32, i32, i32
  }
  func.func @transform_1(%arg0: i32, %arg1: i32) -> (i32, i32, i32) {
    %c0_i32 = arith.constant 0 : i32
    %c0_i32_0 = arith.constant 0 : i32
    return %arg0, %arg1, %c0_i32 : i32, i32, i32
  }
  func.func @transform_2(%arg0: i32, %arg1: i32) -> (i32, i32) {
    %c0_i32 = arith.constant 0 : i32
    %c0_i32_0 = arith.constant 0 : i32
    %c0_i32_1 = arith.constant 0 : i32
    return %c0_i32, %c0_i32_0 : i32, i32
  }
  func.func @transform_3(%arg0: i32, %arg1: i32) -> (i32, i32) {
    %c0_i32 = arith.constant 0 : i32
    %c0_i32_0 = arith.constant 0 : i32
    %c0_i32_1 = arith.constant 0 : i32
    return %c0_i32, %c0_i32_0 : i32, i32
  }
  func.func @transform_4(%arg0: i32, %arg1: i32) -> (i32, i32) {
    %c0_i32 = arith.constant 0 : i32
    %c0_i32_0 = arith.constant 0 : i32
    %c0_i32_1 = arith.constant 0 : i32
    return %c0_i32, %c0_i32_0 : i32, i32
  }
  func.func @transform_5(%arg0: i32, %arg1: i32) -> (i32, i32) {
    %c0_i32 = arith.constant 0 : i32
    %c0_i32_0 = arith.constant 0 : i32
    %c0_i32_1 = arith.constant 0 : i32
    return %c0_i32, %c0_i32_0 : i32, i32
  }
  func.func @transform_6(%arg0: i32, %arg1: i32) -> (i32, i32, i32) {
    %c0_i32 = arith.constant 0 : i32
    %c0_i32_0 = arith.constant 0 : i32
    return %arg0, %arg1, %c0_i32 : i32, i32, i32
  }
  func.func @transform_7(%arg0: i32, %arg1: i32) -> (i32, i32, i32) {
    %c0_i32 = arith.constant 0 : i32
    %c0_i32_0 = arith.constant 0 : i32
    return %arg0, %arg1, %c0_i32 : i32, i32, i32
  }
}

module attributes {stable_mosaic.version = 11 : i64} {
  func.func @_attn_kernel(%arg0: i32, %arg1: i32, %arg2: memref<1x16x32xbf16, #tpu.memory_space<vmem>>, %arg3: memref<1x10x32xbf16, #tpu.memory_space<vmem>>, %arg4: memref<1x10x32xbf16, #tpu.memory_space<vmem>>, %arg5: memref<1x16x32xbf16, #tpu.memory_space<vmem>>) attributes {dimension_semantics = [#tpu.dimension_semantics<parallel>, #tpu.dimension_semantics<parallel>], iteration_bounds = array<i64: 2, 1>, scalar_prefetch = 0 : i64, scratch_operands = 0 : i64, tpu.core_type = #tpu.core_type<tc>, window_params = [{transform_indices = @transform_0, window_bounds = array<i64: 1, 16, 32>}, {transform_indices = @transform_1, window_bounds = array<i64: 1, 10, 32>}, {transform_indices = @transform_2, window_bounds = array<i64: 1, 10, 32>}, {transform_indices = @transform_3, window_bounds = array<i64: 1, 16, 32>}]} {
    %c0 = arith.constant 0 : index
    %c0_0 = arith.constant 0 : index
    %c0_1 = arith.constant 0 : index
    %0 = vector.load %arg2[%c0, %c0_0, %c0_1] : memref<1x16x32xbf16, #tpu.memory_space<vmem>>, vector<1x16x32xbf16>
    %1 = vector.shape_cast %0 : vector<1x16x32xbf16> to vector<16x32xbf16>
    %c0_2 = arith.constant 0 : index
    %c0_3 = arith.constant 0 : index
    %c0_4 = arith.constant 0 : index
    %2 = vector.load %arg3[%c0_2, %c0_3, %c0_4] : memref<1x10x32xbf16, #tpu.memory_space<vmem>>, vector<1x10x32xbf16>
    %3 = vector.shape_cast %2 : vector<1x10x32xbf16> to vector<10x32xbf16>
    %c0_5 = arith.constant 0 : index
    %c0_6 = arith.constant 0 : index
    %c0_7 = arith.constant 0 : index
    %4 = vector.load %arg4[%c0_5, %c0_6, %c0_7] : memref<1x10x32xbf16, #tpu.memory_space<vmem>>, vector<1x10x32xbf16>
    %5 = vector.shape_cast %4 : vector<1x10x32xbf16> to vector<10x32xbf16>
    %6 = vector.extract_strided_slice %1 {offsets = [0, 0], sizes = [16, 8], strides = [1, 1]} : vector<16x32xbf16> to vector<16x8xbf16>
    %7 = vector.extract_strided_slice %3 {offsets = [0, 0], sizes = [10, 8], strides = [1, 1]} : vector<10x32xbf16> to vector<10x8xbf16>
    %8 = vector.extract_strided_slice %5 {offsets = [0, 0], sizes = [10, 8], strides = [1, 1]} : vector<10x32xbf16> to vector<10x8xbf16>
    %cst = arith.constant dense<0.000000e+00> : vector<16x10xf32>
    %9 = tpu.matmul %6, %7, %cst {dimension_numbers = #tpu.dot_dimension_numbers<[1], [1], [0], [0], [0, 0, 1, 0], [], []>} : vector<16x8xbf16>, vector<10x8xbf16>, vector<16x10xf32> -> vector<16x10xf32>
    %cst_8 = arith.constant 0.353553385 : f32
    %10 = vector.broadcast %cst_8 : f32 to vector<16x10xf32>
    %11 = arith.mulf %9, %10 : vector<16x10xf32>
    %cst_9 = arith.constant dense<0xFF800000> : vector<16xf32>
    %12 = vector.multi_reduction <maximumf>, %11, %cst_9 [1] : vector<16x10xf32> to vector<16xf32>
    %13 = vector.shape_cast %12 : vector<16xf32> to vector<16x1xf32>
    %14 = vector.broadcast %13 : vector<16x1xf32> to vector<16x10xf32>
    %15 = arith.subf %11, %14 : vector<16x10xf32>
    %16 = math.exp %15 : vector<16x10xf32>
    %cst_10 = arith.constant dense<0.000000e+00> : vector<16xf32>
    %17 = vector.multi_reduction <add>, %16, %cst_10 [1] : vector<16x10xf32> to vector<16xf32>
    %18 = vector.shape_cast %17 : vector<16xf32> to vector<16x1xf32>
    %19 = tpu.reciprocal %18 {approx = true} : vector<16x1xf32> -> vector<16x1xf32>
    %20 = vector.broadcast %19 : vector<16x1xf32> to vector<16x10xf32>
    %21 = arith.mulf %16, %20 : vector<16x10xf32>
    %22 = arith.truncf %21 : vector<16x10xf32> to vector<16x10xbf16>
    %cst_11 = arith.constant dense<0.000000e+00> : vector<16x8xf32>
    %23 = tpu.matmul %22, %8, %cst_11 {dimension_numbers = #tpu.dot_dimension_numbers<[1], [0], [0], [1], [0, 0, 1, 1], [], []>} : vector<16x10xbf16>, vector<10x8xbf16>, vector<16x8xf32> -> vector<16x8xf32>
    %24 = vector.extract_strided_slice %1 {offsets = [0, 8], sizes = [16, 8], strides = [1, 1]} : vector<16x32xbf16> to vector<16x8xbf16>
    %25 = vector.extract_strided_slice %3 {offsets = [0, 8], sizes = [10, 8], strides = [1, 1]} : vector<10x32xbf16> to vector<10x8xbf16>
    %26 = vector.extract_strided_slice %5 {offsets = [0, 8], sizes = [10, 8], strides = [1, 1]} : vector<10x32xbf16> to vector<10x8xbf16>
    %cst_12 = arith.constant dense<0.000000e+00> : vector<16x10xf32>
    %27 = tpu.matmul %24, %25, %cst_12 {dimension_numbers = #tpu.dot_dimension_numbers<[1], [1], [0], [0], [0, 0, 1, 0], [], []>} : vector<16x8xbf16>, vector<10x8xbf16>, vector<16x10xf32> -> vector<16x10xf32>
    %cst_13 = arith.constant 0.353553385 : f32
    %28 = vector.broadcast %cst_13 : f32 to vector<16x10xf32>
    %29 = arith.mulf %27, %28 : vector<16x10xf32>
    %cst_14 = arith.constant dense<0xFF800000> : vector<16xf32>
    %30 = vector.multi_reduction <maximumf>, %29, %cst_14 [1] : vector<16x10xf32> to vector<16xf32>
    %31 = vector.shape_cast %30 : vector<16xf32> to vector<16x1xf32>
    %32 = vector.broadcast %31 : vector<16x1xf32> to vector<16x10xf32>
    %33 = arith.subf %29, %32 : vector<16x10xf32>
    %34 = math.exp %33 : vector<16x10xf32>
    %cst_15 = arith.constant dense<0.000000e+00> : vector<16xf32>
    %35 = vector.multi_reduction <add>, %34, %cst_15 [1] : vector<16x10xf32> to vector<16xf32>
    %36 = vector.shape_cast %35 : vector<16xf32> to vector<16x1xf32>
    %37 = tpu.reciprocal %36 {approx = true} : vector<16x1xf32> -> vector<16x1xf32>
    %38 = vector.broadcast %37 : vector<16x1xf32> to vector<16x10xf32>
    %39 = arith.mulf %34, %38 : vector<16x10xf32>
    %40 = arith.truncf %39 : vector<16x10xf32> to vector<16x10xbf16>
    %cst_16 = arith.constant dense<0.000000e+00> : vector<16x8xf32>
    %41 = tpu.matmul %40, %26, %cst_16 {dimension_numbers = #tpu.dot_dimension_numbers<[1], [0], [0], [1], [0, 0, 1, 1], [], []>} : vector<16x10xbf16>, vector<10x8xbf16>, vector<16x8xf32> -> vector<16x8xf32>
    %42 = vector.extract_strided_slice %1 {offsets = [0, 16], sizes = [16, 8], strides = [1, 1]} : vector<16x32xbf16> to vector<16x8xbf16>
    %43 = vector.extract_strided_slice %3 {offsets = [0, 16], sizes = [10, 8], strides = [1, 1]} : vector<10x32xbf16> to vector<10x8xbf16>
    %44 = vector.extract_strided_slice %5 {offsets = [0, 16], sizes = [10, 8], strides = [1, 1]} : vector<10x32xbf16> to vector<10x8xbf16>
    %cst_17 = arith.constant dense<0.000000e+00> : vector<16x10xf32>
    %45 = tpu.matmul %42, %43, %cst_17 {dimension_numbers = #tpu.dot_dimension_numbers<[1], [1], [0], [0], [0, 0, 1, 0], [], []>} : vector<16x8xbf16>, vector<10x8xbf16>, vector<16x10xf32> -> vector<16x10xf32>
    %cst_18 = arith.constant 0.353553385 : f32
    %46 = vector.broadcast %cst_18 : f32 to vector<16x10xf32>
    %47 = arith.mulf %45, %46 : vector<16x10xf32>
    %cst_19 = arith.constant dense<0xFF800000> : vector<16xf32>
    %48 = vector.multi_reduction <maximumf>, %47, %cst_19 [1] : vector<16x10xf32> to vector<16xf32>
    %49 = vector.shape_cast %48 : vector<16xf32> to vector<16x1xf32>
    %50 = vector.broadcast %49 : vector<16x1xf32> to vector<16x10xf32>
    %51 = arith.subf %47, %50 : vector<16x10xf32>
    %52 = math.exp %51 : vector<16x10xf32>
    %cst_20 = arith.constant dense<0.000000e+00> : vector<16xf32>
    %53 = vector.multi_reduction <add>, %52, %cst_20 [1] : vector<16x10xf32> to vector<16xf32>
    %54 = vector.shape_cast %53 : vector<16xf32> to vector<16x1xf32>
    %55 = tpu.reciprocal %54 {approx = true} : vector<16x1xf32> -> vector<16x1xf32>
    %56 = vector.broadcast %55 : vector<16x1xf32> to vector<16x10xf32>
    %57 = arith.mulf %52, %56 : vector<16x10xf32>
    %58 = arith.truncf %57 : vector<16x10xf32> to vector<16x10xbf16>
    %cst_21 = arith.constant dense<0.000000e+00> : vector<16x8xf32>
    %59 = tpu.matmul %58, %44, %cst_21 {dimension_numbers = #tpu.dot_dimension_numbers<[1], [0], [0], [1], [0, 0, 1, 1], [], []>} : vector<16x10xbf16>, vector<10x8xbf16>, vector<16x8xf32> -> vector<16x8xf32>
    %60 = vector.extract_strided_slice %1 {offsets = [0, 24], sizes = [16, 8], strides = [1, 1]} : vector<16x32xbf16> to vector<16x8xbf16>
    %61 = vector.extract_strided_slice %3 {offsets = [0, 24], sizes = [10, 8], strides = [1, 1]} : vector<10x32xbf16> to vector<10x8xbf16>
    %62 = vector.extract_strided_slice %5 {offsets = [0, 24], sizes = [10, 8], strides = [1, 1]} : vector<10x32xbf16> to vector<10x8xbf16>
    %cst_22 = arith.constant dense<0.000000e+00> : vector<16x10xf32>
    %63 = tpu.matmul %60, %61, %cst_22 {dimension_numbers = #tpu.dot_dimension_numbers<[1], [1], [0], [0], [0, 0, 1, 0], [], []>} : vector<16x8xbf16>, vector<10x8xbf16>, vector<16x10xf32> -> vector<16x10xf32>
    %cst_23 = arith.constant 0.353553385 : f32
    %64 = vector.broadcast %cst_23 : f32 to vector<16x10xf32>
    %65 = arith.mulf %63, %64 : vector<16x10xf32>
    %cst_24 = arith.constant dense<0xFF800000> : vector<16xf32>
    %66 = vector.multi_reduction <maximumf>, %65, %cst_24 [1] : vector<16x10xf32> to vector<16xf32>
    %67 = vector.shape_cast %66 : vector<16xf32> to vector<16x1xf32>
    %68 = vector.broadcast %67 : vector<16x1xf32> to vector<16x10xf32>
    %69 = arith.subf %65, %68 : vector<16x10xf32>
    %70 = math.exp %69 : vector<16x10xf32>
    %cst_25 = arith.constant dense<0.000000e+00> : vector<16xf32>
    %71 = vector.multi_reduction <add>, %70, %cst_25 [1] : vector<16x10xf32> to vector<16xf32>
    %72 = vector.shape_cast %71 : vector<16xf32> to vector<16x1xf32>
    %73 = tpu.reciprocal %72 {approx = true} : vector<16x1xf32> -> vector<16x1xf32>
    %74 = vector.broadcast %73 : vector<16x1xf32> to vector<16x10xf32>
    %75 = arith.mulf %70, %74 : vector<16x10xf32>
    %76 = arith.truncf %75 : vector<16x10xf32> to vector<16x10xbf16>
    %cst_26 = arith.constant dense<0.000000e+00> : vector<16x8xf32>
    %77 = tpu.matmul %76, %62, %cst_26 {dimension_numbers = #tpu.dot_dimension_numbers<[1], [0], [0], [1], [0, 0, 1, 1], [], []>} : vector<16x10xbf16>, vector<10x8xbf16>, vector<16x8xf32> -> vector<16x8xf32>
    %78 = tpu.concatenate %23, %41, %59, %77 in 1 : vector<16x8xf32>, vector<16x8xf32>, vector<16x8xf32>, vector<16x8xf32> -> vector<16x32xf32>
    %79 = arith.truncf %78 : vector<16x32xf32> to vector<16x32xbf16>
    %c0_27 = arith.constant 0 : index
    %c0_28 = arith.constant 0 : index
    %c0_29 = arith.constant 0 : index
    %80 = vector.load %arg5[%c0_27, %c0_28, %c0_29] : memref<1x16x32xbf16, #tpu.memory_space<vmem>>, vector<1x16x32xbf16>
    %81 = vector.shape_cast %80 : vector<1x16x32xbf16> to vector<16x32xbf16>
    %82 = vector.shape_cast %79 : vector<16x32xbf16> to vector<1x16x32xbf16>
    tpu.vector_store %arg5[%c0_27, %c0_28, %c0_29], %82 {strides = array<i32>} : memref<1x16x32xbf16, #tpu.memory_space<vmem>>, vector<1x16x32xbf16>,
    return
  }
  func.func @transform_0(%arg0: i32, %arg1: i32) -> (i32, i32, i32) {
    %c0_i32 = arith.constant 0 : i32
    %c0_i32_0 = arith.constant 0 : i32
    return %arg0, %c0_i32, %arg1 : i32, i32, i32
  }
  func.func @transform_1(%arg0: i32, %arg1: i32) -> (i32, i32, i32) {
    %c0_i32 = arith.constant 0 : i32
    %c0_i32_0 = arith.constant 0 : i32
    return %arg0, %c0_i32, %arg1 : i32, i32, i32
  }
  func.func @transform_2(%arg0: i32, %arg1: i32) -> (i32, i32, i32) {
    %c0_i32 = arith.constant 0 : i32
    %c0_i32_0 = arith.constant 0 : i32
    return %arg0, %c0_i32, %arg1 : i32, i32, i32
  }
  func.func @transform_3(%arg0: i32, %arg1: i32) -> (i32, i32, i32) {
    %c0_i32 = arith.constant 0 : i32
    %c0_i32_0 = arith.constant 0 : i32
    return %arg0, %c0_i32, %arg1 : i32, i32, i32
  }
}

</mosaic_0001>

<bundles_post_ra>
// kernel: dcf_sam_forward.66
= control target key start
LH: loop header
LB: loop body
LE: loop exit
PB: predicated region body
PF: predicated region fallthrough
CT: control target
= control target key end

     0   :  { %v111_v0 = vmov 0.0   ;;  %vm112_vm0 = vmmov 0   ;;  %vm31_vm1 = vcmask 261120   ;;  %vm84_vm2 = vcmask 781312   ;;  %s160_s1 = inlined_call_operand.vmem [shape: f32[32,96], index: 1, kind: input, shape index: {}]   ;;  %s161_s0 = inlined_call_operand.vmem [shape: f32[12,32], index: 0, kind: input, shape index: {}]   ;;  %s162_s2 = inlined_call_operand.vmem [shape: f32[1,96], index: 2, kind: input, shape index: {}]   ;;  %s163_s3 = inlined_call_operand.vmem [shape: bf16[12,96], index: 3, kind: output, shape index: {}]  }
   0x1   :  { %101 = vmatprep.subr.bf16.mxu0 %v111_v0  ;;  %v20_v1 = vld [vmem:[%s160_s1 + $0x10] sm:$0xff]  ;;  %v21_v2 = vld [vmem:[%s160_s1 + $0x18] sm:$0xff]  ;;  %v18_v3 = vld [vmem:[%s160_s1] sm:$0xff]  ;;  %105 = vmatprep.mubr.msk.bf16.mxu0 %vm112_vm0, %v111_v0  ;;  %vm86_vm3 = vcmask 779264  }
   0x2   :  { %v23_v4 = vpack.c.bf16 %v21_v2, %v20_v1  ;;  %v19_v5 = vld [vmem:[%s160_s1 + $0x8] sm:$0xff]  ;;  %v15_v7 = vld [vmem:[%s161_s0] sm:$0xff] }
   0x3   :  { %v22_v6 = vpack.c.bf16 %v19_v5, %v18_v3  ;;  %v16_v8 = vld [vmem:[%s161_s0 + $0x8] sm:$0xf]  ;;  %v92_v10 = vld [vmem:[%s162_s2] ss:$0 sm:$0xff] }
   0x4   :  { %102 = vmatpush3.bf16.msra.mxu0 %v23_v4  ;;  %v17_v9 = vpack.c.bf16 %v16_v8, %v15_v7 }
   0x5   :  { %103 = vmatprep.subr.bf16.mxu0 %v111_v0 }
   0x8   :  { %104 = vmatpush3.bf16.msra.mxu0 %v22_v6 }
   0xb   :  { %106 = vmatmul.mubr.msk.bf16.vlgmr.msra.gmra.mxu0 %vm31_vm1, %v17_v9 }
  0xcb   :  { %v69_v11 = vpop.f32.mrf.mxu0 }
  0xcc   :  { %v70_v12 = vadd.f32 %v92_v10, %v69_v11 }
  0xcd   :  { %v107_v13 = vpop.f32.mrf.mxu0 }
  0xce   :  { %v96_v14 = vpack.c.bf16 %v70_v12, %v70_v12 }
  0xcf   :  { %v72_v15 = vpop.f32.mrf.mxu0 }
  0xd0   :  { %85 = vst.msk [vmem:[%s163_s3] sm:$0xf] %vm84_vm2, %v96_v14  ;;  %v73_v16 = vadd.f32 %v92_v10, %v72_v15 }
  0xd1   :  { %v108_v17 = vpop.f32.mrf.mxu0 }
  0xd2   :  { %v97_v18 = vpack.c.bf16 %v73_v16, %v73_v16 }
  0xd4   :  { %87 = vst.msk [vmem:[%s163_s3 + $0x4] sm:$0x3] %vm86_vm3, %v97_v18 }

// kernel: dcf_sam_forward.68
= control target key start
LH: loop header
LB: loop body
LE: loop exit
PB: predicated region body
PF: predicated region fallthrough
CT: control target
= control target key end

     0   :  { %s602_s21 = smov 0   ;;  %s604_s22 = smov 0   ;;  %s666_s0 = inlined_call_operand.vmem [shape: bf16[2,6,32], index: 0, kind: input, shape index: {}]   ;;  %s667_s1 = inlined_call_operand.vmem [shape: f32[2,6,32], index: 1, kind: input, shape index: {}]   ;;  %s668_s2 = inlined_call_operand.vmem [shape: f32[32,32], index: 2, kind: input, shape index: {}]   ;;  %s669_s3 = inlined_call_operand.vmem [shape: f32[1,32], index: 3, kind: input, shape index: {}]   ;;  %s670_s4 = inlined_call_operand.vmem [shape: f32[1,32], index: 4, kind: input, shape index: {}]   ;;  %s671_s5 = inlined_call_operand.vmem [shape: f32[1,32], index: 5, kind: input, shape index: {}]   ;;  %s672_s6 = inlined_call_operand.vmem [shape: f32[2,6,32], index: 6, kind: output, shape index: {}]  }
   0x1   :  { %s606_s23 = smov 0  }
   0x2 LB: > { %s28_s24 = sadd.s32 1, %s559_s22  ;;  %p492_p0 = scmp.ge.s32.totalorder %s563_s23, 1  ;;  %s563_s23 = sphi %s606_s23, %s16_s23   ;;  %s559_s22 = sphi %s604_s22, %s674_s22   ;;  %s555_s21 = sphi %s602_s21, %s673_s21  }
   0x3   : > { %p30_p1 = scmp.ge.s32.totalorder %s28_s24, 2  ;;  %p244_p2 = scmp.lt.s32.totalorder %s563_s23, 3 }
   0x5   : > { %s676_s24 = smov (%p30_p1, %s28_s24), 0  ;;  %p245_p3 = pnand %p492_p0, %p244_p2 }
   0x6   : > { %p285_p4 = scmp.lt.s32.totalorder (!%p245_p3), %s555_s21, 1 }
   0x7   : > { %248 = sbr.rel (%p245_p3) target bundleno = 528 (0x210), region = 44 }
   0xc   : > { %v310_v0 = vld [vmem:[%s668_s2 + $0x10] sm:$0xff]  ;;  %v311_v1 = vld [vmem:[%s668_s2 + $0x18] sm:$0xff]  ;;  %v308_v2 = vld [vmem:[%s668_s2] sm:$0xff]  ;;  %v565_v3 = vmov 0.0   ;;  %vm566_vm0 = vmmov 0   ;;  %s678_s21 = smov (!%p285_p4, %s555_s21), 1 }
   0xd   : > { %505 = vmatprep.subr.bf16.mxu0 %v565_v3  ;;  %v313_v4 = vpack.c.bf16 %v311_v1, %v310_v0  ;;  %v309_v5 = vld [vmem:[%s668_s2 + $0x8] sm:$0xff]  ;;  %509 = vmatprep.mubr.msk.bf16.mxu0 %vm566_vm0, %v565_v3  ;;  %s493_s9 = sshll.u32 %s678_s21, 2  ;;  %vm321_vm1 = vcmask 261120   ;;  %s494_s13 = sshll.u32 %s678_s21, 3  ;;  %v496_v8 = vld [vmem:[%s669_s3] ss:$0 sm:$0xff] }
   0xe   : > { %v312_v6 = vpack.c.bf16 %v309_v5, %v308_v2  ;;  %s291_s12 = scalar_lea.vmem %s666_s0, %s493_s9  ;;  %s298_s16 = scalar_lea.vmem %s667_s1, %s494_s13  ;;  %vm367_vm2 = vcmask 259072   ;;  %v498_v26 = vld [vmem:[%s670_s4] ss:$0 sm:$0xff] }
   0xf   : > { %506 = vmatpush3.bf16.msra.mxu0 %v313_v4  ;;  %v307_v7 = vld [vmem:[%s291_s12] sm:$0x7]  ;;  %s305_s28 = scalar_lea.vmem %s672_s6, %s494_s13 }
  0x10   : > { %507 = vmatprep.subr.bf16.mxu0 %v565_v3  ;;  %v365_v10 = vld [vmem:[%s298_s16] sm:$0x3f] }
  0x11   : > { %v499_v28 = vld [vmem:[%s671_s5] ss:$0 sm:$0xff] }
  0x13   : > { %508 = vmatpush3.bf16.msra.mxu0 %v312_v6 }
  0x16   : > { %510 = vmatmul.mubr.msk.bf16.vlgmr.msra.gmra.mxu0 %vm321_vm1, %v307_v7 }
  0xd6   : > { %v359_v9 = vpop.f32.mrf.mxu0 }
  0xd7   : > { %v360_v11 = vadd.f32 %v496_v8, %v359_v9 }
  0xd8   : > { %v511_v12 = vpop.f32.mrf.mxu0 }
  0xd9   : > { %v366_v13 = vadd.f32 %v365_v10, %v360_v11 }
  0xda   : > { %v362_v14 = vpop.f32.mrf.mxu0 }
  0xdb   : > { %v368_v15 = vsel %vm367_vm2, %v366_v13, 0.0 }
  0xdc   : > { %369 = vadd.xlane.f32.xlu0 %v368_v15  ;;  %v512_v16 = vpop.f32.mrf.mxu0 }
 0x165   : > { %v370_v17 = vpop.xlane.xlu0 %369 }
 0x166   : > { %v372_v18 = vmul.f32 0.03125, %v370_v17 }
 0x168   : > { %v373_v19 = vsub.f32 %v366_v13, %v372_v18 }
 0x16a   : > { %v374_v20 = vmul.f32 %v373_v19, %v373_v19 }
 0x16c   : > { %v375_v21 = vsel %vm367_vm2, %v374_v20, 0.0 }
 0x16d   : > { %376 = vadd.xlane.f32.xlu0 %v375_v21 }
 0x1f6   : > { %v377_v22 = vpop.xlane.xlu0 %376 }
 0x1f7   : > { %v378_v23 = vmul.f32 0.03125, %v377_v22 }
 0x1f9   : > { %v379_v24 = vadd.f32 1e-06, %v378_v23 }
 0x1fb   : > { %539 = vrsqrt.f32 %v379_v24 }
 0x208   : > { %v540_v25 = vpop.eup %539 }
 0x209   : > { %v381_v27 = vmul.f32 %v540_v25, %v373_v19 }
 0x20b   : > { %v389_v29 = vmul.f32 %v498_v26, %v381_v27 }
 0x20d   : > { %v397_v30 = vadd.f32 %v499_v28, %v389_v29 }
 0x20f   : > { %398 = vst.msk [vmem:[%s305_s28] sm:$0x3f] %vm367_vm2, %v397_v30 }
 0x210 PF: > { %s16_s23 = sadd.s32 1, %s563_s23   ;;  %s673_s21 = smov %s559_s22 }
 0x211   : > { %p13_p5 = scmp.ge.s32.totalorder %s16_s23, 4   ;;  %s674_s22 = smov %s676_s24 }
 0x213   :  { %15 = sbr.rel (!%p13_p5) target bundleno = 2 (0x2), region = 77 }

// kernel: dcf_sam_forward.67
= control target key start
LH: loop header
LB: loop body
LE: loop exit
PB: predicated region body
PF: predicated region fallthrough
CT: control target
= control target key end

     0   :  { %s1021_s12 = smov 0   ;;  %s1023_s13 = smov 0   ;;  %s1132_s0 = inlined_call_operand.vmem [shape: bf16[2,6,32], index: 0, kind: input, shape index: {}]   ;;  %s1133_s1 = inlined_call_operand.vmem [shape: bf16[2,6,32], index: 1, kind: input, shape index: {}]   ;;  %s1134_s2 = inlined_call_operand.vmem [shape: bf16[2,6,32], index: 2, kind: input, shape index: {}]   ;;  %s1135_s3 = inlined_call_operand.vmem [shape: bf16[2,6,32], index: 3, kind: output, shape index: {}]  }
   0x1   :  { %s1025_s14 = smov 0  }
   0x2 LB: > { %s25_s15 = sadd.s32 1, %s987_s13  ;;  %p836_p0 = scmp.ge.s32.totalorder %s991_s14, 1  ;;  %s991_s14 = sphi %s1025_s14, %s13_s14   ;;  %s987_s13 = sphi %s1023_s13, %s1137_s13   ;;  %s983_s12 = sphi %s1021_s12, %s1136_s12  }
   0x3   : > { %p27_p1 = scmp.ge.s32.totalorder %s25_s15, 2  ;;  %p183_p2 = scmp.lt.s32.totalorder %s991_s14, 3 }
   0x5   : > { %s1139_s15 = smov (%p27_p1, %s25_s15), 0  ;;  %p184_p3 = pnand %p836_p0, %p183_p2 }
   0x6   : > { %p225_p4 = scmp.lt.s32.totalorder (!%p184_p3), %s983_s12, 1  ;;  %s995_s23 = smov (!%p184_p3), 120  }
   0x7   : > { %187 = sbr.rel (%p184_p3) target bundleno = 1415 (0x587), region = 32  ;;  %s996_s24 = smov (!%p184_p3), 112  }
   0x8   : > { %s997_s25 = smov (!%p184_p3), 104   ;;  %s998_s29 = smov (!%p184_p3), 8  }
   0x9   : > { %s999_s30 = smov (!%p184_p3), 16   ;;  %s1000_s4 = smov (!%p184_p3), 24  }
   0xc   : > { %v993_v0 = vmov 0.0   ;;  %vm994_vm0 = vmmov 0   ;;  %s1141_s12 = smov (!%p225_p4, %s983_s12), 1  ;;  %vm257_vm1 = vcmask 64512   ;;  %vm305_vm2 = vcmask 46080  }
   0xd   : > { %870 = vmatprep.subr.bf16.mxu0 %v993_v0  ;;  %872 = vmatprep.mubr.msk.bf16.mxu0 %vm994_vm0, %v993_v0  ;;  %s1045_s16 = sshll.u32 %s1141_s12, 2  ;;  %vm322_vm3 = vcmask 1042432   ;;  %vm318_vm4 = vcmask 48128   ;;  %vm721_vm5 = vcmask 130048   ;;  %vm723_vm6 = vcmask 195584  }
   0xe   : > { %876 = vmatprep.subr.bf16.mxu1 %v993_v0  ;;  %878 = vmatprep.mubr.msk.bf16.mxu1 %vm994_vm0, %v993_v0  ;;  %s238_s19 = scalar_lea.vmem %s1133_s1, %s1045_s16  ;;  %s231_s22 = scalar_lea.vmem %s1132_s0, %s1045_s16  ;;  %vm726_vm7 = vcmask 256000  }
   0xf   : > { %v255_v1 = vld [vmem:[%s238_s19] sm:$0x7]  ;;  %s245_s28 = scalar_lea.vmem %s1134_s2, %s1045_s16  ;;  %s252_s7 = scalar_lea.vmem %s1135_s3, %s1045_s16 }
  0x10   : > { %v262_v2 = vsel %vm257_vm1, %v255_v1, 0  ;;  %v254_v3 = vld [vmem:[%s231_s22] sm:$0x7]  ;;  %v844_v10 = vcombine.low %v255_v1, %v255_v1 }
  0x11   : > { %871 = vmatpush3.bf16.xpose.msra.mxu0 %v262_v2  ;;  %v843_v11 = vcombine.low %v254_v3, %v254_v3  ;;  %v1071_v17 = vld [vmem:[%s245_s28] sm:$0x7] }
  0x12   : > { %888 = vmatprep.subr.bf16.mxu0 %v993_v0  ;;  %374 = vrot.lane.b32.xlu1 %v844_v10, %s995_s23  ;;  %v324_v18 = vsel %vm322_vm3, %v1071_v17, 0  ;;  %v846_v1 = vcombine.low %v1071_v17, %v1071_v17 }
  0x13   : > { %877 = vmatpush3.bf16.msra.mxu1 %v324_v18 }
  0x14   : > { %882 = vmatprep.subr.bf16.mxu1 %v993_v0 }
  0x16   : > { %369 = vrot.lane.b32.xlu1 %v843_v11, %s995_s23 }
  0x18   : > { %873 = vmatmul.mubr.msk.bf16.vlgmr.msra.gmra.mxu0 %vm257_vm1, %v254_v3 }
  0x19   : > { %890 = vmatprep.mubr.msk.bf16.mxu0 %vm994_vm0, %v993_v0 }
  0x1a   : > { %486 = vrot.lane.b32.xlu1 %v843_v11, %s996_s24 }
  0x1e   : > { %599 = vrot.lane.b32.xlu1 %v844_v10, %s997_s25 }
  0x22   : > { %597 = vrot.lane.b32.xlu1 %v843_v11, %s997_s25 }
  0x84   : > { %v375_v21 = vpop.permute.xlu1 %374 }
  0x85   : > { %v380_v23 = vsel %vm257_vm1, %v375_v21, 0 }
  0x88   : > { %v370_v25 = vpop.permute.xlu1 %369 }
  0x8c   : > { %v487_v27 = vpop.permute.xlu1 %486 }
  0x90   : > { %v600_v29 = vpop.permute.xlu1 %599 }
  0x91   : > { %v605_v30 = vsel %vm257_vm1, %v600_v29, 0 }
  0x94   : > { %v598_v31 = vpop.permute.xlu1 %597 }
  0xd8   : > { %v298_v4 = vpop.f32.mrf.mxu0 }
  0xd9   : > { %v304_v5 = vmul.f32 0.35355338, %v298_v4 }
  0xda   : > { %v874_v6 = vpop.f32.mrf.mxu0 }
  0xdb   : > { %v306_v7 = vsel %vm305_vm2, %v304_v5, -inf }
  0xdc   : > { %307 = vmax.xlane.f32.xlu0 %v306_v7  ;;  %v301_v8 = vpop.f32.mrf.mxu0 }
  0xde   : > { %v875_v9 = vpop.f32.mrf.mxu0 }
 0x165   : > { %v308_v12 = vpop.xlane.xlu0 %307 }
 0x166   : > { %v309_v13 = vsub.f32 %v304_v5, %v308_v12 }
 0x168   : > { %v310_v14 = vmul.f32 1.442695, %v309_v13 }
 0x16a   : > { %953 = vpow2.f32 %v310_v14 }
 0x177   : > { %v954_v15 = vpop.eup %953 }
 0x178   : > { %v312_v16 = vsel %vm305_vm2, %v954_v15, 0.0 }
 0x179   : > { %313 = vadd.xlane.f32.xlu0 %v312_v16 }
 0x18f   : > { %488 = vrot.lane.b32.xlu0 %v844_v10, %s996_s24 }
 0x202   : > { %v314_v19 = vpop.xlane.xlu0 %313 }
 0x203   : > { %955 = vrcp.f32 %v314_v19 }
 0x206   : > { %v489_v26 = vpop.permute.xlu0 %488 }
 0x207   : > { %v494_v28 = vsel %vm257_vm1, %v489_v26, 0 }
 0x210   : > { %v956_v20 = vpop.eup %955 }
 0x211   : > { %v316_v22 = vmul.f32 %v956_v20, %v954_v15 }
 0x213   : > { %v317_v24 = vpack.c.bf16 %v316_v22, %v316_v22 }
 0x215   : > { %879 = vmatmul.mubr.msk.bf16.vlgmr.msra.gmra.mxu1 %vm318_vm4, %v317_v24 }
 0x216   : > { %883 = vmatpush3.bf16.xpose.msra.mxu1 %v380_v23  ;;  %884 = vmatprep.mubr.msk.bf16.mxu1 %vm994_vm0, %v993_v0 }
 0x217   : > { %894 = vmatprep.subr.bf16.mxu1 %v993_v0 }
 0x21d   : > { %885 = vmatmul.mubr.msk.bf16.vlgmr.msra.gmra.mxu1 %vm257_vm1, %v370_v25 }
 0x21e   : > { %895 = vmatpush3.bf16.xpose.msra.mxu1 %v494_v28  ;;  %896 = vmatprep.mubr.msk.bf16.mxu1 %vm994_vm0, %v993_v0 }
 0x21f   : > { %906 = vmatprep.subr.bf16.mxu1 %v993_v0 }
 0x225   : > { %897 = vmatmul.mubr.msk.bf16.vlgmr.msra.gmra.mxu1 %vm257_vm1, %v487_v27 }
 0x226   : > { %907 = vmatpush3.bf16.xpose.msra.mxu1 %v605_v30  ;;  %908 = vmatprep.mubr.msk.bf16.mxu1 %vm994_vm0, %v993_v0 }
 0x22d   : > { %909 = vmatmul.mubr.msk.bf16.vlgmr.msra.gmra.mxu1 %vm257_vm1, %v598_v31 }
 0x2d5   : > { %v1092_v32 = vpop.f32.mrf.mxu1 }
 0x2d7   : > { %v880_v33 = vpop.f32.mrf.mxu1 }
 0x2d9   : > { %v363_v34 = vpop.f32.mrf.mxu1 }
 0x2db   : > { %v881_v35 = vpop.f32.mrf.mxu1 }
 0x2dd   : > { %v416_v36 = vpop.f32.mrf.mxu1 }
 0x2de   : > { %v422_v37 = vmul.f32 0.35355338, %v416_v36 }
 0x2df   : > { %v886_v38 = vpop.f32.mrf.mxu1 }
 0x2e0   : > { %v423_v39 = vsel %vm305_vm2, %v422_v37, -inf }
 0x2e1   : > { %424 = vmax.xlane.f32.xlu1 %v423_v39  ;;  %v419_v40 = vpop.f32.mrf.mxu1 }
 0x2e3   : > { %v887_v41 = vpop.f32.mrf.mxu1 }
 0x2e5   : > { %v530_v42 = vpop.f32.mrf.mxu1 }
 0x2e6   : > { %v536_v43 = vmul.f32 0.35355338, %v530_v42 }
 0x2e7   : > { %v898_v44 = vpop.f32.mrf.mxu1 }
 0x2e8   : > { %v537_v45 = vsel %vm305_vm2, %v536_v43, -inf }
 0x2e9   : > { %538 = vmax.xlane.f32.xlu0 %v537_v45  ;;  %v533_v46 = vpop.f32.mrf.mxu1 }
 0x2eb   : > { %v899_v47 = vpop.f32.mrf.mxu1 }
 0x2ed   : > { %v641_v48 = vpop.f32.mrf.mxu1 }
 0x2ee   : > { %v647_v49 = vmul.f32 0.35355338, %v641_v48 }
 0x2ef   : > { %v910_v50 = vpop.f32.mrf.mxu1 }
 0x2f0   : > { %v648_v51 = vsel %vm305_vm2, %v647_v49, -inf }
 0x2f1   : > { %649 = vmax.xlane.f32.xlu1 %v648_v51  ;;  %v644_v52 = vpop.f32.mrf.mxu1 }
 0x2f3   : > { %v911_v53 = vpop.f32.mrf.mxu1 }
 0x36a   : > { %v425_v54 = vpop.xlane.xlu1 %424 }
 0x36b   : > { %v426_v55 = vsub.f32 %v422_v37, %v425_v54 }
 0x36d   : > { %v427_v56 = vmul.f32 1.442695, %v426_v55 }
 0x36f   : > { %957 = vpow2.f32 %v427_v56 }
 0x372   : > { %v539_v57 = vpop.xlane.xlu0 %538 }
 0x373   : > { %v540_v58 = vsub.f32 %v536_v43, %v539_v57 }
 0x375   : > { %v541_v59 = vmul.f32 1.442695, %v540_v58 }
 0x377   : > { %959 = vpow2.f32 %v541_v59 }
 0x37a   : > { %v650_v2 = vpop.xlane.xlu1 %649 }
 0x37b   : > { %v651_v3 = vsub.f32 %v647_v49, %v650_v2 }
 0x37c   : > { %v958_v60 = vpop.eup %957 }
 0x37d   : > { %v429_v61 = vsel %vm305_vm2, %v958_v60, 0.0  ;;  %v652_v4 = vmul.f32 1.442695, %v651_v3 }
 0x37e   : > { %430 = vadd.xlane.f32.xlu1 %v429_v61 }
 0x37f   : > { %961 = vpow2.f32 %v652_v4 }
 0x384   : > { %v960_v62 = vpop.eup %959 }
 0x385   : > { %v543_v63 = vsel %vm305_vm2, %v960_v62, 0.0 }
 0x386   : > { %544 = vadd.xlane.f32.xlu0 %v543_v63 }
 0x38c   : > { %v962_v5 = vpop.eup %961 }
 0x38d   : > { %v654_v6 = vsel %vm305_vm2, %v962_v5, 0.0 }
 0x38f   : > { %549 = vrot.lane.b32.xlu1 %v846_v1, %s996_s24 }
 0x39c   : > { %438 = vrot.lane.b32.xlu0 %v846_v1, %s995_s23 }
 0x3b3   : > { %655 = vadd.xlane.f32.xlu1 %v654_v6 }
 0x3c4   : > { %660 = vrot.lane.b32.xlu1 %v846_v1, %s997_s25 }
 0x407   : > { %v431_v7 = vpop.xlane.xlu1 %430 }
 0x408   : > { %963 = vrcp.f32 %v431_v7 }
 0x40b   : > { %v550_v13 = vpop.permute.xlu1 %549 }
 0x40c   : > { %v555_v15 = vsel %vm322_vm3, %v550_v13, 0 }
 0x40f   : > { %v545_v8 = vpop.xlane.xlu0 %544 }
 0x410   : > { %965 = vrcp.f32 %v545_v8 }
 0x413   : > { %v439_v9 = vpop.permute.xlu0 %438 }
 0x414   : > { %v444_v10 = vsel %vm322_vm3, %v439_v9, 0 }
 0x415   : > { %v964_v11 = vpop.eup %963  ;;  %889 = vmatpush3.bf16.msra.mxu0 %v444_v10 }
 0x416   : > { %900 = vmatprep.subr.bf16.mxu0 %v993_v0  ;;  %v433_v12 = vmul.f32 %v964_v11, %v958_v60 }
 0x418   : > { %v434_v14 = vpack.c.bf16 %v433_v12, %v433_v12 }
 0x41a   : > { %891 = vmatmul.mubr.msk.bf16.vlgmr.msra.gmra.mxu0 %vm318_vm4, %v434_v14 }
 0x41b   : > { %901 = vmatpush3.bf16.msra.mxu0 %v555_v15  ;;  %902 = vmatprep.mubr.msk.bf16.mxu0 %vm994_vm0, %v993_v0 }
 0x41c   : > { %912 = vmatprep.subr.bf16.mxu0 %v993_v0 }
 0x41d   : > { %v966_v16 = vpop.eup %965 }
 0x41e   : > { %v547_v17 = vmul.f32 %v966_v16, %v960_v62 }
 0x420   : > { %v548_v18 = vpack.c.bf16 %v547_v17, %v547_v17 }
 0x422   : > { %903 = vmatmul.mubr.msk.bf16.vlgmr.msra.gmra.mxu0 %vm318_vm4, %v548_v18 }
 0x423   : > { %914 = vmatprep.mubr.msk.bf16.mxu0 %vm994_vm0, %v993_v0 }
 0x43c   : > { %v656_v19 = vpop.xlane.xlu1 %655 }
 0x43d   : > { %967 = vrcp.f32 %v656_v19 }
 0x440   : > { %v661_v20 = vpop.permute.xlu1 %660 }
 0x441   : > { %v666_v21 = vsel %vm322_vm3, %v661_v20, 0 }
 0x442   : > { %913 = vmatpush3.bf16.msra.mxu0 %v666_v21 }
 0x44a   : > { %v968_v22 = vpop.eup %967 }
 0x44b   : > { %v658_v23 = vmul.f32 %v968_v22, %v962_v5 }
 0x44d   : > { %v659_v24 = vpack.c.bf16 %v658_v23, %v658_v23 }
 0x44f   : > { %915 = vmatmul.mubr.msk.bf16.vlgmr.msra.gmra.mxu0 %vm318_vm4, %v659_v24 }
 0x4da   : > { %v480_v25 = vpop.f32.mrf.mxu0 }
 0x4db   : > { %709 = vrot.lane.b32.xlu0 %v480_v25, %s998_s29 }
 0x4dc   : > { %v892_v26 = vpop.f32.mrf.mxu0 }
 0x4de   : > { %v483_v27 = vpop.f32.mrf.mxu0 }
 0x4e0   : > { %v893_v28 = vpop.f32.mrf.mxu0 }
 0x4e2   : > { %v591_v29 = vpop.f32.mrf.mxu0 }
 0x4e3   : > { %713 = vrot.lane.b32.xlu1 %v591_v29, %s999_s30 }
 0x4e4   : > { %v904_v0 = vpop.f32.mrf.mxu0 }
 0x4e6   : > { %v594_v30 = vpop.f32.mrf.mxu0 }
 0x4e8   : > { %v905_v31 = vpop.f32.mrf.mxu0 }
 0x50f   : > { %v702_v33 = vpop.f32.mrf.mxu0 }
 0x510   : > { %717 = vrot.lane.b32.xlu0 %v702_v33, %s1000_s4 }
 0x511   : > { %v916_v34 = vpop.f32.mrf.mxu0 }
 0x513   : > { %v705_v35 = vpop.f32.mrf.mxu0 }
 0x515   : > { %v917_v36 = vpop.f32.mrf.mxu0 }
 0x54d   : > { %v710_v37 = vpop.permute.xlu0 %709 }
 0x54e   : > { %v720_v39 = vsel %vm257_vm1, %v1092_v32, %v710_v37 }
 0x555   : > { %v714_v38 = vpop.permute.xlu1 %713 }
 0x556   : > { %v722_v40 = vsel %vm721_vm5, %v720_v39, %v714_v38 }
 0x582   : > { %v718_v41 = vpop.permute.xlu0 %717 }
 0x583   : > { %v724_v42 = vsel %vm723_vm6, %v722_v40, %v718_v41 }
 0x584   : > { %v725_v43 = vpack.c.bf16 %v724_v42, %v724_v42 }
 0x586   : > { %727 = vst.msk [vmem:[%s252_s7] sm:$0x7] %vm726_vm7, %v725_v43 }
 0x587 PF: > { %s13_s14 = sadd.s32 1, %s991_s14   ;;  %s1136_s12 = smov %s987_s13 }
 0x588   : > { %p10_p5 = scmp.ge.s32.totalorder %s13_s14, 4   ;;  %s1137_s13 = smov %s1139_s15 }
 0x58a   :  { %12 = sbr.rel (!%p10_p5) target bundleno = 2 (0x2), region = 68 }

// kernel: dcf_sam_forward.69
= control target key start
LH: loop header
LB: loop body
LE: loop exit
PB: predicated region body
PF: predicated region fallthrough
CT: control target
= control target key end

     0   :  { %s506_s15 = smov 0   ;;  %s508_s16 = smov 0   ;;  %s557_s0 = inlined_call_operand.vmem [shape: f32[2,6,32], index: 0, kind: input, shape index: {}]   ;;  %s558_s1 = inlined_call_operand.vmem [shape: f32[2,6,32], index: 1, kind: input, shape index: {}]   ;;  %s559_s2 = inlined_call_operand.vmem [shape: f32[32,32], index: 2, kind: input, shape index: {}]   ;;  %s560_s3 = inlined_call_operand.vmem [shape: f32[1,32], index: 3, kind: input, shape index: {}]   ;;  %s561_s4 = inlined_call_operand.vmem [shape: bf16[2,6,32], index: 4, kind: output, shape index: {}]  }
   0x1   :  { %s510_s17 = smov 0  }
   0x2 LB: > { %s26_s18 = sadd.s32 1, %s473_s16  ;;  %p410_p0 = scmp.ge.s32.totalorder %s477_s17, 1  ;;  %s477_s17 = sphi %s510_s17, %s14_s17   ;;  %s473_s16 = sphi %s508_s16, %s563_s16   ;;  %s469_s15 = sphi %s506_s15, %s562_s15  }
   0x3   : > { %p28_p1 = scmp.ge.s32.totalorder %s26_s18, 2  ;;  %p194_p2 = scmp.lt.s32.totalorder %s477_s17, 3 }
   0x5   : > { %s565_s18 = smov (%p28_p1, %s26_s18), 0  ;;  %p195_p3 = pnand %p410_p0, %p194_p2 }
   0x6   : > { %p231_p4 = scmp.lt.s32.totalorder (!%p195_p3), %s469_s15, 1 }
   0x7   : > { %198 = sbr.rel (%p195_p3) target bundleno = 221 (0xdd), region = 36 }
   0xc   : > { %v259_v0 = vld [vmem:[%s559_s2 + $0x10] sm:$0xff]  ;;  %v260_v1 = vld [vmem:[%s559_s2 + $0x18] sm:$0xff]  ;;  %v257_v2 = vld [vmem:[%s559_s2] sm:$0xff]  ;;  %v479_v3 = vmov 0.0   ;;  %vm480_vm0 = vmmov 0   ;;  %s567_s15 = smov (!%p231_p4, %s469_s15), 1 }
   0xd   : > { %421 = vmatprep.subr.bf16.mxu0 %v479_v3  ;;  %v262_v4 = vpack.c.bf16 %v260_v1, %v259_v0  ;;  %v258_v5 = vld [vmem:[%s559_s2 + $0x8] sm:$0xff]  ;;  %425 = vmatprep.mubr.msk.bf16.mxu0 %vm480_vm0, %v479_v3  ;;  %s411_s27 = sshll.u32 %s567_s15, 3  ;;  %vm270_vm1 = vcmask 261120   ;;  %v414_v11 = vld [vmem:[%s560_s3] ss:$0 sm:$0xff]  ;;  %s413_s10 = sshll.u32 %s567_s15, 2 }
   0xe   : > { %v261_v6 = vpack.c.bf16 %v258_v5, %v257_v2  ;;  %s237_s30 = scalar_lea.vmem %s557_s0, %s411_s27  ;;  %s244_s7 = scalar_lea.vmem %s558_s1, %s411_s27  ;;  %vm315_vm2 = vcmask 256000  }
   0xf   : > { %422 = vmatpush3.bf16.msra.mxu0 %v262_v4  ;;  %v253_v7 = vld [vmem:[%s237_s30] sm:$0x3f]  ;;  %s251_s13 = scalar_lea.vmem %s561_s4, %s413_s10 }
  0x10   : > { %423 = vmatprep.subr.bf16.mxu0 %v479_v3  ;;  %v254_v8 = vld [vmem:[%s244_s7] sm:$0x3f] }
  0x11   : > { %v255_v9 = vadd.f32 %v254_v8, %v253_v7 }
  0x13   : > { %424 = vmatpush3.bf16.msra.mxu0 %v261_v6  ;;  %v256_v10 = vpack.c.bf16 %v255_v9, %v255_v9 }
  0x16   : > { %426 = vmatmul.mubr.msk.bf16.vlgmr.msra.gmra.mxu0 %vm270_vm1, %v256_v10 }
  0xd6   : > { %v308_v12 = vpop.f32.mrf.mxu0 }
  0xd7   : > { %v309_v13 = vadd.f32 %v414_v11, %v308_v12 }
  0xd8   : > { %v427_v14 = vpop.f32.mrf.mxu0 }
  0xd9   : > { %v314_v15 = vpack.c.bf16 %v309_v13, %v309_v13 }
  0xda   : > { %v311_v16 = vpop.f32.mrf.mxu0 }
  0xdb   : > { %316 = vst.msk [vmem:[%s251_s13] sm:$0x7] %vm315_vm2, %v314_v15 }
  0xdc   : > { %v428_v17 = vpop.f32.mrf.mxu0 }
  0xdd PF: > { %s14_s17 = sadd.s32 1, %s477_s17   ;;  %s562_s15 = smov %s473_s16 }
  0xde   : > { %p11_p5 = scmp.ge.s32.totalorder %s14_s17, 4   ;;  %s563_s16 = smov %s565_s18 }
  0xe0   :  { %13 = sbr.rel (!%p11_p5) target bundleno = 2 (0x2), region = 69 }

// kernel: dcf_sam_forward.74
= control target key start
LH: loop header
LB: loop body
LE: loop exit
PB: predicated region body
PF: predicated region fallthrough
CT: control target
= control target key end

     0   :  { %s546_s15 = smov 0   ;;  %s548_s16 = smov 0   ;;  %s600_s0 = inlined_call_operand.vmem [shape: f32[2,16,32], index: 0, kind: input, shape index: {}]   ;;  %s601_s1 = inlined_call_operand.vmem [shape: f32[1,16,32], index: 1, kind: input, shape index: {}]   ;;  %s602_s2 = inlined_call_operand.vmem [shape: f32[32,32], index: 2, kind: input, shape index: {}]   ;;  %s603_s3 = inlined_call_operand.vmem [shape: f32[1,32], index: 3, kind: input, shape index: {}]   ;;  %s604_s4 = inlined_call_operand.vmem [shape: bf16[2,16,32], index: 4, kind: output, shape index: {}]  }
   0x1   :  { %s550_s17 = smov 0  }
   0x2 LB: > { %s26_s18 = sadd.s32 1, %s513_s16  ;;  %p443_p0 = scmp.ge.s32.totalorder %s517_s17, 1  ;;  %s517_s17 = sphi %s550_s17, %s14_s17   ;;  %s513_s16 = sphi %s548_s16, %s606_s16   ;;  %s509_s15 = sphi %s546_s15, %s605_s15  }
   0x3   : > { %p28_p1 = scmp.ge.s32.totalorder %s26_s18, 2  ;;  %p194_p2 = scmp.lt.s32.totalorder %s517_s17, 3 }
   0x5   : > { %s608_s18 = smov (%p28_p1, %s26_s18), 0  ;;  %p195_p3 = pnand %p443_p0, %p194_p2 }
   0x6   : > { %p234_p4 = scmp.lt.s32.totalorder (!%p195_p3), %s509_s15, 1 }
   0x7   : > { %198 = sbr.rel (%p195_p3) target bundleno = 224 (0xe0), region = 36 }
   0xc   : > { %v269_v0 = vld [vmem:[%s602_s2 + $0x10] sm:$0xff]  ;;  %v270_v1 = vld [vmem:[%s602_s2 + $0x18] sm:$0xff]  ;;  %v267_v2 = vld [vmem:[%s602_s2] sm:$0xff]  ;;  %v519_v3 = vmov 0.0   ;;  %vm520_vm0 = vmmov 0   ;;  %s610_s15 = smov (!%p234_p4, %s509_s15), 1 }
   0xd   : > { %461 = vmatprep.subr.bf16.mxu0 %v519_v3  ;;  %v272_v4 = vpack.c.bf16 %v270_v1, %v269_v0  ;;  %v268_v5 = vld [vmem:[%s602_s2 + $0x8] sm:$0xff]  ;;  %465 = vmatprep.mubr.msk.bf16.mxu0 %vm520_vm0, %v519_v3  ;;  %s454_s27 = sshll.u32 %s610_s15, 4  ;;  %v262_v7 = vld [vmem:[%s601_s1] sm:$0xff]  ;;  %vm280_vm1 = vcmask 261120   ;;  %s455_s11 = sshll.u32 %s610_s15, 3  ;;  %vm333_vm2 = vcmask 257024  }
   0xe   : > { %v271_v6 = vpack.c.bf16 %v268_v5, %v267_v2  ;;  %v263_v8 = vld [vmem:[%s601_s1 + $0x8] sm:$0xff]  ;;  %s241_s8 = scalar_lea.vmem %s600_s0, %s454_s27  ;;  %v448_v14 = vld [vmem:[%s603_s3] ss:$0 sm:$0xff]  ;;  %s257_s14 = scalar_lea.vmem %s604_s4, %s455_s11 }
   0xf   : > { %462 = vmatpush3.bf16.msra.mxu0 %v272_v4  ;;  %v260_v9 = vld [vmem:[%s241_s8] sm:$0xff]  ;;  %v261_v10 = vld [vmem:[%s241_s8 + $0x8] sm:$0xff] }
  0x10   : > { %463 = vmatprep.subr.bf16.mxu0 %v519_v3  ;;  %v264_v11 = vadd.f32 %v262_v7, %v260_v9  ;;  %v265_v12 = vadd.f32 %v263_v8, %v261_v10 }
  0x12   : > { %v266_v13 = vpack.c.bf16 %v265_v12, %v264_v11 }
  0x13   : > { %464 = vmatpush3.bf16.msra.mxu0 %v271_v6 }
  0x16   : > { %466 = vmatmul.mubr.msk.bf16.vlgmr.msra.gmra.mxu0 %vm280_vm1, %v266_v13 }
  0xd6   : > { %v318_v15 = vpop.f32.mrf.mxu0 }
  0xd7   : > { %v319_v16 = vadd.f32 %v448_v14, %v318_v15 }
  0xd8   : > { %v467_v17 = vpop.f32.mrf.mxu0 }
  0xd9   : > { %v456_v18 = vpack.c.bf16 %v319_v16, %v319_v16 }
  0xda   : > { %v321_v19 = vpop.f32.mrf.mxu0 }
  0xdb   : > { %334 = vst.msk [vmem:[%s257_s14] sm:$0xf] %vm333_vm2, %v456_v18  ;;  %v322_v20 = vadd.f32 %v448_v14, %v321_v19 }
  0xdc   : > { %v468_v21 = vpop.f32.mrf.mxu0 }
  0xdd   : > { %v457_v22 = vpack.c.bf16 %v322_v20, %v322_v20 }
  0xdf   : > { %335 = vst.msk [vmem:[%s257_s14 + $0x4] sm:$0xf] %vm333_vm2, %v457_v22 }
  0xe0 PF: > { %s14_s17 = sadd.s32 1, %s517_s17   ;;  %s605_s15 = smov %s513_s16 }
  0xe1   : > { %p11_p5 = scmp.ge.s32.totalorder %s14_s17, 4   ;;  %s606_s16 = smov %s608_s18 }
  0xe3   :  { %13 = sbr.rel (!%p11_p5) target bundleno = 2 (0x2), region = 69 }

// kernel: dcf_sam_forward.70
= control target key start
LH: loop header
LB: loop body
LE: loop exit
PB: predicated region body
PF: predicated region fallthrough
CT: control target
= control target key end

     0   :  { %s804_s24 = smov 0   ;;  %s806_s25 = smov 0   ;;  %s885_s0 = inlined_call_operand.vmem [shape: f32[2,16,32], index: 0, kind: input, shape index: {}]   ;;  %s886_s1 = inlined_call_operand.vmem [shape: f32[1,16,32], index: 1, kind: input, shape index: {}]   ;;  %s887_s2 = inlined_call_operand.vmem [shape: f32[32,32], index: 2, kind: input, shape index: {}]   ;;  %s888_s3 = inlined_call_operand.vmem [shape: f32[1,32], index: 3, kind: input, shape index: {}]   ;;  %s889_s4 = inlined_call_operand.vmem [shape: f32[32,32], index: 4, kind: input, shape index: {}]   ;;  %s890_s5 = inlined_call_operand.vmem [shape: f32[1,32], index: 5, kind: input, shape index: {}]   ;;  %s891_s6 = inlined_call_operand.vmem [shape: bf16[2,16,32], index: 6, kind: output, shape index: {0}]   ;;  %s892_s7 = inlined_call_operand.vmem [shape: bf16[2,16,32], index: 7, kind: output, shape index: {1}]  }
   0x1   :  { %s808_s26 = smov 0  }
   0x2 LB: > { %s30_s27 = sadd.s32 1, %s756_s25  ;;  %p666_p0 = scmp.ge.s32.totalorder %s760_s26, 1  ;;  %s760_s26 = sphi %s808_s26, %s18_s26   ;;  %s756_s25 = sphi %s806_s25, %s894_s25   ;;  %s752_s24 = sphi %s804_s24, %s893_s24  }
   0x3   : > { %p32_p1 = scmp.ge.s32.totalorder %s30_s27, 2  ;;  %p274_p2 = scmp.lt.s32.totalorder %s760_s26, 3 }
   0x5   : > { %s896_s27 = smov (%p32_p1, %s30_s27), 0  ;;  %p275_p3 = pnand %p666_p0, %p274_p2 }
   0x6   : > { %p329_p4 = scmp.lt.s32.totalorder (!%p275_p3), %s752_s24, 1 }
   0x7   : > { %278 = sbr.rel (%p275_p3) target bundleno = 225 (0xe1), region = 44 }
   0xc   : > { %v444_v0 = vld [vmem:[%s889_s4 + $0x10] sm:$0xff]  ;;  %v445_v1 = vld [vmem:[%s889_s4 + $0x18] sm:$0xff]  ;;  %v762_v3 = vmov 0.0   ;;  %v442_v6 = vld [vmem:[%s889_s4] sm:$0xff]  ;;  %vm763_vm0 = vmmov 0   ;;  %s898_s24 = smov (!%p329_p4, %s752_s24), 1 }
   0xd   : > { %v374_v2 = vld [vmem:[%s887_s2 + $0x10] sm:$0xff]  ;;  %704 = vmatprep.subr.bf16.mxu1 %v762_v3  ;;  %696 = vmatprep.subr.bf16.mxu0 %v762_v3  ;;  %v447_v4 = vpack.c.bf16 %v445_v1, %v444_v0  ;;  %v375_v5 = vld [vmem:[%s887_s2 + $0x18] sm:$0xff]  ;;  %v443_v7 = vld [vmem:[%s889_s4 + $0x8] sm:$0xff]  ;;  %s683_s21 = sshll.u32 %s898_s24, 4  ;;  %vm385_vm1 = vcmask 261120   ;;  %s684_s12 = sshll.u32 %s898_s24, 3 }
   0xe   : > { %v377_v8 = vpack.c.bf16 %v375_v5, %v374_v2  ;;  %v372_v9 = vld [vmem:[%s887_s2] sm:$0xff]  ;;  %v373_v10 = vld [vmem:[%s887_s2 + $0x8] sm:$0xff]  ;;  %708 = vmatprep.mubr.msk.bf16.mxu1 %vm763_vm0, %v762_v3  ;;  %700 = vmatprep.mubr.msk.bf16.mxu0 %vm763_vm0, %v762_v3  ;;  %v446_v11 = vpack.c.bf16 %v443_v7, %v442_v6  ;;  %s336_s9 = scalar_lea.vmem %s885_s0, %s683_s21  ;;  %s362_s17 = scalar_lea.vmem %s892_s7, %s684_s12  ;;  %vm438_vm2 = vcmask 257024  }
   0xf   : > { %705 = vmatpush3.bf16.msra.mxu1 %v447_v4  ;;  %v376_v12 = vpack.c.bf16 %v373_v10, %v372_v9  ;;  %v367_v13 = vld [vmem:[%s886_s1] sm:$0xff]  ;;  %v368_v14 = vld [vmem:[%s886_s1 + $0x8] sm:$0xff]  ;;  %s352_s20 = scalar_lea.vmem %s891_s6, %s684_s12 }
  0x10   : > { %697 = vmatpush3.bf16.msra.mxu0 %v377_v8  ;;  %706 = vmatprep.subr.bf16.mxu1 %v762_v3  ;;  %v365_v15 = vld [vmem:[%s336_s9] sm:$0xff]  ;;  %v366_v16 = vld [vmem:[%s336_s9 + $0x8] sm:$0xff] }
  0x11   : > { %698 = vmatprep.subr.bf16.mxu0 %v762_v3  ;;  %v441_v17 = vpack.c.bf16 %v366_v16, %v365_v15  ;;  %v369_v18 = vadd.f32 %v367_v13, %v365_v15  ;;  %v370_v19 = vadd.f32 %v368_v14, %v366_v16  ;;  %v677_v21 = vld [vmem:[%s890_s5] ss:$0 sm:$0xff] }
  0x12   : > { %v673_v22 = vld [vmem:[%s888_s3] ss:$0 sm:$0xff] }
  0x13   : > { %707 = vmatpush3.bf16.msra.mxu1 %v446_v11  ;;  %v371_v20 = vpack.c.bf16 %v370_v19, %v369_v18 }
  0x14   : > { %699 = vmatpush3.bf16.msra.mxu0 %v376_v12 }
  0x16   : > { %709 = vmatmul.mubr.msk.bf16.vlgmr.msra.gmra.mxu1 %vm385_vm1, %v441_v17 }
  0x17   : > { %701 = vmatmul.mubr.msk.bf16.vlgmr.msra.gmra.mxu0 %vm385_vm1, %v371_v20 }
  0xd6   : > { %v492_v23 = vpop.f32.mrf.mxu1 }
  0xd7   : > { %v493_v24 = vadd.f32 %v677_v21, %v492_v23  ;;  %v423_v25 = vpop.f32.mrf.mxu0 }
  0xd8   : > { %v424_v26 = vadd.f32 %v673_v22, %v423_v25  ;;  %v710_v27 = vpop.f32.mrf.mxu1 }
  0xd9   : > { %v688_v28 = vpack.c.bf16 %v493_v24, %v493_v24  ;;  %v702_v29 = vpop.f32.mrf.mxu0 }
  0xda   : > { %v686_v30 = vpack.c.bf16 %v424_v26, %v424_v26  ;;  %v495_v31 = vpop.f32.mrf.mxu1 }
  0xdb   : > { %507 = vst.msk [vmem:[%s362_s17] sm:$0xf] %vm438_vm2, %v688_v28  ;;  %v496_v32 = vadd.f32 %v677_v21, %v495_v31  ;;  %v426_v33 = vpop.f32.mrf.mxu0 }
  0xdc   : > { %439 = vst.msk [vmem:[%s352_s20] sm:$0xf] %vm438_vm2, %v686_v30  ;;  %v427_v34 = vadd.f32 %v673_v22, %v426_v33  ;;  %v711_v35 = vpop.f32.mrf.mxu1 }
  0xdd   : > { %v689_v36 = vpack.c.bf16 %v496_v32, %v496_v32  ;;  %v703_v37 = vpop.f32.mrf.mxu0 }
  0xde   : > { %v687_v38 = vpack.c.bf16 %v427_v34, %v427_v34 }
  0xdf   : > { %508 = vst.msk [vmem:[%s362_s17 + $0x4] sm:$0xf] %vm438_vm2, %v689_v36 }
  0xe0   : > { %440 = vst.msk [vmem:[%s352_s20 + $0x4] sm:$0xf] %vm438_vm2, %v687_v38 }
  0xe1 PF: > { %s18_s26 = sadd.s32 1, %s760_s26   ;;  %s893_s24 = smov %s756_s25 }
  0xe2   : > { %p15_p5 = scmp.ge.s32.totalorder %s18_s26, 4   ;;  %s894_s25 = smov %s896_s27 }
  0xe4   :  { %17 = sbr.rel (!%p15_p5) target bundleno = 2 (0x2), region = 89 }

// kernel: dcf_sam_forward.71
= control target key start
LH: loop header
LB: loop body
LE: loop exit
PB: predicated region body
PF: predicated region fallthrough
CT: control target
= control target key end

     0   :  { %s1033_s12 = smov 0   ;;  %s1035_s13 = smov 0   ;;  %s1148_s0 = inlined_call_operand.vmem [shape: bf16[2,6,32], index: 0, kind: input, shape index: {}]   ;;  %s1149_s1 = inlined_call_operand.vmem [shape: bf16[2,16,32], index: 1, kind: input, shape index: {}]   ;;  %s1150_s2 = inlined_call_operand.vmem [shape: bf16[2,16,32], index: 2, kind: input, shape index: {}]   ;;  %s1151_s3 = inlined_call_operand.vmem [shape: bf16[2,6,32], index: 3, kind: output, shape index: {}]  }
   0x1   :  { %s1037_s14 = smov 0  }
   0x2 LB: > { %s25_s15 = sadd.s32 1, %s999_s13  ;;  %p844_p0 = scmp.ge.s32.totalorder %s1003_s14, 1  ;;  %s1003_s14 = sphi %s1037_s14, %s13_s14   ;;  %s999_s13 = sphi %s1035_s13, %s1153_s13   ;;  %s995_s12 = sphi %s1033_s12, %s1152_s12  }
   0x3   : > { %p27_p1 = scmp.ge.s32.totalorder %s25_s15, 2  ;;  %p185_p2 = scmp.lt.s32.totalorder %s1003_s14, 3 }
   0x5   : > { %s1155_s15 = smov (%p27_p1, %s25_s15), 0  ;;  %p186_p3 = pnand %p844_p0, %p185_p2 }
   0x6   : > { %p229_p4 = scmp.lt.s32.totalorder (!%p186_p3), %s995_s12, 1  ;;  %s1007_s24 = smov (!%p186_p3), 120  }
   0x7   : > { %189 = sbr.rel (%p186_p3) target bundleno = 1415 (0x587), region = 32  ;;  %s1008_s25 = smov (!%p186_p3), 112  }
   0x8   : > { %s1009_s26 = smov (!%p186_p3), 104   ;;  %s1010_s30 = smov (!%p186_p3), 8  }
   0x9   : > { %s1011_s4 = smov (!%p186_p3), 16   ;;  %s1012_s5 = smov (!%p186_p3), 24  }
   0xc   : > { %v1005_v0 = vmov 0.0   ;;  %vm1006_vm0 = vmmov 0   ;;  %s1157_s12 = smov (!%p229_p4, %s995_s12), 1  ;;  %vm270_vm1 = vcmask 64512   ;;  %vm318_vm2 = vcmask 128000  }
   0xd   : > { %882 = vmatprep.subr.bf16.mxu0 %v1005_v0  ;;  %884 = vmatprep.mubr.msk.bf16.mxu0 %vm1006_vm0, %v1005_v0  ;;  %s864_s16 = sshll.u32 %s1157_s12, 3  ;;  %s845_s20 = sshll.u32 %s1157_s12, 2  ;;  %vm337_vm3 = vcmask 130048   ;;  %vm725_vm4 = vcmask 195584   ;;  %vm728_vm5 = vcmask 256000  }
   0xe   : > { %888 = vmatprep.subr.bf16.mxu1 %v1005_v0  ;;  %890 = vmatprep.mubr.msk.bf16.mxu1 %vm1006_vm0, %v1005_v0  ;;  %s243_s19 = scalar_lea.vmem %s1149_s1, %s864_s16  ;;  %s235_s23 = scalar_lea.vmem %s1148_s0, %s845_s20 }
   0xf   : > { %v962_v1 = vld [vmem:[%s243_s19] sm:$0xff]   ;;  %s251_s29 = scalar_lea.vmem %s1150_s2, %s864_s16  ;;  %s258_s8 = scalar_lea.vmem %s1151_s3, %s845_s20 }
  0x10   : > { %v275_v2 = vsel %vm270_vm1, %v962_v1, 0  ;;  %v260_v3 = vld [vmem:[%s235_s23] sm:$0x7]  ;;  %386 = vrot.lane.b32.xlu1 %v962_v1, %s1007_s24 }
  0x11   : > { %883 = vmatpush3.bf16.xpose.msra.mxu0 %v275_v2  ;;  %v855_v10 = vcombine.low %v260_v3, %v260_v3  ;;  %v1088_v16 = vld [vmem:[%s251_s29] sm:$0xff]  }
  0x12   : > { %900 = vmatprep.subr.bf16.mxu0 %v1005_v0  ;;  %889 = vmatpush3.bf16.msra.mxu1 %v1088_v16 }
  0x13   : > { %894 = vmatprep.subr.bf16.mxu1 %v1005_v0 }
  0x14   : > { %384 = vrot.lane.b32.xlu1 %v855_v10, %s1007_s24 }
  0x18   : > { %885 = vmatmul.mubr.msk.bf16.vlgmr.msra.gmra.mxu0 %vm270_vm1, %v260_v3  ;;  %493 = vrot.lane.b32.xlu1 %v855_v10, %s1008_s25 }
  0x19   : > { %902 = vmatprep.mubr.msk.bf16.mxu0 %vm1006_vm0, %v1005_v0 }
  0x1c   : > { %604 = vrot.lane.b32.xlu1 %v962_v1, %s1009_s26 }
  0x20   : > { %602 = vrot.lane.b32.xlu1 %v855_v10, %s1009_s26 }
  0x82   : > { %v387_v19 = vpop.permute.xlu1 %386 }
  0x83   : > { %v392_v21 = vsel %vm270_vm1, %v387_v19, 0 }
  0x86   : > { %v385_v23 = vpop.permute.xlu1 %384 }
  0x8a   : > { %v494_v25 = vpop.permute.xlu1 %493 }
  0x8e   : > { %v605_v27 = vpop.permute.xlu1 %604 }
  0x8f   : > { %v610_v28 = vsel %vm270_vm1, %v605_v27, 0 }
  0x92   : > { %v603_v29 = vpop.permute.xlu1 %602 }
  0xd8   : > { %v311_v4 = vpop.f32.mrf.mxu0 }
  0xd9   : > { %v317_v5 = vmul.f32 0.35355338, %v311_v4 }
  0xda   : > { %v886_v6 = vpop.f32.mrf.mxu0 }
  0xdb   : > { %v319_v7 = vsel %vm318_vm2, %v317_v5, -inf }
  0xdc   : > { %320 = vmax.xlane.f32.xlu0 %v319_v7  ;;  %v314_v8 = vpop.f32.mrf.mxu0 }
  0xde   : > { %v887_v9 = vpop.f32.mrf.mxu0 }
 0x165   : > { %v321_v11 = vpop.xlane.xlu0 %320 }
 0x166   : > { %v322_v12 = vsub.f32 %v317_v5, %v321_v11 }
 0x168   : > { %v323_v13 = vmul.f32 1.442695, %v322_v12 }
 0x16a   : > { %965 = vpow2.f32 %v323_v13 }
 0x177   : > { %v966_v14 = vpop.eup %965 }
 0x178   : > { %v325_v15 = vsel %vm318_vm2, %v966_v14, 0.0 }
 0x179   : > { %326 = vadd.xlane.f32.xlu0 %v325_v15 }
 0x18f   : > { %495 = vrot.lane.b32.xlu0 %v962_v1, %s1008_s25 }
 0x202   : > { %v327_v17 = vpop.xlane.xlu0 %326 }
 0x203   : > { %967 = vrcp.f32 %v327_v17 }
 0x206   : > { %v496_v24 = vpop.permute.xlu0 %495 }
 0x207   : > { %v501_v26 = vsel %vm270_vm1, %v496_v24, 0 }
 0x210   : > { %v968_v18 = vpop.eup %967 }
 0x211   : > { %v329_v20 = vmul.f32 %v968_v18, %v966_v14 }
 0x213   : > { %v330_v22 = vpack.c.bf16 %v329_v20, %v329_v20 }
 0x215   : > { %891 = vmatmul.mubr.msk.bf16.vlgmr.msra.gmra.mxu1 %vm337_vm3, %v330_v22 }
 0x216   : > { %895 = vmatpush3.bf16.xpose.msra.mxu1 %v392_v21  ;;  %896 = vmatprep.mubr.msk.bf16.mxu1 %vm1006_vm0, %v1005_v0 }
 0x217   : > { %906 = vmatprep.subr.bf16.mxu1 %v1005_v0 }
 0x21d   : > { %897 = vmatmul.mubr.msk.bf16.vlgmr.msra.gmra.mxu1 %vm270_vm1, %v385_v23 }
 0x21e   : > { %907 = vmatpush3.bf16.xpose.msra.mxu1 %v501_v26  ;;  %908 = vmatprep.mubr.msk.bf16.mxu1 %vm1006_vm0, %v1005_v0 }
 0x21f   : > { %918 = vmatprep.subr.bf16.mxu1 %v1005_v0 }
 0x225   : > { %909 = vmatmul.mubr.msk.bf16.vlgmr.msra.gmra.mxu1 %vm270_vm1, %v494_v25 }
 0x226   : > { %919 = vmatpush3.bf16.xpose.msra.mxu1 %v610_v28  ;;  %920 = vmatprep.mubr.msk.bf16.mxu1 %vm1006_vm0, %v1005_v0 }
 0x22d   : > { %921 = vmatmul.mubr.msk.bf16.vlgmr.msra.gmra.mxu1 %vm270_vm1, %v603_v29 }
 0x2d5   : > { %v1108_v30 = vpop.f32.mrf.mxu1 }
 0x2d7   : > { %v892_v31 = vpop.f32.mrf.mxu1 }
 0x2d9   : > { %v378_v32 = vpop.f32.mrf.mxu1 }
 0x2db   : > { %v893_v33 = vpop.f32.mrf.mxu1 }
 0x2dd   : > { %v428_v34 = vpop.f32.mrf.mxu1 }
 0x2de   : > { %v434_v35 = vmul.f32 0.35355338, %v428_v34 }
 0x2df   : > { %v898_v36 = vpop.f32.mrf.mxu1 }
 0x2e0   : > { %v435_v37 = vsel %vm318_vm2, %v434_v35, -inf }
 0x2e1   : > { %436 = vmax.xlane.f32.xlu1 %v435_v37  ;;  %v431_v38 = vpop.f32.mrf.mxu1 }
 0x2e3   : > { %v899_v39 = vpop.f32.mrf.mxu1 }
 0x2e5   : > { %v537_v40 = vpop.f32.mrf.mxu1 }
 0x2e6   : > { %v543_v41 = vmul.f32 0.35355338, %v537_v40 }
 0x2e7   : > { %v910_v42 = vpop.f32.mrf.mxu1 }
 0x2e8   : > { %v544_v43 = vsel %vm318_vm2, %v543_v41, -inf }
 0x2e9   : > { %545 = vmax.xlane.f32.xlu0 %v544_v43  ;;  %v540_v44 = vpop.f32.mrf.mxu1 }
 0x2eb   : > { %v911_v45 = vpop.f32.mrf.mxu1 }
 0x2ed   : > { %v646_v46 = vpop.f32.mrf.mxu1 }
 0x2ee   : > { %v652_v47 = vmul.f32 0.35355338, %v646_v46 }
 0x2ef   : > { %v922_v48 = vpop.f32.mrf.mxu1 }
 0x2f0   : > { %v653_v49 = vsel %vm318_vm2, %v652_v47, -inf }
 0x2f1   : > { %654 = vmax.xlane.f32.xlu1 %v653_v49  ;;  %v649_v50 = vpop.f32.mrf.mxu1 }
 0x2f3   : > { %v923_v51 = vpop.f32.mrf.mxu1 }
 0x36a   : > { %v437_v52 = vpop.xlane.xlu1 %436 }
 0x36b   : > { %v438_v53 = vsub.f32 %v434_v35, %v437_v52 }
 0x36d   : > { %v439_v54 = vmul.f32 1.442695, %v438_v53 }
 0x36f   : > { %969 = vpow2.f32 %v439_v54 }
 0x372   : > { %v546_v55 = vpop.xlane.xlu0 %545 }
 0x373   : > { %v547_v56 = vsub.f32 %v543_v41, %v546_v55 }
 0x375   : > { %v548_v57 = vmul.f32 1.442695, %v547_v56 }
 0x377   : > { %971 = vpow2.f32 %v548_v57 }
 0x37a   : > { %v655_v62 = vpop.xlane.xlu1 %654 }
 0x37b   : > { %v656_v63 = vsub.f32 %v652_v47, %v655_v62 }
 0x37c   : > { %v970_v58 = vpop.eup %969 }
 0x37d   : > { %v441_v59 = vsel %vm318_vm2, %v970_v58, 0.0  ;;  %v657_v1 = vmul.f32 1.442695, %v656_v63 }
 0x37e   : > { %442 = vadd.xlane.f32.xlu1 %v441_v59 }
 0x37f   : > { %973 = vpow2.f32 %v657_v1 }
 0x384   : > { %v972_v60 = vpop.eup %971 }
 0x385   : > { %v550_v61 = vsel %vm318_vm2, %v972_v60, 0.0 }
 0x386   : > { %551 = vadd.xlane.f32.xlu0 %v550_v61 }
 0x38c   : > { %v974_v2 = vpop.eup %973 }
 0x38d   : > { %v659_v3 = vsel %vm318_vm2, %v974_v2, 0.0 }
 0x38f   : > { %556 = vrot.lane.b32.xlu1 %v1088_v16, %s1008_s25 }
 0x39c   : > { %447 = vrot.lane.b32.xlu0 %v1088_v16, %s1007_s24 }
 0x3b3   : > { %660 = vadd.xlane.f32.xlu1 %v659_v3 }
 0x3c4   : > { %665 = vrot.lane.b32.xlu1 %v1088_v16, %s1009_s26 }
 0x407   : > { %v443_v4 = vpop.xlane.xlu1 %442 }
 0x408   : > { %975 = vrcp.f32 %v443_v4 }
 0x40b   : > { %v557_v10 = vpop.permute.xlu1 %556 }
 0x40f   : > { %v552_v5 = vpop.xlane.xlu0 %551 }
 0x410   : > { %977 = vrcp.f32 %v552_v5 }
 0x413   : > { %v448_v6 = vpop.permute.xlu0 %447 }
 0x414   : > { %901 = vmatpush3.bf16.msra.mxu0 %v448_v6 }
 0x415   : > { %v976_v7 = vpop.eup %975  ;;  %912 = vmatprep.subr.bf16.mxu0 %v1005_v0 }
 0x416   : > { %v445_v8 = vmul.f32 %v976_v7, %v970_v58 }
 0x418   : > { %v446_v9 = vpack.c.bf16 %v445_v8, %v445_v8 }
 0x41a   : > { %903 = vmatmul.mubr.msk.bf16.vlgmr.msra.gmra.mxu0 %vm337_vm3, %v446_v9 }
 0x41b   : > { %913 = vmatpush3.bf16.msra.mxu0 %v557_v10  ;;  %914 = vmatprep.mubr.msk.bf16.mxu0 %vm1006_vm0, %v1005_v0 }
 0x41c   : > { %924 = vmatprep.subr.bf16.mxu0 %v1005_v0 }
 0x41d   : > { %v978_v11 = vpop.eup %977 }
 0x41e   : > { %v554_v12 = vmul.f32 %v978_v11, %v972_v60 }
 0x420   : > { %v555_v13 = vpack.c.bf16 %v554_v12, %v554_v12 }
 0x422   : > { %915 = vmatmul.mubr.msk.bf16.vlgmr.msra.gmra.mxu0 %vm337_vm3, %v555_v13 }
 0x423   : > { %926 = vmatprep.mubr.msk.bf16.mxu0 %vm1006_vm0, %v1005_v0 }
 0x43c   : > { %v661_v14 = vpop.xlane.xlu1 %660 }
 0x43d   : > { %979 = vrcp.f32 %v661_v14 }
 0x440   : > { %v666_v15 = vpop.permute.xlu1 %665 }
 0x441   : > { %925 = vmatpush3.bf16.msra.mxu0 %v666_v15 }
 0x44a   : > { %v980_v16 = vpop.eup %979 }
 0x44b   : > { %v663_v17 = vmul.f32 %v980_v16, %v974_v2 }
 0x44d   : > { %v664_v18 = vpack.c.bf16 %v663_v17, %v663_v17 }
 0x44f   : > { %927 = vmatmul.mubr.msk.bf16.vlgmr.msra.gmra.mxu0 %vm337_vm3, %v664_v18 }
 0x4da   : > { %v487_v19 = vpop.f32.mrf.mxu0 }
 0x4db   : > { %712 = vrot.lane.b32.xlu0 %v487_v19, %s1010_s30 }
 0x4dc   : > { %v904_v20 = vpop.f32.mrf.mxu0 }
 0x4de   : > { %v490_v21 = vpop.f32.mrf.mxu0 }
 0x4e0   : > { %v905_v22 = vpop.f32.mrf.mxu0 }
 0x4e2   : > { %v596_v23 = vpop.f32.mrf.mxu0 }
 0x4e3   : > { %716 = vrot.lane.b32.xlu1 %v596_v23, %s1011_s4 }
 0x4e4   : > { %v916_v0 = vpop.f32.mrf.mxu0 }
 0x4e6   : > { %v599_v24 = vpop.f32.mrf.mxu0 }
 0x4e8   : > { %v917_v25 = vpop.f32.mrf.mxu0 }
 0x50f   : > { %v705_v26 = vpop.f32.mrf.mxu0 }
 0x510   : > { %720 = vrot.lane.b32.xlu0 %v705_v26, %s1012_s5 }
 0x511   : > { %v928_v27 = vpop.f32.mrf.mxu0 }
 0x513   : > { %v708_v28 = vpop.f32.mrf.mxu0 }
 0x515   : > { %v929_v29 = vpop.f32.mrf.mxu0 }
 0x54d   : > { %v713_v31 = vpop.permute.xlu0 %712 }
 0x54e   : > { %v723_v33 = vsel %vm270_vm1, %v1108_v30, %v713_v31 }
 0x555   : > { %v717_v32 = vpop.permute.xlu1 %716 }
 0x556   : > { %v724_v34 = vsel %vm337_vm3, %v723_v33, %v717_v32 }
 0x582   : > { %v721_v35 = vpop.permute.xlu0 %720 }
 0x583   : > { %v726_v36 = vsel %vm725_vm4, %v724_v34, %v721_v35 }
 0x584   : > { %v727_v37 = vpack.c.bf16 %v726_v36, %v726_v36 }
 0x586   : > { %729 = vst.msk [vmem:[%s258_s8] sm:$0x7] %vm728_vm5, %v727_v37 }
 0x587 PF: > { %s13_s14 = sadd.s32 1, %s1003_s14   ;;  %s1152_s12 = smov %s999_s13 }
 0x588   : > { %p10_p5 = scmp.ge.s32.totalorder %s13_s14, 4   ;;  %s1153_s13 = smov %s1155_s15 }
 0x58a   :  { %12 = sbr.rel (!%p10_p5) target bundleno = 2 (0x2), region = 68 }

// kernel: dcf_sam_forward.73
= control target key start
LH: loop header
LB: loop body
LE: loop exit
PB: predicated region body
PF: predicated region fallthrough
CT: control target
= control target key end

     0   :  { %s674_s24 = smov 0   ;;  %s676_s25 = smov 0   ;;  %s765_s0 = inlined_call_operand.vmem [shape: f32[2,6,32], index: 0, kind: input, shape index: {}]   ;;  %s766_s1 = inlined_call_operand.vmem [shape: f32[32,64], index: 1, kind: input, shape index: {}]   ;;  %s767_s2 = inlined_call_operand.vmem [shape: f32[1,64], index: 2, kind: input, shape index: {}]   ;;  %s768_s3 = inlined_call_operand.vmem [shape: f32[64,32], index: 3, kind: input, shape index: {}]   ;;  %s769_s4 = inlined_call_operand.vmem [shape: f32[1,32], index: 4, kind: input, shape index: {}]   ;;  %s770_s5 = inlined_call_operand.vmem [shape: f32[1,32], index: 5, kind: input, shape index: {}]   ;;  %s771_s6 = inlined_call_operand.vmem [shape: f32[1,32], index: 6, kind: input, shape index: {}]   ;;  %s772_s7 = inlined_call_operand.vmem [shape: f32[2,6,32], index: 7, kind: output, shape index: {}]  }
   0x1   :  { %s678_s26 = smov 0  }
   0x2 LB: > { %s29_s27 = sadd.s32 1, %s626_s25  ;;  %p541_p0 = scmp.ge.s32.totalorder %s630_s26, 1  ;;  %s630_s26 = sphi %s678_s26, %s17_s26   ;;  %s626_s25 = sphi %s676_s25, %s774_s25   ;;  %s622_s24 = sphi %s674_s24, %s773_s24  }
   0x3   : > { %p31_p1 = scmp.ge.s32.totalorder %s29_s27, 2  ;;  %p255_p2 = scmp.lt.s32.totalorder %s630_s26, 3 }
   0x5   : > { %s776_s27 = smov (%p31_p1, %s29_s27), 0  ;;  %p256_p3 = pnand %p541_p0, %p255_p2 }
   0x6   : > { %p291_p4 = scmp.lt.s32.totalorder (!%p256_p3), %s622_s24, 1 }
   0x7   : > { %259 = sbr.rel (%p256_p3) target bundleno = 727 (0x2d7), region = 48 }
   0xc   : > { %v310_v0 = vld [vmem:[%s766_s1 + $0x10] sm:$0xff]  ;;  %v311_v1 = vld [vmem:[%s766_s1 + $0x18] sm:$0xff]  ;;  %v308_v2 = vld [vmem:[%s766_s1] sm:$0xff]  ;;  %v632_v3 = vmov 0.0   ;;  %vm633_vm0 = vmmov 0   ;;  %s778_s24 = smov (!%p291_p4, %s622_s24), 1 }
   0xd   : > { %560 = vmatprep.subr.bf16.mxu0 %v632_v3  ;;  %v313_v4 = vpack.c.bf16 %v311_v1, %v310_v0  ;;  %v309_v5 = vld [vmem:[%s766_s1 + $0x8] sm:$0xff]  ;;  %564 = vmatprep.mubr.msk.bf16.mxu0 %vm633_vm0, %v632_v3  ;;  %v373_v6 = vld [vmem:[%s768_s3 + $0x30] sm:$0xff]  ;;  %v374_v7 = vld [vmem:[%s768_s3 + $0x38] sm:$0xff]  ;;  %s542_s21 = sshll.u32 %s778_s24, 3  ;;  %vm321_vm1 = vcmask 261120   ;;  %vm386_vm2 = vcmask 523264  }
   0xe   : > { %568 = vmatprep.subr.bf16.mxu1 %v632_v3  ;;  %v378_v8 = vpack.c.bf16 %v374_v7, %v373_v6  ;;  %v371_v9 = vld [vmem:[%s768_s3 + $0x20] sm:$0xff]  ;;  %v372_v10 = vld [vmem:[%s768_s3 + $0x28] sm:$0xff]  ;;  %576 = vmatprep.mubr.msk.bf16.mxu1 %vm633_vm0, %v632_v3  ;;  %v312_v11 = vpack.c.bf16 %v309_v5, %v308_v2  ;;  %s297_s28 = scalar_lea.vmem %s765_s0, %s542_s21  ;;  %v369_v15 = vld [vmem:[%s768_s3 + $0x10] sm:$0xff]  ;;  %vm431_vm3 = vcmask 259072   ;;  %s304_s29 = scalar_lea.vmem %s772_s7, %s542_s21 }
   0xf   : > { %561 = vmatpush3.bf16.msra.mxu0 %v313_v4  ;;  %v377_v12 = vpack.c.bf16 %v372_v10, %v371_v9  ;;  %v306_v13 = vld [vmem:[%s297_s28] sm:$0x3f]  ;;  %v370_v16 = vld [vmem:[%s768_s3 + $0x18] sm:$0xff]  ;;  %v368_v19 = vld [vmem:[%s768_s3 + $0x8] sm:$0xff] }
  0x10   : > { %562 = vmatprep.subr.bf16.mxu0 %v632_v3  ;;  %569 = vmatpush3.bf16.msra.mxu1 %v378_v8  ;;  %v307_v14 = vpack.c.bf16 %v306_v13, %v306_v13  ;;  %v376_v17 = vpack.c.bf16 %v370_v16, %v369_v15  ;;  %v367_v18 = vld [vmem:[%s768_s3] sm:$0xff] }
  0x11   : > { %570 = vmatprep.subr.bf16.mxu1 %v632_v3  ;;  %v375_v20 = vpack.c.bf16 %v368_v19, %v367_v18  ;;  %v544_v21 = vld [vmem:[%s767_s2] ss:$0 sm:$0xff] }
  0x12   : > { %v546_v29 = vld [vmem:[%s769_s4] ss:$0 sm:$0xff] }
  0x13   : > { %563 = vmatpush3.bf16.msra.mxu0 %v312_v11  ;;  %v548_v46 = vld [vmem:[%s770_s5] ss:$0 sm:$0xff] }
  0x14   : > { %571 = vmatpush3.bf16.msra.mxu1 %v377_v12  ;;  %v549_v48 = vld [vmem:[%s771_s6] ss:$0 sm:$0xff] }
  0x15   : > { %572 = vmatprep.subr.bf16.mxu1 %v632_v3 }
  0x16   : > { %565 = vmatmul.mubr.msk.bf16.vlgmr.msra.gmra.mxu0 %vm321_vm1, %v307_v14 }
  0x18   : > { %573 = vmatpush3.bf16.msra.mxu1 %v376_v17 }
  0x19   : > { %574 = vmatprep.subr.bf16.mxu1 %v632_v3 }
  0x1c   : > { %575 = vmatpush3.bf16.msra.mxu1 %v375_v20 }
  0xd6   : > { %v359_v22 = vpop.f32.mrf.mxu0 }
  0xd7   : > { %v360_v23 = vadd.f32 %v544_v21, %v359_v22 }
  0xd8   : > { %v566_v24 = vpop.f32.mrf.mxu0 }
  0xd9   : > { %v365_v25 = vmax.f32 %v360_v23, 0.0 }
  0xda   : > { %v362_v26 = vpop.f32.mrf.mxu0 }
  0xdb   : > { %v366_v27 = vpack.c.bf16 %v365_v25, %v365_v25 }
  0xdc   : > { %v567_v28 = vpop.f32.mrf.mxu0 }
  0xdd   : > { %577 = vmatmul.mubr.msk.bf16.vlgmr.msra.gmra.mxu1 %vm386_vm2, %v366_v27 }
 0x19d   : > { %v424_v30 = vpop.f32.mrf.mxu1 }
 0x19e   : > { %v425_v31 = vadd.f32 %v546_v29, %v424_v30 }
 0x19f   : > { %v578_v32 = vpop.f32.mrf.mxu1 }
 0x1a0   : > { %v430_v33 = vadd.f32 %v425_v31, %v306_v13 }
 0x1a1   : > { %v427_v34 = vpop.f32.mrf.mxu1 }
 0x1a2   : > { %v432_v35 = vsel %vm431_vm3, %v430_v33, 0.0 }
 0x1a3   : > { %433 = vadd.xlane.f32.xlu0 %v432_v35  ;;  %v579_v36 = vpop.f32.mrf.mxu1 }
 0x22c   : > { %v434_v37 = vpop.xlane.xlu0 %433 }
 0x22d   : > { %v436_v38 = vmul.f32 0.03125, %v434_v37 }
 0x22f   : > { %v437_v39 = vsub.f32 %v430_v33, %v436_v38 }
 0x231   : > { %v438_v40 = vmul.f32 %v437_v39, %v437_v39 }
 0x233   : > { %v439_v41 = vsel %vm431_vm3, %v438_v40, 0.0 }
 0x234   : > { %440 = vadd.xlane.f32.xlu0 %v439_v41 }
 0x2bd   : > { %v441_v42 = vpop.xlane.xlu0 %440 }
 0x2be   : > { %v442_v43 = vmul.f32 0.03125, %v441_v42 }
 0x2c0   : > { %v443_v44 = vadd.f32 1e-06, %v442_v43 }
 0x2c2   : > { %606 = vrsqrt.f32 %v443_v44 }
 0x2cf   : > { %v607_v45 = vpop.eup %606 }
 0x2d0   : > { %v445_v47 = vmul.f32 %v607_v45, %v437_v39 }
 0x2d2   : > { %v453_v49 = vmul.f32 %v548_v46, %v445_v47 }
 0x2d4   : > { %v461_v50 = vadd.f32 %v549_v48, %v453_v49 }
 0x2d6   : > { %462 = vst.msk [vmem:[%s304_s29] sm:$0x3f] %vm431_vm3, %v461_v50 }
 0x2d7 PF: > { %s17_s26 = sadd.s32 1, %s630_s26   ;;  %s773_s24 = smov %s626_s25 }
 0x2d8   : > { %p14_p5 = scmp.ge.s32.totalorder %s17_s26, 4   ;;  %s774_s25 = smov %s776_s27 }
 0x2da   :  { %16 = sbr.rel (!%p14_p5) target bundleno = 2 (0x2), region = 78 }

// kernel: dcf_sam_forward.75
= control target key start
LH: loop header
LB: loop body
LE: loop exit
PB: predicated region body
PF: predicated region fallthrough
CT: control target
= control target key end

     0   :  { %s735_s24 = smov 0   ;;  %s737_s25 = smov 0   ;;  %s809_s0 = inlined_call_operand.vmem [shape: f32[2,6,32], index: 0, kind: input, shape index: {}]   ;;  %s810_s1 = inlined_call_operand.vmem [shape: f32[2,6,32], index: 1, kind: input, shape index: {}]   ;;  %s811_s2 = inlined_call_operand.vmem [shape: f32[32,32], index: 2, kind: input, shape index: {}]   ;;  %s812_s3 = inlined_call_operand.vmem [shape: f32[1,32], index: 3, kind: input, shape index: {}]   ;;  %s813_s4 = inlined_call_operand.vmem [shape: f32[32,32], index: 4, kind: input, shape index: {}]   ;;  %s814_s5 = inlined_call_operand.vmem [shape: f32[1,32], index: 5, kind: input, shape index: {}]   ;;  %s815_s6 = inlined_call_operand.vmem [shape: bf16[2,6,32], index: 6, kind: output, shape index: {0}]   ;;  %s816_s7 = inlined_call_operand.vmem [shape: bf16[2,6,32], index: 7, kind: output, shape index: {1}]  }
   0x1   :  { %s739_s26 = smov 0  }
   0x2 LB: > { %s30_s27 = sadd.s32 1, %s687_s25  ;;  %p610_p0 = scmp.ge.s32.totalorder %s691_s26, 1  ;;  %s691_s26 = sphi %s739_s26, %s18_s26   ;;  %s687_s25 = sphi %s737_s25, %s818_s25   ;;  %s683_s24 = sphi %s735_s24, %s817_s24  }
   0x3   : > { %p32_p1 = scmp.ge.s32.totalorder %s30_s27, 2  ;;  %p274_p2 = scmp.lt.s32.totalorder %s691_s26, 3 }
   0x5   : > { %s820_s27 = smov (%p32_p1, %s30_s27), 0  ;;  %p275_p3 = pnand %p610_p0, %p274_p2 }
   0x6   : > { %p324_p4 = scmp.lt.s32.totalorder (!%p275_p3), %s683_s24, 1 }
   0x7   : > { %278 = sbr.rel (%p275_p3) target bundleno = 222 (0xde), region = 44 }
   0xc   : > { %v420_v0 = vld [vmem:[%s813_s4 + $0x10] sm:$0xff]  ;;  %v421_v1 = vld [vmem:[%s813_s4 + $0x18] sm:$0xff]  ;;  %v693_v3 = vmov 0.0   ;;  %v418_v6 = vld [vmem:[%s813_s4] sm:$0xff]  ;;  %vm694_vm0 = vmmov 0   ;;  %s822_s24 = smov (!%p324_p4, %s683_s24), 1 }
   0xd   : > { %v359_v2 = vld [vmem:[%s811_s2 + $0x10] sm:$0xff]  ;;  %635 = vmatprep.subr.bf16.mxu1 %v693_v3  ;;  %627 = vmatprep.subr.bf16.mxu0 %v693_v3  ;;  %v423_v4 = vpack.c.bf16 %v421_v1, %v420_v0  ;;  %v360_v5 = vld [vmem:[%s811_s2 + $0x18] sm:$0xff]  ;;  %v419_v7 = vld [vmem:[%s813_s4 + $0x8] sm:$0xff]  ;;  %s611_s21 = sshll.u32 %s822_s24, 3  ;;  %vm370_vm1 = vcmask 261120   ;;  %s613_s11 = sshll.u32 %s822_s24, 2 }
   0xe   : > { %v362_v8 = vpack.c.bf16 %v360_v5, %v359_v2  ;;  %v357_v9 = vld [vmem:[%s811_s2] sm:$0xff]  ;;  %v358_v10 = vld [vmem:[%s811_s2 + $0x8] sm:$0xff]  ;;  %639 = vmatprep.mubr.msk.bf16.mxu1 %vm694_vm0, %v693_v3  ;;  %631 = vmatprep.mubr.msk.bf16.mxu0 %vm694_vm0, %v693_v3  ;;  %v422_v11 = vpack.c.bf16 %v419_v7, %v418_v6  ;;  %s330_s28 = scalar_lea.vmem %s809_s0, %s611_s21  ;;  %s337_s8 = scalar_lea.vmem %s810_s1, %s611_s21  ;;  %vm415_vm2 = vcmask 256000  }
   0xf   : > { %636 = vmatpush3.bf16.msra.mxu1 %v423_v4  ;;  %v361_v12 = vpack.c.bf16 %v358_v10, %v357_v9  ;;  %v353_v13 = vld [vmem:[%s330_s28] sm:$0x3f]  ;;  %s351_s16 = scalar_lea.vmem %s816_s7, %s613_s11  ;;  %s344_s19 = scalar_lea.vmem %s815_s6, %s613_s11 }
  0x10   : > { %628 = vmatpush3.bf16.msra.mxu0 %v362_v8  ;;  %637 = vmatprep.subr.bf16.mxu1 %v693_v3  ;;  %v354_v14 = vld [vmem:[%s337_s8] sm:$0x3f]  ;;  %v417_v15 = vpack.c.bf16 %v353_v13, %v353_v13 }
  0x11   : > { %629 = vmatprep.subr.bf16.mxu0 %v693_v3  ;;  %v355_v16 = vadd.f32 %v354_v14, %v353_v13  ;;  %v617_v18 = vld [vmem:[%s814_s5] ss:$0 sm:$0xff] }
  0x12   : > { %v615_v19 = vld [vmem:[%s812_s3] ss:$0 sm:$0xff] }
  0x13   : > { %638 = vmatpush3.bf16.msra.mxu1 %v422_v11  ;;  %v356_v17 = vpack.c.bf16 %v355_v16, %v355_v16 }
  0x14   : > { %630 = vmatpush3.bf16.msra.mxu0 %v361_v12 }
  0x16   : > { %640 = vmatmul.mubr.msk.bf16.vlgmr.msra.gmra.mxu1 %vm370_vm1, %v417_v15 }
  0x17   : > { %632 = vmatmul.mubr.msk.bf16.vlgmr.msra.gmra.mxu0 %vm370_vm1, %v356_v17 }
  0xd6   : > { %v468_v20 = vpop.f32.mrf.mxu1 }
  0xd7   : > { %v469_v21 = vadd.f32 %v617_v18, %v468_v20  ;;  %v408_v22 = vpop.f32.mrf.mxu0 }
  0xd8   : > { %v409_v23 = vadd.f32 %v615_v19, %v408_v22  ;;  %v641_v24 = vpop.f32.mrf.mxu1 }
  0xd9   : > { %v474_v25 = vpack.c.bf16 %v469_v21, %v469_v21  ;;  %v633_v26 = vpop.f32.mrf.mxu0 }
  0xda   : > { %v414_v27 = vpack.c.bf16 %v409_v23, %v409_v23  ;;  %v471_v28 = vpop.f32.mrf.mxu1 }
  0xdb   : > { %475 = vst.msk [vmem:[%s351_s16] sm:$0x7] %vm415_vm2, %v474_v25  ;;  %v411_v29 = vpop.f32.mrf.mxu0 }
  0xdc   : > { %416 = vst.msk [vmem:[%s344_s19] sm:$0x7] %vm415_vm2, %v414_v27  ;;  %v642_v30 = vpop.f32.mrf.mxu1 }
  0xdd   : > { %v634_v31 = vpop.f32.mrf.mxu0 }
  0xde PF: > { %s18_s26 = sadd.s32 1, %s691_s26   ;;  %s817_s24 = smov %s687_s25 }
  0xdf   : > { %p15_p5 = scmp.ge.s32.totalorder %s18_s26, 4   ;;  %s818_s25 = smov %s820_s27 }
  0xe1   :  { %17 = sbr.rel (!%p15_p5) target bundleno = 2 (0x2), region = 89 }

// kernel: dcf_sam_forward.76
= control target key start
LH: loop header
LB: loop body
LE: loop exit
PB: predicated region body
PF: predicated region fallthrough
CT: control target
= control target key end

     0   :  { %s1155_s12 = smov 0   ;;  %s1157_s13 = smov 0   ;;  %s1284_s0 = inlined_call_operand.vmem [shape: bf16[2,16,32], index: 0, kind: input, shape index: {}]   ;;  %s1285_s1 = inlined_call_operand.vmem [shape: bf16[2,6,32], index: 1, kind: input, shape index: {}]   ;;  %s1286_s2 = inlined_call_operand.vmem [shape: bf16[2,6,32], index: 2, kind: input, shape index: {}]   ;;  %s1287_s3 = inlined_call_operand.vmem [shape: bf16[2,16,32], index: 3, kind: output, shape index: {}]  }
   0x1   :  { %s1159_s14 = smov 0  }
   0x2 LB: > { %s25_s15 = sadd.s32 1, %s1121_s13  ;;  %p931_p0 = scmp.ge.s32.totalorder %s1125_s14, 1  ;;  %s1125_s14 = sphi %s1159_s14, %s13_s14   ;;  %s1121_s13 = sphi %s1157_s13, %s1289_s13   ;;  %s1117_s12 = sphi %s1155_s12, %s1288_s12  }
   0x3   : > { %p27_p1 = scmp.ge.s32.totalorder %s25_s15, 2  ;;  %p184_p2 = scmp.lt.s32.totalorder %s1125_s14, 3 }
   0x5   : > { %s1291_s15 = smov (%p27_p1, %s25_s15), 0  ;;  %p185_p3 = pnand %p931_p0, %p184_p2 }
   0x6   : > { %p228_p4 = scmp.lt.s32.totalorder (!%p185_p3), %s1117_s12, 1  ;;  %s1129_s24 = smov (!%p185_p3), 120  }
   0x7   : > { %188 = sbr.rel (%p185_p3) target bundleno = 1439 (0x59f), region = 32  ;;  %s1130_s25 = smov (!%p185_p3), 104  }
   0x8   : > { %s1131_s29 = smov (!%p185_p3), 112   ;;  %s1132_s30 = smov (!%p185_p3), 8  }
   0x9   : > { %s1133_s4 = smov (!%p185_p3), 16   ;;  %s1134_s5 = smov (!%p185_p3), 24  }
   0xc   : > { %v1127_v0 = vmov 0.0   ;;  %vm1128_vm0 = vmmov 0   ;;  %s1293_s12 = smov (!%p228_p4, %s1117_s12), 1  ;;  %vm268_vm1 = vcmask 64512   ;;  %vm318_vm2 = vcmask 48128  }
   0xd   : > { %973 = vmatprep.subr.bf16.mxu0 %v1127_v0  ;;  %975 = vmatprep.mubr.msk.bf16.mxu0 %vm1128_vm0, %v1127_v0  ;;  %s953_s16 = sshll.u32 %s1293_s12, 3  ;;  %s934_s17 = sshll.u32 %s1293_s12, 2  ;;  %vm345_vm3 = vcmask 1042432   ;;  %vm797_vm4 = vcmask 130048   ;;  %vm800_vm5 = vcmask 195584   ;;  %vm811_vm6 = vcmask 257024  }
   0xe   : > { %979 = vmatprep.subr.bf16.mxu1 %v1127_v0  ;;  %981 = vmatprep.mubr.msk.bf16.mxu1 %vm1128_vm0, %v1127_v0  ;;  %s235_s20 = scalar_lea.vmem %s1284_s0, %s953_s16  ;;  %s242_s23 = scalar_lea.vmem %s1285_s1, %s934_s17 }
   0xf   : > { %v261_v1 = vld [vmem:[%s242_s23] sm:$0x7]  ;;  %s249_s28 = scalar_lea.vmem %s1286_s2, %s934_s17  ;;  %s257_s8 = scalar_lea.vmem %s1287_s3, %s953_s16 }
  0x10   : > { %v273_v2 = vsel %vm268_vm1, %v261_v1, 0  ;;  %v1069_v3 = vld [vmem:[%s235_s20] sm:$0xff]   ;;  %v941_v12 = vcombine.low %v261_v1, %v261_v1 }
  0x11   : > { %974 = vmatpush3.bf16.xpose.msra.mxu0 %v273_v2  ;;  %v1209_v23 = vld [vmem:[%s249_s28] sm:$0x7] }
  0x12   : > { %991 = vmatprep.subr.bf16.mxu0 %v1127_v0  ;;  %v347_v24 = vsel %vm345_vm3, %v1209_v23, 0 }
  0x13   : > { %980 = vmatpush3.bf16.msra.mxu1 %v347_v24 }
  0x14   : > { %985 = vmatprep.subr.bf16.mxu1 %v1127_v0 }
  0x18   : > { %976 = vmatmul.mubr.msk.bf16.vlgmr.msra.gmra.mxu0 %vm268_vm1, %v1069_v3 }
  0x19   : > { %993 = vmatprep.mubr.msk.bf16.mxu0 %vm1128_vm0, %v1127_v0 }
  0xd8   : > { %v309_v4 = vpop.f32.mrf.mxu0 }
  0xd9   : > { %v316_v5 = vmul.f32 0.35355338, %v309_v4 }
  0xda   : > { %v977_v6 = vpop.f32.mrf.mxu0 }
  0xdb   : > { %v319_v7 = vsel %vm318_vm2, %v316_v5, -inf }
  0xdc   : > { %320 = vmax.xlane.f32.xlu0 %v319_v7  ;;  %v312_v8 = vpop.f32.mrf.mxu0 }
  0xdd   : > { %v317_v9 = vmul.f32 0.35355338, %v312_v8 }
  0xde   : > { %v978_v10 = vpop.f32.mrf.mxu0 }
  0xdf   : > { %v322_v11 = vsel %vm318_vm2, %v317_v9, -inf }
  0xe0   : > { %323 = vmax.xlane.f32.xlu0 %v322_v11 }
  0xf6   : > { %395 = vrot.lane.b32.xlu0 %v941_v12, %s1129_s24 }
  0xfa   : > { %648 = vrot.lane.b32.xlu0 %v941_v12, %s1130_s25 }
 0x165   : > { %v321_v13 = vpop.xlane.xlu0 %320 }
 0x166   : > { %v325_v14 = vsub.f32 %v316_v5, %v321_v13 }
 0x168   : > { %v327_v15 = vmul.f32 1.442695, %v325_v14 }
 0x169   : > { %v324_v16 = vpop.xlane.xlu0 %323 }
 0x16a   : > { %1071 = vpow2.f32 %v327_v15  ;;  %v326_v17 = vsub.f32 %v317_v9, %v324_v16 }
 0x16c   : > { %v329_v18 = vmul.f32 1.442695, %v326_v17 }
 0x16d   : > { %v396_v29 = vpop.permute.xlu0 %395 }
 0x16e   : > { %1073 = vpow2.f32 %v329_v18  ;;  %v401_v33 = vsel %vm268_vm1, %v396_v29, 0 }
 0x171   : > { %v649_v37 = vpop.permute.xlu0 %648 }
 0x172   : > { %v654_v39 = vsel %vm268_vm1, %v649_v37, 0 }
 0x177   : > { %v1072_v19 = vpop.eup %1071 }
 0x178   : > { %v331_v20 = vsel %vm318_vm2, %v1072_v19, 0.0 }
 0x179   : > { %332 = vadd.xlane.f32.xlu1 %v331_v20 }
 0x17b   : > { %v1074_v21 = vpop.eup %1073 }
 0x17c   : > { %v334_v22 = vsel %vm318_vm2, %v1074_v21, 0.0 }
 0x17d   : > { %335 = vadd.xlane.f32.xlu1 %v334_v22 }
 0x18e   : > { %390 = vrot.lane.b32.xlu1 %v1069_v3, %s1129_s24 }
 0x192   : > { %523 = vrot.lane.b32.xlu1 %v941_v12, %s1131_s29 }
 0x196   : > { %521 = vrot.lane.b32.xlu1 %v1069_v3, %s1131_s29 }
 0x19a   : > { %646 = vrot.lane.b32.xlu1 %v1069_v3, %s1130_s25 }
 0x202   : > { %v333_v25 = vpop.xlane.xlu1 %332 }
 0x203   : > { %1075 = vrcp.f32 %v333_v25 }
 0x206   : > { %v336_v26 = vpop.xlane.xlu1 %335 }
 0x207   : > { %1077 = vrcp.f32 %v336_v26 }
 0x20a   : > { %v391_v32 = vpop.permute.xlu1 %390 }
 0x20e   : > { %v524_v35 = vpop.permute.xlu1 %523 }
 0x20f   : > { %v529_v36 = vsel %vm268_vm1, %v524_v35, 0 }
 0x210   : > { %v1076_v27 = vpop.eup %1075 }
 0x211   : > { %v339_v30 = vmul.f32 %v1076_v27, %v1072_v19 }
 0x212   : > { %v522_v38 = vpop.permute.xlu1 %521 }
 0x214   : > { %v1078_v28 = vpop.eup %1077 }
 0x215   : > { %v340_v31 = vmul.f32 %v1078_v28, %v1074_v21 }
 0x216   : > { %v647_v40 = vpop.permute.xlu1 %646 }
 0x217   : > { %v341_v34 = vpack.c.bf16 %v340_v31, %v339_v30 }
 0x219   : > { %982 = vmatmul.mubr.msk.bf16.vlgmr.msra.gmra.mxu1 %vm318_vm2, %v341_v34 }
 0x21a   : > { %986 = vmatpush3.bf16.xpose.msra.mxu1 %v401_v33  ;;  %987 = vmatprep.mubr.msk.bf16.mxu1 %vm1128_vm0, %v1127_v0 }
 0x21b   : > { %997 = vmatprep.subr.bf16.mxu1 %v1127_v0 }
 0x221   : > { %988 = vmatmul.mubr.msk.bf16.vlgmr.msra.gmra.mxu1 %vm268_vm1, %v391_v32  ;;  %v943_v32 = vcombine.low %v1209_v23, %v1209_v23 }
 0x222   : > { %998 = vmatpush3.bf16.xpose.msra.mxu1 %v529_v36  ;;  %999 = vmatprep.mubr.msk.bf16.mxu1 %vm1128_vm0, %v1127_v0 }
 0x223   : > { %1009 = vmatprep.subr.bf16.mxu1 %v1127_v0 }
 0x229   : > { %1000 = vmatmul.mubr.msk.bf16.vlgmr.msra.gmra.mxu1 %vm268_vm1, %v522_v38 }
 0x22a   : > { %1010 = vmatpush3.bf16.xpose.msra.mxu1 %v654_v39  ;;  %1011 = vmatprep.mubr.msk.bf16.mxu1 %vm1128_vm0, %v1127_v0 }
 0x231   : > { %1012 = vmatmul.mubr.msk.bf16.vlgmr.msra.gmra.mxu1 %vm268_vm1, %v647_v40 }
 0x2d9   : > { %v1233_v41 = vpop.f32.mrf.mxu1 }
 0x2db   : > { %v983_v42 = vpop.f32.mrf.mxu1 }
 0x2dd   : > { %v1235_v43 = vpop.f32.mrf.mxu1 }
 0x2df   : > { %v984_v44 = vpop.f32.mrf.mxu1 }
 0x2e1   : > { %v437_v45 = vpop.f32.mrf.mxu1 }
 0x2e2   : > { %v444_v46 = vmul.f32 0.35355338, %v437_v45 }
 0x2e3   : > { %v989_v47 = vpop.f32.mrf.mxu1 }
 0x2e4   : > { %v446_v48 = vsel %vm318_vm2, %v444_v46, -inf }
 0x2e5   : > { %447 = vmax.xlane.f32.xlu0 %v446_v48  ;;  %v440_v49 = vpop.f32.mrf.mxu1 }
 0x2e6   : > { %v445_v50 = vmul.f32 0.35355338, %v440_v49 }
 0x2e7   : > { %v990_v51 = vpop.f32.mrf.mxu1 }
 0x2e8   : > { %v449_v52 = vsel %vm318_vm2, %v445_v50, -inf }
 0x2e9   : > { %450 = vmax.xlane.f32.xlu1 %v449_v52  ;;  %v565_v53 = vpop.f32.mrf.mxu1 }
 0x2ea   : > { %v572_v54 = vmul.f32 0.35355338, %v565_v53 }
 0x2eb   : > { %v1001_v55 = vpop.f32.mrf.mxu1 }
 0x2ec   : > { %v574_v56 = vsel %vm318_vm2, %v572_v54, -inf }
 0x2ed   : > { %575 = vmax.xlane.f32.xlu0 %v574_v56  ;;  %v568_v57 = vpop.f32.mrf.mxu1 }
 0x2ee   : > { %v573_v58 = vmul.f32 0.35355338, %v568_v57 }
 0x2ef   : > { %v1002_v59 = vpop.f32.mrf.mxu1 }
 0x2f0   : > { %v577_v60 = vsel %vm318_vm2, %v573_v58, -inf }
 0x2f1   : > { %578 = vmax.xlane.f32.xlu0 %v577_v60  ;;  %v690_v61 = vpop.f32.mrf.mxu1 }
 0x2f2   : > { %v697_v62 = vmul.f32 0.35355338, %v690_v61 }
 0x2f3   : > { %v1013_v63 = vpop.f32.mrf.mxu1 }
 0x2f4   : > { %v699_v1 = vsel %vm318_vm2, %v697_v62, -inf }
 0x2f5   : > { %700 = vmax.xlane.f32.xlu0 %v699_v1  ;;  %v693_v2 = vpop.f32.mrf.mxu1 }
 0x2f6   : > { %v698_v3 = vmul.f32 0.35355338, %v693_v2 }
 0x2f7   : > { %v1014_v4 = vpop.f32.mrf.mxu1 }
 0x2f8   : > { %v702_v5 = vsel %vm318_vm2, %v698_v3, -inf }
 0x2f9   : > { %703 = vmax.xlane.f32.xlu1 %v702_v5 }
 0x36e   : > { %v448_v6 = vpop.xlane.xlu0 %447 }
 0x36f   : > { %v452_v7 = vsub.f32 %v444_v46, %v448_v6 }
 0x371   : > { %v454_v8 = vmul.f32 1.442695, %v452_v7 }
 0x372   : > { %v451_v9 = vpop.xlane.xlu1 %450 }
 0x373   : > { %1079 = vpow2.f32 %v454_v8  ;;  %v453_v10 = vsub.f32 %v445_v50, %v451_v9 }
 0x375   : > { %v456_v11 = vmul.f32 1.442695, %v453_v10 }
 0x376   : > { %v576_v12 = vpop.xlane.xlu0 %575 }
 0x377   : > { %1081 = vpow2.f32 %v456_v11  ;;  %v580_v13 = vsub.f32 %v572_v54, %v576_v12 }
 0x379   : > { %v582_v14 = vmul.f32 1.442695, %v580_v13 }
 0x37a   : > { %v579_v15 = vpop.xlane.xlu0 %578 }
 0x37b   : > { %1083 = vpow2.f32 %v582_v14  ;;  %v581_v16 = vsub.f32 %v573_v58, %v579_v15 }
 0x37d   : > { %v584_v17 = vmul.f32 1.442695, %v581_v16 }
 0x37e   : > { %v701_v18 = vpop.xlane.xlu0 %700 }
 0x37f   : > { %1085 = vpow2.f32 %v584_v17  ;;  %v705_v19 = vsub.f32 %v697_v62, %v701_v18 }
 0x380   : > { %v1080_v20 = vpop.eup %1079 }
 0x381   : > { %v707_v21 = vmul.f32 1.442695, %v705_v19  ;;  %v458_v22 = vsel %vm318_vm2, %v1080_v20, 0.0 }
 0x382   : > { %459 = vadd.xlane.f32.xlu0 %v458_v22  ;;  %v704_v33 = vpop.xlane.xlu1 %703 }
 0x383   : > { %1087 = vpow2.f32 %v707_v21  ;;  %v706_v34 = vsub.f32 %v698_v3, %v704_v33 }
 0x384   : > { %v1082_v24 = vpop.eup %1081 }
 0x385   : > { %v461_v25 = vsel %vm318_vm2, %v1082_v24, 0.0  ;;  %v709_v35 = vmul.f32 1.442695, %v706_v34 }
 0x386   : > { %462 = vadd.xlane.f32.xlu1 %v461_v25 }
 0x387   : > { %1089 = vpow2.f32 %v709_v35 }
 0x388   : > { %v1084_v26 = vpop.eup %1083 }
 0x389   : > { %v586_v27 = vsel %vm318_vm2, %v1084_v26, 0.0 }
 0x38a   : > { %587 = vadd.xlane.f32.xlu0 %v586_v27 }
 0x38c   : > { %v1086_v28 = vpop.eup %1085 }
 0x38d   : > { %v589_v29 = vsel %vm318_vm2, %v1086_v28, 0.0 }
 0x38e   : > { %590 = vadd.xlane.f32.xlu1 %v589_v29 }
 0x390   : > { %v1088_v30 = vpop.eup %1087 }
 0x391   : > { %v711_v31 = vsel %vm318_vm2, %v1088_v30, 0.0 }
 0x392   : > { %712 = vadd.xlane.f32.xlu0 %v711_v31 }
 0x394   : > { %v1090_v36 = vpop.eup %1089 }
 0x395   : > { %v714_v37 = vsel %vm318_vm2, %v1090_v36, 0.0 }
 0x39f   : > { %597 = vrot.lane.b32.xlu1 %v943_v32, %s1131_s29 }
 0x3a8   : > { %472 = vrot.lane.b32.xlu0 %v943_v32, %s1129_s24 }
 0x3c3   : > { %715 = vadd.xlane.f32.xlu1 %v714_v37 }
 0x3d4   : > { %722 = vrot.lane.b32.xlu1 %v943_v32, %s1130_s25 }
 0x40b   : > { %v460_v38 = vpop.xlane.xlu0 %459 }
 0x40c   : > { %1091 = vrcp.f32 %v460_v38 }
 0x40f   : > { %v463_v39 = vpop.xlane.xlu1 %462 }
 0x410   : > { %1093 = vrcp.f32 %v463_v39 }
 0x413   : > { %v588_v40 = vpop.xlane.xlu0 %587 }
 0x414   : > { %1095 = vrcp.f32 %v588_v40 }
 0x417   : > { %v591_v23 = vpop.xlane.xlu1 %590 }
 0x418   : > { %1097 = vrcp.f32 %v591_v23 }
 0x419   : > { %v1092_v44 = vpop.eup %1091 }
 0x41a   : > { %v466_v49 = vmul.f32 %v1092_v44, %v1080_v20 }
 0x41b   : > { %v713_v42 = vpop.xlane.xlu0 %712  ;;  %v598_v50 = vpop.permute.xlu1 %597 }
 0x41c   : > { %v603_v53 = vsel %vm345_vm3, %v598_v50, 0  ;;  %1099 = vrcp.f32 %v713_v42 }
 0x41d   : > { %v1094_v45 = vpop.eup %1093 }
 0x41e   : > { %v467_v46 = vmul.f32 %v1094_v45, %v1082_v24 }
 0x41f   : > { %v473_v47 = vpop.permute.xlu0 %472 }
 0x420   : > { %v478_v48 = vsel %vm345_vm3, %v473_v47, 0  ;;  %v468_v51 = vpack.c.bf16 %v467_v46, %v466_v49 }
 0x421   : > { %992 = vmatpush3.bf16.msra.mxu0 %v478_v48  ;;  %v1096_v52 = vpop.eup %1095 }
 0x422   : > { %1003 = vmatprep.subr.bf16.mxu0 %v1127_v0  ;;  %v594_v56 = vmul.f32 %v1096_v52, %v1084_v26 }
 0x424   : > { %994 = vmatmul.mubr.msk.bf16.vlgmr.msra.gmra.mxu0 %vm318_vm2, %v468_v51 }
 0x425   : > { %v1098_v54 = vpop.eup %1097  ;;  %1004 = vmatpush3.bf16.msra.mxu0 %v603_v53  ;;  %1005 = vmatprep.mubr.msk.bf16.mxu0 %vm1128_vm0, %v1127_v0 }
 0x426   : > { %v595_v55 = vmul.f32 %v1098_v54, %v1086_v28  ;;  %1015 = vmatprep.subr.bf16.mxu0 %v1127_v0 }
 0x428   : > { %v596_v57 = vpack.c.bf16 %v595_v55, %v594_v56 }
 0x429   : > { %v1100_v61 = vpop.eup %1099 }
 0x42a   : > { %v719_v63 = vmul.f32 %v1100_v61, %v1088_v30 }
 0x42c   : > { %1006 = vmatmul.mubr.msk.bf16.vlgmr.msra.gmra.mxu0 %vm318_vm2, %v596_v57 }
 0x42d   : > { %1017 = vmatprep.mubr.msk.bf16.mxu0 %vm1128_vm0, %v1127_v0 }
 0x44c   : > { %v716_v58 = vpop.xlane.xlu1 %715 }
 0x44d   : > { %1101 = vrcp.f32 %v716_v58 }
 0x450   : > { %v723_v59 = vpop.permute.xlu1 %722 }
 0x451   : > { %v728_v60 = vsel %vm345_vm3, %v723_v59, 0 }
 0x452   : > { %1016 = vmatpush3.bf16.msra.mxu0 %v728_v60 }
 0x45a   : > { %v1102_v62 = vpop.eup %1101 }
 0x45b   : > { %v720_v1 = vmul.f32 %v1102_v62, %v1090_v36 }
 0x45d   : > { %v721_v2 = vpack.c.bf16 %v720_v1, %v719_v63 }
 0x45f   : > { %1018 = vmatmul.mubr.msk.bf16.vlgmr.msra.gmra.mxu0 %vm318_vm2, %v721_v2 }
 0x4e4   : > { %v514_v3 = vpop.f32.mrf.mxu0 }
 0x4e6   : > { %v995_v4 = vpop.f32.mrf.mxu0 }
 0x4e8   : > { %v517_v5 = vpop.f32.mrf.mxu0 }
 0x4e9   : > { %v1053_v6 = vpack.i.bf16 %v517_v5, %v514_v3 }
 0x4ea   : > { %v996_v7 = vpop.f32.mrf.mxu0 }
 0x4eb   : > { %1054 = vrot.lane.b32.xlu1 %v1053_v6, %s1132_s30 }
 0x4ec   : > { %v639_v0 = vpop.f32.mrf.mxu0 }
 0x4ee   : > { %v1007_v8 = vpop.f32.mrf.mxu0 }
 0x4f0   : > { %v642_v9 = vpop.f32.mrf.mxu0 }
 0x4f1   : > { %v1058_v10 = vpack.i.bf16 %v642_v9, %v639_v0 }
 0x4f2   : > { %v1008_v11 = vpop.f32.mrf.mxu0 }
 0x4f3   : > { %1059 = vrot.lane.b32.xlu0 %v1058_v10, %s1133_s4 }
 0x51f   : > { %v764_v12 = vpop.f32.mrf.mxu0 }
 0x521   : > { %v1019_v13 = vpop.f32.mrf.mxu0 }
 0x523   : > { %v767_v14 = vpop.f32.mrf.mxu0 }
 0x524   : > { %v1063_v15 = vpack.i.bf16 %v767_v14, %v764_v12 }
 0x525   : > { %v1020_v16 = vpop.f32.mrf.mxu0 }
 0x526   : > { %1064 = vrot.lane.b32.xlu1 %v1063_v15, %s1134_s5 }
 0x55d   : > { %v1055_v17 = vpop.permute.xlu1 %1054 }
 0x55e   : > { %v1057_v19 = vunpack.i.h.bf16 %v1055_v17  ;;  %v1056_v20 = vunpack.i.l.bf16 %v1055_v17 }
 0x560   : > { %v796_v25 = vsel %vm268_vm1, %v1235_v43, %v1057_v19  ;;  %v795_v26 = vsel %vm268_vm1, %v1233_v41, %v1056_v20 }
 0x565   : > { %v1060_v18 = vpop.permute.xlu0 %1059 }
 0x566   : > { %v1062_v21 = vunpack.i.h.bf16 %v1060_v18  ;;  %v1061_v22 = vunpack.i.l.bf16 %v1060_v18 }
 0x568   : > { %v799_v29 = vsel %vm797_vm4, %v796_v25, %v1062_v21  ;;  %v798_v30 = vsel %vm797_vm4, %v795_v26, %v1061_v22 }
 0x598   : > { %v1065_v24 = vpop.permute.xlu1 %1064 }
 0x599   : > { %v1067_v27 = vunpack.i.h.bf16 %v1065_v24  ;;  %v1066_v28 = vunpack.i.l.bf16 %v1065_v24 }
 0x59b   : > { %v802_v31 = vsel %vm800_vm5, %v799_v29, %v1067_v27  ;;  %v801_v32 = vsel %vm800_vm5, %v798_v30, %v1066_v28 }
 0x59c   : > { %v956_v33 = vpack.c.bf16 %v802_v31, %v802_v31  ;;  %v955_v34 = vpack.c.bf16 %v801_v32, %v801_v32 }
 0x59e   : > { %813 = vst.msk [vmem:[%s257_s8 + $0x4] sm:$0xf] %vm811_vm6, %v956_v33  ;;  %812 = vst.msk [vmem:[%s257_s8] sm:$0xf] %vm811_vm6, %v955_v34 }
 0x59f PF: > { %s13_s14 = sadd.s32 1, %s1125_s14   ;;  %s1288_s12 = smov %s1121_s13 }
 0x5a0   : > { %p10_p5 = scmp.ge.s32.totalorder %s13_s14, 4   ;;  %s1289_s13 = smov %s1291_s15 }
 0x5a2   :  { %12 = sbr.rel (!%p10_p5) target bundleno = 2 (0x2), region = 68 }

// kernel: dcf_sam_forward.77
= control target key start
LH: loop header
LB: loop body
LE: loop exit
PB: predicated region body
PF: predicated region fallthrough
CT: control target
= control target key end

     0   :  { %s673_s21 = smov 0   ;;  %s675_s22 = smov 0   ;;  %s745_s0 = inlined_call_operand.vmem [shape: bf16[2,16,32], index: 0, kind: input, shape index: {}]   ;;  %s746_s1 = inlined_call_operand.vmem [shape: f32[2,16,32], index: 1, kind: input, shape index: {}]   ;;  %s747_s2 = inlined_call_operand.vmem [shape: f32[32,32], index: 2, kind: input, shape index: {}]   ;;  %s748_s3 = inlined_call_operand.vmem [shape: f32[1,32], index: 3, kind: input, shape index: {}]   ;;  %s749_s4 = inlined_call_operand.vmem [shape: f32[1,32], index: 4, kind: input, shape index: {}]   ;;  %s750_s5 = inlined_call_operand.vmem [shape: f32[1,32], index: 5, kind: input, shape index: {}]   ;;  %s751_s6 = inlined_call_operand.vmem [shape: f32[2,16,32], index: 6, kind: output, shape index: {}]  }
   0x1   :  { %s677_s23 = smov 0  }
   0x2 LB: > { %s28_s24 = sadd.s32 1, %s630_s22  ;;  %p553_p0 = scmp.ge.s32.totalorder %s634_s23, 1  ;;  %s634_s23 = sphi %s677_s23, %s16_s23   ;;  %s630_s22 = sphi %s675_s22, %s753_s22   ;;  %s626_s21 = sphi %s673_s21, %s752_s21  }
   0x3   : > { %p30_p1 = scmp.ge.s32.totalorder %s28_s24, 2  ;;  %p250_p2 = scmp.lt.s32.totalorder %s634_s23, 3 }
   0x5   : > { %s755_s24 = smov (%p30_p1, %s28_s24), 0  ;;  %p251_p3 = pnand %p553_p0, %p250_p2 }
   0x6   : > { %p298_p4 = scmp.lt.s32.totalorder (!%p251_p3), %s626_s21, 1 }
   0x7   : > { %254 = sbr.rel (%p251_p3) target bundleno = 532 (0x214), region = 44 }
   0xc   : > { %v332_v0 = vld [vmem:[%s747_s2 + $0x10] sm:$0xff]  ;;  %v333_v1 = vld [vmem:[%s747_s2 + $0x18] sm:$0xff]  ;;  %v330_v2 = vld [vmem:[%s747_s2] sm:$0xff]  ;;  %v636_v3 = vmov 0.0   ;;  %vm637_vm0 = vmmov 0   ;;  %s757_s21 = smov (!%p298_p4, %s626_s21), 1 }
   0xd   : > { %573 = vmatprep.subr.bf16.mxu0 %v636_v3  ;;  %v335_v4 = vpack.c.bf16 %v333_v1, %v332_v0  ;;  %v331_v5 = vld [vmem:[%s747_s2 + $0x8] sm:$0xff]  ;;  %577 = vmatprep.mubr.msk.bf16.mxu0 %vm637_vm0, %v636_v3  ;;  %s567_s9 = sshll.u32 %s757_s21, 3  ;;  %vm348_vm1 = vcmask 261120   ;;  %s568_s13 = sshll.u32 %s757_s21, 4  ;;  %v560_v8 = vld [vmem:[%s748_s3] ss:$0 sm:$0xff] }
   0xe   : > { %v334_v6 = vpack.c.bf16 %v331_v5, %v330_v2  ;;  %s305_s12 = scalar_lea.vmem %s745_s0, %s567_s9  ;;  %s315_s16 = scalar_lea.vmem %s746_s1, %s568_s13  ;;  %v563_v38 = vld [vmem:[%s749_s4] ss:$0 sm:$0xff] }
   0xf   : > { %574 = vmatpush3.bf16.msra.mxu0 %v335_v4  ;;  %v607_v7 = vld [vmem:[%s305_s12] sm:$0xff]   ;;  %v394_v15 = vld [vmem:[%s315_s16 + $0x8] sm:$0xff]  ;;  %s325_s29 = scalar_lea.vmem %s751_s6, %s568_s13 }
  0x10   : > { %575 = vmatprep.subr.bf16.mxu0 %v636_v3  ;;  %v393_v10 = vld [vmem:[%s315_s16] sm:$0xff] }
  0x11   : > { %v564_v40 = vld [vmem:[%s750_s5] ss:$0 sm:$0xff] }
  0x13   : > { %576 = vmatpush3.bf16.msra.mxu0 %v334_v6 }
  0x16   : > { %578 = vmatmul.mubr.msk.bf16.vlgmr.msra.gmra.mxu0 %vm348_vm1, %v607_v7 }
  0xd6   : > { %v386_v9 = vpop.f32.mrf.mxu0 }
  0xd7   : > { %v387_v11 = vadd.f32 %v560_v8, %v386_v9 }
  0xd8   : > { %v579_v12 = vpop.f32.mrf.mxu0 }
  0xd9   : > { %v395_v13 = vadd.f32 %v393_v10, %v387_v11 }
  0xda   : > { %v389_v14 = vpop.f32.mrf.mxu0 }
  0xdb   : > { %v390_v16 = vadd.f32 %v560_v8, %v389_v14  ;;  %v397_v17 = vsel %vm348_vm1, %v395_v13, 0.0 }
  0xdc   : > { %398 = vadd.xlane.f32.xlu0 %v397_v17  ;;  %v580_v18 = vpop.f32.mrf.mxu0 }
  0xdd   : > { %v396_v19 = vadd.f32 %v394_v15, %v390_v16 }
  0xdf   : > { %v400_v20 = vsel %vm348_vm1, %v396_v19, 0.0 }
  0xe0   : > { %401 = vadd.xlane.f32.xlu0 %v400_v20 }
 0x165   : > { %v399_v21 = vpop.xlane.xlu0 %398 }
 0x166   : > { %v404_v22 = vmul.f32 0.03125, %v399_v21 }
 0x168   : > { %v406_v23 = vsub.f32 %v395_v13, %v404_v22 }
 0x169   : > { %v402_v24 = vpop.xlane.xlu0 %401 }
 0x16a   : > { %v405_v25 = vmul.f32 0.03125, %v402_v24  ;;  %v408_v26 = vmul.f32 %v406_v23, %v406_v23 }
 0x16c   : > { %v407_v27 = vsub.f32 %v396_v19, %v405_v25  ;;  %v410_v28 = vsel %vm348_vm1, %v408_v26, 0.0 }
 0x16d   : > { %411 = vadd.xlane.f32.xlu1 %v410_v28 }
 0x16e   : > { %v409_v29 = vmul.f32 %v407_v27, %v407_v27 }
 0x170   : > { %v413_v30 = vsel %vm348_vm1, %v409_v29, 0.0 }
 0x171   : > { %414 = vadd.xlane.f32.xlu1 %v413_v30 }
 0x1f6   : > { %v412_v31 = vpop.xlane.xlu1 %411 }
 0x1f7   : > { %v416_v32 = vmul.f32 0.03125, %v412_v31 }
 0x1f9   : > { %v418_v33 = vadd.f32 1e-06, %v416_v32 }
 0x1fa   : > { %v415_v34 = vpop.xlane.xlu1 %414 }
 0x1fb   : > { %608 = vrsqrt.f32 %v418_v33  ;;  %v417_v35 = vmul.f32 0.03125, %v415_v34 }
 0x1fd   : > { %v419_v36 = vadd.f32 1e-06, %v417_v35 }
 0x1ff   : > { %610 = vrsqrt.f32 %v419_v36 }
 0x208   : > { %v609_v37 = vpop.eup %608 }
 0x209   : > { %v422_v39 = vmul.f32 %v609_v37, %v406_v23 }
 0x20b   : > { %v431_v41 = vmul.f32 %v563_v38, %v422_v39 }
 0x20c   : > { %v611_v42 = vpop.eup %610 }
 0x20d   : > { %v440_v43 = vadd.f32 %v564_v40, %v431_v41  ;;  %v423_v44 = vmul.f32 %v611_v42, %v407_v27 }
 0x20f   : > { %442 = vst.msk [vmem:[%s325_s29] sm:$0xff] %vm348_vm1, %v440_v43  ;;  %v432_v45 = vmul.f32 %v563_v38, %v423_v44 }
 0x211   : > { %v441_v46 = vadd.f32 %v564_v40, %v432_v45 }
 0x213   : > { %443 = vst.msk [vmem:[%s325_s29 + $0x8] sm:$0xff] %vm348_vm1, %v441_v46 }
 0x214 PF: > { %s16_s23 = sadd.s32 1, %s634_s23   ;;  %s752_s21 = smov %s630_s22 }
 0x215   : > { %p13_p5 = scmp.ge.s32.totalorder %s16_s23, 4   ;;  %s753_s22 = smov %s755_s24 }
 0x217   :  { %15 = sbr.rel (!%p13_p5) target bundleno = 2 (0x2), region = 77 }

// kernel: dcf_sam_forward.78
= control target key start
LH: loop header
LB: loop body
LE: loop exit
PB: predicated region body
PF: predicated region fallthrough
CT: control target
= control target key end

     0   :  { %s736_s24 = smov 0   ;;  %s738_s25 = smov 0   ;;  %s810_s0 = inlined_call_operand.vmem [shape: f32[2,6,32], index: 0, kind: input, shape index: {}]   ;;  %s811_s1 = inlined_call_operand.vmem [shape: f32[2,6,32], index: 1, kind: input, shape index: {}]   ;;  %s812_s2 = inlined_call_operand.vmem [shape: f32[32,64], index: 2, kind: input, shape index: {}]   ;;  %s813_s3 = inlined_call_operand.vmem [shape: f32[1,64], index: 3, kind: input, shape index: {}]   ;;  %s814_s4 = inlined_call_operand.vmem [shape: f32[32,32], index: 4, kind: input, shape index: {}]   ;;  %s815_s5 = inlined_call_operand.vmem [shape: f32[1,32], index: 5, kind: input, shape index: {}]   ;;  %s816_s6 = inlined_call_operand.vmem [shape: bf16[2,6,64], index: 6, kind: output, shape index: {0}]   ;;  %s817_s7 = inlined_call_operand.vmem [shape: bf16[2,6,32], index: 7, kind: output, shape index: {1}]  }
   0x1   :  { %s740_s26 = smov 0  }
   0x2 LB: > { %s30_s27 = sadd.s32 1, %s688_s25  ;;  %p611_p0 = scmp.ge.s32.totalorder %s692_s26, 1  ;;  %s692_s26 = sphi %s740_s26, %s18_s26   ;;  %s688_s25 = sphi %s738_s25, %s819_s25   ;;  %s684_s24 = sphi %s736_s24, %s818_s24  }
   0x3   : > { %p32_p1 = scmp.ge.s32.totalorder %s30_s27, 2  ;;  %p274_p2 = scmp.lt.s32.totalorder %s692_s26, 3 }
   0x5   : > { %s821_s27 = smov (%p32_p1, %s30_s27), 0  ;;  %p275_p3 = pnand %p611_p0, %p274_p2 }
   0x6   : > { %p324_p4 = scmp.lt.s32.totalorder (!%p275_p3), %s684_s24, 1 }
   0x7   : > { %278 = sbr.rel (%p275_p3) target bundleno = 222 (0xde), region = 44 }
   0xc   : > { %v420_v0 = vld [vmem:[%s814_s4 + $0x10] sm:$0xff]  ;;  %v421_v1 = vld [vmem:[%s814_s4 + $0x18] sm:$0xff]  ;;  %v694_v3 = vmov 0.0   ;;  %v418_v6 = vld [vmem:[%s814_s4] sm:$0xff]  ;;  %vm695_vm0 = vmmov 0   ;;  %s823_s24 = smov (!%p324_p4, %s684_s24), 1 }
   0xd   : > { %v359_v2 = vld [vmem:[%s812_s2 + $0x10] sm:$0xff]  ;;  %636 = vmatprep.subr.bf16.mxu1 %v694_v3  ;;  %628 = vmatprep.subr.bf16.mxu0 %v694_v3  ;;  %v423_v4 = vpack.c.bf16 %v421_v1, %v420_v0  ;;  %v360_v5 = vld [vmem:[%s812_s2 + $0x18] sm:$0xff]  ;;  %v419_v7 = vld [vmem:[%s814_s4 + $0x8] sm:$0xff]  ;;  %s612_s21 = sshll.u32 %s823_s24, 3  ;;  %vm370_vm1 = vcmask 261120   ;;  %s614_s11 = sshll.u32 %s823_s24, 2 }
   0xe   : > { %v362_v8 = vpack.c.bf16 %v360_v5, %v359_v2  ;;  %v357_v9 = vld [vmem:[%s812_s2] sm:$0xff]  ;;  %v358_v10 = vld [vmem:[%s812_s2 + $0x8] sm:$0xff]  ;;  %640 = vmatprep.mubr.msk.bf16.mxu1 %vm695_vm0, %v694_v3  ;;  %632 = vmatprep.mubr.msk.bf16.mxu0 %vm695_vm0, %v694_v3  ;;  %v422_v11 = vpack.c.bf16 %v419_v7, %v418_v6  ;;  %s330_s28 = scalar_lea.vmem %s810_s0, %s612_s21  ;;  %s337_s8 = scalar_lea.vmem %s811_s1, %s612_s21  ;;  %vm475_vm2 = vcmask 256000   ;;  %vm415_vm3 = vcmask 518144  }
   0xf   : > { %637 = vmatpush3.bf16.msra.mxu1 %v423_v4  ;;  %v361_v12 = vpack.c.bf16 %v358_v10, %v357_v9  ;;  %v353_v13 = vld [vmem:[%s330_s28] sm:$0x3f]  ;;  %s351_s16 = scalar_lea.vmem %s817_s7, %s614_s11  ;;  %s344_s19 = scalar_lea.vmem %s816_s6, %s614_s11 }
  0x10   : > { %629 = vmatpush3.bf16.msra.mxu0 %v362_v8  ;;  %638 = vmatprep.subr.bf16.mxu1 %v694_v3  ;;  %v354_v14 = vld [vmem:[%s337_s8] sm:$0x3f]  ;;  %v417_v15 = vpack.c.bf16 %v353_v13, %v353_v13 }
  0x11   : > { %630 = vmatprep.subr.bf16.mxu0 %v694_v3  ;;  %v355_v16 = vadd.f32 %v354_v14, %v353_v13  ;;  %v618_v18 = vld [vmem:[%s815_s5] ss:$0 sm:$0xff] }
  0x12   : > { %v616_v19 = vld [vmem:[%s813_s3] ss:$0 sm:$0xff] }
  0x13   : > { %639 = vmatpush3.bf16.msra.mxu1 %v422_v11  ;;  %v356_v17 = vpack.c.bf16 %v355_v16, %v355_v16 }
  0x14   : > { %631 = vmatpush3.bf16.msra.mxu0 %v361_v12 }
  0x16   : > { %641 = vmatmul.mubr.msk.bf16.vlgmr.msra.gmra.mxu1 %vm370_vm1, %v417_v15 }
  0x17   : > { %633 = vmatmul.mubr.msk.bf16.vlgmr.msra.gmra.mxu0 %vm370_vm1, %v356_v17 }
  0xd6   : > { %v468_v20 = vpop.f32.mrf.mxu1 }
  0xd7   : > { %v469_v21 = vadd.f32 %v618_v18, %v468_v20  ;;  %v408_v22 = vpop.f32.mrf.mxu0 }
  0xd8   : > { %v409_v23 = vadd.f32 %v616_v19, %v408_v22  ;;  %v642_v24 = vpop.f32.mrf.mxu1 }
  0xd9   : > { %v474_v25 = vpack.c.bf16 %v469_v21, %v469_v21  ;;  %v634_v26 = vpop.f32.mrf.mxu0 }
  0xda   : > { %v414_v27 = vpack.c.bf16 %v409_v23, %v409_v23  ;;  %v471_v28 = vpop.f32.mrf.mxu1 }
  0xdb   : > { %476 = vst.msk [vmem:[%s351_s16] sm:$0x7] %vm475_vm2, %v474_v25  ;;  %v411_v29 = vpop.f32.mrf.mxu0 }
  0xdc   : > { %416 = vst.msk [vmem:[%s344_s19] sm:$0x7] %vm415_vm3, %v414_v27  ;;  %v643_v30 = vpop.f32.mrf.mxu1 }
  0xdd   : > { %v635_v31 = vpop.f32.mrf.mxu0 }
  0xde PF: > { %s18_s26 = sadd.s32 1, %s692_s26   ;;  %s818_s24 = smov %s688_s25 }
  0xdf   : > { %p15_p5 = scmp.ge.s32.totalorder %s18_s26, 4   ;;  %s819_s25 = smov %s821_s27 }
  0xe1   :  { %17 = sbr.rel (!%p15_p5) target bundleno = 2 (0x2), region = 89 }

// kernel: dcf_sam_forward.94
= control target key start
LH: loop header
LB: loop body
LE: loop exit
PB: predicated region body
PF: predicated region fallthrough
CT: control target
= control target key end

     0   :  { %vm34_vm0 = vcmask 261120   ;;  %vm106_vm1 = vcmask 257024   ;;  %s197_s1 = inlined_call_operand.vmem [shape: f32[32,32], index: 1, kind: input, shape index: {}]   ;;  %s198_s0 = inlined_call_operand.vmem [shape: f32[32,32], index: 0, kind: input, shape index: {}]   ;;  %s199_s2 = inlined_call_operand.vmem [shape: f32[1,32], index: 2, kind: input, shape index: {}]   ;;  %s200_s3 = inlined_call_operand.vmem [shape: bf16[32,32], index: 3, kind: output, shape index: {}]  }
   0x1   :  { %v23_v0 = vld [vmem:[%s197_s1 + $0x10] sm:$0xff]  ;;  %v24_v1 = vld [vmem:[%s197_s1 + $0x18] sm:$0xff]  ;;  %v21_v2 = vld [vmem:[%s197_s1] sm:$0xff] }
   0x2   :  { %v26_v3 = vpack.c.bf16 %v24_v1, %v23_v0  ;;  %v22_v4 = vld [vmem:[%s197_s1 + $0x8] sm:$0xff]  ;;  %v15_v5 = vld [vmem:[%s198_s0] sm:$0xff]  ;;  %v17_v9 = vld [vmem:[%s198_s0 + $0x10] sm:$0xff] }
   0x3   :  { %v16_v6 = vld [vmem:[%s198_s0 + $0x8] sm:$0xff]  ;;  %v25_v7 = vpack.c.bf16 %v22_v4, %v21_v2  ;;  %v18_v10 = vld [vmem:[%s198_s0 + $0x18] sm:$0xff]  ;;  %v115_v12 = vld [vmem:[%s199_s2] ss:$0 sm:$0xff] }
   0x4   :  { %v19_v8 = vpack.c.bf16 %v16_v6, %v15_v5  ;;  %130 = vmatprep.subr.bf16.mxu0 %v26_v3  ;;  %v20_v11 = vpack.c.bf16 %v18_v10, %v17_v9 }
   0x5   :  { %131 = vmatpush3.bf16.msra.mxu0 %v26_v3 }
   0x6   :  { %134 = vmatprep.mubr.msk.bf16.mxu0 %vm34_vm0, %v19_v8  ;;  %132 = vmatprep.subr.bf16.mxu0 %v25_v7 }
   0x9   :  { %133 = vmatpush3.bf16.msra.mxu0 %v25_v7 }
   0xc   :  { %135 = vmatmul.mubr.msk.bf16.vlgmr.msra.gmra.mxu0 %vm34_vm0, %v20_v11 }
  0xcc   :  { %v136_v13 = vpop.f32.mrf.mxu0 }
  0xcd   :  { %v84_v14 = vadd.f32 %v136_v13, %v115_v12 }
  0xce   :  { %v75_v15 = vpop.f32.mrf.mxu0 }
  0xcf   :  { %v124_v16 = vpack.c.bf16 %v84_v14, %v84_v14  ;;  %v76_v17 = vadd.f32 %v115_v12, %v75_v15 }
  0xd0   :  { %v137_v18 = vpop.f32.mrf.mxu0 }
  0xd1   :  { %109 = vst.msk [vmem:[%s200_s3 + $0x8] sm:$0xf] %vm106_vm1, %v124_v16  ;;  %v122_v19 = vpack.c.bf16 %v76_v17, %v76_v17  ;;  %v87_v20 = vadd.f32 %v137_v18, %v115_v12 }
  0xd2   :  { %v78_v21 = vpop.f32.mrf.mxu0 }
  0xd3   :  { %107 = vst.msk [vmem:[%s200_s3] sm:$0xf] %vm106_vm1, %v122_v19  ;;  %v125_v22 = vpack.c.bf16 %v87_v20, %v87_v20  ;;  %v79_v23 = vadd.f32 %v115_v12, %v78_v21 }
  0xd5   :  { %110 = vst.msk [vmem:[%s200_s3 + $0xc] sm:$0xf] %vm106_vm1, %v125_v22  ;;  %v123_v24 = vpack.c.bf16 %v79_v23, %v79_v23 }
  0xd7   :  { %108 = vst.msk [vmem:[%s200_s3 + $0x4] sm:$0xf] %vm106_vm1, %v123_v24 }

// kernel: dcf_sam_forward.99
= control target key start
LH: loop header
LB: loop body
LE: loop exit
PB: predicated region body
PF: predicated region fallthrough
CT: control target
= control target key end

     0   :  { %vm33_vm0 = vcmask 261120   ;;  %vm104_vm1 = vcmask 779264   ;;  %vm101_vm2 = vcmask 781312   ;;  %s184_s1 = inlined_call_operand.vmem [shape: f32[32,96], index: 1, kind: input, shape index: {}]   ;;  %s185_s0 = inlined_call_operand.vmem [shape: f32[20,32], index: 0, kind: input, shape index: {}]   ;;  %s186_s2 = inlined_call_operand.vmem [shape: f32[1,96], index: 2, kind: input, shape index: {}]   ;;  %s187_s3 = inlined_call_operand.vmem [shape: bf16[20,96], index: 3, kind: output, shape index: {}]  }
   0x1   :  { %v22_v0 = vld [vmem:[%s184_s1 + $0x10] sm:$0xff]  ;;  %v23_v1 = vld [vmem:[%s184_s1 + $0x18] sm:$0xff]  ;;  %v20_v2 = vld [vmem:[%s184_s1] sm:$0xff] }
   0x2   :  { %v25_v3 = vpack.c.bf16 %v23_v1, %v22_v0  ;;  %v21_v4 = vld [vmem:[%s184_s1 + $0x8] sm:$0xff]  ;;  %v15_v5 = vld [vmem:[%s185_s0] sm:$0xff]  ;;  %v17_v9 = vld [vmem:[%s185_s0 + $0x10] sm:$0xf] }
   0x3   :  { %v16_v6 = vld [vmem:[%s185_s0 + $0x8] sm:$0xff]  ;;  %v24_v7 = vpack.c.bf16 %v21_v4, %v20_v2  ;;  %v19_v10 = vpack.c.bf16 %v17_v9, %v17_v9  ;;  %v110_v11 = vld [vmem:[%s186_s2] ss:$0 sm:$0xff] }
   0x4   :  { %v18_v8 = vpack.c.bf16 %v16_v6, %v15_v5  ;;  %123 = vmatprep.subr.bf16.mxu0 %v25_v3 }
   0x5   :  { %124 = vmatpush3.bf16.msra.mxu0 %v25_v3 }
   0x6   :  { %127 = vmatprep.mubr.msk.bf16.mxu0 %vm33_vm0, %v18_v8  ;;  %125 = vmatprep.subr.bf16.mxu0 %v24_v7 }
   0x9   :  { %126 = vmatpush3.bf16.msra.mxu0 %v24_v7 }
   0xc   :  { %128 = vmatmul.mubr.msk.bf16.vlgmr.msra.gmra.mxu0 %vm33_vm0, %v19_v10 }
  0xcc   :  { %v129_v12 = vpop.f32.mrf.mxu0 }
  0xcd   :  { %v83_v13 = vadd.f32 %v129_v12, %v110_v11 }
  0xce   :  { %v74_v14 = vpop.f32.mrf.mxu0 }
  0xcf   :  { %v118_v15 = vpack.c.bf16 %v83_v13, %v83_v13  ;;  %v75_v16 = vadd.f32 %v110_v11, %v74_v14 }
  0xd0   :  { %v130_v17 = vpop.f32.mrf.mxu0 }
  0xd1   :  { %105 = vst.msk [vmem:[%s187_s3 + $0x8] sm:$0x3] %vm104_vm1, %v118_v15  ;;  %v116_v18 = vpack.c.bf16 %v75_v16, %v75_v16 }
  0xd2   :  { %v77_v19 = vpop.f32.mrf.mxu0 }
  0xd3   :  { %102 = vst.msk [vmem:[%s187_s3] sm:$0xf] %vm101_vm2, %v116_v18  ;;  %v78_v20 = vadd.f32 %v110_v11, %v77_v19 }
  0xd5   :  { %v117_v21 = vpack.c.bf16 %v78_v20, %v78_v20 }
  0xd7   :  { %103 = vst.msk [vmem:[%s187_s3 + $0x4] sm:$0xf] %vm101_vm2, %v117_v21 }

// kernel: dcf_sam_forward.102
= control target key start
LH: loop header
LB: loop body
LE: loop exit
PB: predicated region body
PF: predicated region fallthrough
CT: control target
= control target key end

     0   :  { %s566_s15 = smov 0   ;;  %s568_s16 = smov 0   ;;  %s617_s0 = inlined_call_operand.vmem [shape: f32[2,10,32], index: 0, kind: input, shape index: {}]   ;;  %s618_s1 = inlined_call_operand.vmem [shape: f32[2,10,32], index: 1, kind: input, shape index: {}]   ;;  %s619_s2 = inlined_call_operand.vmem [shape: f32[32,32], index: 2, kind: input, shape index: {}]   ;;  %s620_s3 = inlined_call_operand.vmem [shape: f32[1,32], index: 3, kind: input, shape index: {}]   ;;  %s621_s4 = inlined_call_operand.vmem [shape: bf16[2,10,32], index: 4, kind: output, shape index: {}]  }
   0x1   :  { %s570_s17 = smov 0  }
   0x2 LB: > { %s26_s18 = sadd.s32 1, %s533_s16  ;;  %p460_p0 = scmp.ge.s32.totalorder %s537_s17, 1  ;;  %s537_s17 = sphi %s570_s17, %s14_s17   ;;  %s533_s16 = sphi %s568_s16, %s623_s16   ;;  %s529_s15 = sphi %s566_s15, %s622_s15  }
   0x3   : > { %p28_p1 = scmp.ge.s32.totalorder %s26_s18, 2  ;;  %p200_p2 = scmp.lt.s32.totalorder %s537_s17, 3 }
   0x5   : > { %s625_s18 = smov (%p28_p1, %s26_s18), 0  ;;  %p201_p3 = pnand %p460_p0, %p200_p2 }
   0x6   : > { %p244_p4 = scmp.lt.s32.totalorder (!%p201_p3), %s529_s15, 1 }
   0x7   : > { %204 = sbr.rel (%p201_p3) target bundleno = 224 (0xe0), region = 36 }
   0xc   : > { %v283_v0 = vld [vmem:[%s619_s2 + $0x10] sm:$0xff]  ;;  %v284_v1 = vld [vmem:[%s619_s2 + $0x18] sm:$0xff]  ;;  %v281_v2 = vld [vmem:[%s619_s2] sm:$0xff]  ;;  %v539_v3 = vmov 0.0   ;;  %vm540_vm0 = vmmov 0   ;;  %s627_s15 = smov (!%p244_p4, %s529_s15), 1 }
   0xd   : > { %481 = vmatprep.subr.bf16.mxu0 %v539_v3  ;;  %v286_v4 = vpack.c.bf16 %v284_v1, %v283_v0  ;;  %v282_v5 = vld [vmem:[%s619_s2 + $0x8] sm:$0xff]  ;;  %485 = vmatprep.mubr.msk.bf16.mxu0 %vm540_vm0, %v539_v3  ;;  %s473_s27 = sshll.u32 %s627_s15, 4  ;;  %vm294_vm1 = vcmask 261120   ;;  %v467_v14 = vld [vmem:[%s620_s3] ss:$0 sm:$0xff]  ;;  %s475_s10 = sshll.u32 %s627_s15, 3 }
   0xe   : > { %v285_v6 = vpack.c.bf16 %v282_v5, %v281_v2  ;;  %s251_s30 = scalar_lea.vmem %s617_s0, %s473_s27  ;;  %s261_s7 = scalar_lea.vmem %s618_s1, %s473_s27  ;;  %vm347_vm2 = vcmask 257024   ;;  %vm349_vm3 = vcmask 253952  }
   0xf   : > { %482 = vmatpush3.bf16.msra.mxu0 %v286_v4  ;;  %v274_v7 = vld [vmem:[%s251_s30] sm:$0xff]  ;;  %v275_v8 = vld [vmem:[%s251_s30 + $0x8] sm:$0x3]  ;;  %s271_s13 = scalar_lea.vmem %s621_s4, %s475_s10 }
  0x10   : > { %483 = vmatprep.subr.bf16.mxu0 %v539_v3  ;;  %v276_v9 = vld [vmem:[%s261_s7] sm:$0xff]  ;;  %v277_v10 = vld [vmem:[%s261_s7 + $0x8] sm:$0x3] }
  0x11   : > { %v278_v11 = vadd.f32 %v276_v9, %v274_v7  ;;  %v279_v12 = vadd.f32 %v277_v10, %v275_v8 }
  0x13   : > { %484 = vmatpush3.bf16.msra.mxu0 %v285_v6  ;;  %v280_v13 = vpack.c.bf16 %v279_v12, %v278_v11 }
  0x16   : > { %486 = vmatmul.mubr.msk.bf16.vlgmr.msra.gmra.mxu0 %vm294_vm1, %v280_v13 }
  0xd6   : > { %v332_v15 = vpop.f32.mrf.mxu0 }
  0xd7   : > { %v333_v16 = vadd.f32 %v467_v14, %v332_v15 }
  0xd8   : > { %v487_v17 = vpop.f32.mrf.mxu0 }
  0xd9   : > { %v476_v18 = vpack.c.bf16 %v333_v16, %v333_v16 }
  0xda   : > { %v335_v19 = vpop.f32.mrf.mxu0 }
  0xdb   : > { %348 = vst.msk [vmem:[%s271_s13] sm:$0xf] %vm347_vm2, %v476_v18  ;;  %v336_v20 = vadd.f32 %v467_v14, %v335_v19 }
  0xdc   : > { %v488_v21 = vpop.f32.mrf.mxu0 }
  0xdd   : > { %v477_v22 = vpack.c.bf16 %v336_v20, %v336_v20 }
  0xdf   : > { %350 = vst.msk [vmem:[%s271_s13 + $0x4] sm:$0x1] %vm349_vm3, %v477_v22 }
  0xe0 PF: > { %s14_s17 = sadd.s32 1, %s537_s17   ;;  %s622_s15 = smov %s533_s16 }
  0xe1   : > { %p11_p5 = scmp.ge.s32.totalorder %s14_s17, 4   ;;  %s623_s16 = smov %s625_s18 }
  0xe3   :  { %13 = sbr.rel (!%p11_p5) target bundleno = 2 (0x2), region = 69 }

// kernel: dcf_sam_forward.100
= control target key start
LH: loop header
LB: loop body
LE: loop exit
PB: predicated region body
PF: predicated region fallthrough
CT: control target
= control target key end

     0   :  { %s1179_s12 = smov 0   ;;  %s1181_s13 = smov 0   ;;  %s1303_s0 = inlined_call_operand.vmem [shape: bf16[2,10,32], index: 0, kind: input, shape index: {}]   ;;  %s1304_s1 = inlined_call_operand.vmem [shape: bf16[2,10,32], index: 1, kind: input, shape index: {}]   ;;  %s1305_s2 = inlined_call_operand.vmem [shape: bf16[2,10,32], index: 2, kind: input, shape index: {}]   ;;  %s1306_s3 = inlined_call_operand.vmem [shape: bf16[2,10,32], index: 3, kind: output, shape index: {}]  }
   0x1   :  { %s1183_s14 = smov 0  }
   0x2 LB: > { %s25_s15 = sadd.s32 1, %s1145_s13  ;;  %p951_p0 = scmp.ge.s32.totalorder %s1149_s14, 1  ;;  %s1149_s14 = sphi %s1183_s14, %s13_s14   ;;  %s1145_s13 = sphi %s1181_s13, %s1308_s13   ;;  %s1141_s12 = sphi %s1179_s12, %s1307_s12  }
   0x3   : > { %p27_p1 = scmp.ge.s32.totalorder %s25_s15, 2  ;;  %p186_p2 = scmp.lt.s32.totalorder %s1149_s14, 3 }
   0x5   : > { %s1310_s15 = smov (%p27_p1, %s25_s15), 0  ;;  %p187_p3 = pnand %p951_p0, %p186_p2 }
   0x6   : > { %p232_p4 = scmp.lt.s32.totalorder (!%p187_p3), %s1141_s12, 1  ;;  %s1153_s23 = smov (!%p187_p3), 120  }
   0x7   : > { %190 = sbr.rel (%p187_p3) target bundleno = 1440 (0x5a0), region = 32  ;;  %s1154_s24 = smov (!%p187_p3), 104  }
   0x8   : > { %s1155_s28 = smov (!%p187_p3), 112   ;;  %s1156_s29 = smov (!%p187_p3), 8  }
   0x9   : > { %s1157_s30 = smov (!%p187_p3), 16   ;;  %s1158_s4 = smov (!%p187_p3), 24  }
   0xc   : > { %v1151_v0 = vmov 0.0   ;;  %vm1152_vm0 = vmmov 0   ;;  %s1312_s12 = smov (!%p232_p4, %s1141_s12), 1  ;;  %vm281_vm1 = vcmask 64512   ;;  %vm331_vm2 = vcmask 80896  }
   0xd   : > { %997 = vmatprep.subr.bf16.mxu0 %v1151_v0  ;;  %999 = vmatprep.mubr.msk.bf16.mxu0 %vm1152_vm0, %v1151_v0  ;;  %s1203_s16 = sshll.u32 %s1312_s12, 3  ;;  %vm335_vm3 = vcmask 74752   ;;  %vm364_vm4 = vcmask 1044480   ;;  %vm810_vm5 = vcmask 130048   ;;  %vm813_vm6 = vcmask 195584  }
   0xe   : > { %1003 = vmatprep.subr.bf16.mxu1 %v1151_v0  ;;  %1005 = vmatprep.mubr.msk.bf16.mxu1 %vm1152_vm0, %v1151_v0  ;;  %s247_s19 = scalar_lea.vmem %s1304_s1, %s1203_s16  ;;  %s239_s22 = scalar_lea.vmem %s1303_s0, %s1203_s16  ;;  %vm824_vm7 = vcmask 257024   ;;  %vm826_vm8 = vcmask 253952  }
   0xf   : > { %v1092_v1 = vld [vmem:[%s247_s19] sm:$0x1f]   ;;  %s255_s27 = scalar_lea.vmem %s1305_s2, %s1203_s16  ;;  %s263_s7 = scalar_lea.vmem %s1306_s3, %s1203_s16 }
  0x10   : > { %v286_v2 = vsel %vm281_vm1, %v1092_v1, 0  ;;  %v1093_v3 = vld [vmem:[%s239_s22] sm:$0x1f]  }
  0x11   : > { %998 = vmatpush3.bf16.xpose.msra.mxu0 %v286_v2  ;;  %v1228_v22 = vld [vmem:[%s255_s27] sm:$0x1f]  }
  0x12   : > { %1015 = vmatprep.subr.bf16.mxu0 %v1151_v0  ;;  %v366_v23 = vsel %vm364_vm4, %v1228_v22, 0 }
  0x13   : > { %1004 = vmatpush3.bf16.msra.mxu1 %v366_v23 }
  0x14   : > { %1009 = vmatprep.subr.bf16.mxu1 %v1151_v0 }
  0x18   : > { %1000 = vmatmul.mubr.msk.bf16.vlgmr.msra.gmra.mxu0 %vm281_vm1, %v1093_v3 }
  0x19   : > { %1017 = vmatprep.mubr.msk.bf16.mxu0 %vm1152_vm0, %v1151_v0 }
  0xd8   : > { %v322_v4 = vpop.f32.mrf.mxu0 }
  0xd9   : > { %v329_v5 = vmul.f32 0.35355338, %v322_v4 }
  0xda   : > { %v1001_v6 = vpop.f32.mrf.mxu0 }
  0xdb   : > { %v332_v7 = vsel %vm331_vm2, %v329_v5, -inf }
  0xdc   : > { %333 = vmax.xlane.f32.xlu0 %v332_v7  ;;  %v325_v8 = vpop.f32.mrf.mxu0 }
  0xdd   : > { %v330_v9 = vmul.f32 0.35355338, %v325_v8 }
  0xde   : > { %v1002_v10 = vpop.f32.mrf.mxu0 }
  0xdf   : > { %v336_v11 = vsel %vm335_vm3, %v330_v9, -inf }
  0xe0   : > { %337 = vmax.xlane.f32.xlu0 %v336_v11 }
  0xf6   : > { %411 = vrot.lane.b32.xlu0 %v1092_v1, %s1153_s23 }
  0xfa   : > { %661 = vrot.lane.b32.xlu0 %v1092_v1, %s1154_s24 }
 0x165   : > { %v334_v12 = vpop.xlane.xlu0 %333 }
 0x166   : > { %v339_v13 = vsub.f32 %v329_v5, %v334_v12 }
 0x168   : > { %v341_v14 = vmul.f32 1.442695, %v339_v13 }
 0x169   : > { %v338_v15 = vpop.xlane.xlu0 %337 }
 0x16a   : > { %1095 = vpow2.f32 %v341_v14  ;;  %v340_v16 = vsub.f32 %v330_v9, %v338_v15 }
 0x16c   : > { %v343_v17 = vmul.f32 1.442695, %v340_v16 }
 0x16d   : > { %v412_v28 = vpop.permute.xlu0 %411 }
 0x16e   : > { %1097 = vpow2.f32 %v343_v17  ;;  %v417_v32 = vsel %vm281_vm1, %v412_v28, 0 }
 0x171   : > { %v662_v36 = vpop.permute.xlu0 %661 }
 0x172   : > { %v667_v38 = vsel %vm281_vm1, %v662_v36, 0 }
 0x177   : > { %v1096_v18 = vpop.eup %1095 }
 0x178   : > { %v345_v19 = vsel %vm331_vm2, %v1096_v18, 0.0 }
 0x179   : > { %346 = vadd.xlane.f32.xlu1 %v345_v19 }
 0x17b   : > { %v1098_v20 = vpop.eup %1097 }
 0x17c   : > { %v348_v21 = vsel %vm335_vm3, %v1098_v20, 0.0 }
 0x17d   : > { %349 = vadd.xlane.f32.xlu1 %v348_v21 }
 0x18e   : > { %409 = vrot.lane.b32.xlu1 %v1093_v3, %s1153_s23 }
 0x192   : > { %536 = vrot.lane.b32.xlu1 %v1092_v1, %s1155_s28 }
 0x196   : > { %534 = vrot.lane.b32.xlu1 %v1093_v3, %s1155_s28 }
 0x19a   : > { %659 = vrot.lane.b32.xlu1 %v1093_v3, %s1154_s24 }
 0x202   : > { %v347_v24 = vpop.xlane.xlu1 %346 }
 0x203   : > { %1099 = vrcp.f32 %v347_v24 }
 0x206   : > { %v350_v25 = vpop.xlane.xlu1 %349 }
 0x207   : > { %1101 = vrcp.f32 %v350_v25 }
 0x20a   : > { %v410_v31 = vpop.permute.xlu1 %409 }
 0x20e   : > { %v537_v34 = vpop.permute.xlu1 %536 }
 0x20f   : > { %v542_v35 = vsel %vm281_vm1, %v537_v34, 0 }
 0x210   : > { %v1100_v26 = vpop.eup %1099 }
 0x211   : > { %v353_v29 = vmul.f32 %v1100_v26, %v1096_v18 }
 0x212   : > { %v535_v37 = vpop.permute.xlu1 %534 }
 0x214   : > { %v1102_v27 = vpop.eup %1101 }
 0x215   : > { %v354_v30 = vmul.f32 %v1102_v27, %v1098_v20 }
 0x216   : > { %v660_v39 = vpop.permute.xlu1 %659 }
 0x217   : > { %v355_v33 = vpack.c.bf16 %v354_v30, %v353_v29 }
 0x219   : > { %1006 = vmatmul.mubr.msk.bf16.vlgmr.msra.gmra.mxu1 %vm331_vm2, %v355_v33 }
 0x21a   : > { %1010 = vmatpush3.bf16.xpose.msra.mxu1 %v417_v32  ;;  %1011 = vmatprep.mubr.msk.bf16.mxu1 %vm1152_vm0, %v1151_v0 }
 0x21b   : > { %1021 = vmatprep.subr.bf16.mxu1 %v1151_v0 }
 0x221   : > { %1012 = vmatmul.mubr.msk.bf16.vlgmr.msra.gmra.mxu1 %vm281_vm1, %v410_v31 }
 0x222   : > { %1022 = vmatpush3.bf16.xpose.msra.mxu1 %v542_v35  ;;  %1023 = vmatprep.mubr.msk.bf16.mxu1 %vm1152_vm0, %v1151_v0 }
 0x223   : > { %1033 = vmatprep.subr.bf16.mxu1 %v1151_v0 }
 0x229   : > { %1024 = vmatmul.mubr.msk.bf16.vlgmr.msra.gmra.mxu1 %vm281_vm1, %v535_v37 }
 0x22a   : > { %1034 = vmatpush3.bf16.xpose.msra.mxu1 %v667_v38  ;;  %1035 = vmatprep.mubr.msk.bf16.mxu1 %vm1152_vm0, %v1151_v0 }
 0x231   : > { %1036 = vmatmul.mubr.msk.bf16.vlgmr.msra.gmra.mxu1 %vm281_vm1, %v660_v39 }
 0x2d9   : > { %v1252_v40 = vpop.f32.mrf.mxu1 }
 0x2db   : > { %v1007_v41 = vpop.f32.mrf.mxu1 }
 0x2dd   : > { %v1254_v42 = vpop.f32.mrf.mxu1 }
 0x2df   : > { %v1008_v43 = vpop.f32.mrf.mxu1 }
 0x2e1   : > { %v453_v44 = vpop.f32.mrf.mxu1 }
 0x2e2   : > { %v460_v45 = vmul.f32 0.35355338, %v453_v44 }
 0x2e3   : > { %v1013_v46 = vpop.f32.mrf.mxu1 }
 0x2e4   : > { %v462_v47 = vsel %vm331_vm2, %v460_v45, -inf }
 0x2e5   : > { %463 = vmax.xlane.f32.xlu0 %v462_v47  ;;  %v456_v48 = vpop.f32.mrf.mxu1 }
 0x2e6   : > { %v461_v49 = vmul.f32 0.35355338, %v456_v48 }
 0x2e7   : > { %v1014_v50 = vpop.f32.mrf.mxu1 }
 0x2e8   : > { %v465_v51 = vsel %vm335_vm3, %v461_v49, -inf }
 0x2e9   : > { %466 = vmax.xlane.f32.xlu1 %v465_v51  ;;  %v578_v52 = vpop.f32.mrf.mxu1 }
 0x2ea   : > { %v585_v53 = vmul.f32 0.35355338, %v578_v52 }
 0x2eb   : > { %v1025_v54 = vpop.f32.mrf.mxu1 }
 0x2ec   : > { %v587_v55 = vsel %vm331_vm2, %v585_v53, -inf }
 0x2ed   : > { %588 = vmax.xlane.f32.xlu0 %v587_v55  ;;  %v581_v56 = vpop.f32.mrf.mxu1 }
 0x2ee   : > { %v586_v57 = vmul.f32 0.35355338, %v581_v56 }
 0x2ef   : > { %v1026_v58 = vpop.f32.mrf.mxu1 }
 0x2f0   : > { %v590_v59 = vsel %vm335_vm3, %v586_v57, -inf }
 0x2f1   : > { %591 = vmax.xlane.f32.xlu0 %v590_v59  ;;  %v703_v60 = vpop.f32.mrf.mxu1 }
 0x2f2   : > { %v710_v61 = vmul.f32 0.35355338, %v703_v60 }
 0x2f3   : > { %v1037_v62 = vpop.f32.mrf.mxu1 }
 0x2f4   : > { %v712_v63 = vsel %vm331_vm2, %v710_v61, -inf }
 0x2f5   : > { %713 = vmax.xlane.f32.xlu0 %v712_v63  ;;  %v706_v1 = vpop.f32.mrf.mxu1 }
 0x2f6   : > { %v711_v2 = vmul.f32 0.35355338, %v706_v1 }
 0x2f7   : > { %v1038_v3 = vpop.f32.mrf.mxu1 }
 0x2f8   : > { %v715_v4 = vsel %vm335_vm3, %v711_v2, -inf }
 0x2f9   : > { %716 = vmax.xlane.f32.xlu1 %v715_v4 }
 0x36e   : > { %v464_v5 = vpop.xlane.xlu0 %463 }
 0x36f   : > { %v468_v6 = vsub.f32 %v460_v45, %v464_v5 }
 0x371   : > { %v470_v7 = vmul.f32 1.442695, %v468_v6 }
 0x372   : > { %v467_v8 = vpop.xlane.xlu1 %466 }
 0x373   : > { %1103 = vpow2.f32 %v470_v7  ;;  %v469_v9 = vsub.f32 %v461_v49, %v467_v8 }
 0x375   : > { %v472_v10 = vmul.f32 1.442695, %v469_v9 }
 0x376   : > { %v589_v11 = vpop.xlane.xlu0 %588 }
 0x377   : > { %1105 = vpow2.f32 %v472_v10  ;;  %v593_v12 = vsub.f32 %v585_v53, %v589_v11 }
 0x379   : > { %v595_v13 = vmul.f32 1.442695, %v593_v12 }
 0x37a   : > { %v592_v14 = vpop.xlane.xlu0 %591 }
 0x37b   : > { %1107 = vpow2.f32 %v595_v13  ;;  %v594_v15 = vsub.f32 %v586_v57, %v592_v14 }
 0x37d   : > { %v597_v16 = vmul.f32 1.442695, %v594_v15 }
 0x37e   : > { %v714_v17 = vpop.xlane.xlu0 %713 }
 0x37f   : > { %1109 = vpow2.f32 %v597_v16  ;;  %v718_v18 = vsub.f32 %v710_v61, %v714_v17 }
 0x380   : > { %v1104_v19 = vpop.eup %1103 }
 0x381   : > { %v720_v20 = vmul.f32 1.442695, %v718_v18  ;;  %v474_v21 = vsel %vm331_vm2, %v1104_v19, 0.0 }
 0x382   : > { %475 = vadd.xlane.f32.xlu0 %v474_v21  ;;  %v717_v31 = vpop.xlane.xlu1 %716 }
 0x383   : > { %1111 = vpow2.f32 %v720_v20  ;;  %v719_v32 = vsub.f32 %v711_v2, %v717_v31 }
 0x384   : > { %v1106_v23 = vpop.eup %1105 }
 0x385   : > { %v477_v24 = vsel %vm335_vm3, %v1106_v23, 0.0  ;;  %v722_v33 = vmul.f32 1.442695, %v719_v32 }
 0x386   : > { %478 = vadd.xlane.f32.xlu1 %v477_v24 }
 0x387   : > { %1113 = vpow2.f32 %v722_v33 }
 0x388   : > { %v1108_v25 = vpop.eup %1107 }
 0x389   : > { %v599_v26 = vsel %vm331_vm2, %v1108_v25, 0.0 }
 0x38a   : > { %600 = vadd.xlane.f32.xlu0 %v599_v26 }
 0x38c   : > { %v1110_v27 = vpop.eup %1109 }
 0x38d   : > { %v602_v28 = vsel %vm335_vm3, %v1110_v27, 0.0 }
 0x38e   : > { %603 = vadd.xlane.f32.xlu1 %v602_v28 }
 0x390   : > { %v1112_v29 = vpop.eup %1111 }
 0x391   : > { %v724_v30 = vsel %vm331_vm2, %v1112_v29, 0.0 }
 0x392   : > { %725 = vadd.xlane.f32.xlu0 %v724_v30 }
 0x394   : > { %v1114_v34 = vpop.eup %1113 }
 0x395   : > { %v727_v35 = vsel %vm335_vm3, %v1114_v34, 0.0 }
 0x39f   : > { %610 = vrot.lane.b32.xlu1 %v1228_v22, %s1155_s28 }
 0x3a8   : > { %485 = vrot.lane.b32.xlu0 %v1228_v22, %s1153_s23 }
 0x3c3   : > { %728 = vadd.xlane.f32.xlu1 %v727_v35 }
 0x3d4   : > { %735 = vrot.lane.b32.xlu1 %v1228_v22, %s1154_s24 }
 0x40b   : > { %v476_v36 = vpop.xlane.xlu0 %475 }
 0x40c   : > { %1115 = vrcp.f32 %v476_v36 }
 0x40f   : > { %v479_v37 = vpop.xlane.xlu1 %478 }
 0x410   : > { %1117 = vrcp.f32 %v479_v37 }
 0x413   : > { %v601_v38 = vpop.xlane.xlu0 %600 }
 0x414   : > { %1119 = vrcp.f32 %v601_v38 }
 0x417   : > { %v604_v39 = vpop.xlane.xlu1 %603 }
 0x418   : > { %1121 = vrcp.f32 %v604_v39 }
 0x419   : > { %v1116_v43 = vpop.eup %1115 }
 0x41a   : > { %v482_v48 = vmul.f32 %v1116_v43, %v1104_v19 }
 0x41b   : > { %v726_v41 = vpop.xlane.xlu0 %725  ;;  %v611_v49 = vpop.permute.xlu1 %610 }
 0x41c   : > { %v616_v51 = vsel %vm364_vm4, %v611_v49, 0  ;;  %1123 = vrcp.f32 %v726_v41 }
 0x41d   : > { %v1118_v44 = vpop.eup %1117 }
 0x41e   : > { %v483_v45 = vmul.f32 %v1118_v44, %v1106_v23 }
 0x41f   : > { %v486_v46 = vpop.permute.xlu0 %485 }
 0x420   : > { %v491_v47 = vsel %vm364_vm4, %v486_v46, 0  ;;  %v484_v50 = vpack.c.bf16 %v483_v45, %v482_v48 }
 0x421   : > { %1016 = vmatpush3.bf16.msra.mxu0 %v491_v47  ;;  %v1120_v22 = vpop.eup %1119 }
 0x422   : > { %1027 = vmatprep.subr.bf16.mxu0 %v1151_v0  ;;  %v607_v54 = vmul.f32 %v1120_v22, %v1108_v25 }
 0x424   : > { %1018 = vmatmul.mubr.msk.bf16.vlgmr.msra.gmra.mxu0 %vm331_vm2, %v484_v50 }
 0x425   : > { %v1122_v52 = vpop.eup %1121  ;;  %1028 = vmatpush3.bf16.msra.mxu0 %v616_v51  ;;  %1029 = vmatprep.mubr.msk.bf16.mxu0 %vm1152_vm0, %v1151_v0 }
 0x426   : > { %v608_v53 = vmul.f32 %v1122_v52, %v1110_v27  ;;  %1039 = vmatprep.subr.bf16.mxu0 %v1151_v0 }
 0x428   : > { %v609_v55 = vpack.c.bf16 %v608_v53, %v607_v54 }
 0x429   : > { %v1124_v59 = vpop.eup %1123 }
 0x42a   : > { %v732_v61 = vmul.f32 %v1124_v59, %v1112_v29 }
 0x42c   : > { %1030 = vmatmul.mubr.msk.bf16.vlgmr.msra.gmra.mxu0 %vm331_vm2, %v609_v55 }
 0x42d   : > { %1041 = vmatprep.mubr.msk.bf16.mxu0 %vm1152_vm0, %v1151_v0 }
 0x44c   : > { %v729_v56 = vpop.xlane.xlu1 %728 }
 0x44d   : > { %1125 = vrcp.f32 %v729_v56 }
 0x450   : > { %v736_v57 = vpop.permute.xlu1 %735 }
 0x451   : > { %v741_v58 = vsel %vm364_vm4, %v736_v57, 0 }
 0x452   : > { %1040 = vmatpush3.bf16.msra.mxu0 %v741_v58 }
 0x45a   : > { %v1126_v60 = vpop.eup %1125 }
 0x45b   : > { %v733_v62 = vmul.f32 %v1126_v60, %v1114_v34 }
 0x45d   : > { %v734_v63 = vpack.c.bf16 %v733_v62, %v732_v61 }
 0x45f   : > { %1042 = vmatmul.mubr.msk.bf16.vlgmr.msra.gmra.mxu0 %vm331_vm2, %v734_v63 }
 0x4e4   : > { %v527_v1 = vpop.f32.mrf.mxu0 }
 0x4e6   : > { %v1019_v2 = vpop.f32.mrf.mxu0 }
 0x4e8   : > { %v530_v3 = vpop.f32.mrf.mxu0 }
 0x4e9   : > { %v1077_v4 = vpack.i.bf16 %v530_v3, %v527_v1 }
 0x4ea   : > { %v1020_v5 = vpop.f32.mrf.mxu0 }
 0x4eb   : > { %1078 = vrot.lane.b32.xlu1 %v1077_v4, %s1156_s29 }
 0x4ec   : > { %v652_v0 = vpop.f32.mrf.mxu0 }
 0x4ee   : > { %v1031_v6 = vpop.f32.mrf.mxu0 }
 0x4f0   : > { %v655_v7 = vpop.f32.mrf.mxu0 }
 0x4f1   : > { %v1082_v8 = vpack.i.bf16 %v655_v7, %v652_v0 }
 0x4f2   : > { %v1032_v9 = vpop.f32.mrf.mxu0 }
 0x4f3   : > { %1083 = vrot.lane.b32.xlu0 %v1082_v8, %s1157_s30 }
 0x51f   : > { %v777_v10 = vpop.f32.mrf.mxu0 }
 0x521   : > { %v1043_v11 = vpop.f32.mrf.mxu0 }
 0x523   : > { %v780_v12 = vpop.f32.mrf.mxu0 }
 0x524   : > { %v1087_v13 = vpack.i.bf16 %v780_v12, %v777_v10 }
 0x525   : > { %v1044_v14 = vpop.f32.mrf.mxu0 }
 0x526   : > { %1088 = vrot.lane.b32.xlu1 %v1087_v13, %s1158_s4 }
 0x55d   : > { %v1079_v15 = vpop.permute.xlu1 %1078 }
 0x55e   : > { %v1081_v17 = vunpack.i.h.bf16 %v1079_v15  ;;  %v1080_v18 = vunpack.i.l.bf16 %v1079_v15 }
 0x560   : > { %v809_v23 = vsel %vm281_vm1, %v1254_v42, %v1081_v17  ;;  %v808_v24 = vsel %vm281_vm1, %v1252_v40, %v1080_v18 }
 0x565   : > { %v1084_v16 = vpop.permute.xlu0 %1083 }
 0x566   : > { %v1086_v19 = vunpack.i.h.bf16 %v1084_v16  ;;  %v1085_v20 = vunpack.i.l.bf16 %v1084_v16 }
 0x568   : > { %v812_v27 = vsel %vm810_vm5, %v809_v23, %v1086_v19  ;;  %v811_v28 = vsel %vm810_vm5, %v808_v24, %v1085_v20 }
 0x598   : > { %v1089_v21 = vpop.permute.xlu1 %1088 }
 0x599   : > { %v1091_v25 = vunpack.i.h.bf16 %v1089_v21  ;;  %v1090_v26 = vunpack.i.l.bf16 %v1089_v21 }
 0x59b   : > { %v815_v29 = vsel %vm813_vm6, %v812_v27, %v1091_v25  ;;  %v814_v30 = vsel %vm813_vm6, %v811_v28, %v1090_v26 }
 0x59c   : > { %v980_v31 = vpack.c.bf16 %v815_v29, %v815_v29  ;;  %v979_v32 = vpack.c.bf16 %v814_v30, %v814_v30 }
 0x59e   : > { %827 = vst.msk [vmem:[%s263_s7 + $0x4] sm:$0x1] %vm826_vm8, %v980_v31 }
 0x59f   : > { %825 = vst.msk [vmem:[%s263_s7] sm:$0xf] %vm824_vm7, %v979_v32 }
 0x5a0 PF: > { %s13_s14 = sadd.s32 1, %s1149_s14   ;;  %s1307_s12 = smov %s1145_s13 }
 0x5a1   : > { %p10_p5 = scmp.ge.s32.totalorder %s13_s14, 4   ;;  %s1308_s13 = smov %s1310_s15 }
 0x5a3   :  { %12 = sbr.rel (!%p10_p5) target bundleno = 2 (0x2), region = 68 }

// kernel: dcf_sam_forward.101
= control target key start
LH: loop header
LB: loop body
LE: loop exit
PB: predicated region body
PF: predicated region fallthrough
CT: control target
= control target key end

     0   :  { %s674_s21 = smov 0   ;;  %s676_s22 = smov 0   ;;  %s746_s0 = inlined_call_operand.vmem [shape: bf16[2,10,32], index: 0, kind: input, shape index: {}]   ;;  %s747_s1 = inlined_call_operand.vmem [shape: f32[2,10,32], index: 1, kind: input, shape index: {}]   ;;  %s748_s2 = inlined_call_operand.vmem [shape: f32[32,32], index: 2, kind: input, shape index: {}]   ;;  %s749_s3 = inlined_call_operand.vmem [shape: f32[1,32], index: 3, kind: input, shape index: {}]   ;;  %s750_s4 = inlined_call_operand.vmem [shape: f32[1,32], index: 4, kind: input, shape index: {}]   ;;  %s751_s5 = inlined_call_operand.vmem [shape: f32[1,32], index: 5, kind: input, shape index: {}]   ;;  %s752_s6 = inlined_call_operand.vmem [shape: f32[2,10,32], index: 6, kind: output, shape index: {}]  }
   0x1   :  { %s678_s23 = smov 0  }
   0x2 LB: > { %s28_s24 = sadd.s32 1, %s631_s22  ;;  %p554_p0 = scmp.ge.s32.totalorder %s635_s23, 1  ;;  %s635_s23 = sphi %s678_s23, %s16_s23   ;;  %s631_s22 = sphi %s676_s22, %s754_s22   ;;  %s627_s21 = sphi %s674_s21, %s753_s21  }
   0x3   : > { %p30_p1 = scmp.ge.s32.totalorder %s28_s24, 2  ;;  %p250_p2 = scmp.lt.s32.totalorder %s635_s23, 3 }
   0x5   : > { %s756_s24 = smov (%p30_p1, %s28_s24), 0  ;;  %p251_p3 = pnand %p554_p0, %p250_p2 }
   0x6   : > { %p298_p4 = scmp.lt.s32.totalorder (!%p251_p3), %s627_s21, 1 }
   0x7   : > { %254 = sbr.rel (%p251_p3) target bundleno = 532 (0x214), region = 44 }
   0xc   : > { %v332_v0 = vld [vmem:[%s748_s2 + $0x10] sm:$0xff]  ;;  %v333_v1 = vld [vmem:[%s748_s2 + $0x18] sm:$0xff]  ;;  %v330_v2 = vld [vmem:[%s748_s2] sm:$0xff]  ;;  %v637_v3 = vmov 0.0   ;;  %vm638_vm0 = vmmov 0   ;;  %s758_s21 = smov (!%p298_p4, %s627_s21), 1 }
   0xd   : > { %574 = vmatprep.subr.bf16.mxu0 %v637_v3  ;;  %v335_v4 = vpack.c.bf16 %v333_v1, %v332_v0  ;;  %v331_v5 = vld [vmem:[%s748_s2 + $0x8] sm:$0xff]  ;;  %578 = vmatprep.mubr.msk.bf16.mxu0 %vm638_vm0, %v637_v3  ;;  %s568_s9 = sshll.u32 %s758_s21, 3  ;;  %vm348_vm1 = vcmask 261120   ;;  %s569_s13 = sshll.u32 %s758_s21, 4  ;;  %v561_v8 = vld [vmem:[%s749_s3] ss:$0 sm:$0xff] }
   0xe   : > { %v334_v6 = vpack.c.bf16 %v331_v5, %v330_v2  ;;  %s305_s12 = scalar_lea.vmem %s746_s0, %s568_s9  ;;  %s315_s16 = scalar_lea.vmem %s747_s1, %s569_s13  ;;  %vm400_vm2 = vcmask 254976   ;;  %v564_v38 = vld [vmem:[%s750_s4] ss:$0 sm:$0xff] }
   0xf   : > { %575 = vmatpush3.bf16.msra.mxu0 %v335_v4  ;;  %v608_v7 = vld [vmem:[%s305_s12] sm:$0x1f]   ;;  %v394_v15 = vld [vmem:[%s315_s16 + $0x8] sm:$0x3]  ;;  %s325_s29 = scalar_lea.vmem %s752_s6, %s569_s13 }
  0x10   : > { %576 = vmatprep.subr.bf16.mxu0 %v637_v3  ;;  %v393_v10 = vld [vmem:[%s315_s16] sm:$0xff] }
  0x11   : > { %v565_v40 = vld [vmem:[%s751_s5] ss:$0 sm:$0xff] }
  0x13   : > { %577 = vmatpush3.bf16.msra.mxu0 %v334_v6 }
  0x16   : > { %579 = vmatmul.mubr.msk.bf16.vlgmr.msra.gmra.mxu0 %vm348_vm1, %v608_v7 }
  0xd6   : > { %v386_v9 = vpop.f32.mrf.mxu0 }
  0xd7   : > { %v387_v11 = vadd.f32 %v561_v8, %v386_v9 }
  0xd8   : > { %v580_v12 = vpop.f32.mrf.mxu0 }
  0xd9   : > { %v395_v13 = vadd.f32 %v393_v10, %v387_v11 }
  0xda   : > { %v389_v14 = vpop.f32.mrf.mxu0 }
  0xdb   : > { %v390_v16 = vadd.f32 %v561_v8, %v389_v14  ;;  %v397_v17 = vsel %vm348_vm1, %v395_v13, 0.0 }
  0xdc   : > { %398 = vadd.xlane.f32.xlu0 %v397_v17  ;;  %v581_v18 = vpop.f32.mrf.mxu0 }
  0xdd   : > { %v396_v19 = vadd.f32 %v394_v15, %v390_v16 }
  0xdf   : > { %v401_v20 = vsel %vm400_vm2, %v396_v19, 0.0 }
  0xe0   : > { %402 = vadd.xlane.f32.xlu0 %v401_v20 }
 0x165   : > { %v399_v21 = vpop.xlane.xlu0 %398 }
 0x166   : > { %v405_v22 = vmul.f32 0.03125, %v399_v21 }
 0x168   : > { %v407_v23 = vsub.f32 %v395_v13, %v405_v22 }
 0x169   : > { %v403_v24 = vpop.xlane.xlu0 %402 }
 0x16a   : > { %v406_v25 = vmul.f32 0.03125, %v403_v24  ;;  %v409_v26 = vmul.f32 %v407_v23, %v407_v23 }
 0x16c   : > { %v408_v27 = vsub.f32 %v396_v19, %v406_v25  ;;  %v411_v28 = vsel %vm348_vm1, %v409_v26, 0.0 }
 0x16d   : > { %412 = vadd.xlane.f32.xlu1 %v411_v28 }
 0x16e   : > { %v410_v29 = vmul.f32 %v408_v27, %v408_v27 }
 0x170   : > { %v414_v30 = vsel %vm400_vm2, %v410_v29, 0.0 }
 0x171   : > { %415 = vadd.xlane.f32.xlu1 %v414_v30 }
 0x1f6   : > { %v413_v31 = vpop.xlane.xlu1 %412 }
 0x1f7   : > { %v417_v32 = vmul.f32 0.03125, %v413_v31 }
 0x1f9   : > { %v419_v33 = vadd.f32 1e-06, %v417_v32 }
 0x1fa   : > { %v416_v34 = vpop.xlane.xlu1 %415 }
 0x1fb   : > { %609 = vrsqrt.f32 %v419_v33  ;;  %v418_v35 = vmul.f32 0.03125, %v416_v34 }
 0x1fd   : > { %v420_v36 = vadd.f32 1e-06, %v418_v35 }
 0x1ff   : > { %611 = vrsqrt.f32 %v420_v36 }
 0x208   : > { %v610_v37 = vpop.eup %609 }
 0x209   : > { %v423_v39 = vmul.f32 %v610_v37, %v407_v23 }
 0x20b   : > { %v432_v41 = vmul.f32 %v564_v38, %v423_v39 }
 0x20c   : > { %v612_v42 = vpop.eup %611 }
 0x20d   : > { %v441_v43 = vadd.f32 %v565_v40, %v432_v41  ;;  %v424_v44 = vmul.f32 %v612_v42, %v408_v27 }
 0x20f   : > { %443 = vst.msk [vmem:[%s325_s29] sm:$0xff] %vm348_vm1, %v441_v43  ;;  %v433_v45 = vmul.f32 %v564_v38, %v424_v44 }
 0x211   : > { %v442_v46 = vadd.f32 %v565_v40, %v433_v45 }
 0x213   : > { %444 = vst.msk [vmem:[%s325_s29 + $0x8] sm:$0x3] %vm400_vm2, %v442_v46 }
 0x214 PF: > { %s16_s23 = sadd.s32 1, %s635_s23   ;;  %s753_s21 = smov %s631_s22 }
 0x215   : > { %p13_p5 = scmp.ge.s32.totalorder %s16_s23, 4   ;;  %s754_s22 = smov %s756_s24 }
 0x217   :  { %15 = sbr.rel (!%p13_p5) target bundleno = 2 (0x2), region = 77 }

// kernel: dcf_sam_forward.96
= control target key start
LH: loop header
LB: loop body
LE: loop exit
PB: predicated region body
PF: predicated region fallthrough
CT: control target
= control target key end

     0   :  { %vm105_vm0 = vcmask 1043456   ;;  %vm80_vm1 = vcmask 64512   ;;  %vm270_vm2 = vcmask 125952   ;;  %s501_s1 = inlined_call_operand.vmem [shape: f32[8,16], index: 1, kind: input, shape index: {}]   ;;  %s502_s0 = inlined_call_operand.vmem [shape: bf16[128,8], index: 0, kind: input, shape index: {}]   ;;  %s503_s2 = inlined_call_operand.vmem [shape: f32[1,16], index: 2, kind: input, shape index: {}]   ;;  %s504_s3 = inlined_call_operand.vmem [shape: bf16[128,16], index: 3, kind: output, shape index: {}]  }
   0x1   :  { %v31_v0 = vld [vmem:[%s501_s1] sm:$0xff]  ;;  %v373_v5 = vld [vmem:[%s502_s0 + $0x8] sm:$0xff]   ;;  %v375_v7 = vld [vmem:[%s502_s0 + $0x10] sm:$0xff]  }
   0x2   :  { %v32_v1 = vpack.c.bf16 %v31_v0, %v31_v0  ;;  %v371_v2 = vld [vmem:[%s502_s0] sm:$0xff]   ;;  %v374_v6 = vld [vmem:[%s502_s0 + $0x28] sm:$0xff]   ;;  %v376_v8 = vld [vmem:[%s502_s0 + $0x30] sm:$0xff]  }
   0x3   :  { %v372_v3 = vld [vmem:[%s502_s0 + $0x20] sm:$0xff]   ;;  %351 = vmatprep.mubr.msk.bf16.mxu0 %vm80_vm1, %v371_v2  ;;  %v377_v9 = vld [vmem:[%s502_s0 + $0x18] sm:$0xff]  }
   0x4   :  { %369 = vmatprep.subr.msk.bf16.mxu0 %vm105_vm0, %v32_v1  ;;  %370 = vmatprep.subr.msk.bf16.mxu1 %vm105_vm0, %v32_v1  ;;  %v107_v4 = vsel %vm105_vm0, %v32_v1, 0  ;;  %v378_v10 = vld [vmem:[%s502_s0 + $0x38] sm:$0xff]   ;;  %v291_v11 = vld [vmem:[%s503_s2] ss:$0 sm:$0xff] }
   0x5   :  { %350 = vmatpush3.bf16.msra.mxu0 %v107_v4  ;;  %368 = vmatpush3.bf16.msra.mxu1 %v107_v4 }
   0x6   :  { %359 = vmatprep.mubr.msk.bf16.mxu1 %vm80_vm1, %v372_v3 }
   0x8   :  { %352 = vmatmul.mubr.msk.bf16.vlgmr.msra.gmra.mxu0 %vm80_vm1, %v373_v5  ;;  %360 = vmatmul.mubr.msk.bf16.vlgmr.msra.gmra.mxu1 %vm80_vm1, %v374_v6 }
   0x9   :  { %355 = vmatprep.mubr.msk.bf16.mxu0 %vm80_vm1, %v375_v7  ;;  %363 = vmatprep.mubr.msk.bf16.mxu1 %vm80_vm1, %v376_v8 }
  0x10   :  { %356 = vmatmul.mubr.msk.bf16.gmra.mxu0 %vm80_vm1, %v377_v9  ;;  %364 = vmatmul.mubr.msk.bf16.gmra.mxu1 %vm80_vm1, %v378_v10 }
  0xc8   :  { %v353_v12 = vpop.f32.mrf.mxu0  ;;  %v361_v13 = vpop.f32.mrf.mxu1 }
  0xc9   :  { %v152_v14 = vadd.f32 %v353_v12, %v291_v11  ;;  %v184_v15 = vadd.f32 %v361_v13, %v291_v11 }
  0xca   :  { %v143_v16 = vpop.f32.mrf.mxu0  ;;  %v175_v17 = vpop.f32.mrf.mxu1 }
  0xcb   :  { %v326_v18 = vpack.c.bf16 %v152_v14, %v152_v14  ;;  %v334_v19 = vpack.c.bf16 %v184_v15, %v184_v15  ;;  %v144_v20 = vadd.f32 %v291_v11, %v143_v16  ;;  %v176_v21 = vadd.f32 %v291_v11, %v175_v17 }
  0xcc   :  { %v354_v22 = vpop.f32.mrf.mxu0  ;;  %v362_v23 = vpop.f32.mrf.mxu1 }
  0xcd   :  { %273 = vst.msk [vmem:[%s504_s3 + $0x8] sm:$0xf] %vm270_vm2, %v326_v18  ;;  %281 = vst.msk [vmem:[%s504_s3 + $0x28] sm:$0xf] %vm270_vm2, %v334_v19  ;;  %v324_v24 = vpack.c.bf16 %v144_v20, %v144_v20  ;;  %v332_v25 = vpack.c.bf16 %v176_v21, %v176_v21  ;;  %v155_v26 = vadd.f32 %v354_v22, %v291_v11 }
  0xce   :  { %v187_v27 = vadd.f32 %v362_v23, %v291_v11  ;;  %v146_v28 = vpop.f32.mrf.mxu0  ;;  %v178_v29 = vpop.f32.mrf.mxu1 }
  0xcf   :  { %271 = vst.msk [vmem:[%s504_s3] sm:$0xf] %vm270_vm2, %v324_v24  ;;  %279 = vst.msk [vmem:[%s504_s3 + $0x20] sm:$0xf] %vm270_vm2, %v332_v25  ;;  %v327_v30 = vpack.c.bf16 %v155_v26, %v155_v26  ;;  %v147_v32 = vadd.f32 %v291_v11, %v146_v28  ;;  %v179_v33 = vadd.f32 %v291_v11, %v178_v29 }
  0xd0   :  { %v335_v31 = vpack.c.bf16 %v187_v27, %v187_v27  ;;  %v357_v34 = vpop.f32.mrf.mxu0  ;;  %v365_v35 = vpop.f32.mrf.mxu1 }
  0xd1   :  { %274 = vst.msk [vmem:[%s504_s3 + $0xc] sm:$0xf] %vm270_vm2, %v327_v30  ;;  %v325_v36 = vpack.c.bf16 %v147_v32, %v147_v32  ;;  %v333_v37 = vpack.c.bf16 %v179_v33, %v179_v33  ;;  %v168_v38 = vadd.f32 %v357_v34, %v291_v11  ;;  %v200_v39 = vadd.f32 %v365_v35, %v291_v11 }
  0xd2   :  { %282 = vst.msk [vmem:[%s504_s3 + $0x2c] sm:$0xf] %vm270_vm2, %v335_v31  ;;  %v159_v40 = vpop.f32.mrf.mxu0  ;;  %v191_v41 = vpop.f32.mrf.mxu1 }
  0xd3   :  { %272 = vst.msk [vmem:[%s504_s3 + $0x4] sm:$0xf] %vm270_vm2, %v325_v36  ;;  %280 = vst.msk [vmem:[%s504_s3 + $0x24] sm:$0xf] %vm270_vm2, %v333_v37  ;;  %v330_v42 = vpack.c.bf16 %v168_v38, %v168_v38  ;;  %v338_v43 = vpack.c.bf16 %v200_v39, %v200_v39  ;;  %v160_v44 = vadd.f32 %v291_v11, %v159_v40 }
  0xd4   :  { %v192_v45 = vadd.f32 %v291_v11, %v191_v41  ;;  %v358_v46 = vpop.f32.mrf.mxu0  ;;  %v366_v47 = vpop.f32.mrf.mxu1 }
  0xd5   :  { %277 = vst.msk [vmem:[%s504_s3 + $0x18] sm:$0xf] %vm270_vm2, %v330_v42  ;;  %285 = vst.msk [vmem:[%s504_s3 + $0x38] sm:$0xf] %vm270_vm2, %v338_v43  ;;  %v328_v48 = vpack.c.bf16 %v160_v44, %v160_v44  ;;  %v171_v50 = vadd.f32 %v358_v46, %v291_v11  ;;  %v203_v51 = vadd.f32 %v366_v47, %v291_v11 }
  0xd6   :  { %v336_v49 = vpack.c.bf16 %v192_v45, %v192_v45  ;;  %v162_v52 = vpop.f32.mrf.mxu0  ;;  %v194_v53 = vpop.f32.mrf.mxu1 }
  0xd7   :  { %275 = vst.msk [vmem:[%s504_s3 + $0x10] sm:$0xf] %vm270_vm2, %v328_v48  ;;  %v331_v54 = vpack.c.bf16 %v171_v50, %v171_v50  ;;  %v339_v55 = vpack.c.bf16 %v203_v51, %v203_v51  ;;  %v163_v56 = vadd.f32 %v291_v11, %v162_v52  ;;  %v195_v57 = vadd.f32 %v291_v11, %v194_v53 }
  0xd8   :  { %283 = vst.msk [vmem:[%s504_s3 + $0x30] sm:$0xf] %vm270_vm2, %v336_v49 }
  0xd9   :  { %278 = vst.msk [vmem:[%s504_s3 + $0x1c] sm:$0xf] %vm270_vm2, %v331_v54  ;;  %286 = vst.msk [vmem:[%s504_s3 + $0x3c] sm:$0xf] %vm270_vm2, %v339_v55  ;;  %v329_v58 = vpack.c.bf16 %v163_v56, %v163_v56  ;;  %v337_v59 = vpack.c.bf16 %v195_v57, %v195_v57 }
  0xdb   :  { %276 = vst.msk [vmem:[%s504_s3 + $0x14] sm:$0xf] %vm270_vm2, %v329_v58  ;;  %284 = vst.msk [vmem:[%s504_s3 + $0x34] sm:$0xf] %vm270_vm2, %v337_v59 }

// kernel: dcf_sam_forward.95
= control target key start
LH: loop header
LB: loop body
LE: loop exit
PB: predicated region body
PF: predicated region fallthrough
CT: control target
= control target key end

     0   :  { %vm81_vm0 = vcmask 64512   ;;  %vm545_vm1 = vcmask 60416   ;;  %s1180_s0 = inlined_call_operand.vmem [shape: bf16[128,8], index: 0, kind: input, shape index: {}]   ;;  %s1181_s1 = inlined_call_operand.vmem [shape: f32[128,8], index: 1, kind: input, shape index: {}]   ;;  %s1182_s2 = inlined_call_operand.vmem [shape: f32[1,8], index: 2, kind: input, shape index: {}]   ;;  %s1183_s3 = inlined_call_operand.vmem [shape: f32[1,8], index: 3, kind: input, shape index: {}]   ;;  %s1184_s4 = inlined_call_operand.vmem [shape: bf16[128,8], index: 4, kind: output, shape index: {}]  }
   0x1   :  { %v601_v0 = vld [vmem:[%s1180_s0] sm:$0xff]   ;;  %v632_v2 = vld [vmem:[%s1180_s0 + $0x8] sm:$0xff]   ;;  %v51_v5 = vld [vmem:[%s1181_s1 + $0x10] sm:$0xff] }
   0x2   :  { %v49_v1 = vld [vmem:[%s1181_s1] sm:$0xff]  ;;  %v602_v3 = vunpack.c.l.bf16 %v601_v0  ;;  %v606_v4 = vunpack.c.l.bf16 %v632_v2  ;;  %v603_v6 = vunpack.c.h.bf16 %v601_v0  ;;  %v50_v7 = vld [vmem:[%s1181_s1 + $0x8] sm:$0xff]  ;;  %v607_v8 = vunpack.c.h.bf16 %v632_v2  ;;  %v52_v9 = vld [vmem:[%s1181_s1 + $0x18] sm:$0xff] }
   0x3   :  { %v633_v10 = vld [vmem:[%s1180_s0 + $0x10] sm:$0xff]   ;;  %v634_v15 = vld [vmem:[%s1180_s0 + $0x18] sm:$0xff]   ;;  %v53_v17 = vld [vmem:[%s1181_s1 + $0x20] sm:$0xff] }
   0x4   :  { %v749_v11 = vadd.f32 %v602_v3, %v49_v1  ;;  %v751_v12 = vadd.f32 %v606_v4, %v51_v5  ;;  %v753_v13 = vadd.f32 %v603_v6, %v50_v7  ;;  %v755_v14 = vadd.f32 %v607_v8, %v52_v9  ;;  %v54_v19 = vld [vmem:[%s1181_s1 + $0x28] sm:$0xff]  ;;  %v55_v28 = vld [vmem:[%s1181_s1 + $0x30] sm:$0xff]  ;;  %v635_v29 = vld [vmem:[%s1180_s0 + $0x20] sm:$0xff]  }
   0x5   :  { %v610_v16 = vunpack.c.l.bf16 %v633_v10  ;;  %v611_v18 = vunpack.c.h.bf16 %v633_v10  ;;  %v614_v22 = vunpack.c.l.bf16 %v634_v15  ;;  %v615_v23 = vunpack.c.h.bf16 %v634_v15  ;;  %v56_v30 = vld [vmem:[%s1181_s1 + $0x38] sm:$0xff]  ;;  %v636_v37 = vld [vmem:[%s1180_s0 + $0x28] sm:$0xff]   ;;  %v57_v38 = vld [vmem:[%s1181_s1 + $0x40] sm:$0xff] }
   0x6   :  { %v82_v20 = vsel %vm81_vm0, %v749_v11, 0.0  ;;  %v88_v21 = vsel %vm81_vm0, %v751_v12, 0.0  ;;  %v85_v24 = vsel %vm81_vm0, %v753_v13, 0.0  ;;  %v91_v25 = vsel %vm81_vm0, %v755_v14, 0.0  ;;  %v58_v39 = vld [vmem:[%s1181_s1 + $0x48] sm:$0xff]  ;;  %v59_v46 = vld [vmem:[%s1181_s1 + $0x50] sm:$0xff] }
   0x7   :  { %83 = vadd.xlane.f32.xlu0 %v82_v20  ;;  %89 = vadd.xlane.f32.xlu1 %v88_v21  ;;  %v774_v26 = vadd.f32 %v610_v16, %v53_v17  ;;  %v776_v27 = vadd.f32 %v611_v18, %v54_v19  ;;  %v787_v31 = vadd.f32 %v614_v22, %v55_v28  ;;  %v618_v32 = vunpack.c.l.bf16 %v635_v29  ;;  %v60_v47 = vld [vmem:[%s1181_s1 + $0x58] sm:$0xff]  ;;  %v637_v48 = vld [vmem:[%s1180_s0 + $0x30] sm:$0xff]   ;;  %v61_v56 = vld [vmem:[%s1181_s1 + $0x60] sm:$0xff] }
   0x8   :  { %v793_v35 = vadd.f32 %v615_v23, %v56_v30  ;;  %v619_v36 = vunpack.c.h.bf16 %v635_v29  ;;  %v622_v40 = vunpack.c.l.bf16 %v636_v37  ;;  %v623_v41 = vunpack.c.h.bf16 %v636_v37  ;;  %v638_v55 = vld [vmem:[%s1180_s0 + $0x38] sm:$0xff]   ;;  %v62_v57 = vld [vmem:[%s1181_s1 + $0x68] sm:$0xff]  ;;  %v63_v0 = vld [vmem:[%s1181_s1 + $0x70] sm:$0xff] }
   0x9   :  { %v94_v33 = vsel %vm81_vm0, %v774_v26, 0.0  ;;  %v97_v34 = vsel %vm81_vm0, %v776_v27, 0.0  ;;  %v100_v42 = vsel %vm81_vm0, %v787_v31, 0.0  ;;  %v808_v44 = vadd.f32 %v618_v32, %v57_v38  ;;  %v64_v1 = vld [vmem:[%s1181_s1 + $0x78] sm:$0xff] }
   0xa   :  { %v103_v43 = vsel %vm81_vm0, %v793_v35, 0.0  ;;  %v810_v45 = vadd.f32 %v619_v36, %v58_v39  ;;  %v821_v49 = vadd.f32 %v622_v40, %v59_v46  ;;  %v823_v50 = vadd.f32 %v623_v41, %v60_v47 }
   0xb   :  { %86 = vadd.xlane.f32.xlu0 %v85_v24  ;;  %92 = vadd.xlane.f32.xlu1 %v91_v25  ;;  %v106_v51 = vsel %vm81_vm0, %v808_v44, 0.0  ;;  %v626_v53 = vunpack.c.l.bf16 %v637_v48  ;;  %v627_v54 = vunpack.c.h.bf16 %v637_v48  ;;  %v630_v59 = vunpack.c.l.bf16 %v638_v55 }
   0xc   :  { %v109_v52 = vsel %vm81_vm0, %v810_v45, 0.0  ;;  %v112_v58 = vsel %vm81_vm0, %v821_v49, 0.0  ;;  %v115_v60 = vsel %vm81_vm0, %v823_v50, 0.0  ;;  %v631_v63 = vunpack.c.h.bf16 %v638_v55 }
   0xd   :  { %v842_v61 = vadd.f32 %v626_v53, %v61_v56  ;;  %v844_v62 = vadd.f32 %v627_v54, %v62_v57  ;;  %v856_v4 = vadd.f32 %v630_v59, %v63_v0 }
   0xe   :  { %v858_v5 = vadd.f32 %v631_v63, %v64_v1 }
   0xf   :  { %95 = vadd.xlane.f32.xlu0 %v94_v33  ;;  %98 = vadd.xlane.f32.xlu1 %v97_v34  ;;  %v118_v2 = vsel %vm81_vm0, %v842_v61, 0.0  ;;  %v121_v3 = vsel %vm81_vm0, %v844_v62, 0.0  ;;  %v124_v6 = vsel %vm81_vm0, %v856_v4, 0.0 }
  0x10   :  { %v127_v7 = vsel %vm81_vm0, %v858_v5, 0.0 }
  0x13   :  { %101 = vadd.xlane.f32.xlu0 %v100_v42  ;;  %104 = vadd.xlane.f32.xlu1 %v103_v43 }
  0x17   :  { %107 = vadd.xlane.f32.xlu0 %v106_v51  ;;  %110 = vadd.xlane.f32.xlu1 %v109_v52 }
  0x1b   :  { %113 = vadd.xlane.f32.xlu0 %v112_v58  ;;  %116 = vadd.xlane.f32.xlu1 %v115_v60 }
  0x1f   :  { %119 = vadd.xlane.f32.xlu0 %v118_v2  ;;  %122 = vadd.xlane.f32.xlu1 %v121_v3 }
  0x23   :  { %125 = vadd.xlane.f32.xlu0 %v124_v6  ;;  %128 = vadd.xlane.f32.xlu1 %v127_v7 }
  0x90   :  { %v84_v8 = vpop.xlane.xlu0 %83  ;;  %v90_v9 = vpop.xlane.xlu1 %89 }
  0x91   :  { %v131_v10 = vmul.f32 0.125, %v84_v8  ;;  %v133_v15 = vmul.f32 0.125, %v90_v9 }
  0x93   :  { %v865_v16 = vsub.f32 %v749_v11, %v131_v10  ;;  %v868_v17 = vsub.f32 %v751_v12, %v133_v15 }
  0x94   :  { %v87_v18 = vpop.xlane.xlu0 %86  ;;  %v93_v19 = vpop.xlane.xlu1 %92 }
  0x95   :  { %v132_v20 = vmul.f32 0.125, %v87_v18  ;;  %v134_v21 = vmul.f32 0.125, %v93_v19  ;;  %v163_v22 = vmul.f32 %v865_v16, %v865_v16  ;;  %v165_v23 = vmul.f32 %v868_v17, %v868_v17 }
  0x97   :  { %v875_v24 = vsub.f32 %v753_v13, %v132_v20  ;;  %v878_v25 = vsub.f32 %v755_v14, %v134_v21  ;;  %v179_v11 = vsel %vm81_vm0, %v163_v22, 0.0  ;;  %v185_v29 = vsel %vm81_vm0, %v165_v23, 0.0 }
  0x98   :  { %180 = vadd.xlane.f32.xlu0 %v179_v11  ;;  %v96_v12 = vpop.xlane.xlu0 %95  ;;  %v99_v28 = vpop.xlane.xlu1 %98 }
  0x99   :  { %v135_v30 = vmul.f32 0.125, %v96_v12  ;;  %v136_v32 = vmul.f32 0.125, %v99_v28  ;;  %v164_v33 = vmul.f32 %v875_v24, %v875_v24  ;;  %v166_v34 = vmul.f32 %v878_v25, %v878_v25 }
  0x9b   :  { %v887_v13 = vsub.f32 %v774_v26, %v135_v30  ;;  %v890_v14 = vsub.f32 %v776_v27, %v136_v32  ;;  %v182_v36 = vsel %vm81_vm0, %v164_v33, 0.0  ;;  %v188_v39 = vsel %vm81_vm0, %v166_v34, 0.0 }
  0x9c   :  { %186 = vadd.xlane.f32.xlu0 %v185_v29  ;;  %183 = vadd.xlane.f32.xlu1 %v182_v36  ;;  %v102_v37 = vpop.xlane.xlu0 %101  ;;  %v105_v38 = vpop.xlane.xlu1 %104 }
  0x9d   :  { %v137_v40 = vmul.f32 0.125, %v102_v37  ;;  %v138_v41 = vmul.f32 0.125, %v105_v38  ;;  %v167_v42 = vmul.f32 %v887_v13, %v887_v13  ;;  %v168_v26 = vmul.f32 %v890_v14, %v890_v14 }
  0x9f   :  { %v899_v43 = vsub.f32 %v787_v31, %v137_v40  ;;  %v902_v27 = vsub.f32 %v793_v35, %v138_v41  ;;  %v191_v46 = vsel %vm81_vm0, %v167_v42, 0.0  ;;  %v194_v51 = vsel %vm81_vm0, %v168_v26, 0.0 }
  0xa0   :  { %189 = vadd.xlane.f32.xlu1 %v188_v39  ;;  %192 = vadd.xlane.f32.xlu0 %v191_v46  ;;  %v108_v47 = vpop.xlane.xlu0 %107  ;;  %v111_v48 = vpop.xlane.xlu1 %110 }
  0xa1   :  { %v139_v52 = vmul.f32 0.125, %v108_v47  ;;  %v140_v53 = vmul.f32 0.125, %v111_v48  ;;  %v169_v54 = vmul.f32 %v899_v43, %v899_v43  ;;  %v170_v31 = vmul.f32 %v902_v27, %v902_v27 }
  0xa3   :  { %v911_v55 = vsub.f32 %v808_v44, %v139_v52  ;;  %v914_v35 = vsub.f32 %v810_v45, %v140_v53  ;;  %v197_v56 = vsel %vm81_vm0, %v169_v54, 0.0  ;;  %v200_v59 = vsel %vm81_vm0, %v170_v31, 0.0 }
  0xa4   :  { %195 = vadd.xlane.f32.xlu1 %v194_v51  ;;  %198 = vadd.xlane.f32.xlu0 %v197_v56  ;;  %v114_v57 = vpop.xlane.xlu0 %113  ;;  %v117_v58 = vpop.xlane.xlu1 %116 }
  0xa5   :  { %v141_v60 = vmul.f32 0.125, %v114_v57  ;;  %v142_v63 = vmul.f32 0.125, %v117_v58  ;;  %v171_v0 = vmul.f32 %v911_v55, %v911_v55  ;;  %v172_v44 = vmul.f32 %v914_v35, %v914_v35 }
  0xa7   :  { %v923_v1 = vsub.f32 %v821_v49, %v141_v60  ;;  %v926_v45 = vsub.f32 %v823_v50, %v142_v63  ;;  %v203_v2 = vsel %vm81_vm0, %v171_v0, 0.0  ;;  %v206_v7 = vsel %vm81_vm0, %v172_v44, 0.0 }
  0xa8   :  { %201 = vadd.xlane.f32.xlu1 %v200_v59  ;;  %204 = vadd.xlane.f32.xlu0 %v203_v2  ;;  %v120_v3 = vpop.xlane.xlu0 %119  ;;  %v123_v6 = vpop.xlane.xlu1 %122  ;;  %v963_v2 = vld [vmem:[%s1182_s2] ss:$0 sm:$0xff] }
  0xa9   :  { %v143_v8 = vmul.f32 0.125, %v120_v3  ;;  %v144_v9 = vmul.f32 0.125, %v123_v6  ;;  %v173_v10 = vmul.f32 %v923_v1, %v923_v1  ;;  %v174_v49 = vmul.f32 %v926_v45, %v926_v45 }
  0xab   :  { %v935_v15 = vsub.f32 %v842_v61, %v143_v8  ;;  %v938_v50 = vsub.f32 %v844_v62, %v144_v9  ;;  %v209_v18 = vsel %vm81_vm0, %v173_v10, 0.0  ;;  %v212_v21 = vsel %vm81_vm0, %v174_v49, 0.0  ;;  %v969_v8 = vld [vmem:[%s1183_s3] ss:$0 sm:$0xff] }
  0xac   :  { %207 = vadd.xlane.f32.xlu1 %v206_v7  ;;  %210 = vadd.xlane.f32.xlu0 %v209_v18  ;;  %v126_v19 = vpop.xlane.xlu0 %125  ;;  %v129_v20 = vpop.xlane.xlu1 %128 }
  0xad   :  { %v145_v22 = vmul.f32 0.125, %v126_v19  ;;  %v146_v23 = vmul.f32 0.125, %v129_v20  ;;  %v175_v11 = vmul.f32 %v935_v15, %v935_v15  ;;  %v176_v61 = vmul.f32 %v938_v50, %v938_v50 }
  0xaf   :  { %v947_v12 = vsub.f32 %v856_v4, %v145_v22  ;;  %v950_v62 = vsub.f32 %v858_v5, %v146_v23  ;;  %v215_v28 = vsel %vm81_vm0, %v175_v11, 0.0  ;;  %v218_v29 = vsel %vm81_vm0, %v176_v61, 0.0 }
  0xb0   :  { %213 = vadd.xlane.f32.xlu1 %v212_v21  ;;  %216 = vadd.xlane.f32.xlu0 %v215_v28 }
  0xb1   :  { %v177_v30 = vmul.f32 %v947_v12, %v947_v12  ;;  %v178_v32 = vmul.f32 %v950_v62, %v950_v62 }
  0xb3   :  { %v221_v33 = vsel %vm81_vm0, %v177_v30, 0.0  ;;  %v224_v4 = vsel %vm81_vm0, %v178_v32, 0.0 }
  0xb4   :  { %219 = vadd.xlane.f32.xlu1 %v218_v29  ;;  %222 = vadd.xlane.f32.xlu0 %v221_v33 }
  0xb8   :  { %225 = vadd.xlane.f32.xlu1 %v224_v4 }
 0x121   :  { %v181_v5 = vpop.xlane.xlu0 %180 }
 0x122   :  { %v227_v34 = vmul.f32 0.125, %v181_v5 }
 0x124   :  { %v243_v36 = vadd.f32 1e-06, %v227_v34 }
 0x125   :  { %v184_v37 = vpop.xlane.xlu1 %183  ;;  %v187_v38 = vpop.xlane.xlu0 %186 }
 0x126   :  { %639 = vrsqrt.f32 %v243_v36  ;;  %v228_v39 = vmul.f32 0.125, %v184_v37  ;;  %v229_v40 = vmul.f32 0.125, %v187_v38 }
 0x128   :  { %v244_v41 = vadd.f32 1e-06, %v228_v39  ;;  %v245_v42 = vadd.f32 1e-06, %v229_v40 }
 0x129   :  { %v190_v26 = vpop.xlane.xlu1 %189  ;;  %v193_v46 = vpop.xlane.xlu0 %192 }
 0x12a   :  { %641 = vrsqrt.f32 %v244_v41  ;;  %v230_v47 = vmul.f32 0.125, %v190_v26  ;;  %v231_v48 = vmul.f32 0.125, %v193_v46 }
 0x12b   :  { %643 = vrsqrt.f32 %v245_v42 }
 0x12c   :  { %v246_v51 = vadd.f32 1e-06, %v230_v47  ;;  %v247_v52 = vadd.f32 1e-06, %v231_v48 }
 0x12d   :  { %v196_v53 = vpop.xlane.xlu1 %195  ;;  %v199_v54 = vpop.xlane.xlu0 %198 }
 0x12e   :  { %645 = vrsqrt.f32 %v246_v51  ;;  %v232_v31 = vmul.f32 0.125, %v196_v53  ;;  %v233_v56 = vmul.f32 0.125, %v199_v54 }
 0x12f   :  { %647 = vrsqrt.f32 %v247_v52 }
 0x130   :  { %v248_v57 = vadd.f32 1e-06, %v232_v31  ;;  %v249_v58 = vadd.f32 1e-06, %v233_v56 }
 0x131   :  { %v202_v59 = vpop.xlane.xlu1 %201  ;;  %v205_v60 = vpop.xlane.xlu0 %204 }
 0x132   :  { %649 = vrsqrt.f32 %v248_v57  ;;  %v234_v63 = vmul.f32 0.125, %v202_v59  ;;  %v235_v0 = vmul.f32 0.125, %v205_v60 }
 0x133   :  { %v640_v44 = vpop.eup %639  ;;  %651 = vrsqrt.f32 %v249_v58 }
 0x134   :  { %v275_v3 = vmul.f32 %v640_v44, %v865_v16  ;;  %v250_v6 = vadd.f32 1e-06, %v234_v63  ;;  %v251_v7 = vadd.f32 1e-06, %v235_v0 }
 0x135   :  { %v208_v9 = vpop.xlane.xlu1 %207  ;;  %v211_v10 = vpop.xlane.xlu0 %210 }
 0x136   :  { %v298_v49 = vmul.f32 %v963_v2, %v275_v3  ;;  %653 = vrsqrt.f32 %v250_v6  ;;  %v236_v18 = vmul.f32 0.125, %v208_v9  ;;  %v237_v19 = vmul.f32 0.125, %v211_v10 }
 0x137   :  { %v642_v20 = vpop.eup %641  ;;  %655 = vrsqrt.f32 %v251_v7 }
 0x138   :  { %v644_v21 = vpop.eup %643  ;;  %v973_v22 = vadd.f32 %v969_v8, %v298_v49  ;;  %v276_v16 = vmul.f32 %v642_v20, %v875_v24  ;;  %v252_v23 = vadd.f32 1e-06, %v236_v18  ;;  %v253_v11 = vadd.f32 1e-06, %v237_v19 }
 0x139   :  { %v277_v61 = vmul.f32 %v644_v21, %v868_v17  ;;  %v214_v28 = vpop.xlane.xlu1 %213  ;;  %v217_v29 = vpop.xlane.xlu0 %216 }
 0x13a   :  { %v337_v30 = vmul.f32 %v973_v22, %v973_v22  ;;  %v299_v32 = vmul.f32 %v963_v2, %v276_v16  ;;  %657 = vrsqrt.f32 %v252_v23  ;;  %v238_v33 = vmul.f32 0.125, %v214_v28 }
 0x13b   :  { %v646_v4 = vpop.eup %645  ;;  %v300_v5 = vmul.f32 %v963_v2, %v277_v61  ;;  %659 = vrsqrt.f32 %v253_v11  ;;  %v239_v34 = vmul.f32 0.125, %v217_v29 }
 0x13c   :  { %v648_v36 = vpop.eup %647  ;;  %v353_v24 = vmul.f32 %v337_v30, %v973_v22  ;;  %v983_v37 = vadd.f32 %v969_v8, %v299_v32  ;;  %v278_v17 = vmul.f32 %v646_v4, %v878_v25  ;;  %v254_v38 = vadd.f32 1e-06, %v238_v33 }
 0x13d   :  { %v987_v39 = vadd.f32 %v969_v8, %v300_v5  ;;  %v279_v40 = vmul.f32 %v648_v36, %v887_v13  ;;  %v255_v41 = vadd.f32 1e-06, %v239_v34  ;;  %v220_v42 = vpop.xlane.xlu1 %219 }
 0x13e   :  { %v369_v26 = vmul.f32 0.044715, %v353_v24  ;;  %v338_v46 = vmul.f32 %v983_v37, %v983_v37  ;;  %v301_v47 = vmul.f32 %v963_v2, %v278_v17  ;;  %661 = vrsqrt.f32 %v254_v38 }
 0x13f   :  { %v650_v48 = vpop.eup %649  ;;  %v339_v51 = vmul.f32 %v987_v39, %v987_v39  ;;  %v302_v25 = vmul.f32 %v963_v2, %v279_v40  ;;  %663 = vrsqrt.f32 %v255_v41  ;;  %v240_v52 = vmul.f32 0.125, %v220_v42 }
 0x140   :  { %v652_v53 = vpop.eup %651  ;;  %v385_v13 = vadd.f32 %v369_v26, %v973_v22  ;;  %v354_v54 = vmul.f32 %v338_v46, %v983_v37  ;;  %v999_v31 = vadd.f32 %v969_v8, %v301_v47  ;;  %v280_v56 = vmul.f32 %v650_v48, %v890_v14 }
 0x141   :  { %v355_v57 = vmul.f32 %v339_v51, %v987_v39  ;;  %v1004_v58 = vadd.f32 %v969_v8, %v302_v25  ;;  %v281_v59 = vmul.f32 %v652_v53, %v899_v43  ;;  %v256_v60 = vadd.f32 1e-06, %v240_v52 }
 0x142   :  { %v401_v63 = vmul.f32 0.7978846, %v385_v13  ;;  %v370_v0 = vmul.f32 0.044715, %v354_v54  ;;  %v340_v44 = vmul.f32 %v999_v31, %v999_v31  ;;  %v303_v3 = vmul.f32 %v963_v2, %v280_v56 }
 0x143   :  { %v654_v6 = vpop.eup %653  ;;  %v371_v7 = vmul.f32 0.044715, %v355_v57  ;;  %v341_v14 = vmul.f32 %v1004_v58, %v1004_v58  ;;  %v304_v9 = vmul.f32 %v963_v2, %v281_v59  ;;  %665 = vrsqrt.f32 %v256_v60 }
 0x144   :  { %v656_v10 = vpop.eup %655  ;;  %667 = vtanh.f32 %v401_v63  ;;  %v386_v43 = vadd.f32 %v370_v0, %v983_v37  ;;  %v356_v49 = vmul.f32 %v340_v44, %v999_v31  ;;  %v1016_v18 = vadd.f32 %v969_v8, %v303_v3 }
 0x145   :  { %v387_v19 = vadd.f32 %v371_v7, %v987_v39  ;;  %v357_v20 = vmul.f32 %v341_v14, %v1004_v58  ;;  %v1021_v21 = vadd.f32 %v969_v8, %v304_v9  ;;  %v282_v16 = vmul.f32 %v654_v6, %v902_v27 }
 0x146   :  { %v402_v23 = vmul.f32 0.7978846, %v386_v43  ;;  %v372_v11 = vmul.f32 0.044715, %v356_v49  ;;  %v342_v61 = vmul.f32 %v1016_v18, %v1016_v18  ;;  %v283_v28 = vmul.f32 %v656_v10, %v911_v55 }
 0x147   :  { %v658_v29 = vpop.eup %657  ;;  %v403_v30 = vmul.f32 0.7978846, %v387_v19  ;;  %v373_v32 = vmul.f32 0.044715, %v357_v20  ;;  %v343_v33 = vmul.f32 %v1021_v21, %v1021_v21  ;;  %v305_v4 = vmul.f32 %v963_v2, %v282_v16 }
 0x148   :  { %v660_v5 = vpop.eup %659  ;;  %669 = vtanh.f32 %v402_v23  ;;  %v388_v34 = vadd.f32 %v372_v11, %v999_v31  ;;  %v358_v27 = vmul.f32 %v342_v61, %v1016_v18  ;;  %v306_v36 = vmul.f32 %v963_v2, %v283_v28 }
 0x149   :  { %671 = vtanh.f32 %v403_v30  ;;  %v389_v24 = vadd.f32 %v373_v32, %v1004_v58  ;;  %v359_v55 = vmul.f32 %v343_v33, %v1021_v21  ;;  %v1036_v17 = vadd.f32 %v969_v8, %v305_v4 }
 0x14a   :  { %v404_v38 = vmul.f32 0.7978846, %v388_v34  ;;  %v374_v40 = vmul.f32 0.044715, %v358_v27  ;;  %v1039_v41 = vadd.f32 %v969_v8, %v306_v36  ;;  %v284_v42 = vmul.f32 %v658_v29, %v914_v35 }
 0x14b   :  { %v662_v26 = vpop.eup %661  ;;  %v405_v46 = vmul.f32 0.7978846, %v389_v24  ;;  %v375_v47 = vmul.f32 0.044715, %v359_v55  ;;  %v344_v48 = vmul.f32 %v1036_v17, %v1036_v17  ;;  %v285_v51 = vmul.f32 %v660_v5, %v923_v1 }
 0x14c   :  { %v664_v25 = vpop.eup %663  ;;  %673 = vtanh.f32 %v404_v38  ;;  %v390_v52 = vadd.f32 %v374_v40, %v1016_v18  ;;  %v345_v53 = vmul.f32 %v1039_v41, %v1039_v41  ;;  %v307_v13 = vmul.f32 %v963_v2, %v284_v42  ;;  %v223_v38 = vpop.xlane.xlu0 %222 }
 0x14d   :  { %675 = vtanh.f32 %v405_v46  ;;  %v391_v35 = vadd.f32 %v375_v47, %v1021_v21  ;;  %v360_v54 = vmul.f32 %v344_v48, %v1036_v17  ;;  %v308_v56 = vmul.f32 %v963_v2, %v285_v51 }
 0x14e   :  { %v406_v57 = vmul.f32 0.7978846, %v390_v52  ;;  %v361_v59 = vmul.f32 %v345_v53, %v1039_v41  ;;  %v1054_v1 = vadd.f32 %v969_v8, %v307_v13  ;;  %v286_v60 = vmul.f32 %v662_v26, %v926_v45 }
 0x14f   :  { %v407_v63 = vmul.f32 0.7978846, %v391_v35  ;;  %v376_v0 = vmul.f32 0.044715, %v360_v54  ;;  %v1058_v44 = vadd.f32 %v969_v8, %v308_v56  ;;  %v287_v3 = vmul.f32 %v664_v25, %v935_v15 }
 0x150   :  { %v666_v6 = vpop.eup %665  ;;  %677 = vtanh.f32 %v406_v57  ;;  %v377_v7 = vmul.f32 0.044715, %v361_v59  ;;  %v346_v14 = vmul.f32 %v1054_v1, %v1054_v1  ;;  %v309_v9 = vmul.f32 %v963_v2, %v286_v60 }
 0x151   :  { %v668_v10 = vpop.eup %667  ;;  %679 = vtanh.f32 %v407_v63  ;;  %v392_v45 = vadd.f32 %v376_v0, %v1036_v17  ;;  %v347_v43 = vmul.f32 %v1058_v44, %v1058_v44  ;;  %v310_v49 = vmul.f32 %v963_v2, %v287_v3 }
 0x152   :  { %v433_v19 = vadd.f32 1.0, %v668_v10  ;;  %v393_v15 = vadd.f32 %v377_v7, %v1039_v41  ;;  %v362_v20 = vmul.f32 %v346_v14, %v1054_v1  ;;  %v1071_v16 = vadd.f32 %v969_v8, %v309_v9  ;;  %v226_v9 = vpop.xlane.xlu1 %225 }
 0x153   :  { %v408_v23 = vmul.f32 0.7978846, %v392_v45  ;;  %v363_v11 = vmul.f32 %v347_v43, %v1058_v44  ;;  %v1075_v61 = vadd.f32 %v969_v8, %v310_v49  ;;  %v288_v28 = vmul.f32 %v666_v6, %v938_v50 }
 0x154   :  { %v449_v29 = vmul.f32 0.5, %v433_v19  ;;  %v409_v30 = vmul.f32 0.7978846, %v393_v15  ;;  %v378_v32 = vmul.f32 0.044715, %v362_v20  ;;  %v348_v33 = vmul.f32 %v1071_v16, %v1071_v16 }
 0x155   :  { %v670_v4 = vpop.eup %669  ;;  %681 = vtanh.f32 %v408_v23  ;;  %v379_v5 = vmul.f32 0.044715, %v363_v11  ;;  %v349_v34 = vmul.f32 %v1075_v61, %v1075_v61  ;;  %v311_v27 = vmul.f32 %v963_v2, %v288_v28 }
 0x156   :  { %v672_v36 = vpop.eup %671  ;;  %v465_v24 = vmul.f32 %v449_v29, %v973_v22  ;;  %v434_v55 = vadd.f32 1.0, %v670_v4  ;;  %683 = vtanh.f32 %v409_v30  ;;  %v394_v50 = vadd.f32 %v378_v32, %v1054_v1 }
 0x157   :  { %v435_v40 = vadd.f32 1.0, %v672_v36  ;;  %v395_v42 = vadd.f32 %v379_v5, %v1058_v44  ;;  %v364_v26 = vmul.f32 %v348_v33, %v1071_v16  ;;  %v365_v46 = vmul.f32 %v349_v34, %v1075_v61 }
 0x158   :  { %v584_v47 = vpack.c.bf16 %v465_v24, %v465_v24  ;;  %v450_v48 = vmul.f32 0.5, %v434_v55  ;;  %v410_v51 = vmul.f32 0.7978846, %v394_v50  ;;  %v1089_v25 = vadd.f32 %v969_v8, %v311_v27 }
 0x159   :  { %v674_v52 = vpop.eup %673  ;;  %v451_v22 = vmul.f32 0.5, %v435_v40  ;;  %v411_v53 = vmul.f32 0.7978846, %v395_v42  ;;  %v380_v13 = vmul.f32 0.044715, %v364_v26  ;;  %v241_v35 = vmul.f32 0.125, %v223_v38 }
 0x15a   :  { %v676_v54 = vpop.eup %675  ;;  %546 = vst.msk [vmem:[%s1184_s4] sm:$0xf] %vm545_vm1, %v584_v47  ;;  %v466_v56 = vmul.f32 %v450_v48, %v983_v37  ;;  %v436_v57 = vadd.f32 1.0, %v674_v52  ;;  %685 = vtanh.f32 %v410_v51  ;;  %v381_v59 = vmul.f32 0.044715, %v365_v46 }
 0x15b   :  { %v467_v60 = vmul.f32 %v451_v22, %v987_v39  ;;  %v437_v63 = vadd.f32 1.0, %v676_v54  ;;  %687 = vtanh.f32 %v411_v53  ;;  %v396_v0 = vadd.f32 %v380_v13, %v1071_v16 }
 0x15c   :  { %v585_v3 = vpack.c.bf16 %v466_v56, %v466_v56  ;;  %v452_v6 = vmul.f32 0.5, %v436_v57  ;;  %v397_v7 = vadd.f32 %v381_v59, %v1075_v61  ;;  %v350_v14 = vmul.f32 %v1089_v25, %v1089_v25 }
 0x15d   :  { %v678_v10 = vpop.eup %677  ;;  %v586_v45 = vpack.c.bf16 %v467_v60, %v467_v60  ;;  %v453_v37 = vmul.f32 0.5, %v437_v63  ;;  %v412_v43 = vmul.f32 0.7978846, %v396_v0  ;;  %v257_v49 = vadd.f32 1e-06, %v241_v35 }
 0x15e   :  { %v680_v19 = vpop.eup %679  ;;  %547 = vst.msk [vmem:[%s1184_s4 + $0x4] sm:$0xf] %vm545_vm1, %v585_v3  ;;  %v468_v39 = vmul.f32 %v452_v6, %v999_v31  ;;  %v438_v15 = vadd.f32 1.0, %v678_v10  ;;  %v413_v20 = vmul.f32 0.7978846, %v397_v7  ;;  %v366_v23 = vmul.f32 %v350_v14, %v1089_v25 }
 0x15f   :  { %548 = vst.msk [vmem:[%s1184_s4 + $0x8] sm:$0xf] %vm545_vm1, %v586_v45  ;;  %v469_v11 = vmul.f32 %v453_v37, %v1004_v58  ;;  %v439_v28 = vadd.f32 1.0, %v680_v19  ;;  %689 = vtanh.f32 %v412_v43  ;;  %v242_v29 = vmul.f32 0.125, %v226_v9 }
 0x160   :  { %v587_v30 = vpack.c.bf16 %v468_v39, %v468_v39  ;;  %v454_v32 = vmul.f32 0.5, %v438_v15  ;;  %691 = vtanh.f32 %v413_v20  ;;  %v382_v33 = vmul.f32 0.044715, %v366_v23 }
 0x161   :  { %v588_v4 = vpack.c.bf16 %v469_v11, %v469_v11  ;;  %v455_v31 = vmul.f32 0.5, %v439_v28  ;;  %693 = vrsqrt.f32 %v257_v49  ;;  %v258_v5 = vadd.f32 1e-06, %v242_v29 }
 0x162   :  { %v682_v34 = vpop.eup %681  ;;  %549 = vst.msk [vmem:[%s1184_s4 + $0xc] sm:$0xf] %vm545_vm1, %v587_v30  ;;  %v470_v27 = vmul.f32 %v454_v32, %v1016_v18  ;;  %v398_v58 = vadd.f32 %v382_v33, %v1089_v25 }
 0x163   :  { %v684_v36 = vpop.eup %683  ;;  %550 = vst.msk [vmem:[%s1184_s4 + $0x10] sm:$0xf] %vm545_vm1, %v588_v4  ;;  %v471_v24 = vmul.f32 %v455_v31, %v1021_v21  ;;  %v440_v55 = vadd.f32 1.0, %v682_v34  ;;  %695 = vrsqrt.f32 %v258_v5 }
 0x164   :  { %v589_v50 = vpack.c.bf16 %v470_v27, %v470_v27  ;;  %v441_v38 = vadd.f32 1.0, %v684_v36  ;;  %v414_v40 = vmul.f32 0.7978846, %v398_v58 }
 0x165   :  { %v590_v42 = vpack.c.bf16 %v471_v24, %v471_v24  ;;  %v456_v26 = vmul.f32 0.5, %v440_v55 }
 0x166   :  { %551 = vst.msk [vmem:[%s1184_s4 + $0x14] sm:$0xf] %vm545_vm1, %v589_v50  ;;  %v457_v18 = vmul.f32 0.5, %v441_v38  ;;  %697 = vtanh.f32 %v414_v40 }
 0x167   :  { %v686_v46 = vpop.eup %685  ;;  %552 = vst.msk [vmem:[%s1184_s4 + $0x18] sm:$0xf] %vm545_vm1, %v590_v42  ;;  %v472_v21 = vmul.f32 %v456_v26, %v1036_v17 }
 0x168   :  { %v688_v47 = vpop.eup %687  ;;  %v473_v48 = vmul.f32 %v457_v18, %v1039_v41  ;;  %v442_v51 = vadd.f32 1.0, %v686_v46 }
 0x169   :  { %v591_v52 = vpack.c.bf16 %v472_v21, %v472_v21  ;;  %v443_v22 = vadd.f32 1.0, %v688_v47 }
 0x16a   :  { %v592_v53 = vpack.c.bf16 %v473_v48, %v473_v48  ;;  %v458_v13 = vmul.f32 0.5, %v442_v51 }
 0x16b   :  { %553 = vst.msk [vmem:[%s1184_s4 + $0x1c] sm:$0xf] %vm545_vm1, %v591_v52  ;;  %v459_v35 = vmul.f32 0.5, %v443_v22 }
 0x16c   :  { %v690_v54 = vpop.eup %689  ;;  %554 = vst.msk [vmem:[%s1184_s4 + $0x20] sm:$0xf] %vm545_vm1, %v592_v53  ;;  %v474_v17 = vmul.f32 %v458_v13, %v1054_v1 }
 0x16d   :  { %v692_v41 = vpop.eup %691  ;;  %v475_v56 = vmul.f32 %v459_v35, %v1058_v44  ;;  %v444_v57 = vadd.f32 1.0, %v690_v54 }
 0x16e   :  { %v694_v59 = vpop.eup %693  ;;  %v593_v60 = vpack.c.bf16 %v474_v17, %v474_v17  ;;  %v445_v63 = vadd.f32 1.0, %v692_v41 }
 0x16f   :  { %v594_v0 = vpack.c.bf16 %v475_v56, %v475_v56  ;;  %v460_v3 = vmul.f32 0.5, %v444_v57  ;;  %v289_v6 = vmul.f32 %v694_v59, %v947_v12 }
 0x170   :  { %v696_v7 = vpop.eup %695  ;;  %555 = vst.msk [vmem:[%s1184_s4 + $0x24] sm:$0xf] %vm545_vm1, %v593_v60  ;;  %v461_v14 = vmul.f32 0.5, %v445_v63 }
 0x171   :  { %556 = vst.msk [vmem:[%s1184_s4 + $0x28] sm:$0xf] %vm545_vm1, %v594_v0  ;;  %v476_v1 = vmul.f32 %v460_v3, %v1071_v16  ;;  %v312_v44 = vmul.f32 %v963_v2, %v289_v6  ;;  %v290_v9 = vmul.f32 %v696_v7, %v950_v62 }
 0x172   :  { %v477_v12 = vmul.f32 %v461_v14, %v1075_v61 }
 0x173   :  { %v698_v10 = vpop.eup %697  ;;  %v595_v45 = vpack.c.bf16 %v476_v1, %v476_v1  ;;  %v335_v37 = vadd.f32 %v969_v8, %v312_v44  ;;  %v313_v43 = vmul.f32 %v963_v2, %v290_v9 }
 0x174   :  { %v596_v49 = vpack.c.bf16 %v477_v12, %v477_v12  ;;  %v446_v19 = vadd.f32 1.0, %v698_v10 }
 0x175   :  { %557 = vst.msk [vmem:[%s1184_s4 + $0x2c] sm:$0xf] %vm545_vm1, %v595_v45  ;;  %v351_v16 = vmul.f32 %v335_v37, %v335_v37  ;;  %v336_v39 = vadd.f32 %v969_v8, %v313_v43 }
 0x176   :  { %558 = vst.msk [vmem:[%s1184_s4 + $0x30] sm:$0xf] %vm545_vm1, %v596_v49  ;;  %v462_v62 = vmul.f32 0.5, %v446_v19 }
 0x177   :  { %v367_v61 = vmul.f32 %v351_v16, %v335_v37  ;;  %v352_v15 = vmul.f32 %v336_v39, %v336_v39 }
 0x178   :  { %v478_v2 = vmul.f32 %v462_v62, %v1089_v25 }
 0x179   :  { %v383_v20 = vmul.f32 0.044715, %v367_v61  ;;  %v368_v23 = vmul.f32 %v352_v15, %v336_v39 }
 0x17a   :  { %v597_v11 = vpack.c.bf16 %v478_v2, %v478_v2 }
 0x17b   :  { %v399_v28 = vadd.f32 %v383_v20, %v335_v37  ;;  %v384_v29 = vmul.f32 0.044715, %v368_v23 }
 0x17c   :  { %559 = vst.msk [vmem:[%s1184_s4 + $0x34] sm:$0xf] %vm545_vm1, %v597_v11 }
 0x17d   :  { %v415_v8 = vmul.f32 0.7978846, %v399_v28  ;;  %v400_v30 = vadd.f32 %v384_v29, %v336_v39 }
 0x17f   :  { %699 = vtanh.f32 %v415_v8  ;;  %v416_v32 = vmul.f32 0.7978846, %v400_v30 }
 0x181   :  { %701 = vtanh.f32 %v416_v32 }
 0x18c   :  { %v700_v33 = vpop.eup %699 }
 0x18d   :  { %v447_v4 = vadd.f32 1.0, %v700_v33 }
 0x18e   :  { %v702_v31 = vpop.eup %701 }
 0x18f   :  { %v463_v5 = vmul.f32 0.5, %v447_v4  ;;  %v448_v25 = vadd.f32 1.0, %v702_v31 }
 0x191   :  { %v479_v34 = vmul.f32 %v463_v5, %v335_v37  ;;  %v464_v27 = vmul.f32 0.5, %v448_v25 }
 0x193   :  { %v598_v58 = vpack.c.bf16 %v479_v34, %v479_v34  ;;  %v480_v36 = vmul.f32 %v464_v27, %v336_v39 }
 0x195   :  { %560 = vst.msk [vmem:[%s1184_s4 + $0x38] sm:$0xf] %vm545_vm1, %v598_v58  ;;  %v599_v24 = vpack.c.bf16 %v480_v36, %v480_v36 }
 0x197   :  { %561 = vst.msk [vmem:[%s1184_s4 + $0x3c] sm:$0xf] %vm545_vm1, %v599_v24 }

// kernel: dcf_sam_forward.98
= control target key start
LH: loop header
LB: loop body
LE: loop exit
PB: predicated region body
PF: predicated region fallthrough
CT: control target
= control target key end

     0   :  { %vm160_vm0 = vcmask 31744   ;;  %s716_s1 = inlined_call_operand.vmem [shape: bf16[2,256,4], index: 1, kind: input, shape index: {}]   ;;  %s717_s0 = inlined_call_operand.vmem [shape: f32[2,4,4], index: 0, kind: input, shape index: {}]   ;;  %s718_s2 = inlined_call_operand.vmem [shape: f32[2,4,256], index: 2, kind: output, shape index: {}]  }
   0x1   :  { %v525_v0 = vld [vmem:[%s716_s1 + $0x78] sm:$0xff]   ;;  %v529_v5 = vld [vmem:[%s716_s1 + $0x70] sm:$0xff]   ;;  %v533_v11 = vld [vmem:[%s716_s1 + $0x68] sm:$0xff]  }
   0x2   :  { %v526_v1 = vld [vmem:[%s716_s1 + $0xf8] sm:$0xff]   ;;  %509 = vmatprep.subr.msk.bf16.mxu0 %vm160_vm0, %v525_v0  ;;  %v530_v7 = vld [vmem:[%s716_s1 + $0xf0] sm:$0xff]   ;;  %v534_v13 = vld [vmem:[%s716_s1 + $0xe8] sm:$0xff]  }
   0x3   :  { %v527_v2 = vld [vmem:[%s716_s1 + $0x38] sm:$0xff]   ;;  %517 = vmatprep.subr.msk.bf16.mxu1 %vm160_vm0, %v526_v1  ;;  %v531_v8 = vld [vmem:[%s716_s1 + $0x30] sm:$0xff]   ;;  %v535_v14 = vld [vmem:[%s716_s1 + $0x28] sm:$0xff]  }
   0x4   :  { %v528_v3 = vld [vmem:[%s716_s1 + $0xb8] sm:$0xff]   ;;  %v186_v4 = vsel %vm160_vm0, %v527_v2, 0  ;;  %v532_v9 = vld [vmem:[%s716_s1 + $0xb0] sm:$0xff]   ;;  %v183_v10 = vsel %vm160_vm0, %v531_v8, 0  ;;  %v536_v15 = vld [vmem:[%s716_s1 + $0xa8] sm:$0xff]   ;;  %v180_v16 = vsel %vm160_vm0, %v535_v14, 0 }
   0x5   :  { %474 = vmatpush3.bf16.xpose.msra.mxu0 %v186_v4  ;;  %v358_v6 = vsel %vm160_vm0, %v528_v3, 0  ;;  %v355_v12 = vsel %vm160_vm0, %v532_v9, 0  ;;  %v537_v17 = vld [vmem:[%s716_s1 + $0x60] sm:$0xff]   ;;  %v352_v18 = vsel %vm160_vm0, %v536_v15, 0  ;;  %v541_v23 = vld [vmem:[%s716_s1 + $0x58] sm:$0xff]   ;;  %v545_v33 = vld [vmem:[%s716_s1 + $0x50] sm:$0xff]  }
   0x6   :  { %492 = vmatpush3.bf16.xpose.msra.mxu1 %v358_v6  ;;  %510 = vmatprep.subr.msk.bf16.mxu0 %vm160_vm0, %v529_v5  ;;  %v538_v19 = vld [vmem:[%s716_s1 + $0xe0] sm:$0xff]   ;;  %v542_v25 = vld [vmem:[%s716_s1 + $0xd8] sm:$0xff]   ;;  %v546_v35 = vld [vmem:[%s716_s1 + $0xd0] sm:$0xff]  }
   0x7   :  { %518 = vmatprep.subr.msk.bf16.mxu1 %vm160_vm0, %v530_v7  ;;  %v539_v20 = vld [vmem:[%s716_s1 + $0x20] sm:$0xff]   ;;  %v543_v26 = vld [vmem:[%s716_s1 + $0x18] sm:$0xff]   ;;  %v547_v36 = vld [vmem:[%s716_s1 + $0x10] sm:$0xff]  }
   0x8   :  { %v540_v21 = vld [vmem:[%s716_s1 + $0xa0] sm:$0xff]   ;;  %v177_v22 = vsel %vm160_vm0, %v539_v20, 0  ;;  %v544_v27 = vld [vmem:[%s716_s1 + $0x98] sm:$0xff]   ;;  %v174_v32 = vsel %vm160_vm0, %v543_v26, 0  ;;  %v548_v37 = vld [vmem:[%s716_s1 + $0x90] sm:$0xff]   ;;  %v171_v38 = vsel %vm160_vm0, %v547_v36, 0 }
   0x9   :  { %v349_v24 = vsel %vm160_vm0, %v540_v21, 0  ;;  %v12_v28 = vld [vmem:[%s717_s0] sm:$0xf]  ;;  %v13_v29 = vld [vmem:[%s717_s0 + $0x4] sm:$0xf]  ;;  %v346_v34 = vsel %vm160_vm0, %v544_v27, 0 }
   0xa   :  { %v14_v30 = vpack.c.bf16 %v12_v28, %v12_v28  ;;  %v15_v31 = vpack.c.bf16 %v13_v29, %v13_v29  ;;  %v549_v39 = vld [vmem:[%s716_s1 + $0x48] sm:$0xff]   ;;  %v343_v40 = vsel %vm160_vm0, %v548_v37, 0  ;;  %v553_v45 = vld [vmem:[%s716_s1 + $0x40] sm:$0xff]  }
   0xb   :  { %v550_v41 = vld [vmem:[%s716_s1 + $0xc8] sm:$0xff]   ;;  %v554_v47 = vld [vmem:[%s716_s1 + $0xc0] sm:$0xff]  }
   0xc   :  { %489 = vmatprep.mubr.msk.bf16.mxu0 %vm160_vm0, %v14_v30  ;;  %507 = vmatprep.mubr.msk.bf16.mxu1 %vm160_vm0, %v15_v31  ;;  %v551_v42 = vld [vmem:[%s716_s1 + $0x8] sm:$0xff]   ;;  %v555_v48 = vld [vmem:[%s716_s1] sm:$0xff]  }
   0xd   :  { %476 = vmatpush3.bf16.xpose.msra.mxu0 %v183_v10  ;;  %v552_v43 = vld [vmem:[%s716_s1 + $0x88] sm:$0xff]   ;;  %v168_v44 = vsel %vm160_vm0, %v551_v42, 0  ;;  %v556_v49 = vld [vmem:[%s716_s1 + $0x80] sm:$0xff]   ;;  %v165_v50 = vsel %vm160_vm0, %v555_v48, 0 }
   0xe   :  { %494 = vmatpush3.bf16.xpose.msra.mxu1 %v355_v12  ;;  %511 = vmatprep.subr.msk.bf16.mxu0 %vm160_vm0, %v533_v11  ;;  %v340_v46 = vsel %vm160_vm0, %v552_v43, 0  ;;  %v337_v51 = vsel %vm160_vm0, %v556_v49, 0 }
   0xf   :  { %519 = vmatprep.subr.msk.bf16.mxu1 %vm160_vm0, %v534_v13 }
  0x15   :  { %478 = vmatpush3.bf16.xpose.msra.mxu0 %v180_v16 }
  0x16   :  { %496 = vmatpush3.bf16.xpose.msra.mxu1 %v352_v18  ;;  %512 = vmatprep.subr.msk.bf16.mxu0 %vm160_vm0, %v537_v17 }
  0x17   :  { %520 = vmatprep.subr.msk.bf16.mxu1 %vm160_vm0, %v538_v19 }
  0x1d   :  { %480 = vmatpush3.bf16.xpose.msra.mxu0 %v177_v22 }
  0x1e   :  { %498 = vmatpush3.bf16.xpose.msra.mxu1 %v349_v24  ;;  %513 = vmatprep.subr.msk.bf16.mxu0 %vm160_vm0, %v541_v23 }
  0x1f   :  { %521 = vmatprep.subr.msk.bf16.mxu1 %vm160_vm0, %v542_v25 }
  0x25   :  { %482 = vmatpush3.bf16.xpose.msra.mxu0 %v174_v32 }
  0x26   :  { %500 = vmatpush3.bf16.xpose.msra.mxu1 %v346_v34  ;;  %514 = vmatprep.subr.msk.bf16.mxu0 %vm160_vm0, %v545_v33 }
  0x27   :  { %522 = vmatprep.subr.msk.bf16.mxu1 %vm160_vm0, %v546_v35 }
  0x2d   :  { %484 = vmatpush3.bf16.xpose.msra.mxu0 %v171_v38 }
  0x2e   :  { %502 = vmatpush3.bf16.xpose.msra.mxu1 %v343_v40  ;;  %515 = vmatprep.subr.msk.bf16.mxu0 %vm160_vm0, %v549_v39 }
  0x2f   :  { %523 = vmatprep.subr.msk.bf16.mxu1 %vm160_vm0, %v550_v41 }
  0x35   :  { %486 = vmatpush3.bf16.xpose.msra.mxu0 %v168_v44 }
  0x36   :  { %504 = vmatpush3.bf16.xpose.msra.mxu1 %v340_v46  ;;  %516 = vmatprep.subr.msk.bf16.mxu0 %vm160_vm0, %v553_v45 }
  0x37   :  { %524 = vmatprep.subr.msk.bf16.mxu1 %vm160_vm0, %v554_v47 }
  0x3d   :  { %488 = vmatpush3.bf16.xpose.msra.mxu0 %v165_v50 }
  0x3e   :  { %506 = vmatpush3.bf16.xpose.msra.mxu1 %v337_v51 }
  0x44   :  { %490 = vmatmul.mubr.msk.bf16.vlgmr.msra.gmra.mxu0 %vm160_vm0, %v14_v30 }
  0x45   :  { %508 = vmatmul.mubr.msk.bf16.vlgmr.msra.gmra.mxu1 %vm160_vm0, %v15_v31 }
 0x104   :  { %v246_v52 = vpop.f32.mrf.mxu0 }
 0x105   :  { %v418_v53 = vpop.f32.mrf.mxu1 }
 0x106   :  { %v248_v54 = vpop.f32.mrf.mxu0 }
 0x107   :  { %v429_v55 = vcombine.low %v246_v52, %v248_v54  ;;  %v420_v56 = vpop.f32.mrf.mxu1 }
 0x108   :  { %v430_v57 = vcombine.low %v418_v53, %v420_v56  ;;  %v250_v58 = vpop.f32.mrf.mxu0 }
 0x109   :  { %433 = vst [vmem:[%s718_s2] sm:$0xff] %v429_v55  ;;  %v422_v59 = vpop.f32.mrf.mxu1 }
 0x10a   :  { %434 = vst [vmem:[%s718_s2 + $0x8] sm:$0xff] %v430_v57  ;;  %v251_v60 = vpop.f32.mrf.mxu0 }
 0x10b   :  { %v423_v61 = vpop.f32.mrf.mxu1 }

// kernel: dcf_sam_forward.97
= control target key start
LH: loop header
LB: loop body
LE: loop exit
PB: predicated region body
PF: predicated region fallthrough
CT: control target
= control target key end

     0   :  { %vm1105_vm0 = vcmask 27648   ;;  %s2611_s0 = inlined_call_operand.vmem [shape: bf16[512,4], index: 0, kind: input, shape index: {}]   ;;  %s2612_s1 = inlined_call_operand.vmem [shape: f32[512,4], index: 1, kind: input, shape index: {}]   ;;  %s2613_s2 = inlined_call_operand.vmem [shape: f32[1,4], index: 2, kind: input, shape index: {}]   ;;  %s2614_s3 = inlined_call_operand.vmem [shape: f32[1,4], index: 3, kind: input, shape index: {}]   ;;  %s2615_s4 = inlined_call_operand.vmem [shape: bf16[512,4], index: 4, kind: output, shape index: {}]  }
   0x1   :  { %v1303_v0 = vld [vmem:[%s2611_s0] sm:$0xff]   ;;  %v146_v2 = vld [vmem:[%s2612_s1 + $0x8] sm:$0xff]  ;;  %v147_v6 = vld [vmem:[%s2612_s1 + $0x10] sm:$0xff] }
   0x2   :  { %v145_v1 = vld [vmem:[%s2612_s1] sm:$0xff]  ;;  %v1304_v3 = vunpack.c.l.bf16 %v1303_v0  ;;  %v1305_v4 = vunpack.c.h.bf16 %v1303_v0  ;;  %v1430_v5 = vld [vmem:[%s2611_s0 + $0x8] sm:$0xff]   ;;  %v148_v7 = vld [vmem:[%s2612_s1 + $0x18] sm:$0xff] }
   0x3   :  { %v1308_v8 = vunpack.c.l.bf16 %v1430_v5  ;;  %v1309_v9 = vunpack.c.h.bf16 %v1430_v5  ;;  %v1431_v10 = vld [vmem:[%s2611_s0 + $0x10] sm:$0xff]   ;;  %v149_v11 = vld [vmem:[%s2612_s1 + $0x20] sm:$0xff]  ;;  %v150_v12 = vld [vmem:[%s2612_s1 + $0x28] sm:$0xff] }
   0x4   :  { %v1641_v13 = vadd.f32 %v1304_v3, %v145_v1  ;;  %v1643_v14 = vadd.f32 %v1305_v4, %v146_v2  ;;  %v1312_v15 = vunpack.c.l.bf16 %v1431_v10  ;;  %v1313_v16 = vunpack.c.h.bf16 %v1431_v10  ;;  %v1432_v17 = vld [vmem:[%s2611_s0 + $0x18] sm:$0xff]   ;;  %v151_v18 = vld [vmem:[%s2612_s1 + $0x30] sm:$0xff]  ;;  %v1433_v56 = vld [vmem:[%s2611_s0 + $0x20] sm:$0xff]  }
   0x5   :  { %v152_v19 = vld [vmem:[%s2612_s1 + $0x38] sm:$0xff]  ;;  %v1654_v20 = vadd.f32 %v1308_v8, %v147_v6  ;;  %v1656_v21 = vadd.f32 %v1309_v9, %v148_v7  ;;  %v1316_v22 = vunpack.c.l.bf16 %v1432_v17  ;;  %v1317_v23 = vunpack.c.h.bf16 %v1432_v17  ;;  %v153_v1 = vld [vmem:[%s2612_s1 + $0x40] sm:$0xff]  ;;  %v1434_v2 = vld [vmem:[%s2611_s0 + $0x28] sm:$0xff]  }
   0x6   :  { %v273_v24 = vmul.f32 %v1641_v13, %v1641_v13  ;;  %v274_v25 = vmul.f32 %v1643_v14, %v1643_v14  ;;  %v1662_v26 = vadd.f32 %v1312_v15, %v149_v11  ;;  %v1664_v27 = vadd.f32 %v1313_v16, %v150_v12  ;;  %v154_v6 = vld [vmem:[%s2612_s1 + $0x48] sm:$0xff]  ;;  %v1435_v7 = vld [vmem:[%s2611_s0 + $0x30] sm:$0xff]   ;;  %v156_v12 = vld [vmem:[%s2612_s1 + $0x58] sm:$0xff] }
   0x7   :  { %v275_v28 = vmul.f32 %v1654_v20, %v1654_v20  ;;  %v276_v29 = vmul.f32 %v1656_v21, %v1656_v21  ;;  %v1670_v30 = vadd.f32 %v1316_v22, %v151_v18  ;;  %v1672_v31 = vadd.f32 %v1317_v23, %v152_v19  ;;  %v155_v11 = vld [vmem:[%s2612_s1 + $0x50] sm:$0xff]  ;;  %v157_v18 = vld [vmem:[%s2612_s1 + $0x60] sm:$0xff]  ;;  %v158_v19 = vld [vmem:[%s2612_s1 + $0x68] sm:$0xff] }
   0x8   :  { %v337_v32 = vmul.f32 %v273_v24, %v1641_v13  ;;  %v338_v33 = vmul.f32 %v274_v25, %v1643_v14  ;;  %v277_v34 = vmul.f32 %v1662_v26, %v1662_v26  ;;  %v278_v35 = vmul.f32 %v1664_v27, %v1664_v27 }
   0x9   :  { %v339_v36 = vmul.f32 %v275_v28, %v1654_v20  ;;  %v340_v37 = vmul.f32 %v276_v29, %v1656_v21  ;;  %v279_v38 = vmul.f32 %v1670_v30, %v1670_v30  ;;  %v280_v39 = vmul.f32 %v1672_v31, %v1672_v31 }
   0xa   :  { %v401_v40 = vmul.f32 0.044715, %v337_v32  ;;  %v402_v41 = vmul.f32 0.044715, %v338_v33  ;;  %v341_v42 = vmul.f32 %v277_v34, %v1662_v26  ;;  %v342_v43 = vmul.f32 %v278_v35, %v1664_v27  ;;  %v1436_v35 = vld [vmem:[%s2611_s0 + $0x38] sm:$0xff]  }
   0xb   :  { %v403_v44 = vmul.f32 0.044715, %v339_v36  ;;  %v404_v45 = vmul.f32 0.044715, %v340_v37  ;;  %v343_v46 = vmul.f32 %v279_v38, %v1670_v30  ;;  %v344_v47 = vmul.f32 %v280_v39, %v1672_v31 }
   0xc   :  { %v465_v48 = vadd.f32 %v401_v40, %v1641_v13  ;;  %v466_v49 = vadd.f32 %v402_v41, %v1643_v14  ;;  %v405_v50 = vmul.f32 0.044715, %v341_v42  ;;  %v406_v51 = vmul.f32 0.044715, %v342_v43  ;;  %v159_v42 = vld [vmem:[%s2612_s1 + $0x70] sm:$0xff] }
   0xd   :  { %v467_v52 = vadd.f32 %v403_v44, %v1654_v20  ;;  %v468_v53 = vadd.f32 %v404_v45, %v1656_v21  ;;  %v407_v54 = vmul.f32 0.044715, %v343_v46  ;;  %v408_v55 = vmul.f32 0.044715, %v344_v47  ;;  %v160_v47 = vld [vmem:[%s2612_s1 + $0x78] sm:$0xff] }
   0xe   :  { %v529_v57 = vmul.f32 0.7978846, %v465_v48  ;;  %v530_v58 = vmul.f32 0.7978846, %v466_v49  ;;  %v469_v59 = vadd.f32 %v405_v50, %v1662_v26  ;;  %v470_v60 = vadd.f32 %v406_v51, %v1664_v27 }
   0xf   :  { %v531_v61 = vmul.f32 0.7978846, %v467_v52  ;;  %v532_v62 = vmul.f32 0.7978846, %v468_v53  ;;  %v471_v63 = vadd.f32 %v407_v54, %v1670_v30  ;;  %v472_v0 = vadd.f32 %v408_v55, %v1672_v31 }
  0x10   :  { %1461 = vtanh.f32 %v529_v57  ;;  %v533_v3 = vmul.f32 0.7978846, %v469_v59  ;;  %v534_v4 = vmul.f32 0.7978846, %v470_v60  ;;  %v1320_v5 = vunpack.c.l.bf16 %v1433_v56 }
  0x11   :  { %1463 = vtanh.f32 %v530_v58  ;;  %v535_v8 = vmul.f32 0.7978846, %v471_v63  ;;  %v536_v9 = vmul.f32 0.7978846, %v472_v0  ;;  %v1321_v10 = vunpack.c.h.bf16 %v1433_v56 }
  0x12   :  { %1465 = vtanh.f32 %v531_v61  ;;  %v1719_v15 = vadd.f32 %v1320_v5, %v153_v1  ;;  %v1324_v16 = vunpack.c.l.bf16 %v1434_v2  ;;  %v1325_v17 = vunpack.c.h.bf16 %v1434_v2 }
  0x13   :  { %1467 = vtanh.f32 %v532_v62  ;;  %v1727_v22 = vadd.f32 %v1321_v10, %v154_v6  ;;  %v1328_v23 = vunpack.c.l.bf16 %v1435_v7  ;;  %v1329_v24 = vunpack.c.h.bf16 %v1435_v7 }
  0x14   :  { %1469 = vtanh.f32 %v533_v3  ;;  %v281_v25 = vmul.f32 %v1719_v15, %v1719_v15  ;;  %v1731_v28 = vadd.f32 %v1324_v16, %v155_v11  ;;  %v1733_v29 = vadd.f32 %v1325_v17, %v156_v12 }
  0x15   :  { %1471 = vtanh.f32 %v534_v4  ;;  %v282_v32 = vmul.f32 %v1727_v22, %v1727_v22  ;;  %v1737_v33 = vadd.f32 %v1328_v23, %v157_v18  ;;  %v1739_v34 = vadd.f32 %v1329_v24, %v158_v19 }
  0x16   :  { %1473 = vtanh.f32 %v535_v8  ;;  %v345_v36 = vmul.f32 %v281_v25, %v1719_v15  ;;  %v283_v37 = vmul.f32 %v1731_v28, %v1731_v28  ;;  %v284_v38 = vmul.f32 %v1733_v29, %v1733_v29 }
  0x17   :  { %1475 = vtanh.f32 %v536_v9  ;;  %v346_v39 = vmul.f32 %v282_v32, %v1727_v22  ;;  %v285_v40 = vmul.f32 %v1737_v33, %v1737_v33  ;;  %v286_v41 = vmul.f32 %v1739_v34, %v1739_v34 }
  0x18   :  { %v409_v43 = vmul.f32 0.044715, %v345_v36  ;;  %v347_v44 = vmul.f32 %v283_v37, %v1731_v28  ;;  %v348_v45 = vmul.f32 %v284_v38, %v1733_v29  ;;  %v1332_v46 = vunpack.c.l.bf16 %v1436_v35 }
  0x19   :  { %v410_v48 = vmul.f32 0.044715, %v346_v39  ;;  %v349_v49 = vmul.f32 %v285_v40, %v1737_v33  ;;  %v350_v50 = vmul.f32 %v286_v41, %v1739_v34  ;;  %v1333_v51 = vunpack.c.h.bf16 %v1436_v35 }
  0x1a   :  { %v473_v52 = vadd.f32 %v409_v43, %v1719_v15  ;;  %v411_v53 = vmul.f32 0.044715, %v347_v44  ;;  %v412_v54 = vmul.f32 0.044715, %v348_v45  ;;  %v1765_v55 = vadd.f32 %v1332_v46, %v159_v42 }
  0x1b   :  { %v474_v56 = vadd.f32 %v410_v48, %v1727_v22  ;;  %v413_v57 = vmul.f32 0.044715, %v349_v49  ;;  %v414_v58 = vmul.f32 0.044715, %v350_v50  ;;  %v1768_v59 = vadd.f32 %v1333_v51, %v160_v47  ;;  %v1437_v51 = vld [vmem:[%s2611_s0 + $0x40] sm:$0xff]  }
  0x1c   :  { %v537_v60 = vmul.f32 0.7978846, %v473_v52  ;;  %v475_v61 = vadd.f32 %v411_v53, %v1731_v28  ;;  %v476_v62 = vadd.f32 %v412_v54, %v1733_v29  ;;  %v287_v63 = vmul.f32 %v1765_v55, %v1765_v55 }
  0x1d   :  { %v1462_v0 = vpop.eup %1461  ;;  %v538_v1 = vmul.f32 0.7978846, %v474_v56  ;;  %v477_v2 = vadd.f32 %v413_v57, %v1737_v33  ;;  %v478_v3 = vadd.f32 %v414_v58, %v1739_v34  ;;  %v288_v4 = vmul.f32 %v1768_v59, %v1768_v59  ;;  %v161_v58 = vld [vmem:[%s2612_s1 + $0x80] sm:$0xff] }
  0x1e   :  { %v1464_v5 = vpop.eup %1463  ;;  %v657_v6 = vadd.f32 1.0, %v1462_v0  ;;  %1477 = vtanh.f32 %v537_v60  ;;  %v539_v7 = vmul.f32 0.7978846, %v475_v61  ;;  %v540_v8 = vmul.f32 0.7978846, %v476_v62 }
  0x1f   :  { %v1466_v9 = vpop.eup %1465  ;;  %v658_v10 = vadd.f32 1.0, %v1464_v5  ;;  %1479 = vtanh.f32 %v538_v1  ;;  %v541_v11 = vmul.f32 0.7978846, %v477_v2  ;;  %v542_v12 = vmul.f32 0.7978846, %v478_v3 }
  0x20   :  { %v1468_v16 = vpop.eup %1467  ;;  %v721_v17 = vmul.f32 0.5, %v657_v6  ;;  %v659_v18 = vadd.f32 1.0, %v1466_v9  ;;  %1481 = vtanh.f32 %v539_v7  ;;  %v351_v19 = vmul.f32 %v287_v63, %v1765_v55  ;;  %v162_v63 = vld [vmem:[%s2612_s1 + $0x88] sm:$0xff] }
  0x21   :  { %v1470_v23 = vpop.eup %1469  ;;  %v722_v24 = vmul.f32 0.5, %v658_v10  ;;  %v660_v25 = vadd.f32 1.0, %v1468_v16  ;;  %1483 = vtanh.f32 %v540_v8  ;;  %v352_v32 = vmul.f32 %v288_v4, %v1768_v59 }
  0x22   :  { %v1472_v35 = vpop.eup %1471  ;;  %v785_v36 = vmul.f32 %v721_v17, %v1641_v13  ;;  %v723_v37 = vmul.f32 0.5, %v659_v18  ;;  %v661_v38 = vadd.f32 1.0, %v1470_v23  ;;  %1485 = vtanh.f32 %v541_v11 }
  0x23   :  { %v1474_v39 = vpop.eup %1473  ;;  %v786_v40 = vmul.f32 %v722_v24, %v1643_v14  ;;  %v724_v41 = vmul.f32 0.5, %v660_v25  ;;  %v662_v42 = vadd.f32 1.0, %v1472_v35  ;;  %1487 = vtanh.f32 %v542_v12 }
  0x24   :  { %v1476_v43 = vpop.eup %1475  ;;  %v1238_v44 = vpack.c.bf16 %v785_v36, %v785_v36  ;;  %v787_v45 = vmul.f32 %v723_v37, %v1654_v20  ;;  %v725_v46 = vmul.f32 0.5, %v661_v38  ;;  %v663_v47 = vadd.f32 1.0, %v1474_v39 }
  0x25   :  { %v1239_v48 = vpack.c.bf16 %v786_v40, %v786_v40  ;;  %v788_v49 = vmul.f32 %v724_v41, %v1656_v21  ;;  %v726_v50 = vmul.f32 0.5, %v662_v42  ;;  %v664_v13 = vadd.f32 1.0, %v1476_v43 }
  0x26   :  { %1106 = vst.msk [vmem:[%s2615_s4] sm:$0xf] %vm1105_vm0, %v1238_v44  ;;  %v1240_v14 = vpack.c.bf16 %v787_v45, %v787_v45  ;;  %v789_v52 = vmul.f32 %v725_v46, %v1662_v26  ;;  %v727_v20 = vmul.f32 0.5, %v663_v47  ;;  %v415_v53 = vmul.f32 0.044715, %v351_v19  ;;  %v1438_v26 = vld [vmem:[%s2611_s0 + $0x48] sm:$0xff]  }
  0x27   :  { %1107 = vst.msk [vmem:[%s2615_s4 + $0x4] sm:$0xf] %vm1105_vm0, %v1239_v48  ;;  %v1241_v21 = vpack.c.bf16 %v788_v49, %v788_v49  ;;  %v790_v54 = vmul.f32 %v726_v50, %v1664_v27  ;;  %v728_v56 = vmul.f32 0.5, %v664_v13  ;;  %v416_v57 = vmul.f32 0.044715, %v352_v32 }
  0x28   :  { %1108 = vst.msk [vmem:[%s2615_s4 + $0x8] sm:$0xf] %vm1105_vm0, %v1240_v14  ;;  %v1242_v60 = vpack.c.bf16 %v789_v52, %v789_v52  ;;  %v791_v61 = vmul.f32 %v727_v20, %v1670_v30  ;;  %v479_v27 = vadd.f32 %v415_v53, %v1765_v55  ;;  %v1336_v62 = vunpack.c.l.bf16 %v1437_v51  ;;  %v163_v30 = vld [vmem:[%s2612_s1 + $0x90] sm:$0xff] }
  0x29   :  { %1109 = vst.msk [vmem:[%s2615_s4 + $0xc] sm:$0xf] %vm1105_vm0, %v1241_v21  ;;  %v1243_v0 = vpack.c.bf16 %v790_v54, %v790_v54  ;;  %v792_v1 = vmul.f32 %v728_v56, %v1672_v31  ;;  %v480_v2 = vadd.f32 %v416_v57, %v1768_v59  ;;  %v1337_v3 = vunpack.c.h.bf16 %v1437_v51  ;;  %v164_v31 = vld [vmem:[%s2612_s1 + $0x98] sm:$0xff] }
  0x2a   :  { %1110 = vst.msk [vmem:[%s2615_s4 + $0x10] sm:$0xf] %vm1105_vm0, %v1242_v60  ;;  %v1244_v4 = vpack.c.bf16 %v791_v61, %v791_v61  ;;  %v543_v5 = vmul.f32 0.7978846, %v479_v27  ;;  %v1825_v6 = vadd.f32 %v1336_v62, %v161_v58  ;;  %v1340_v7 = vunpack.c.l.bf16 %v1438_v26  ;;  %v1439_v58 = vld [vmem:[%s2611_s0 + $0x50] sm:$0xff]  }
  0x2b   :  { %v1478_v8 = vpop.eup %1477  ;;  %1111 = vst.msk [vmem:[%s2615_s4 + $0x14] sm:$0xf] %vm1105_vm0, %v1243_v0  ;;  %v1245_v9 = vpack.c.bf16 %v792_v1, %v792_v1  ;;  %v544_v10 = vmul.f32 0.7978846, %v480_v2  ;;  %v1834_v11 = vadd.f32 %v1337_v3, %v162_v63  ;;  %v1341_v12 = vunpack.c.h.bf16 %v1438_v26  ;;  %v165_v63 = vld [vmem:[%s2612_s1 + $0xa0] sm:$0xff]  ;;  %v166_v2 = vld [vmem:[%s2612_s1 + $0xa8] sm:$0xff] }
  0x2c   :  { %v1480_v16 = vpop.eup %1479  ;;  %1112 = vst.msk [vmem:[%s2615_s4 + $0x18] sm:$0xf] %vm1105_vm0, %v1244_v4  ;;  %v665_v17 = vadd.f32 1.0, %v1478_v8  ;;  %1489 = vtanh.f32 %v543_v5  ;;  %v289_v18 = vmul.f32 %v1825_v6, %v1825_v6  ;;  %v1842_v19 = vadd.f32 %v1340_v7, %v163_v30  ;;  %v1441_v3 = vld [vmem:[%s2611_s0 + $0x60] sm:$0xff]   ;;  %v167_v7 = vld [vmem:[%s2612_s1 + $0xb0] sm:$0xff] }
  0x2d   :  { %v1482_v23 = vpop.eup %1481  ;;  %1113 = vst.msk [vmem:[%s2615_s4 + $0x1c] sm:$0xf] %vm1105_vm0, %v1245_v9  ;;  %v666_v24 = vadd.f32 1.0, %v1480_v16  ;;  %1491 = vtanh.f32 %v544_v10  ;;  %v290_v25 = vmul.f32 %v1834_v11, %v1834_v11  ;;  %v1850_v32 = vadd.f32 %v1341_v12, %v164_v31  ;;  %v168_v12 = vld [vmem:[%s2612_s1 + $0xb8] sm:$0xff] }
  0x2e   :  { %v1484_v35 = vpop.eup %1483  ;;  %v729_v36 = vmul.f32 0.5, %v665_v17  ;;  %v667_v37 = vadd.f32 1.0, %v1482_v23  ;;  %v353_v38 = vmul.f32 %v289_v18, %v1825_v6  ;;  %v291_v39 = vmul.f32 %v1842_v19, %v1842_v19 }
  0x2f   :  { %v1486_v40 = vpop.eup %1485  ;;  %v730_v41 = vmul.f32 0.5, %v666_v24  ;;  %v668_v42 = vadd.f32 1.0, %v1484_v35  ;;  %v354_v43 = vmul.f32 %v290_v25, %v1834_v11  ;;  %v292_v44 = vmul.f32 %v1850_v32, %v1850_v32 }
  0x30   :  { %v1488_v45 = vpop.eup %1487  ;;  %v793_v46 = vmul.f32 %v729_v36, %v1719_v15  ;;  %v731_v47 = vmul.f32 0.5, %v667_v37  ;;  %v669_v48 = vadd.f32 1.0, %v1486_v40  ;;  %v417_v49 = vmul.f32 0.044715, %v353_v38 }
  0x31   :  { %v794_v50 = vmul.f32 %v730_v41, %v1727_v22  ;;  %v732_v13 = vmul.f32 0.5, %v668_v42  ;;  %v670_v51 = vadd.f32 1.0, %v1488_v45  ;;  %v418_v14 = vmul.f32 0.044715, %v354_v43  ;;  %v169_v43 = vld [vmem:[%s2612_s1 + $0xc0] sm:$0xff] }
  0x32   :  { %v1246_v52 = vpack.c.bf16 %v793_v46, %v793_v46  ;;  %v795_v20 = vmul.f32 %v731_v47, %v1731_v28  ;;  %v733_v53 = vmul.f32 0.5, %v669_v48  ;;  %v481_v21 = vadd.f32 %v417_v49, %v1825_v6  ;;  %v170_v47 = vld [vmem:[%s2612_s1 + $0xc8] sm:$0xff] }
  0x33   :  { %v1247_v54 = vpack.c.bf16 %v794_v50, %v794_v50  ;;  %v796_v56 = vmul.f32 %v732_v13, %v1733_v29  ;;  %v734_v57 = vmul.f32 0.5, %v670_v51  ;;  %v482_v15 = vadd.f32 %v418_v14, %v1834_v11 }
  0x34   :  { %1114 = vst.msk [vmem:[%s2615_s4 + $0x20] sm:$0xf] %vm1105_vm0, %v1246_v52  ;;  %v1248_v22 = vpack.c.bf16 %v795_v20, %v795_v20  ;;  %v797_v28 = vmul.f32 %v733_v53, %v1737_v33  ;;  %v545_v26 = vmul.f32 0.7978846, %v481_v21  ;;  %v355_v60 = vmul.f32 %v291_v39, %v1842_v19  ;;  %v1440_v33 = vld [vmem:[%s2611_s0 + $0x58] sm:$0xff]  }
  0x35   :  { %1115 = vst.msk [vmem:[%s2615_s4 + $0x24] sm:$0xf] %vm1105_vm0, %v1247_v54  ;;  %v1249_v29 = vpack.c.bf16 %v796_v56, %v796_v56  ;;  %v798_v61 = vmul.f32 %v734_v57, %v1739_v34  ;;  %v546_v27 = vmul.f32 0.7978846, %v482_v15  ;;  %v356_v62 = vmul.f32 %v292_v44, %v1850_v32  ;;  %v1442_v56 = vld [vmem:[%s2611_s0 + $0x68] sm:$0xff]  }
  0x36   :  { %1116 = vst.msk [vmem:[%s2615_s4 + $0x28] sm:$0xf] %vm1105_vm0, %v1248_v22  ;;  %v1250_v0 = vpack.c.bf16 %v797_v28, %v797_v28  ;;  %1493 = vtanh.f32 %v545_v26  ;;  %v419_v1 = vmul.f32 0.044715, %v355_v60  ;;  %v1344_v34 = vunpack.c.l.bf16 %v1439_v58 }
  0x37   :  { %1117 = vst.msk [vmem:[%s2615_s4 + $0x2c] sm:$0xf] %vm1105_vm0, %v1249_v29  ;;  %v1251_v30 = vpack.c.bf16 %v798_v61, %v798_v61  ;;  %1495 = vtanh.f32 %v546_v27  ;;  %v420_v4 = vmul.f32 0.044715, %v356_v62  ;;  %v1345_v5 = vunpack.c.h.bf16 %v1439_v58 }
  0x38   :  { %1118 = vst.msk [vmem:[%s2615_s4 + $0x30] sm:$0xf] %vm1105_vm0, %v1250_v0  ;;  %v483_v31 = vadd.f32 %v419_v1, %v1842_v19  ;;  %v1907_v8 = vadd.f32 %v1344_v34, %v165_v63  ;;  %v1348_v9 = vunpack.c.l.bf16 %v1440_v33  ;;  %v1349_v10 = vunpack.c.h.bf16 %v1440_v33  ;;  %v171_v1 = vld [vmem:[%s2612_s1 + $0xd0] sm:$0xff] }
  0x39   :  { %v1490_v16 = vpop.eup %1489  ;;  %1119 = vst.msk [vmem:[%s2615_s4 + $0x34] sm:$0xf] %vm1105_vm0, %v1251_v30  ;;  %v484_v17 = vadd.f32 %v420_v4, %v1850_v32  ;;  %v1917_v18 = vadd.f32 %v1345_v5, %v166_v2  ;;  %v1352_v23 = vunpack.c.l.bf16 %v1441_v3  ;;  %v1353_v24 = vunpack.c.h.bf16 %v1441_v3  ;;  %v172_v5 = vld [vmem:[%s2612_s1 + $0xd8] sm:$0xff] }
  0x3a   :  { %v1492_v25 = vpop.eup %1491  ;;  %v671_v35 = vadd.f32 1.0, %v1490_v16  ;;  %v547_v36 = vmul.f32 0.7978846, %v483_v31  ;;  %v293_v37 = vmul.f32 %v1907_v8, %v1907_v8  ;;  %v1921_v38 = vadd.f32 %v1348_v9, %v167_v7 }
  0x3b   :  { %v672_v39 = vadd.f32 1.0, %v1492_v25  ;;  %v548_v40 = vmul.f32 0.7978846, %v484_v17  ;;  %v294_v41 = vmul.f32 %v1917_v18, %v1917_v18  ;;  %v1925_v42 = vadd.f32 %v1349_v10, %v168_v12  ;;  %v1443_v10 = vld [vmem:[%s2611_s0 + $0x70] sm:$0xff]  }
  0x3c   :  { %v735_v44 = vmul.f32 0.5, %v671_v35  ;;  %1497 = vtanh.f32 %v547_v36  ;;  %v357_v45 = vmul.f32 %v293_v37, %v1907_v8  ;;  %v295_v46 = vmul.f32 %v1921_v38, %v1921_v38 }
  0x3d   :  { %v736_v48 = vmul.f32 0.5, %v672_v39  ;;  %1499 = vtanh.f32 %v548_v40  ;;  %v358_v49 = vmul.f32 %v294_v41, %v1917_v18  ;;  %v296_v50 = vmul.f32 %v1925_v42, %v1925_v42 }
  0x3e   :  { %v799_v13 = vmul.f32 %v735_v44, %v1765_v55  ;;  %v421_v51 = vmul.f32 0.044715, %v357_v45  ;;  %v359_v14 = vmul.f32 %v295_v46, %v1921_v38  ;;  %v1941_v52 = vadd.f32 %v1352_v23, %v169_v43  ;;  %v173_v45 = vld [vmem:[%s2612_s1 + $0xe0] sm:$0xff] }
  0x3f   :  { %v800_v20 = vmul.f32 %v736_v48, %v1768_v59  ;;  %v422_v53 = vmul.f32 0.044715, %v358_v49  ;;  %v360_v21 = vmul.f32 %v296_v50, %v1925_v42  ;;  %v1945_v54 = vadd.f32 %v1353_v24, %v170_v47 }
  0x40   :  { %v1252_v57 = vpack.c.bf16 %v799_v13, %v799_v13  ;;  %v485_v15 = vadd.f32 %v421_v51, %v1907_v8  ;;  %v423_v55 = vmul.f32 0.044715, %v359_v14  ;;  %v297_v58 = vmul.f32 %v1941_v52, %v1941_v52 }
  0x41   :  { %v1253_v22 = vpack.c.bf16 %v800_v20, %v800_v20  ;;  %v486_v28 = vadd.f32 %v422_v53, %v1917_v18  ;;  %v424_v59 = vmul.f32 0.044715, %v360_v21  ;;  %v298_v26 = vmul.f32 %v1945_v54, %v1945_v54 }
  0x42   :  { %1120 = vst.msk [vmem:[%s2615_s4 + $0x38] sm:$0xf] %vm1105_vm0, %v1252_v57  ;;  %v549_v60 = vmul.f32 0.7978846, %v485_v15  ;;  %v487_v29 = vadd.f32 %v423_v55, %v1921_v38  ;;  %v361_v61 = vmul.f32 %v297_v58, %v1941_v52  ;;  %v1356_v27 = vunpack.c.l.bf16 %v1442_v56  ;;  %v175_v57 = vld [vmem:[%s2612_s1 + $0xf0] sm:$0xff]  ;;  %v176_v15 = vld [vmem:[%s2612_s1 + $0xf8] sm:$0xff] }
  0x43   :  { %v1494_v62 = vpop.eup %1493  ;;  %1121 = vst.msk [vmem:[%s2615_s4 + $0x3c] sm:$0xf] %vm1105_vm0, %v1253_v22  ;;  %v550_v63 = vmul.f32 0.7978846, %v486_v28  ;;  %v488_v33 = vadd.f32 %v424_v59, %v1925_v42  ;;  %v362_v0 = vmul.f32 %v298_v26, %v1945_v54  ;;  %v1357_v34 = vunpack.c.h.bf16 %v1442_v56 }
  0x44   :  { %v1496_v2 = vpop.eup %1495  ;;  %v673_v3 = vadd.f32 1.0, %v1494_v62  ;;  %1501 = vtanh.f32 %v549_v60  ;;  %v551_v30 = vmul.f32 0.7978846, %v487_v29  ;;  %v425_v4 = vmul.f32 0.044715, %v361_v61 }
  0x45   :  { %v674_v7 = vadd.f32 1.0, %v1496_v2  ;;  %1503 = vtanh.f32 %v550_v63  ;;  %v552_v31 = vmul.f32 0.7978846, %v488_v33  ;;  %v426_v9 = vmul.f32 0.044715, %v362_v0 }
  0x46   :  { %v737_v12 = vmul.f32 0.5, %v673_v3  ;;  %1505 = vtanh.f32 %v551_v30  ;;  %v489_v16 = vadd.f32 %v425_v4, %v1941_v52  ;;  %v1978_v17 = vadd.f32 %v1356_v27, %v171_v1 }
  0x47   :  { %v738_v23 = vmul.f32 0.5, %v674_v7  ;;  %1507 = vtanh.f32 %v552_v31  ;;  %v490_v24 = vadd.f32 %v426_v9, %v1945_v54  ;;  %v1981_v25 = vadd.f32 %v1357_v34, %v172_v5 }
  0x48   :  { %v801_v35 = vmul.f32 %v737_v12, %v1825_v6  ;;  %v553_v36 = vmul.f32 0.7978846, %v489_v16  ;;  %v299_v37 = vmul.f32 %v1978_v17, %v1978_v17  ;;  %v1360_v39 = vunpack.c.l.bf16 %v1443_v10  ;;  %v174_v6 = vld [vmem:[%s2612_s1 + $0xe8] sm:$0xff] }
  0x49   :  { %v1498_v40 = vpop.eup %1497  ;;  %v802_v41 = vmul.f32 %v738_v23, %v1834_v11  ;;  %v554_v43 = vmul.f32 0.7978846, %v490_v24  ;;  %v300_v44 = vmul.f32 %v1981_v25, %v1981_v25  ;;  %v1361_v46 = vunpack.c.h.bf16 %v1443_v10  ;;  %v1444_v11 = vld [vmem:[%s2611_s0 + $0x78] sm:$0xff]  }
  0x4a   :  { %v1500_v47 = vpop.eup %1499  ;;  %v1254_v48 = vpack.c.bf16 %v801_v35, %v801_v35  ;;  %v675_v49 = vadd.f32 1.0, %v1498_v40  ;;  %1509 = vtanh.f32 %v553_v36  ;;  %v363_v50 = vmul.f32 %v299_v37, %v1978_v17 }
  0x4b   :  { %v1255_v13 = vpack.c.bf16 %v802_v41, %v802_v41  ;;  %v676_v51 = vadd.f32 1.0, %v1500_v47  ;;  %1511 = vtanh.f32 %v554_v43  ;;  %v364_v14 = vmul.f32 %v300_v44, %v1981_v25 }
  0x4c   :  { %1122 = vst.msk [vmem:[%s2615_s4 + $0x40] sm:$0xf] %vm1105_vm0, %v1254_v48  ;;  %v739_v20 = vmul.f32 0.5, %v675_v49  ;;  %v427_v53 = vmul.f32 0.044715, %v363_v50  ;;  %v2004_v21 = vadd.f32 %v1360_v39, %v173_v45  ;;  %v2006_v56 = vadd.f32 %v1361_v46, %v174_v6 }
  0x4d   :  { %1123 = vst.msk [vmem:[%s2615_s4 + $0x44] sm:$0xf] %vm1105_vm0, %v1255_v13  ;;  %v740_v55 = vmul.f32 0.5, %v676_v51  ;;  %v428_v58 = vmul.f32 0.044715, %v364_v14  ;;  %v1364_v22 = vunpack.c.l.bf16 %v1444_v11  ;;  %v1365_v28 = vunpack.c.h.bf16 %v1444_v11 }
  0x4e   :  { %v803_v59 = vmul.f32 %v739_v20, %v1842_v19  ;;  %v491_v26 = vadd.f32 %v427_v53, %v1978_v17  ;;  %v301_v60 = vmul.f32 %v2004_v21, %v2004_v21  ;;  %v302_v29 = vmul.f32 %v2006_v56, %v2006_v56 }
  0x4f   :  { %v804_v61 = vmul.f32 %v740_v55, %v1850_v32  ;;  %v492_v27 = vadd.f32 %v428_v58, %v1981_v25  ;;  %v2026_v62 = vadd.f32 %v1364_v22, %v175_v57  ;;  %v2028_v63 = vadd.f32 %v1365_v28, %v176_v15  ;;  %v1446_v55 = vld [vmem:[%s2611_s0 + $0x88] sm:$0xff]  }
  0x50   :  { %v1256_v33 = vpack.c.bf16 %v803_v59, %v803_v59  ;;  %v555_v0 = vmul.f32 0.7978846, %v491_v26  ;;  %v365_v19 = vmul.f32 %v301_v60, %v2004_v21  ;;  %v366_v1 = vmul.f32 %v302_v29, %v2006_v56 }
  0x51   :  { %v1502_v34 = vpop.eup %1501  ;;  %v1257_v2 = vpack.c.bf16 %v804_v61, %v804_v61  ;;  %v556_v3 = vmul.f32 0.7978846, %v492_v27  ;;  %v303_v30 = vmul.f32 %v2026_v62, %v2026_v62  ;;  %v304_v32 = vmul.f32 %v2028_v63, %v2028_v63  ;;  %v179_v61 = vld [vmem:[%s2612_s1 + $0x110] sm:$0xff]  ;;  %v180_v27 = vld [vmem:[%s2612_s1 + $0x118] sm:$0xff] }
  0x52   :  { %v1504_v4 = vpop.eup %1503  ;;  %1124 = vst.msk [vmem:[%s2615_s4 + $0x48] sm:$0xf] %vm1105_vm0, %v1256_v33  ;;  %v677_v5 = vadd.f32 1.0, %v1502_v34  ;;  %1513 = vtanh.f32 %v555_v0  ;;  %v429_v7 = vmul.f32 0.044715, %v365_v19  ;;  %v1447_v33 = vld [vmem:[%s2611_s0 + $0x90] sm:$0xff]   ;;  %v1372_v19 = vunpack.c.l.bf16 %v1446_v55 }
  0x53   :  { %v430_v31 = vmul.f32 0.044715, %v366_v1  ;;  %v1506_v9 = vpop.eup %1505  ;;  %1125 = vst.msk [vmem:[%s2615_s4 + $0x4c] sm:$0xf] %vm1105_vm0, %v1257_v2  ;;  %v678_v10 = vadd.f32 1.0, %v1504_v4  ;;  %1515 = vtanh.f32 %v556_v3  ;;  %v367_v12 = vmul.f32 %v303_v30, %v2026_v62  ;;  %v181_v30 = vld [vmem:[%s2612_s1 + $0x120] sm:$0xff] }
  0x54   :  { %v368_v16 = vmul.f32 %v304_v32, %v2028_v63  ;;  %v1508_v23 = vpop.eup %1507  ;;  %v741_v24 = vmul.f32 0.5, %v677_v5  ;;  %v679_v35 = vadd.f32 1.0, %v1506_v9  ;;  %v493_v36 = vadd.f32 %v429_v7, %v2004_v21  ;;  %v182_v7 = vld [vmem:[%s2612_s1 + $0x128] sm:$0xff] }
  0x55   :  { %v494_v37 = vadd.f32 %v430_v31, %v2006_v56  ;;  %v742_v39 = vmul.f32 0.5, %v678_v10  ;;  %v680_v40 = vadd.f32 1.0, %v1508_v23  ;;  %v431_v41 = vmul.f32 0.044715, %v367_v12 }
  0x56   :  { %v432_v43 = vmul.f32 0.044715, %v368_v16  ;;  %v805_v44 = vmul.f32 %v741_v24, %v1907_v8  ;;  %v743_v45 = vmul.f32 0.5, %v679_v35  ;;  %v557_v46 = vmul.f32 0.7978846, %v493_v36  ;;  %v1445_v8 = vld [vmem:[%s2611_s0 + $0x80] sm:$0xff]  }
  0x57   :  { %v558_v6 = vmul.f32 0.7978846, %v494_v37  ;;  %v1510_v47 = vpop.eup %1509  ;;  %v806_v48 = vmul.f32 %v742_v39, %v1917_v18  ;;  %v744_v49 = vmul.f32 0.5, %v680_v40  ;;  %v495_v50 = vadd.f32 %v431_v41, %v2026_v62  ;;  %v177_v18 = vld [vmem:[%s2612_s1 + $0x100] sm:$0xff] }
  0x58   :  { %v496_v11 = vadd.f32 %v432_v43, %v2028_v63  ;;  %v1512_v13 = vpop.eup %1511  ;;  %v1258_v51 = vpack.c.bf16 %v805_v44, %v805_v44  ;;  %v807_v14 = vmul.f32 %v743_v45, %v1921_v38  ;;  %v681_v20 = vadd.f32 1.0, %v1510_v47 }
  0x59   :  { %1517 = vtanh.f32 %v557_v46  ;;  %v1259_v53 = vpack.c.bf16 %v806_v48, %v806_v48  ;;  %v808_v57 = vmul.f32 %v744_v49, %v1925_v42  ;;  %v682_v15 = vadd.f32 1.0, %v1512_v13  ;;  %v178_v42 = vld [vmem:[%s2612_s1 + $0x108] sm:$0xff] }
  0x5a   :  { %1519 = vtanh.f32 %v558_v6  ;;  %1126 = vst.msk [vmem:[%s2615_s4 + $0x50] sm:$0xf] %vm1105_vm0, %v1258_v51  ;;  %v1260_v38 = vpack.c.bf16 %v807_v14, %v807_v14  ;;  %v745_v58 = vmul.f32 0.5, %v681_v20  ;;  %v559_v22 = vmul.f32 0.7978846, %v495_v50 }
  0x5b   :  { %v560_v28 = vmul.f32 0.7978846, %v496_v11  ;;  %1127 = vst.msk [vmem:[%s2615_s4 + $0x54] sm:$0xf] %vm1105_vm0, %v1259_v53  ;;  %v1261_v59 = vpack.c.bf16 %v808_v57, %v808_v57  ;;  %v746_v26 = vmul.f32 0.5, %v682_v15  ;;  %v1368_v60 = vunpack.c.l.bf16 %v1445_v8  ;;  %v1448_v15 = vld [vmem:[%s2611_s0 + $0x98] sm:$0xff]  }
  0x5c   :  { %v1369_v29 = vunpack.c.h.bf16 %v1445_v8  ;;  %1128 = vst.msk [vmem:[%s2615_s4 + $0x58] sm:$0xf] %vm1105_vm0, %v1260_v38  ;;  %v809_v0 = vmul.f32 %v745_v58, %v1941_v52  ;;  %1521 = vtanh.f32 %v559_v22  ;;  %v1373_v1 = vunpack.c.h.bf16 %v1446_v55 }
  0x5d   :  { %1129 = vst.msk [vmem:[%s2615_s4 + $0x5c] sm:$0xf] %vm1105_vm0, %v1261_v59  ;;  %v810_v34 = vmul.f32 %v746_v26, %v1945_v54  ;;  %1523 = vtanh.f32 %v560_v28  ;;  %v2093_v2 = vadd.f32 %v1368_v60, %v177_v18  ;;  %v2100_v32 = vadd.f32 %v1372_v19, %v179_v61  ;;  %v183_v59 = vld [vmem:[%s2612_s1 + $0x130] sm:$0xff] }
  0x5e   :  { %v2095_v3 = vadd.f32 %v1369_v29, %v178_v42  ;;  %v1262_v52 = vpack.c.bf16 %v809_v0, %v809_v0  ;;  %v2102_v4 = vadd.f32 %v1373_v1, %v180_v27  ;;  %v1376_v5 = vunpack.c.l.bf16 %v1447_v33 }
  0x5f   :  { %v1514_v54 = vpop.eup %1513  ;;  %v1263_v31 = vpack.c.bf16 %v810_v34, %v810_v34  ;;  %v305_v9 = vmul.f32 %v2093_v2, %v2093_v2  ;;  %v1377_v12 = vunpack.c.h.bf16 %v1447_v33  ;;  %v307_v24 = vmul.f32 %v2100_v32, %v2100_v32 }
  0x60   :  { %v306_v10 = vmul.f32 %v2095_v3, %v2095_v3  ;;  %v1516_v16 = vpop.eup %1515  ;;  %1130 = vst.msk [vmem:[%s2615_s4 + $0x60] sm:$0xf] %vm1105_vm0, %v1262_v52  ;;  %v683_v23 = vadd.f32 1.0, %v1514_v54  ;;  %v308_v35 = vmul.f32 %v2102_v4, %v2102_v4  ;;  %v2119_v36 = vadd.f32 %v1376_v5, %v181_v30 }
  0x61   :  { %1131 = vst.msk [vmem:[%s2615_s4 + $0x64] sm:$0xf] %vm1105_vm0, %v1263_v31  ;;  %v684_v37 = vadd.f32 1.0, %v1516_v16  ;;  %v369_v39 = vmul.f32 %v305_v9, %v2093_v2  ;;  %v2127_v41 = vadd.f32 %v1377_v12, %v182_v7  ;;  %v371_v44 = vmul.f32 %v307_v24, %v2100_v32  ;;  %v1449_v31 = vld [vmem:[%s2611_s0 + $0xa0] sm:$0xff]  }
  0x62   :  { %v370_v40 = vmul.f32 %v306_v10, %v2095_v3  ;;  %v747_v43 = vmul.f32 0.5, %v683_v23  ;;  %v372_v45 = vmul.f32 %v308_v35, %v2102_v4  ;;  %v309_v46 = vmul.f32 %v2119_v36, %v2119_v36  ;;  %v185_v35 = vld [vmem:[%s2612_s1 + $0x140] sm:$0xff] }
  0x63   :  { %v748_v6 = vmul.f32 0.5, %v684_v37  ;;  %v433_v47 = vmul.f32 0.044715, %v369_v39  ;;  %v310_v49 = vmul.f32 %v2127_v41, %v2127_v41  ;;  %v435_v11 = vmul.f32 0.044715, %v371_v44  ;;  %v186_v44 = vld [vmem:[%s2612_s1 + $0x148] sm:$0xff] }
  0x64   :  { %v434_v48 = vmul.f32 0.044715, %v370_v40  ;;  %v811_v50 = vmul.f32 %v747_v43, %v1978_v17  ;;  %v436_v13 = vmul.f32 0.044715, %v372_v45  ;;  %v373_v51 = vmul.f32 %v309_v46, %v2119_v36  ;;  %v1450_v45 = vld [vmem:[%s2611_s0 + $0xa8] sm:$0xff]  }
  0x65   :  { %v812_v20 = vmul.f32 %v748_v6, %v1981_v25  ;;  %v497_v8 = vadd.f32 %v433_v47, %v2093_v2  ;;  %v374_v57 = vmul.f32 %v310_v49, %v2127_v41  ;;  %v499_v38 = vadd.f32 %v435_v11, %v2100_v32  ;;  %v1451_v47 = vld [vmem:[%s2611_s0 + $0xb0] sm:$0xff]  }
  0x66   :  { %v1518_v14 = vpop.eup %1517  ;;  %v498_v53 = vadd.f32 %v434_v48, %v2095_v3  ;;  %v1264_v55 = vpack.c.bf16 %v811_v50, %v811_v50  ;;  %v500_v58 = vadd.f32 %v436_v13, %v2102_v4  ;;  %v1380_v61 = vunpack.c.l.bf16 %v1448_v15  ;;  %v187_v11 = vld [vmem:[%s2612_s1 + $0x150] sm:$0xff] }
  0x67   :  { %v1520_v18 = vpop.eup %1519  ;;  %v685_v17 = vadd.f32 1.0, %v1518_v14  ;;  %v1265_v22 = vpack.c.bf16 %v812_v20, %v812_v20  ;;  %v561_v25 = vmul.f32 0.7978846, %v497_v8  ;;  %v563_v60 = vmul.f32 0.7978846, %v499_v38  ;;  %v188_v20 = vld [vmem:[%s2612_s1 + $0x158] sm:$0xff] }
  0x68   :  { %v686_v28 = vadd.f32 1.0, %v1520_v18  ;;  %v562_v42 = vmul.f32 0.7978846, %v498_v53  ;;  %1132 = vst.msk [vmem:[%s2615_s4 + $0x68] sm:$0xf] %vm1105_vm0, %v1264_v55  ;;  %v2158_v52 = vadd.f32 %v1380_v61, %v183_v59  ;;  %v1381_v40 = vunpack.c.h.bf16 %v1448_v15  ;;  %v189_v8 = vld [vmem:[%s2612_s1 + $0x160] sm:$0xff] }
  0x69   :  { %v749_v26 = vmul.f32 0.5, %v685_v17  ;;  %v564_v29 = vmul.f32 0.7978846, %v500_v58  ;;  %v1522_v27 = vpop.eup %1521  ;;  %1133 = vst.msk [vmem:[%s2615_s4 + $0x6c] sm:$0xf] %vm1105_vm0, %v1265_v22  ;;  %1525 = vtanh.f32 %v561_v25  ;;  %v1384_v43 = vunpack.c.l.bf16 %v1449_v31  ;;  %v190_v55 = vld [vmem:[%s2612_s1 + $0x168] sm:$0xff] }
  0x6a   :  { %v750_v33 = vmul.f32 0.5, %v686_v28  ;;  %v437_v0 = vmul.f32 0.044715, %v373_v51  ;;  %v438_v19 = vmul.f32 0.044715, %v374_v57  ;;  %v1524_v1 = vpop.eup %1523  ;;  %v687_v30 = vadd.f32 1.0, %v1522_v27 }
  0x6b   :  { %v813_v34 = vmul.f32 %v749_v26, %v2004_v21  ;;  %1527 = vtanh.f32 %v562_v42  ;;  %v688_v7 = vadd.f32 1.0, %v1524_v1  ;;  %v311_v24 = vmul.f32 %v2158_v52, %v2158_v52 }
  0x6c   :  { %v814_v5 = vmul.f32 %v750_v33, %v2006_v56  ;;  %1529 = vtanh.f32 %v563_v60  ;;  %v501_v54 = vadd.f32 %v437_v0, %v2119_v36  ;;  %v751_v10 = vmul.f32 0.5, %v687_v30  ;;  %v184_v56 = vld [vmem:[%s2612_s1 + $0x138] sm:$0xff] }
  0x6d   :  { %v1266_v9 = vpack.c.bf16 %v813_v34, %v813_v34  ;;  %1531 = vtanh.f32 %v564_v29  ;;  %v502_v12 = vadd.f32 %v438_v19, %v2127_v41  ;;  %v752_v16 = vmul.f32 0.5, %v688_v7 }
  0x6e   :  { %v1267_v21 = vpack.c.bf16 %v814_v5, %v814_v5  ;;  %v565_v23 = vmul.f32 0.7978846, %v501_v54  ;;  %v815_v37 = vmul.f32 %v751_v10, %v2026_v62  ;;  %v375_v62 = vmul.f32 %v311_v24, %v2158_v52 }
  0x6f   :  { %1134 = vst.msk [vmem:[%s2615_s4 + $0x70] sm:$0xf] %vm1105_vm0, %v1266_v9  ;;  %v566_v39 = vmul.f32 0.7978846, %v502_v12  ;;  %v816_v46 = vmul.f32 %v752_v16, %v2028_v63  ;;  %v1385_v6 = vunpack.c.h.bf16 %v1449_v31  ;;  %v2194_v49 = vadd.f32 %v1381_v40, %v184_v56 }
  0x70   :  { %1135 = vst.msk [vmem:[%s2615_s4 + $0x74] sm:$0xf] %vm1105_vm0, %v1267_v21  ;;  %1533 = vtanh.f32 %v565_v23  ;;  %v1268_v48 = vpack.c.bf16 %v815_v37, %v815_v37  ;;  %v2196_v50 = vadd.f32 %v1384_v43, %v185_v35  ;;  %v439_v63 = vmul.f32 0.044715, %v375_v62 }
  0x71   :  { %1535 = vtanh.f32 %v566_v39  ;;  %v1269_v13 = vpack.c.bf16 %v816_v46, %v816_v46  ;;  %v2201_v51 = vadd.f32 %v1385_v6, %v186_v44  ;;  %v1388_v14 = vunpack.c.l.bf16 %v1450_v45 }
  0x72   :  { %1136 = vst.msk [vmem:[%s2615_s4 + $0x78] sm:$0xf] %vm1105_vm0, %v1268_v48  ;;  %v312_v53 = vmul.f32 %v2194_v49, %v2194_v49  ;;  %v313_v57 = vmul.f32 %v2196_v50, %v2196_v50  ;;  %v1389_v15 = vunpack.c.h.bf16 %v1450_v45  ;;  %v1392_v18 = vunpack.c.l.bf16 %v1451_v47 }
  0x73   :  { %1137 = vst.msk [vmem:[%s2615_s4 + $0x7c] sm:$0xf] %vm1105_vm0, %v1269_v13  ;;  %v503_v17 = vadd.f32 %v439_v63, %v2158_v52  ;;  %v314_v38 = vmul.f32 %v2201_v51, %v2201_v51  ;;  %v2227_v58 = vadd.f32 %v1388_v14, %v187_v11  ;;  %v1393_v22 = vunpack.c.h.bf16 %v1451_v47 }
  0x74   :  { %v376_v28 = vmul.f32 %v312_v53, %v2194_v49  ;;  %v377_v25 = vmul.f32 %v313_v57, %v2196_v50  ;;  %v2231_v42 = vadd.f32 %v1389_v15, %v188_v20  ;;  %v2233_v59 = vadd.f32 %v1392_v18, %v189_v8  ;;  %v1452_v53 = vld [vmem:[%s2611_s0 + $0xb8] sm:$0xff]  }
  0x75   :  { %v567_v26 = vmul.f32 0.7978846, %v503_v17  ;;  %v378_v60 = vmul.f32 %v314_v38, %v2201_v51  ;;  %v315_v29 = vmul.f32 %v2227_v58, %v2227_v58  ;;  %v2238_v61 = vadd.f32 %v1393_v22, %v190_v55  ;;  %v191_v38 = vld [vmem:[%s2612_s1 + $0x170] sm:$0xff]  ;;  %v1453_v22 = vld [vmem:[%s2611_s0 + $0xc0] sm:$0xff]  }
  0x76   :  { %v1526_v27 = vpop.eup %1525  ;;  %v440_v33 = vmul.f32 0.044715, %v376_v28  ;;  %v441_v0 = vmul.f32 0.044715, %v377_v25  ;;  %v316_v19 = vmul.f32 %v2231_v42, %v2231_v42  ;;  %v317_v1 = vmul.f32 %v2233_v59, %v2233_v59 }
  0x77   :  { %v689_v30 = vadd.f32 1.0, %v1526_v27  ;;  %1537 = vtanh.f32 %v567_v26  ;;  %v442_v5 = vmul.f32 0.044715, %v378_v60  ;;  %v379_v7 = vmul.f32 %v315_v29, %v2227_v58  ;;  %v192_v60 = vld [vmem:[%s2612_s1 + $0x178] sm:$0xff] }
  0x78   :  { %v1528_v34 = vpop.eup %1527  ;;  %v504_v9 = vadd.f32 %v440_v33, %v2194_v49  ;;  %v505_v10 = vadd.f32 %v441_v0, %v2196_v50  ;;  %v380_v12 = vmul.f32 %v316_v19, %v2231_v42  ;;  %v381_v55 = vmul.f32 %v317_v1, %v2233_v59 }
  0x79   :  { %v1530_v54 = vpop.eup %1529  ;;  %v690_v31 = vadd.f32 1.0, %v1528_v34  ;;  %v753_v16 = vmul.f32 0.5, %v689_v30  ;;  %v506_v24 = vadd.f32 %v442_v5, %v2201_v51  ;;  %v443_v56 = vmul.f32 0.044715, %v379_v7  ;;  %v2297_v30 = vld [vmem:[%s2611_s0 + $0xc8] sm:$0xff]  }
  0x7a   :  { %v1532_v21 = vpop.eup %1531  ;;  %v691_v23 = vadd.f32 1.0, %v1530_v54  ;;  %v568_v39 = vmul.f32 0.7978846, %v504_v9  ;;  %v569_v40 = vmul.f32 0.7978846, %v505_v10  ;;  %v318_v17 = vmul.f32 %v2238_v61, %v2238_v61  ;;  %v194_v9 = vld [vmem:[%s2612_s1 + $0x188] sm:$0xff] }
  0x7b   :  { %v754_v35 = vmul.f32 0.5, %v690_v31  ;;  %v692_v37 = vadd.f32 1.0, %v1532_v21  ;;  %v817_v43 = vmul.f32 %v753_v16, %v2093_v2  ;;  %v570_v45 = vmul.f32 0.7978846, %v506_v24 }
  0x7c   :  { %v755_v44 = vmul.f32 0.5, %v691_v23  ;;  %v507_v46 = vadd.f32 %v443_v56, %v2227_v58  ;;  %1539 = vtanh.f32 %v568_v39  ;;  %v444_v48 = vmul.f32 0.044715, %v380_v12  ;;  %v195_v23 = vld [vmem:[%s2612_s1 + $0x190] sm:$0xff] }
  0x7d   :  { %v1534_v62 = vpop.eup %1533  ;;  %v818_v6 = vmul.f32 %v754_v35, %v2095_v3  ;;  %v756_v47 = vmul.f32 0.5, %v692_v37  ;;  %v1270_v13 = vpack.c.bf16 %v817_v43, %v817_v43  ;;  %1541 = vtanh.f32 %v569_v40 }
  0x7e   :  { %v1536_v11 = vpop.eup %1535  ;;  %v819_v63 = vmul.f32 %v755_v44, %v2100_v32  ;;  %v693_v14 = vadd.f32 1.0, %v1534_v62  ;;  %1543 = vtanh.f32 %v570_v45  ;;  %v571_v15 = vmul.f32 0.7978846, %v507_v46 }
  0x7f   :  { %v1271_v20 = vpack.c.bf16 %v818_v6, %v818_v6  ;;  %v820_v8 = vmul.f32 %v756_v47, %v2102_v4  ;;  %v694_v2 = vadd.f32 1.0, %v1536_v11  ;;  %1138 = vst.msk [vmem:[%s2615_s4 + $0x80] sm:$0xf] %vm1105_vm0, %v1270_v13  ;;  %v508_v32 = vadd.f32 %v444_v48, %v2231_v42 }
  0x80   :  { %v1272_v3 = vpack.c.bf16 %v819_v63, %v819_v63  ;;  %v757_v57 = vmul.f32 0.5, %v693_v14  ;;  %1545 = vtanh.f32 %v571_v15  ;;  %v1396_v26 = vunpack.c.l.bf16 %v1452_v53 }
  0x81   :  { %1139 = vst.msk [vmem:[%s2615_s4 + $0x84] sm:$0xf] %vm1105_vm0, %v1271_v20  ;;  %v1273_v4 = vpack.c.bf16 %v820_v8, %v820_v8  ;;  %v758_v18 = vmul.f32 0.5, %v694_v2  ;;  %v572_v25 = vmul.f32 0.7978846, %v508_v32  ;;  %v382_v33 = vmul.f32 %v318_v17, %v2238_v61 }
  0x82   :  { %1140 = vst.msk [vmem:[%s2615_s4 + $0x88] sm:$0xf] %vm1105_vm0, %v1272_v3  ;;  %v821_v28 = vmul.f32 %v757_v57, %v2119_v36  ;;  %v445_v27 = vmul.f32 0.044715, %v381_v55  ;;  %v1397_v0 = vunpack.c.h.bf16 %v1452_v53  ;;  %v193_v36 = vld [vmem:[%s2612_s1 + $0x180] sm:$0xff]  ;;  %v2292_v1 = vadd.f32 %v1396_v26, %v191_v38 }
  0x83   :  { %1141 = vst.msk [vmem:[%s2615_s4 + $0x8c] sm:$0xf] %vm1105_vm0, %v1273_v4  ;;  %v822_v29 = vmul.f32 %v758_v18, %v2127_v41  ;;  %1547 = vtanh.f32 %v572_v25  ;;  %v1400_v34 = vunpack.c.l.bf16 %v1453_v22  ;;  %v446_v54 = vmul.f32 0.044715, %v382_v33 }
  0x84   :  { %v1274_v19 = vpack.c.bf16 %v821_v28, %v821_v28  ;;  %v1538_v5 = vpop.eup %1537  ;;  %v509_v7 = vadd.f32 %v445_v27, %v2233_v59  ;;  %v2300_v31 = vadd.f32 %v1397_v0, %v192_v60  ;;  %v319_v12 = vmul.f32 %v2292_v1, %v2292_v1 }
  0x85   :  { %v1275_v41 = vpack.c.bf16 %v822_v29, %v822_v29  ;;  %v695_v10 = vadd.f32 1.0, %v1538_v5  ;;  %v2311_v21 = vadd.f32 %v1400_v34, %v193_v36  ;;  %v1401_v16 = vunpack.c.h.bf16 %v1453_v22 }
  0x86   :  { %1142 = vst.msk [vmem:[%s2615_s4 + $0x90] sm:$0xf] %vm1105_vm0, %v1274_v19  ;;  %v573_v24 = vmul.f32 0.7978846, %v509_v7  ;;  %v510_v56 = vadd.f32 %v446_v54, %v2238_v61  ;;  %v320_v35 = vmul.f32 %v2300_v31, %v2300_v31  ;;  %v1404_v37 = vunpack.c.l.bf16 %v2297_v30 }
  0x87   :  { %1143 = vst.msk [vmem:[%s2615_s4 + $0x94] sm:$0xf] %vm1105_vm0, %v1275_v41  ;;  %v759_v39 = vmul.f32 0.5, %v695_v10  ;;  %v383_v40 = vmul.f32 %v319_v12, %v2292_v1  ;;  %v321_v43 = vmul.f32 %v2311_v21, %v2311_v21  ;;  %v2327_v44 = vadd.f32 %v1401_v16, %v194_v9  ;;  %v1455_v41 = vld [vmem:[%s2611_s0 + $0xd0] sm:$0xff]   ;;  %v1456_v9 = vld [vmem:[%s2611_s0 + $0xd8] sm:$0xff]  }
  0x88   :  { %1549 = vtanh.f32 %v573_v24  ;;  %v574_v45 = vmul.f32 0.7978846, %v510_v56  ;;  %v384_v46 = vmul.f32 %v320_v35, %v2300_v31  ;;  %v2330_v62 = vadd.f32 %v1404_v37, %v195_v23  ;;  %v197_v23 = vld [vmem:[%s2612_s1 + $0x1a0] sm:$0xff]  ;;  %v198_v24 = vld [vmem:[%s2612_s1 + $0x1a8] sm:$0xff] }
  0x89   :  { %v1540_v6 = vpop.eup %1539  ;;  %v823_v47 = vmul.f32 %v759_v39, %v2158_v52  ;;  %v447_v48 = vmul.f32 0.044715, %v383_v40  ;;  %v385_v11 = vmul.f32 %v321_v43, %v2311_v21  ;;  %v322_v13 = vmul.f32 %v2327_v44, %v2327_v44 }
  0x8a   :  { %v1542_v63 = vpop.eup %1541  ;;  %v696_v14 = vadd.f32 1.0, %v1540_v6  ;;  %1551 = vtanh.f32 %v574_v45  ;;  %v448_v20 = vmul.f32 0.044715, %v384_v46  ;;  %v323_v8 = vmul.f32 %v2330_v62, %v2330_v62 }
  0x8b   :  { %v1544_v2 = vpop.eup %1543  ;;  %v1276_v53 = vpack.c.bf16 %v823_v47, %v823_v47  ;;  %v697_v3 = vadd.f32 1.0, %v1542_v63  ;;  %v511_v57 = vadd.f32 %v447_v48, %v2292_v1  ;;  %v449_v15 = vmul.f32 0.044715, %v385_v11 }
  0x8c   :  { %v760_v52 = vmul.f32 0.5, %v696_v14  ;;  %v698_v32 = vadd.f32 1.0, %v1544_v2  ;;  %v512_v4 = vadd.f32 %v448_v20, %v2300_v31  ;;  %v386_v18 = vmul.f32 %v322_v13, %v2327_v44  ;;  %v200_v20 = vld [vmem:[%s2612_s1 + $0x1b8] sm:$0xff] }
  0x8d   :  { %1144 = vst.msk [vmem:[%s2615_s4 + $0x98] sm:$0xf] %vm1105_vm0, %v1276_v53  ;;  %v761_v55 = vmul.f32 0.5, %v697_v3  ;;  %v575_v17 = vmul.f32 0.7978846, %v511_v57  ;;  %v513_v38 = vadd.f32 %v449_v15, %v2311_v21  ;;  %v387_v22 = vmul.f32 %v323_v8, %v2330_v62  ;;  %v1546_v28 = vpop.eup %1545  ;;  %v2409_v57 = vld [vmem:[%s2611_s0 + $0xe0] sm:$0xff]  }
  0x8e   :  { %v824_v25 = vmul.f32 %v760_v52, %v2194_v49  ;;  %v762_v26 = vmul.f32 0.5, %v698_v32  ;;  %v576_v60 = vmul.f32 0.7978846, %v512_v4  ;;  %v450_v29 = vmul.f32 0.044715, %v386_v18 }
  0x8f   :  { %v825_v27 = vmul.f32 %v761_v55, %v2196_v50  ;;  %v699_v33 = vadd.f32 1.0, %v1546_v28  ;;  %1553 = vtanh.f32 %v575_v17  ;;  %v577_v0 = vmul.f32 0.7978846, %v513_v38  ;;  %v196_v50 = vld [vmem:[%s2612_s1 + $0x198] sm:$0xff]  ;;  %v201_v38 = vld [vmem:[%s2612_s1 + $0x1c0] sm:$0xff] }
  0x90   :  { %v1548_v36 = vpop.eup %1547  ;;  %v1277_v19 = vpack.c.bf16 %v824_v25, %v824_v25  ;;  %v826_v34 = vmul.f32 %v762_v26, %v2201_v51  ;;  %1555 = vtanh.f32 %v576_v60  ;;  %v514_v5 = vadd.f32 %v450_v29, %v2327_v44 }
  0x91   :  { %v1278_v49 = vpack.c.bf16 %v825_v27, %v825_v27  ;;  %v763_v7 = vmul.f32 0.5, %v699_v33  ;;  %v700_v54 = vadd.f32 1.0, %v1548_v36  ;;  %1557 = vtanh.f32 %v577_v0 }
  0x92   :  { %1145 = vst.msk [vmem:[%s2615_s4 + $0x9c] sm:$0xf] %vm1105_vm0, %v1277_v19  ;;  %v1279_v51 = vpack.c.bf16 %v826_v34, %v826_v34  ;;  %v578_v10 = vmul.f32 0.7978846, %v514_v5  ;;  %v451_v12 = vmul.f32 0.044715, %v387_v22  ;;  %v1405_v16 = vunpack.c.h.bf16 %v2297_v30 }
  0x93   :  { %1146 = vst.msk [vmem:[%s2615_s4 + $0xa0] sm:$0xf] %vm1105_vm0, %v1278_v49  ;;  %v827_v56 = vmul.f32 %v763_v7, %v2227_v58  ;;  %v764_v35 = vmul.f32 0.5, %v700_v54  ;;  %v1408_v37 = vunpack.c.l.bf16 %v1455_v41  ;;  %v1409_v39 = vunpack.c.h.bf16 %v1455_v41  ;;  %v199_v30 = vld [vmem:[%s2612_s1 + $0x1b0] sm:$0xff] }
  0x94   :  { %1147 = vst.msk [vmem:[%s2615_s4 + $0xa4] sm:$0xf] %vm1105_vm0, %v1279_v51  ;;  %1559 = vtanh.f32 %v578_v10  ;;  %v515_v40 = vadd.f32 %v451_v12, %v2330_v62  ;;  %v2384_v43 = vadd.f32 %v1405_v16, %v196_v50  ;;  %v1412_v45 = vunpack.c.l.bf16 %v1456_v9 }
  0x95   :  { %v1550_v46 = vpop.eup %1549  ;;  %v1280_v58 = vpack.c.bf16 %v827_v56, %v827_v56  ;;  %v828_v6 = vmul.f32 %v764_v35, %v2231_v42  ;;  %v2387_v47 = vadd.f32 %v1408_v37, %v197_v23  ;;  %v2389_v48 = vadd.f32 %v1409_v39, %v198_v24 }
  0x96   :  { %v701_v11 = vadd.f32 1.0, %v1550_v46  ;;  %v579_v13 = vmul.f32 0.7978846, %v515_v40  ;;  %v324_v63 = vmul.f32 %v2384_v43, %v2384_v43  ;;  %v2393_v14 = vadd.f32 %v1412_v45, %v199_v30 }
  0x97   :  { %v1552_v8 = vpop.eup %1551  ;;  %1148 = vst.msk [vmem:[%s2615_s4 + $0xa8] sm:$0xf] %vm1105_vm0, %v1280_v58  ;;  %v1281_v42 = vpack.c.bf16 %v828_v6, %v828_v6  ;;  %v325_v2 = vmul.f32 %v2387_v47, %v2387_v47  ;;  %v326_v53 = vmul.f32 %v2389_v48, %v2389_v48  ;;  %v1413_v3 = vunpack.c.h.bf16 %v1456_v9 }
  0x98   :  { %v765_v15 = vmul.f32 0.5, %v701_v11  ;;  %v702_v52 = vadd.f32 1.0, %v1552_v8  ;;  %1561 = vtanh.f32 %v579_v13  ;;  %v388_v32 = vmul.f32 %v324_v63, %v2384_v43  ;;  %v1458_v11 = vld [vmem:[%s2611_s0 + $0xe8] sm:$0xff]  }
  0x99   :  { %1149 = vst.msk [vmem:[%s2615_s4 + $0xac] sm:$0xf] %vm1105_vm0, %v1281_v42  ;;  %v389_v4 = vmul.f32 %v325_v2, %v2387_v47  ;;  %v390_v18 = vmul.f32 %v326_v53, %v2389_v48  ;;  %v327_v55 = vmul.f32 %v2393_v14, %v2393_v14  ;;  %v2420_v17 = vadd.f32 %v1413_v3, %v200_v20  ;;  %v202_v8 = vld [vmem:[%s2612_s1 + $0x1c8] sm:$0xff]  ;;  %v203_v53 = vld [vmem:[%s2612_s1 + $0x1d0] sm:$0xff] }
  0x9a   :  { %v829_v22 = vmul.f32 %v765_v15, %v2233_v59  ;;  %v766_v28 = vmul.f32 0.5, %v702_v52  ;;  %v452_v25 = vmul.f32 0.044715, %v388_v32  ;;  %v1416_v26 = vunpack.c.l.bf16 %v2409_v57 }
  0x9b   :  { %v453_v60 = vmul.f32 0.044715, %v389_v4  ;;  %v454_v29 = vmul.f32 0.044715, %v390_v18  ;;  %v391_v27 = vmul.f32 %v327_v55, %v2393_v14  ;;  %v328_v33 = vmul.f32 %v2420_v17, %v2420_v17 }
  0x9c   :  { %v1554_v0 = vpop.eup %1553  ;;  %v1282_v36 = vpack.c.bf16 %v829_v22, %v829_v22  ;;  %v830_v19 = vmul.f32 %v766_v28, %v2238_v61  ;;  %v516_v34 = vadd.f32 %v452_v25, %v2384_v43  ;;  %v2432_v5 = vadd.f32 %v1416_v26, %v201_v38  ;;  %v205_v28 = vld [vmem:[%s2612_s1 + $0x1e0] sm:$0xff] }
  0x9d   :  { %v1556_v59 = vpop.eup %1555  ;;  %v703_v41 = vadd.f32 1.0, %v1554_v0  ;;  %v517_v49 = vadd.f32 %v453_v60, %v2387_v47  ;;  %v518_v7 = vadd.f32 %v454_v29, %v2389_v48  ;;  %v455_v54 = vmul.f32 0.044715, %v391_v27 }
  0x9e   :  { %v1558_v50 = vpop.eup %1557  ;;  %1150 = vst.msk [vmem:[%s2615_s4 + $0xb0] sm:$0xf] %vm1105_vm0, %v1282_v36  ;;  %v1283_v9 = vpack.c.bf16 %v830_v19, %v830_v19  ;;  %v704_v51 = vadd.f32 1.0, %v1556_v59  ;;  %v580_v61 = vmul.f32 0.7978846, %v516_v34  ;;  %v392_v10 = vmul.f32 %v328_v33, %v2420_v17  ;;  %v206_v36 = vld [vmem:[%s2612_s1 + $0x1e8] sm:$0xff] }
  0x9f   :  { %v767_v12 = vmul.f32 0.5, %v703_v41  ;;  %v705_v16 = vadd.f32 1.0, %v1558_v50  ;;  %v581_v23 = vmul.f32 0.7978846, %v517_v49  ;;  %v582_v24 = vmul.f32 0.7978846, %v518_v7 }
  0xa0   :  { %1151 = vst.msk [vmem:[%s2615_s4 + $0xb4] sm:$0xf] %vm1105_vm0, %v1283_v9  ;;  %v768_v56 = vmul.f32 0.5, %v704_v51  ;;  %1563 = vtanh.f32 %v580_v61  ;;  %v519_v35 = vadd.f32 %v455_v54, %v2393_v14  ;;  %v456_v37 = vmul.f32 0.044715, %v392_v10  ;;  %v207_v49 = vld [vmem:[%s2612_s1 + $0x1f0] sm:$0xff] }
  0xa1   :  { %v1560_v39 = vpop.eup %1559  ;;  %v831_v30 = vmul.f32 %v767_v12, %v2292_v1  ;;  %v769_v40 = vmul.f32 0.5, %v705_v16  ;;  %1565 = vtanh.f32 %v581_v23  ;;  %v329_v45 = vmul.f32 %v2432_v5, %v2432_v5 }
  0xa2   :  { %v832_v46 = vmul.f32 %v768_v56, %v2300_v31  ;;  %v706_v58 = vadd.f32 1.0, %v1560_v39  ;;  %1567 = vtanh.f32 %v582_v24  ;;  %v583_v6 = vmul.f32 0.7978846, %v519_v35 }
  0xa3   :  { %v1284_v13 = vpack.c.bf16 %v831_v30, %v831_v30  ;;  %v833_v63 = vmul.f32 %v769_v40, %v2311_v21  ;;  %v520_v20 = vadd.f32 %v456_v37, %v2420_v17  ;;  %v393_v1 = vmul.f32 %v329_v45, %v2432_v5  ;;  %v1459_v21 = vld [vmem:[%s2611_s0 + $0xf0] sm:$0xff]  }
  0xa4   :  { %v1285_v42 = vpack.c.bf16 %v832_v46, %v832_v46  ;;  %v770_v31 = vmul.f32 0.5, %v706_v58  ;;  %1569 = vtanh.f32 %v583_v6  ;;  %v1417_v2 = vunpack.c.h.bf16 %v2409_v57  ;;  %v204_v57 = vld [vmem:[%s2612_s1 + $0x1d8] sm:$0xff] }
  0xa5   :  { %v1562_v3 = vpop.eup %1561  ;;  %1152 = vst.msk [vmem:[%s2615_s4 + $0xb8] sm:$0xf] %vm1105_vm0, %v1284_v13  ;;  %v1286_v15 = vpack.c.bf16 %v833_v63, %v833_v63  ;;  %v584_v52 = vmul.f32 0.7978846, %v520_v20  ;;  %v457_v32 = vmul.f32 0.044715, %v393_v1  ;;  %v1420_v4 = vunpack.c.l.bf16 %v1458_v11 }
  0xa6   :  { %1153 = vst.msk [vmem:[%s2615_s4 + $0xbc] sm:$0xf] %vm1105_vm0, %v1285_v42  ;;  %v834_v18 = vmul.f32 %v770_v31, %v2327_v44  ;;  %v707_v55 = vadd.f32 1.0, %v1562_v3  ;;  %v2478_v38 = vadd.f32 %v1417_v2, %v202_v8  ;;  %v1421_v22 = vunpack.c.h.bf16 %v1458_v11  ;;  %v2493_v44 = vld [vmem:[%s2611_s0 + $0xf8] sm:$0xff]  }
  0xa7   :  { %1154 = vst.msk [vmem:[%s2615_s4 + $0xc0] sm:$0xf] %vm1105_vm0, %v1286_v15  ;;  %1571 = vtanh.f32 %v584_v52  ;;  %v521_v25 = vadd.f32 %v457_v32, %v2432_v5  ;;  %v2488_v26 = vadd.f32 %v1420_v4, %v203_v53  ;;  %v1424_v60 = vunpack.c.l.bf16 %v1459_v21 }
  0xa8   :  { %v1287_v29 = vpack.c.bf16 %v834_v18, %v834_v18  ;;  %v771_v27 = vmul.f32 0.5, %v707_v55  ;;  %v330_v33 = vmul.f32 %v2478_v38, %v2478_v38  ;;  %v2497_v0 = vadd.f32 %v1421_v22, %v204_v57 }
  0xa9   :  { %v585_v19 = vmul.f32 0.7978846, %v521_v25  ;;  %v331_v34 = vmul.f32 %v2488_v26, %v2488_v26  ;;  %v2504_v59 = vadd.f32 %v1424_v60, %v205_v28  ;;  %v1425_v41 = vunpack.c.h.bf16 %v1459_v21 }
  0xaa   :  { %1155 = vst.msk [vmem:[%s2615_s4 + $0xc4] sm:$0xf] %vm1105_vm0, %v1287_v29  ;;  %v835_v7 = vmul.f32 %v771_v27, %v2330_v62  ;;  %v394_v54 = vmul.f32 %v330_v33, %v2478_v38  ;;  %v332_v50 = vmul.f32 %v2497_v0, %v2497_v0  ;;  %v1428_v9 = vunpack.c.l.bf16 %v2493_v44  ;;  %v208_v29 = vld [vmem:[%s2612_s1 + $0x1f8] sm:$0xff] }
  0xab   :  { %1573 = vtanh.f32 %v585_v19  ;;  %v395_v51 = vmul.f32 %v331_v34, %v2488_v26  ;;  %v333_v61 = vmul.f32 %v2504_v59, %v2504_v59  ;;  %v2521_v10 = vadd.f32 %v1425_v41, %v206_v36 }
  0xac   :  { %v1288_v12 = vpack.c.bf16 %v835_v7, %v835_v7  ;;  %v458_v16 = vmul.f32 0.044715, %v394_v54  ;;  %v396_v23 = vmul.f32 %v332_v50, %v2497_v0  ;;  %v2524_v62 = vadd.f32 %v1428_v9, %v207_v49 }
  0xad   :  { %v1564_v24 = vpop.eup %1563  ;;  %v459_v56 = vmul.f32 0.044715, %v395_v51  ;;  %v397_v35 = vmul.f32 %v333_v61, %v2504_v59  ;;  %v334_v37 = vmul.f32 %v2521_v10, %v2521_v10  ;;  %v1429_v39 = vunpack.c.h.bf16 %v2493_v44 }
  0xae   :  { %v1566_v30 = vpop.eup %1565  ;;  %1156 = vst.msk [vmem:[%s2615_s4 + $0xc8] sm:$0xf] %vm1105_vm0, %v1288_v12  ;;  %v708_v40 = vadd.f32 1.0, %v1564_v24  ;;  %v522_v45 = vadd.f32 %v458_v16, %v2478_v38  ;;  %v460_v46 = vmul.f32 0.044715, %v396_v23  ;;  %v335_v58 = vmul.f32 %v2524_v62, %v2524_v62 }
  0xaf   :  { %v1568_v6 = vpop.eup %1567  ;;  %v709_v11 = vadd.f32 1.0, %v1566_v30  ;;  %v523_v13 = vadd.f32 %v459_v56, %v2488_v26  ;;  %v461_v63 = vmul.f32 0.044715, %v397_v35  ;;  %v398_v20 = vmul.f32 %v334_v37, %v2521_v10 }
  0xb0   :  { %v772_v1 = vmul.f32 0.5, %v708_v40  ;;  %v710_v8 = vadd.f32 1.0, %v1568_v6  ;;  %v586_v42 = vmul.f32 0.7978846, %v522_v45  ;;  %v524_v31 = vadd.f32 %v460_v46, %v2497_v0 }
  0xb1   :  { %v1570_v2 = vpop.eup %1569  ;;  %v773_v53 = vmul.f32 0.5, %v709_v11  ;;  %v587_v21 = vmul.f32 0.7978846, %v523_v13  ;;  %v525_v3 = vadd.f32 %v461_v63, %v2504_v59  ;;  %v462_v15 = vmul.f32 0.044715, %v398_v20 }
  0xb2   :  { %v836_v52 = vmul.f32 %v772_v1, %v2384_v43  ;;  %v774_v32 = vmul.f32 0.5, %v710_v8  ;;  %v711_v4 = vadd.f32 1.0, %v1570_v2  ;;  %1575 = vtanh.f32 %v586_v42 }
  0xb3   :  { %v837_v57 = vmul.f32 %v773_v53, %v2387_v47  ;;  %1577 = vtanh.f32 %v587_v21  ;;  %v588_v18 = vmul.f32 0.7978846, %v524_v31  ;;  %v589_v55 = vmul.f32 0.7978846, %v525_v3 }
  0xb4   :  { %v1572_v22 = vpop.eup %1571  ;;  %v1289_v28 = vpack.c.bf16 %v836_v52, %v836_v52  ;;  %v838_v25 = vmul.f32 %v774_v32, %v2389_v48  ;;  %v775_v60 = vmul.f32 0.5, %v711_v4  ;;  %v526_v44 = vadd.f32 %v462_v15, %v2521_v10 }
  0xb5   :  { %v1290_v43 = vpack.c.bf16 %v837_v57, %v837_v57  ;;  %v712_v27 = vadd.f32 1.0, %v1572_v22  ;;  %1579 = vtanh.f32 %v588_v18  ;;  %v399_v33 = vmul.f32 %v335_v58, %v2524_v62 }
  0xb6   :  { %1157 = vst.msk [vmem:[%s2615_s4 + $0xcc] sm:$0xf] %vm1105_vm0, %v1289_v28  ;;  %v1291_v47 = vpack.c.bf16 %v838_v25, %v838_v25  ;;  %v839_v48 = vmul.f32 %v775_v60, %v2393_v14  ;;  %1581 = vtanh.f32 %v589_v55  ;;  %v590_v36 = vmul.f32 0.7978846, %v526_v44 }
  0xb7   :  { %1158 = vst.msk [vmem:[%s2615_s4 + $0xd0] sm:$0xf] %vm1105_vm0, %v1290_v43  ;;  %v776_v19 = vmul.f32 0.5, %v712_v27  ;;  %v463_v34 = vmul.f32 0.044715, %v399_v33  ;;  %v272_v41 = vadd.f32 %v1429_v39, %v208_v29 }
  0xb8   :  { %v1574_v49 = vpop.eup %1573  ;;  %1159 = vst.msk [vmem:[%s2615_s4 + $0xd4] sm:$0xf] %vm1105_vm0, %v1291_v47  ;;  %v1292_v7 = vpack.c.bf16 %v839_v48, %v839_v48  ;;  %1583 = vtanh.f32 %v590_v36 }
  0xb9   :  { %v840_v14 = vmul.f32 %v776_v19, %v2420_v17  ;;  %v713_v54 = vadd.f32 1.0, %v1574_v49  ;;  %v527_v50 = vadd.f32 %v463_v34, %v2524_v62  ;;  %v336_v9 = vmul.f32 %v272_v41, %v272_v41 }
  0xba   :  { %1160 = vst.msk [vmem:[%s2615_s4 + $0xd8] sm:$0xf] %vm1105_vm0, %v1292_v7 }
  0xbb   :  { %v1293_v51 = vpack.c.bf16 %v840_v14, %v840_v14  ;;  %v777_v61 = vmul.f32 0.5, %v713_v54  ;;  %v591_v12 = vmul.f32 0.7978846, %v527_v50  ;;  %v400_v16 = vmul.f32 %v336_v9, %v272_v41 }
  0xbd   :  { %1161 = vst.msk [vmem:[%s2615_s4 + $0xdc] sm:$0xf] %vm1105_vm0, %v1293_v51  ;;  %v841_v17 = vmul.f32 %v777_v61, %v2432_v5  ;;  %1585 = vtanh.f32 %v591_v12  ;;  %v464_v23 = vmul.f32 0.044715, %v400_v16 }
  0xbf   :  { %v1576_v24 = vpop.eup %1575  ;;  %v1294_v56 = vpack.c.bf16 %v841_v17, %v841_v17  ;;  %v528_v35 = vadd.f32 %v464_v23, %v272_v41 }
  0xc0   :  { %v1578_v37 = vpop.eup %1577  ;;  %v714_v39 = vadd.f32 1.0, %v1576_v24 }
  0xc1   :  { %1162 = vst.msk [vmem:[%s2615_s4 + $0xe0] sm:$0xf] %vm1105_vm0, %v1294_v56  ;;  %v715_v30 = vadd.f32 1.0, %v1578_v37  ;;  %v592_v40 = vmul.f32 0.7978846, %v528_v35 }
  0xc2   :  { %v1580_v45 = vpop.eup %1579  ;;  %v778_v46 = vmul.f32 0.5, %v714_v39 }
  0xc3   :  { %v1582_v58 = vpop.eup %1581  ;;  %v779_v6 = vmul.f32 0.5, %v715_v30  ;;  %v716_v11 = vadd.f32 1.0, %v1580_v45  ;;  %1587 = vtanh.f32 %v592_v40 }
  0xc4   :  { %v842_v5 = vmul.f32 %v778_v46, %v2478_v38  ;;  %v717_v13 = vadd.f32 1.0, %v1582_v58 }
  0xc5   :  { %v1584_v63 = vpop.eup %1583  ;;  %v843_v20 = vmul.f32 %v779_v6, %v2488_v26  ;;  %v780_v1 = vmul.f32 0.5, %v716_v11 }
  0xc6   :  { %v1295_v8 = vpack.c.bf16 %v842_v5, %v842_v5  ;;  %v781_v42 = vmul.f32 0.5, %v717_v13  ;;  %v718_v31 = vadd.f32 1.0, %v1584_v63 }
  0xc7   :  { %v1296_v2 = vpack.c.bf16 %v843_v20, %v843_v20  ;;  %v844_v53 = vmul.f32 %v780_v1, %v2497_v0 }
  0xc8   :  { %1163 = vst.msk [vmem:[%s2615_s4 + $0xe4] sm:$0xf] %vm1105_vm0, %v1295_v8  ;;  %v845_v21 = vmul.f32 %v781_v42, %v2504_v59  ;;  %v782_v3 = vmul.f32 0.5, %v718_v31 }
  0xc9   :  { %1164 = vst.msk [vmem:[%s2615_s4 + $0xe8] sm:$0xf] %vm1105_vm0, %v1296_v2  ;;  %v1297_v38 = vpack.c.bf16 %v844_v53, %v844_v53 }
  0xca   :  { %v1586_v26 = vpop.eup %1585  ;;  %v1298_v15 = vpack.c.bf16 %v845_v21, %v845_v21  ;;  %v846_v52 = vmul.f32 %v782_v3, %v2521_v10 }
  0xcb   :  { %1165 = vst.msk [vmem:[%s2615_s4 + $0xec] sm:$0xf] %vm1105_vm0, %v1297_v38  ;;  %v719_v0 = vadd.f32 1.0, %v1586_v26 }
  0xcc   :  { %1166 = vst.msk [vmem:[%s2615_s4 + $0xf0] sm:$0xf] %vm1105_vm0, %v1298_v15  ;;  %v1299_v59 = vpack.c.bf16 %v846_v52, %v846_v52 }
  0xcd   :  { %v783_v32 = vmul.f32 0.5, %v719_v0 }
  0xce   :  { %1167 = vst.msk [vmem:[%s2615_s4 + $0xf4] sm:$0xf] %vm1105_vm0, %v1299_v59 }
  0xcf   :  { %v847_v10 = vmul.f32 %v783_v32, %v2524_v62 }
  0xd0   :  { %v1588_v4 = vpop.eup %1587 }
  0xd1   :  { %v1300_v57 = vpack.c.bf16 %v847_v10, %v847_v10  ;;  %v720_v18 = vadd.f32 1.0, %v1588_v4 }
  0xd3   :  { %1168 = vst.msk [vmem:[%s2615_s4 + $0xf8] sm:$0xf] %vm1105_vm0, %v1300_v57  ;;  %v784_v55 = vmul.f32 0.5, %v720_v18 }
  0xd5   :  { %v848_v22 = vmul.f32 %v784_v55, %v272_v41 }
  0xd7   :  { %v1301_v28 = vpack.c.bf16 %v848_v22, %v848_v22 }
  0xd9   :  { %1169 = vst.msk [vmem:[%s2615_s4 + $0xfc] sm:$0xf] %vm1105_vm0, %v1301_v28 }

// kernel: dcf_sam_forward.111
= control target key start
LH: loop header
LB: loop body
LE: loop exit
PB: predicated region body
PF: predicated region fallthrough
CT: control target
= control target key end

     0   :  { %s826_s24 = smov 0   ;;  %s828_s25 = smov 0   ;;  %s900_s0 = inlined_call_operand.vmem [shape: f32[2,10,32], index: 0, kind: input, shape index: {}]   ;;  %s901_s1 = inlined_call_operand.vmem [shape: f32[2,10,32], index: 1, kind: input, shape index: {}]   ;;  %s902_s2 = inlined_call_operand.vmem [shape: f32[32,64], index: 2, kind: input, shape index: {}]   ;;  %s903_s3 = inlined_call_operand.vmem [shape: f32[1,64], index: 3, kind: input, shape index: {}]   ;;  %s904_s4 = inlined_call_operand.vmem [shape: f32[32,32], index: 4, kind: input, shape index: {}]   ;;  %s905_s5 = inlined_call_operand.vmem [shape: f32[1,32], index: 5, kind: input, shape index: {}]   ;;  %s906_s6 = inlined_call_operand.vmem [shape: bf16[2,10,64], index: 6, kind: output, shape index: {0}]   ;;  %s907_s7 = inlined_call_operand.vmem [shape: bf16[2,10,32], index: 7, kind: output, shape index: {1}]  }
   0x1   :  { %s830_s26 = smov 0  }
   0x2 LB: > { %s30_s27 = sadd.s32 1, %s778_s25  ;;  %p685_p0 = scmp.ge.s32.totalorder %s782_s26, 1  ;;  %s782_s26 = sphi %s830_s26, %s18_s26   ;;  %s778_s25 = sphi %s828_s25, %s909_s25   ;;  %s774_s24 = sphi %s826_s24, %s908_s24  }
   0x3   : > { %p32_p1 = scmp.ge.s32.totalorder %s30_s27, 2  ;;  %p280_p2 = scmp.lt.s32.totalorder %s782_s26, 3 }
   0x5   : > { %s911_s27 = smov (%p32_p1, %s30_s27), 0  ;;  %p281_p3 = pnand %p685_p0, %p280_p2 }
   0x6   : > { %p339_p4 = scmp.lt.s32.totalorder (!%p281_p3), %s774_s24, 1 }
   0x7   : > { %284 = sbr.rel (%p281_p3) target bundleno = 225 (0xe1), region = 44 }
   0xc   : > { %v459_v0 = vld [vmem:[%s904_s4 + $0x10] sm:$0xff]  ;;  %v460_v1 = vld [vmem:[%s904_s4 + $0x18] sm:$0xff]  ;;  %v784_v3 = vmov 0.0   ;;  %v457_v6 = vld [vmem:[%s904_s4] sm:$0xff]  ;;  %vm785_vm0 = vmmov 0   ;;  %s913_s24 = smov (!%p339_p4, %s774_s24), 1 }
   0xd   : > { %v388_v2 = vld [vmem:[%s902_s2 + $0x10] sm:$0xff]  ;;  %726 = vmatprep.subr.bf16.mxu1 %v784_v3  ;;  %718 = vmatprep.subr.bf16.mxu0 %v784_v3  ;;  %v462_v4 = vpack.c.bf16 %v460_v1, %v459_v0  ;;  %v389_v5 = vld [vmem:[%s902_s2 + $0x18] sm:$0xff]  ;;  %v458_v7 = vld [vmem:[%s904_s4 + $0x8] sm:$0xff]  ;;  %s704_s21 = sshll.u32 %s913_s24, 4  ;;  %vm399_vm1 = vcmask 261120   ;;  %s706_s11 = sshll.u32 %s913_s24, 3 }
   0xe   : > { %v391_v8 = vpack.c.bf16 %v389_v5, %v388_v2  ;;  %v386_v9 = vld [vmem:[%s902_s2] sm:$0xff]  ;;  %v387_v10 = vld [vmem:[%s902_s2 + $0x8] sm:$0xff]  ;;  %730 = vmatprep.mubr.msk.bf16.mxu1 %vm785_vm0, %v784_v3  ;;  %722 = vmatprep.mubr.msk.bf16.mxu0 %vm785_vm0, %v784_v3  ;;  %v461_v11 = vpack.c.bf16 %v458_v7, %v457_v6  ;;  %s346_s28 = scalar_lea.vmem %s900_s0, %s704_s21  ;;  %s356_s8 = scalar_lea.vmem %s901_s1, %s704_s21  ;;  %vm522_vm2 = vcmask 257024   ;;  %vm452_vm3 = vcmask 519168  }
   0xf   : > { %727 = vmatpush3.bf16.msra.mxu1 %v462_v4  ;;  %v390_v12 = vpack.c.bf16 %v387_v10, %v386_v9  ;;  %v379_v13 = vld [vmem:[%s346_s28] sm:$0xff]  ;;  %v380_v14 = vld [vmem:[%s346_s28 + $0x8] sm:$0x3]  ;;  %s376_s16 = scalar_lea.vmem %s907_s7, %s706_s11  ;;  %s366_s19 = scalar_lea.vmem %s906_s6, %s706_s11  ;;  %vm524_vm4 = vcmask 253952   ;;  %vm454_vm5 = vcmask 516096  }
  0x10   : > { %719 = vmatpush3.bf16.msra.mxu0 %v391_v8  ;;  %728 = vmatprep.subr.bf16.mxu1 %v784_v3  ;;  %v381_v15 = vld [vmem:[%s356_s8] sm:$0xff]  ;;  %v456_v16 = vpack.c.bf16 %v380_v14, %v379_v13  ;;  %v382_v17 = vld [vmem:[%s356_s8 + $0x8] sm:$0x3] }
  0x11   : > { %720 = vmatprep.subr.bf16.mxu0 %v784_v3  ;;  %v383_v18 = vadd.f32 %v381_v15, %v379_v13  ;;  %v384_v19 = vadd.f32 %v382_v17, %v380_v14  ;;  %v698_v21 = vld [vmem:[%s905_s5] ss:$0 sm:$0xff] }
  0x12   : > { %v694_v23 = vld [vmem:[%s903_s3] ss:$0 sm:$0xff] }
  0x13   : > { %729 = vmatpush3.bf16.msra.mxu1 %v461_v11  ;;  %v385_v20 = vpack.c.bf16 %v384_v19, %v383_v18 }
  0x14   : > { %721 = vmatpush3.bf16.msra.mxu0 %v390_v12 }
  0x16   : > { %731 = vmatmul.mubr.msk.bf16.vlgmr.msra.gmra.mxu1 %vm399_vm1, %v456_v16 }
  0x17   : > { %723 = vmatmul.mubr.msk.bf16.vlgmr.msra.gmra.mxu0 %vm399_vm1, %v385_v20 }
  0xd6   : > { %v507_v22 = vpop.f32.mrf.mxu1 }
  0xd7   : > { %v508_v24 = vadd.f32 %v698_v21, %v507_v22  ;;  %v437_v25 = vpop.f32.mrf.mxu0 }
  0xd8   : > { %v732_v26 = vpop.f32.mrf.mxu1  ;;  %v438_v28 = vadd.f32 %v694_v23, %v437_v25 }
  0xd9   : > { %v710_v27 = vpack.c.bf16 %v508_v24, %v508_v24  ;;  %v724_v29 = vpop.f32.mrf.mxu0 }
  0xda   : > { %v510_v30 = vpop.f32.mrf.mxu1  ;;  %v708_v31 = vpack.c.bf16 %v438_v28, %v438_v28 }
  0xdb   : > { %523 = vst.msk [vmem:[%s376_s16] sm:$0xf] %vm522_vm2, %v710_v27  ;;  %v511_v32 = vadd.f32 %v698_v21, %v510_v30  ;;  %v440_v33 = vpop.f32.mrf.mxu0 }
  0xdc   : > { %v733_v34 = vpop.f32.mrf.mxu1  ;;  %453 = vst.msk [vmem:[%s366_s19] sm:$0xf] %vm452_vm3, %v708_v31  ;;  %v441_v36 = vadd.f32 %v694_v23, %v440_v33 }
  0xdd   : > { %v711_v35 = vpack.c.bf16 %v511_v32, %v511_v32  ;;  %v725_v37 = vpop.f32.mrf.mxu0 }
  0xde   : > { %v709_v38 = vpack.c.bf16 %v441_v36, %v441_v36 }
  0xdf   : > { %525 = vst.msk [vmem:[%s376_s16 + $0x4] sm:$0x1] %vm524_vm4, %v711_v35 }
  0xe0   : > { %455 = vst.msk [vmem:[%s366_s19 + $0x4] sm:$0x1] %vm454_vm5, %v709_v38 }
  0xe1 PF: > { %s18_s26 = sadd.s32 1, %s782_s26   ;;  %s908_s24 = smov %s778_s25 }
  0xe2   : > { %p15_p5 = scmp.ge.s32.totalorder %s18_s26, 4   ;;  %s909_s25 = smov %s911_s27 }
  0xe4   :  { %17 = sbr.rel (!%p15_p5) target bundleno = 2 (0x2), region = 89 }

// kernel: dcf_sam_forward.106
= control target key start
LH: loop header
LB: loop body
LE: loop exit
PB: predicated region body
PF: predicated region fallthrough
CT: control target
= control target key end

     0   :  { %s727_s24 = smov 0   ;;  %s729_s25 = smov 0   ;;  %s822_s0 = inlined_call_operand.vmem [shape: f32[2,10,32], index: 0, kind: input, shape index: {}]   ;;  %s823_s1 = inlined_call_operand.vmem [shape: f32[32,64], index: 1, kind: input, shape index: {}]   ;;  %s824_s2 = inlined_call_operand.vmem [shape: f32[1,64], index: 2, kind: input, shape index: {}]   ;;  %s825_s3 = inlined_call_operand.vmem [shape: f32[64,32], index: 3, kind: input, shape index: {}]   ;;  %s826_s4 = inlined_call_operand.vmem [shape: f32[1,32], index: 4, kind: input, shape index: {}]   ;;  %s827_s5 = inlined_call_operand.vmem [shape: f32[1,32], index: 5, kind: input, shape index: {}]   ;;  %s828_s6 = inlined_call_operand.vmem [shape: f32[1,32], index: 6, kind: input, shape index: {}]   ;;  %s829_s7 = inlined_call_operand.vmem [shape: f32[2,10,32], index: 7, kind: output, shape index: {}]  }
   0x1   :  { %s731_s26 = smov 0  }
   0x2 LB: > { %s29_s27 = sadd.s32 1, %s679_s25  ;;  %p588_p0 = scmp.ge.s32.totalorder %s683_s26, 1  ;;  %s683_s26 = sphi %s731_s26, %s17_s26   ;;  %s679_s25 = sphi %s729_s25, %s831_s25   ;;  %s675_s24 = sphi %s727_s24, %s830_s24  }
   0x3   : > { %p31_p1 = scmp.ge.s32.totalorder %s29_s27, 2  ;;  %p258_p2 = scmp.lt.s32.totalorder %s683_s26, 3 }
   0x5   : > { %s833_s27 = smov (%p31_p1, %s29_s27), 0  ;;  %p259_p3 = pnand %p588_p0, %p258_p2 }
   0x6   : > { %p299_p4 = scmp.lt.s32.totalorder (!%p259_p3), %s675_s24, 1 }
   0x7   : > { %262 = sbr.rel (%p259_p3) target bundleno = 735 (0x2df), region = 48 }
   0xc   : > { %v324_v0 = vld [vmem:[%s823_s1 + $0x10] sm:$0xff]  ;;  %v325_v1 = vld [vmem:[%s823_s1 + $0x18] sm:$0xff]  ;;  %v322_v2 = vld [vmem:[%s823_s1] sm:$0xff]  ;;  %v685_v3 = vmov 0.0   ;;  %vm686_vm0 = vmmov 0   ;;  %s835_s24 = smov (!%p299_p4, %s675_s24), 1 }
   0xd   : > { %611 = vmatprep.subr.bf16.mxu0 %v685_v3  ;;  %v327_v4 = vpack.c.bf16 %v325_v1, %v324_v0  ;;  %v323_v5 = vld [vmem:[%s823_s1 + $0x8] sm:$0xff]  ;;  %615 = vmatprep.mubr.msk.bf16.mxu0 %vm686_vm0, %v685_v3  ;;  %v389_v6 = vld [vmem:[%s825_s3 + $0x30] sm:$0xff]  ;;  %v390_v7 = vld [vmem:[%s825_s3 + $0x38] sm:$0xff]  ;;  %s601_s17 = sshll.u32 %s835_s24, 4  ;;  %vm335_vm1 = vcmask 261120   ;;  %vm402_vm2 = vcmask 523264  }
   0xe   : > { %619 = vmatprep.subr.bf16.mxu1 %v685_v3  ;;  %v394_v8 = vpack.c.bf16 %v390_v7, %v389_v6  ;;  %627 = vmatprep.mubr.msk.bf16.mxu1 %vm686_vm0, %v685_v3  ;;  %v326_v9 = vpack.c.bf16 %v323_v5, %v322_v2  ;;  %s306_s20 = scalar_lea.vmem %s822_s0, %s601_s17  ;;  %v387_v13 = vld [vmem:[%s825_s3 + $0x20] sm:$0xff]  ;;  %v388_v14 = vld [vmem:[%s825_s3 + $0x28] sm:$0xff]  ;;  %v385_v16 = vld [vmem:[%s825_s3 + $0x10] sm:$0xff]  ;;  %vm452_vm3 = vcmask 254976   ;;  %s316_s29 = scalar_lea.vmem %s829_s7, %s601_s17 }
   0xf   : > { %612 = vmatpush3.bf16.msra.mxu0 %v327_v4  ;;  %v319_v10 = vld [vmem:[%s306_s20] sm:$0xff]  ;;  %v320_v11 = vld [vmem:[%s306_s20 + $0x8] sm:$0x3]  ;;  %v393_v15 = vpack.c.bf16 %v388_v14, %v387_v13  ;;  %v386_v17 = vld [vmem:[%s825_s3 + $0x18] sm:$0xff] }
  0x10   : > { %613 = vmatprep.subr.bf16.mxu0 %v685_v3  ;;  %620 = vmatpush3.bf16.msra.mxu1 %v394_v8  ;;  %v321_v12 = vpack.c.bf16 %v320_v11, %v319_v10  ;;  %v392_v18 = vpack.c.bf16 %v386_v17, %v385_v16  ;;  %v383_v19 = vld [vmem:[%s825_s3] sm:$0xff]  ;;  %v384_v20 = vld [vmem:[%s825_s3 + $0x8] sm:$0xff] }
  0x11   : > { %621 = vmatprep.subr.bf16.mxu1 %v685_v3  ;;  %v391_v21 = vpack.c.bf16 %v384_v20, %v383_v19  ;;  %v593_v22 = vld [vmem:[%s824_s2] ss:$0 sm:$0xff] }
  0x12   : > { %v595_v32 = vld [vmem:[%s826_s4] ss:$0 sm:$0xff] }
  0x13   : > { %614 = vmatpush3.bf16.msra.mxu0 %v326_v9  ;;  %v597_v60 = vld [vmem:[%s827_s5] ss:$0 sm:$0xff] }
  0x14   : > { %622 = vmatpush3.bf16.msra.mxu1 %v393_v15  ;;  %v598_v62 = vld [vmem:[%s828_s6] ss:$0 sm:$0xff] }
  0x15   : > { %623 = vmatprep.subr.bf16.mxu1 %v685_v3 }
  0x16   : > { %616 = vmatmul.mubr.msk.bf16.vlgmr.msra.gmra.mxu0 %vm335_vm1, %v321_v12 }
  0x18   : > { %624 = vmatpush3.bf16.msra.mxu1 %v392_v18 }
  0x19   : > { %625 = vmatprep.subr.bf16.mxu1 %v685_v3 }
  0x1c   : > { %626 = vmatpush3.bf16.msra.mxu1 %v391_v21 }
  0xd6   : > { %v373_v23 = vpop.f32.mrf.mxu0 }
  0xd7   : > { %v374_v25 = vadd.f32 %v593_v22, %v373_v23 }
  0xd8   : > { %v617_v24 = vpop.f32.mrf.mxu0 }
  0xd9   : > { %v380_v29 = vmax.f32 %v374_v25, 0.0 }
  0xda   : > { %v376_v26 = vpop.f32.mrf.mxu0 }
  0xdb   : > { %v377_v27 = vadd.f32 %v593_v22, %v376_v26 }
  0xdc   : > { %v618_v28 = vpop.f32.mrf.mxu0 }
  0xdd   : > { %v381_v30 = vmax.f32 %v377_v27, 0.0 }
  0xdf   : > { %v382_v31 = vpack.c.bf16 %v381_v30, %v380_v29 }
  0xe1   : > { %628 = vmatmul.mubr.msk.bf16.vlgmr.msra.gmra.mxu1 %vm402_vm2, %v382_v31 }
 0x1a1   : > { %v440_v33 = vpop.f32.mrf.mxu1 }
 0x1a2   : > { %v441_v34 = vadd.f32 %v595_v32, %v440_v33 }
 0x1a3   : > { %v629_v35 = vpop.f32.mrf.mxu1 }
 0x1a4   : > { %v447_v36 = vadd.f32 %v441_v34, %v319_v10 }
 0x1a5   : > { %v443_v37 = vpop.f32.mrf.mxu1 }
 0x1a6   : > { %v444_v38 = vadd.f32 %v595_v32, %v443_v37  ;;  %v449_v39 = vsel %vm335_vm1, %v447_v36, 0.0 }
 0x1a7   : > { %450 = vadd.xlane.f32.xlu0 %v449_v39  ;;  %v630_v40 = vpop.f32.mrf.mxu1 }
 0x1a8   : > { %v448_v41 = vadd.f32 %v444_v38, %v320_v11 }
 0x1aa   : > { %v453_v42 = vsel %vm452_vm3, %v448_v41, 0.0 }
 0x1ab   : > { %454 = vadd.xlane.f32.xlu0 %v453_v42 }
 0x230   : > { %v451_v43 = vpop.xlane.xlu0 %450 }
 0x231   : > { %v457_v44 = vmul.f32 0.03125, %v451_v43 }
 0x233   : > { %v459_v45 = vsub.f32 %v447_v36, %v457_v44 }
 0x234   : > { %v455_v46 = vpop.xlane.xlu0 %454 }
 0x235   : > { %v458_v47 = vmul.f32 0.03125, %v455_v46  ;;  %v461_v48 = vmul.f32 %v459_v45, %v459_v45 }
 0x237   : > { %v460_v49 = vsub.f32 %v448_v41, %v458_v47  ;;  %v463_v50 = vsel %vm335_vm1, %v461_v48, 0.0 }
 0x238   : > { %464 = vadd.xlane.f32.xlu1 %v463_v50 }
 0x239   : > { %v462_v51 = vmul.f32 %v460_v49, %v460_v49 }
 0x23b   : > { %v466_v52 = vsel %vm452_vm3, %v462_v51, 0.0 }
 0x23c   : > { %467 = vadd.xlane.f32.xlu1 %v466_v52 }
 0x2c1   : > { %v465_v53 = vpop.xlane.xlu1 %464 }
 0x2c2   : > { %v469_v54 = vmul.f32 0.03125, %v465_v53 }
 0x2c4   : > { %v471_v55 = vadd.f32 1e-06, %v469_v54 }
 0x2c5   : > { %v468_v56 = vpop.xlane.xlu1 %467 }
 0x2c6   : > { %657 = vrsqrt.f32 %v471_v55  ;;  %v470_v57 = vmul.f32 0.03125, %v468_v56 }
 0x2c8   : > { %v472_v58 = vadd.f32 1e-06, %v470_v57 }
 0x2ca   : > { %659 = vrsqrt.f32 %v472_v58 }
 0x2d3   : > { %v658_v59 = vpop.eup %657 }
 0x2d4   : > { %v475_v61 = vmul.f32 %v658_v59, %v459_v45 }
 0x2d6   : > { %v484_v63 = vmul.f32 %v597_v60, %v475_v61 }
 0x2d7   : > { %v660_v0 = vpop.eup %659 }
 0x2d8   : > { %v493_v1 = vadd.f32 %v598_v62, %v484_v63  ;;  %v476_v2 = vmul.f32 %v660_v0, %v460_v49 }
 0x2da   : > { %495 = vst.msk [vmem:[%s316_s29] sm:$0xff] %vm335_vm1, %v493_v1  ;;  %v485_v3 = vmul.f32 %v597_v60, %v476_v2 }
 0x2dc   : > { %v494_v4 = vadd.f32 %v598_v62, %v485_v3 }
 0x2de   : > { %496 = vst.msk [vmem:[%s316_s29 + $0x8] sm:$0x3] %vm452_vm3, %v494_v4 }
 0x2df PF: > { %s17_s26 = sadd.s32 1, %s683_s26   ;;  %s830_s24 = smov %s679_s25 }
 0x2e0   : > { %p14_p5 = scmp.ge.s32.totalorder %s17_s26, 4   ;;  %s831_s25 = smov %s833_s27 }
 0x2e2   :  { %16 = sbr.rel (!%p14_p5) target bundleno = 2 (0x2), region = 78 }

// kernel: dcf_sam_forward.108
= control target key start
LH: loop header
LB: loop body
LE: loop exit
PB: predicated region body
PF: predicated region fallthrough
CT: control target
= control target key end

     0   :  { %s824_s24 = smov 0   ;;  %s826_s25 = smov 0   ;;  %s898_s0 = inlined_call_operand.vmem [shape: f32[2,10,32], index: 0, kind: input, shape index: {}]   ;;  %s899_s1 = inlined_call_operand.vmem [shape: f32[2,10,32], index: 1, kind: input, shape index: {}]   ;;  %s900_s2 = inlined_call_operand.vmem [shape: f32[32,32], index: 2, kind: input, shape index: {}]   ;;  %s901_s3 = inlined_call_operand.vmem [shape: f32[1,32], index: 3, kind: input, shape index: {}]   ;;  %s902_s4 = inlined_call_operand.vmem [shape: f32[32,32], index: 4, kind: input, shape index: {}]   ;;  %s903_s5 = inlined_call_operand.vmem [shape: f32[1,32], index: 5, kind: input, shape index: {}]   ;;  %s904_s6 = inlined_call_operand.vmem [shape: bf16[2,10,32], index: 6, kind: output, shape index: {0}]   ;;  %s905_s7 = inlined_call_operand.vmem [shape: bf16[2,10,32], index: 7, kind: output, shape index: {1}]  }
   0x1   :  { %s828_s26 = smov 0  }
   0x2 LB: > { %s30_s27 = sadd.s32 1, %s776_s25  ;;  %p683_p0 = scmp.ge.s32.totalorder %s780_s26, 1  ;;  %s780_s26 = sphi %s828_s26, %s18_s26   ;;  %s776_s25 = sphi %s826_s25, %s907_s25   ;;  %s772_s24 = sphi %s824_s24, %s906_s24  }
   0x3   : > { %p32_p1 = scmp.ge.s32.totalorder %s30_s27, 2  ;;  %p280_p2 = scmp.lt.s32.totalorder %s780_s26, 3 }
   0x5   : > { %s909_s27 = smov (%p32_p1, %s30_s27), 0  ;;  %p281_p3 = pnand %p683_p0, %p280_p2 }
   0x6   : > { %p339_p4 = scmp.lt.s32.totalorder (!%p281_p3), %s772_s24, 1 }
   0x7   : > { %284 = sbr.rel (%p281_p3) target bundleno = 225 (0xe1), region = 44 }
   0xc   : > { %v459_v0 = vld [vmem:[%s902_s4 + $0x10] sm:$0xff]  ;;  %v460_v1 = vld [vmem:[%s902_s4 + $0x18] sm:$0xff]  ;;  %v782_v3 = vmov 0.0   ;;  %v457_v6 = vld [vmem:[%s902_s4] sm:$0xff]  ;;  %vm783_vm0 = vmmov 0   ;;  %s911_s24 = smov (!%p339_p4, %s772_s24), 1 }
   0xd   : > { %v388_v2 = vld [vmem:[%s900_s2 + $0x10] sm:$0xff]  ;;  %724 = vmatprep.subr.bf16.mxu1 %v782_v3  ;;  %716 = vmatprep.subr.bf16.mxu0 %v782_v3  ;;  %v462_v4 = vpack.c.bf16 %v460_v1, %v459_v0  ;;  %v389_v5 = vld [vmem:[%s900_s2 + $0x18] sm:$0xff]  ;;  %v458_v7 = vld [vmem:[%s902_s4 + $0x8] sm:$0xff]  ;;  %s702_s21 = sshll.u32 %s911_s24, 4  ;;  %vm399_vm1 = vcmask 261120   ;;  %s704_s11 = sshll.u32 %s911_s24, 3 }
   0xe   : > { %v391_v8 = vpack.c.bf16 %v389_v5, %v388_v2  ;;  %v386_v9 = vld [vmem:[%s900_s2] sm:$0xff]  ;;  %v387_v10 = vld [vmem:[%s900_s2 + $0x8] sm:$0xff]  ;;  %728 = vmatprep.mubr.msk.bf16.mxu1 %vm783_vm0, %v782_v3  ;;  %720 = vmatprep.mubr.msk.bf16.mxu0 %vm783_vm0, %v782_v3  ;;  %v461_v11 = vpack.c.bf16 %v458_v7, %v457_v6  ;;  %s346_s28 = scalar_lea.vmem %s898_s0, %s702_s21  ;;  %s356_s8 = scalar_lea.vmem %s899_s1, %s702_s21  ;;  %vm452_vm2 = vcmask 257024   ;;  %vm454_vm3 = vcmask 253952  }
   0xf   : > { %725 = vmatpush3.bf16.msra.mxu1 %v462_v4  ;;  %v390_v12 = vpack.c.bf16 %v387_v10, %v386_v9  ;;  %v379_v13 = vld [vmem:[%s346_s28] sm:$0xff]  ;;  %v380_v14 = vld [vmem:[%s346_s28 + $0x8] sm:$0x3]  ;;  %s376_s16 = scalar_lea.vmem %s905_s7, %s704_s11  ;;  %s366_s19 = scalar_lea.vmem %s904_s6, %s704_s11 }
  0x10   : > { %717 = vmatpush3.bf16.msra.mxu0 %v391_v8  ;;  %726 = vmatprep.subr.bf16.mxu1 %v782_v3  ;;  %v381_v15 = vld [vmem:[%s356_s8] sm:$0xff]  ;;  %v456_v16 = vpack.c.bf16 %v380_v14, %v379_v13  ;;  %v382_v17 = vld [vmem:[%s356_s8 + $0x8] sm:$0x3] }
  0x11   : > { %718 = vmatprep.subr.bf16.mxu0 %v782_v3  ;;  %v383_v18 = vadd.f32 %v381_v15, %v379_v13  ;;  %v384_v19 = vadd.f32 %v382_v17, %v380_v14  ;;  %v696_v21 = vld [vmem:[%s903_s5] ss:$0 sm:$0xff] }
  0x12   : > { %v692_v23 = vld [vmem:[%s901_s3] ss:$0 sm:$0xff] }
  0x13   : > { %727 = vmatpush3.bf16.msra.mxu1 %v461_v11  ;;  %v385_v20 = vpack.c.bf16 %v384_v19, %v383_v18 }
  0x14   : > { %719 = vmatpush3.bf16.msra.mxu0 %v390_v12 }
  0x16   : > { %729 = vmatmul.mubr.msk.bf16.vlgmr.msra.gmra.mxu1 %vm399_vm1, %v456_v16 }
  0x17   : > { %721 = vmatmul.mubr.msk.bf16.vlgmr.msra.gmra.mxu0 %vm399_vm1, %v385_v20 }
  0xd6   : > { %v507_v22 = vpop.f32.mrf.mxu1 }
  0xd7   : > { %v508_v24 = vadd.f32 %v696_v21, %v507_v22  ;;  %v437_v25 = vpop.f32.mrf.mxu0 }
  0xd8   : > { %v730_v26 = vpop.f32.mrf.mxu1  ;;  %v438_v28 = vadd.f32 %v692_v23, %v437_v25 }
  0xd9   : > { %v708_v27 = vpack.c.bf16 %v508_v24, %v508_v24  ;;  %v722_v29 = vpop.f32.mrf.mxu0 }
  0xda   : > { %v510_v30 = vpop.f32.mrf.mxu1  ;;  %v706_v31 = vpack.c.bf16 %v438_v28, %v438_v28 }
  0xdb   : > { %522 = vst.msk [vmem:[%s376_s16] sm:$0xf] %vm452_vm2, %v708_v27  ;;  %v511_v32 = vadd.f32 %v696_v21, %v510_v30  ;;  %v440_v33 = vpop.f32.mrf.mxu0 }
  0xdc   : > { %v731_v34 = vpop.f32.mrf.mxu1  ;;  %453 = vst.msk [vmem:[%s366_s19] sm:$0xf] %vm452_vm2, %v706_v31  ;;  %v441_v36 = vadd.f32 %v692_v23, %v440_v33 }
  0xdd   : > { %v709_v35 = vpack.c.bf16 %v511_v32, %v511_v32  ;;  %v723_v37 = vpop.f32.mrf.mxu0 }
  0xde   : > { %v707_v38 = vpack.c.bf16 %v441_v36, %v441_v36 }
  0xdf   : > { %523 = vst.msk [vmem:[%s376_s16 + $0x4] sm:$0x1] %vm454_vm3, %v709_v35 }
  0xe0   : > { %455 = vst.msk [vmem:[%s366_s19 + $0x4] sm:$0x1] %vm454_vm3, %v707_v38 }
  0xe1 PF: > { %s18_s26 = sadd.s32 1, %s780_s26   ;;  %s906_s24 = smov %s776_s25 }
  0xe2   : > { %p15_p5 = scmp.ge.s32.totalorder %s18_s26, 4   ;;  %s907_s25 = smov %s909_s27 }
  0xe4   :  { %17 = sbr.rel (!%p15_p5) target bundleno = 2 (0x2), region = 89 }

// kernel: dcf_sam_forward.104
= control target key start
LH: loop header
LB: loop body
LE: loop exit
PB: predicated region body
PF: predicated region fallthrough
CT: control target
= control target key end

     0   :  { %s1169_s12 = smov 0   ;;  %s1171_s13 = smov 0   ;;  %s1291_s0 = inlined_call_operand.vmem [shape: bf16[2,10,32], index: 0, kind: input, shape index: {}]   ;;  %s1292_s1 = inlined_call_operand.vmem [shape: bf16[2,16,32], index: 1, kind: input, shape index: {}]   ;;  %s1293_s2 = inlined_call_operand.vmem [shape: bf16[2,16,32], index: 2, kind: input, shape index: {}]   ;;  %s1294_s3 = inlined_call_operand.vmem [shape: bf16[2,10,32], index: 3, kind: output, shape index: {}]  }
   0x1   :  { %s1173_s14 = smov 0  }
   0x2 LB: > { %s25_s15 = sadd.s32 1, %s1135_s13  ;;  %p941_p0 = scmp.ge.s32.totalorder %s1139_s14, 1  ;;  %s1139_s14 = sphi %s1173_s14, %s13_s14   ;;  %s1135_s13 = sphi %s1171_s13, %s1296_s13   ;;  %s1131_s12 = sphi %s1169_s12, %s1295_s12  }
   0x3   : > { %p27_p1 = scmp.ge.s32.totalorder %s25_s15, 2  ;;  %p186_p2 = scmp.lt.s32.totalorder %s1139_s14, 3 }
   0x5   : > { %s1298_s15 = smov (%p27_p1, %s25_s15), 0  ;;  %p187_p3 = pnand %p941_p0, %p186_p2 }
   0x6   : > { %p232_p4 = scmp.lt.s32.totalorder (!%p187_p3), %s1131_s12, 1  ;;  %s1143_s23 = smov (!%p187_p3), 120  }
   0x7   : > { %190 = sbr.rel (%p187_p3) target bundleno = 1440 (0x5a0), region = 32  ;;  %s1144_s24 = smov (!%p187_p3), 104  }
   0x8   : > { %s1145_s28 = smov (!%p187_p3), 112   ;;  %s1146_s29 = smov (!%p187_p3), 8  }
   0x9   : > { %s1147_s30 = smov (!%p187_p3), 16   ;;  %s1148_s4 = smov (!%p187_p3), 24  }
   0xc   : > { %v1141_v0 = vmov 0.0   ;;  %vm1142_vm0 = vmmov 0   ;;  %s1300_s12 = smov (!%p232_p4, %s1131_s12), 1  ;;  %vm281_vm1 = vcmask 64512   ;;  %vm331_vm2 = vcmask 130048  }
   0xd   : > { %987 = vmatprep.subr.bf16.mxu0 %v1141_v0  ;;  %989 = vmatprep.mubr.msk.bf16.mxu0 %vm1142_vm0, %v1141_v0  ;;  %s1193_s16 = sshll.u32 %s1300_s12, 3  ;;  %vm335_vm3 = vcmask 123904   ;;  %vm803_vm4 = vcmask 195584   ;;  %vm814_vm5 = vcmask 257024   ;;  %vm816_vm6 = vcmask 253952  }
   0xe   : > { %993 = vmatprep.subr.bf16.mxu1 %v1141_v0  ;;  %995 = vmatprep.mubr.msk.bf16.mxu1 %vm1142_vm0, %v1141_v0  ;;  %s247_s19 = scalar_lea.vmem %s1292_s1, %s1193_s16  ;;  %s239_s22 = scalar_lea.vmem %s1291_s0, %s1193_s16 }
   0xf   : > { %v1082_v1 = vld [vmem:[%s247_s19] sm:$0xff]   ;;  %s255_s27 = scalar_lea.vmem %s1293_s2, %s1193_s16  ;;  %s263_s7 = scalar_lea.vmem %s1294_s3, %s1193_s16 }
  0x10   : > { %v286_v2 = vsel %vm281_vm1, %v1082_v1, 0  ;;  %v1083_v3 = vld [vmem:[%s239_s22] sm:$0x1f]  }
  0x11   : > { %988 = vmatpush3.bf16.xpose.msra.mxu0 %v286_v2  ;;  %v1218_v22 = vld [vmem:[%s255_s27] sm:$0xff]  }
  0x12   : > { %1005 = vmatprep.subr.bf16.mxu0 %v1141_v0  ;;  %994 = vmatpush3.bf16.msra.mxu1 %v1218_v22 }
  0x13   : > { %999 = vmatprep.subr.bf16.mxu1 %v1141_v0 }
  0x18   : > { %990 = vmatmul.mubr.msk.bf16.vlgmr.msra.gmra.mxu0 %vm281_vm1, %v1083_v3 }
  0x19   : > { %1007 = vmatprep.mubr.msk.bf16.mxu0 %vm1142_vm0, %v1141_v0 }
  0xd8   : > { %v322_v4 = vpop.f32.mrf.mxu0 }
  0xd9   : > { %v329_v5 = vmul.f32 0.35355338, %v322_v4 }
  0xda   : > { %v991_v6 = vpop.f32.mrf.mxu0 }
  0xdb   : > { %v332_v7 = vsel %vm331_vm2, %v329_v5, -inf }
  0xdc   : > { %333 = vmax.xlane.f32.xlu0 %v332_v7  ;;  %v325_v8 = vpop.f32.mrf.mxu0 }
  0xdd   : > { %v330_v9 = vmul.f32 0.35355338, %v325_v8 }
  0xde   : > { %v992_v10 = vpop.f32.mrf.mxu0 }
  0xdf   : > { %v336_v11 = vsel %vm335_vm3, %v330_v9, -inf }
  0xe0   : > { %337 = vmax.xlane.f32.xlu0 %v336_v11 }
  0xf6   : > { %408 = vrot.lane.b32.xlu0 %v1082_v1, %s1143_s23 }
  0xfa   : > { %654 = vrot.lane.b32.xlu0 %v1082_v1, %s1144_s24 }
 0x165   : > { %v334_v12 = vpop.xlane.xlu0 %333 }
 0x166   : > { %v339_v13 = vsub.f32 %v329_v5, %v334_v12 }
 0x168   : > { %v341_v14 = vmul.f32 1.442695, %v339_v13 }
 0x169   : > { %v338_v15 = vpop.xlane.xlu0 %337 }
 0x16a   : > { %1085 = vpow2.f32 %v341_v14  ;;  %v340_v16 = vsub.f32 %v330_v9, %v338_v15 }
 0x16c   : > { %v343_v17 = vmul.f32 1.442695, %v340_v16 }
 0x16d   : > { %v409_v27 = vpop.permute.xlu0 %408 }
 0x16e   : > { %1087 = vpow2.f32 %v343_v17  ;;  %v414_v31 = vsel %vm281_vm1, %v409_v27, 0 }
 0x171   : > { %v655_v35 = vpop.permute.xlu0 %654 }
 0x172   : > { %v660_v37 = vsel %vm281_vm1, %v655_v35, 0 }
 0x177   : > { %v1086_v18 = vpop.eup %1085 }
 0x178   : > { %v345_v19 = vsel %vm331_vm2, %v1086_v18, 0.0 }
 0x179   : > { %346 = vadd.xlane.f32.xlu1 %v345_v19 }
 0x17b   : > { %v1088_v20 = vpop.eup %1087 }
 0x17c   : > { %v348_v21 = vsel %vm335_vm3, %v1088_v20, 0.0 }
 0x17d   : > { %349 = vadd.xlane.f32.xlu1 %v348_v21 }
 0x18e   : > { %406 = vrot.lane.b32.xlu1 %v1083_v3, %s1143_s23 }
 0x192   : > { %531 = vrot.lane.b32.xlu1 %v1082_v1, %s1145_s28 }
 0x196   : > { %529 = vrot.lane.b32.xlu1 %v1083_v3, %s1145_s28 }
 0x19a   : > { %652 = vrot.lane.b32.xlu1 %v1083_v3, %s1144_s24 }
 0x202   : > { %v347_v23 = vpop.xlane.xlu1 %346 }
 0x203   : > { %1089 = vrcp.f32 %v347_v23 }
 0x206   : > { %v350_v24 = vpop.xlane.xlu1 %349 }
 0x207   : > { %1091 = vrcp.f32 %v350_v24 }
 0x20a   : > { %v407_v30 = vpop.permute.xlu1 %406 }
 0x20e   : > { %v532_v33 = vpop.permute.xlu1 %531 }
 0x20f   : > { %v537_v34 = vsel %vm281_vm1, %v532_v33, 0 }
 0x210   : > { %v1090_v25 = vpop.eup %1089 }
 0x211   : > { %v353_v28 = vmul.f32 %v1090_v25, %v1086_v18 }
 0x212   : > { %v530_v36 = vpop.permute.xlu1 %529 }
 0x214   : > { %v1092_v26 = vpop.eup %1091 }
 0x215   : > { %v354_v29 = vmul.f32 %v1092_v26, %v1088_v20 }
 0x216   : > { %v653_v38 = vpop.permute.xlu1 %652 }
 0x217   : > { %v355_v32 = vpack.c.bf16 %v354_v29, %v353_v28 }
 0x219   : > { %996 = vmatmul.mubr.msk.bf16.vlgmr.msra.gmra.mxu1 %vm331_vm2, %v355_v32 }
 0x21a   : > { %1000 = vmatpush3.bf16.xpose.msra.mxu1 %v414_v31  ;;  %1001 = vmatprep.mubr.msk.bf16.mxu1 %vm1142_vm0, %v1141_v0 }
 0x21b   : > { %1011 = vmatprep.subr.bf16.mxu1 %v1141_v0 }
 0x221   : > { %1002 = vmatmul.mubr.msk.bf16.vlgmr.msra.gmra.mxu1 %vm281_vm1, %v407_v30 }
 0x222   : > { %1012 = vmatpush3.bf16.xpose.msra.mxu1 %v537_v34  ;;  %1013 = vmatprep.mubr.msk.bf16.mxu1 %vm1142_vm0, %v1141_v0 }
 0x223   : > { %1023 = vmatprep.subr.bf16.mxu1 %v1141_v0 }
 0x229   : > { %1014 = vmatmul.mubr.msk.bf16.vlgmr.msra.gmra.mxu1 %vm281_vm1, %v530_v36 }
 0x22a   : > { %1024 = vmatpush3.bf16.xpose.msra.mxu1 %v660_v37  ;;  %1025 = vmatprep.mubr.msk.bf16.mxu1 %vm1142_vm0, %v1141_v0 }
 0x231   : > { %1026 = vmatmul.mubr.msk.bf16.vlgmr.msra.gmra.mxu1 %vm281_vm1, %v653_v38 }
 0x2d9   : > { %v1241_v39 = vpop.f32.mrf.mxu1 }
 0x2db   : > { %v997_v40 = vpop.f32.mrf.mxu1 }
 0x2dd   : > { %v1243_v41 = vpop.f32.mrf.mxu1 }
 0x2df   : > { %v998_v42 = vpop.f32.mrf.mxu1 }
 0x2e1   : > { %v450_v43 = vpop.f32.mrf.mxu1 }
 0x2e2   : > { %v457_v44 = vmul.f32 0.35355338, %v450_v43 }
 0x2e3   : > { %v1003_v45 = vpop.f32.mrf.mxu1 }
 0x2e4   : > { %v459_v46 = vsel %vm331_vm2, %v457_v44, -inf }
 0x2e5   : > { %460 = vmax.xlane.f32.xlu0 %v459_v46  ;;  %v453_v47 = vpop.f32.mrf.mxu1 }
 0x2e6   : > { %v458_v48 = vmul.f32 0.35355338, %v453_v47 }
 0x2e7   : > { %v1004_v49 = vpop.f32.mrf.mxu1 }
 0x2e8   : > { %v462_v50 = vsel %vm335_vm3, %v458_v48, -inf }
 0x2e9   : > { %463 = vmax.xlane.f32.xlu1 %v462_v50  ;;  %v573_v51 = vpop.f32.mrf.mxu1 }
 0x2ea   : > { %v580_v52 = vmul.f32 0.35355338, %v573_v51 }
 0x2eb   : > { %v1015_v53 = vpop.f32.mrf.mxu1 }
 0x2ec   : > { %v582_v54 = vsel %vm331_vm2, %v580_v52, -inf }
 0x2ed   : > { %583 = vmax.xlane.f32.xlu0 %v582_v54  ;;  %v576_v55 = vpop.f32.mrf.mxu1 }
 0x2ee   : > { %v581_v56 = vmul.f32 0.35355338, %v576_v55 }
 0x2ef   : > { %v1016_v57 = vpop.f32.mrf.mxu1 }
 0x2f0   : > { %v585_v58 = vsel %vm335_vm3, %v581_v56, -inf }
 0x2f1   : > { %586 = vmax.xlane.f32.xlu0 %v585_v58  ;;  %v696_v59 = vpop.f32.mrf.mxu1 }
 0x2f2   : > { %v703_v60 = vmul.f32 0.35355338, %v696_v59 }
 0x2f3   : > { %v1027_v61 = vpop.f32.mrf.mxu1 }
 0x2f4   : > { %v705_v62 = vsel %vm331_vm2, %v703_v60, -inf }
 0x2f5   : > { %706 = vmax.xlane.f32.xlu0 %v705_v62  ;;  %v699_v63 = vpop.f32.mrf.mxu1 }
 0x2f6   : > { %v704_v1 = vmul.f32 0.35355338, %v699_v63 }
 0x2f7   : > { %v1028_v2 = vpop.f32.mrf.mxu1 }
 0x2f8   : > { %v708_v3 = vsel %vm335_vm3, %v704_v1, -inf }
 0x2f9   : > { %709 = vmax.xlane.f32.xlu1 %v708_v3 }
 0x36e   : > { %v461_v4 = vpop.xlane.xlu0 %460 }
 0x36f   : > { %v465_v5 = vsub.f32 %v457_v44, %v461_v4 }
 0x371   : > { %v467_v6 = vmul.f32 1.442695, %v465_v5 }
 0x372   : > { %v464_v7 = vpop.xlane.xlu1 %463 }
 0x373   : > { %1093 = vpow2.f32 %v467_v6  ;;  %v466_v8 = vsub.f32 %v458_v48, %v464_v7 }
 0x375   : > { %v469_v9 = vmul.f32 1.442695, %v466_v8 }
 0x376   : > { %v584_v10 = vpop.xlane.xlu0 %583 }
 0x377   : > { %1095 = vpow2.f32 %v469_v9  ;;  %v588_v11 = vsub.f32 %v580_v52, %v584_v10 }
 0x379   : > { %v590_v12 = vmul.f32 1.442695, %v588_v11 }
 0x37a   : > { %v587_v13 = vpop.xlane.xlu0 %586 }
 0x37b   : > { %1097 = vpow2.f32 %v590_v12  ;;  %v589_v14 = vsub.f32 %v581_v56, %v587_v13 }
 0x37d   : > { %v592_v15 = vmul.f32 1.442695, %v589_v14 }
 0x37e   : > { %v707_v16 = vpop.xlane.xlu0 %706 }
 0x37f   : > { %1099 = vpow2.f32 %v592_v15  ;;  %v711_v17 = vsub.f32 %v703_v60, %v707_v16 }
 0x380   : > { %v1094_v18 = vpop.eup %1093 }
 0x381   : > { %v713_v19 = vmul.f32 1.442695, %v711_v17  ;;  %v471_v20 = vsel %vm331_vm2, %v1094_v18, 0.0 }
 0x382   : > { %472 = vadd.xlane.f32.xlu0 %v471_v20  ;;  %v710_v30 = vpop.xlane.xlu1 %709 }
 0x383   : > { %1101 = vpow2.f32 %v713_v19  ;;  %v712_v31 = vsub.f32 %v704_v1, %v710_v30 }
 0x384   : > { %v1096_v21 = vpop.eup %1095 }
 0x385   : > { %v474_v23 = vsel %vm335_vm3, %v1096_v21, 0.0  ;;  %v715_v32 = vmul.f32 1.442695, %v712_v31 }
 0x386   : > { %475 = vadd.xlane.f32.xlu1 %v474_v23 }
 0x387   : > { %1103 = vpow2.f32 %v715_v32 }
 0x388   : > { %v1098_v24 = vpop.eup %1097 }
 0x389   : > { %v594_v25 = vsel %vm331_vm2, %v1098_v24, 0.0 }
 0x38a   : > { %595 = vadd.xlane.f32.xlu0 %v594_v25 }
 0x38c   : > { %v1100_v26 = vpop.eup %1099 }
 0x38d   : > { %v597_v27 = vsel %vm335_vm3, %v1100_v26, 0.0 }
 0x38e   : > { %598 = vadd.xlane.f32.xlu1 %v597_v27 }
 0x390   : > { %v1102_v28 = vpop.eup %1101 }
 0x391   : > { %v717_v29 = vsel %vm331_vm2, %v1102_v28, 0.0 }
 0x392   : > { %718 = vadd.xlane.f32.xlu0 %v717_v29 }
 0x394   : > { %v1104_v33 = vpop.eup %1103 }
 0x395   : > { %v720_v34 = vsel %vm335_vm3, %v1104_v33, 0.0 }
 0x39f   : > { %605 = vrot.lane.b32.xlu1 %v1218_v22, %s1145_s28 }
 0x3a8   : > { %482 = vrot.lane.b32.xlu0 %v1218_v22, %s1143_s23 }
 0x3c3   : > { %721 = vadd.xlane.f32.xlu1 %v720_v34 }
 0x3d4   : > { %728 = vrot.lane.b32.xlu1 %v1218_v22, %s1144_s24 }
 0x40b   : > { %v473_v35 = vpop.xlane.xlu0 %472 }
 0x40c   : > { %1105 = vrcp.f32 %v473_v35 }
 0x40f   : > { %v476_v36 = vpop.xlane.xlu1 %475 }
 0x410   : > { %1107 = vrcp.f32 %v476_v36 }
 0x413   : > { %v596_v37 = vpop.xlane.xlu0 %595 }
 0x414   : > { %1109 = vrcp.f32 %v596_v37 }
 0x417   : > { %v599_v38 = vpop.xlane.xlu1 %598 }
 0x418   : > { %1111 = vrcp.f32 %v599_v38 }
 0x419   : > { %v1106_v40 = vpop.eup %1105 }
 0x41a   : > { %v479_v44 = vmul.f32 %v1106_v40, %v1094_v18 }
 0x41b   : > { %v719_v42 = vpop.xlane.xlu0 %718  ;;  %v606_v22 = vpop.permute.xlu1 %605 }
 0x41c   : > { %1113 = vrcp.f32 %v719_v42 }
 0x41d   : > { %v1108_v43 = vpop.eup %1107 }
 0x41e   : > { %v480_v45 = vmul.f32 %v1108_v43, %v1096_v21 }
 0x41f   : > { %v483_v46 = vpop.permute.xlu0 %482 }
 0x420   : > { %1006 = vmatpush3.bf16.msra.mxu0 %v483_v46  ;;  %v481_v47 = vpack.c.bf16 %v480_v45, %v479_v44 }
 0x421   : > { %1017 = vmatprep.subr.bf16.mxu0 %v1141_v0  ;;  %v1110_v48 = vpop.eup %1109 }
 0x422   : > { %v602_v50 = vmul.f32 %v1110_v48, %v1098_v24 }
 0x423   : > { %1008 = vmatmul.mubr.msk.bf16.vlgmr.msra.gmra.mxu0 %vm331_vm2, %v481_v47 }
 0x424   : > { %1018 = vmatpush3.bf16.msra.mxu0 %v606_v22  ;;  %1019 = vmatprep.mubr.msk.bf16.mxu0 %vm1142_vm0, %v1141_v0 }
 0x425   : > { %v1112_v49 = vpop.eup %1111  ;;  %1029 = vmatprep.subr.bf16.mxu0 %v1141_v0 }
 0x426   : > { %v603_v51 = vmul.f32 %v1112_v49, %v1100_v26 }
 0x428   : > { %v604_v52 = vpack.c.bf16 %v603_v51, %v602_v50 }
 0x429   : > { %v1114_v55 = vpop.eup %1113 }
 0x42a   : > { %v725_v57 = vmul.f32 %v1114_v55, %v1102_v28 }
 0x42b   : > { %1020 = vmatmul.mubr.msk.bf16.vlgmr.msra.gmra.mxu0 %vm331_vm2, %v604_v52 }
 0x42c   : > { %1031 = vmatprep.mubr.msk.bf16.mxu0 %vm1142_vm0, %v1141_v0 }
 0x44c   : > { %v722_v53 = vpop.xlane.xlu1 %721 }
 0x44d   : > { %1115 = vrcp.f32 %v722_v53 }
 0x450   : > { %v729_v54 = vpop.permute.xlu1 %728 }
 0x451   : > { %1030 = vmatpush3.bf16.msra.mxu0 %v729_v54 }
 0x45a   : > { %v1116_v56 = vpop.eup %1115 }
 0x45b   : > { %v726_v58 = vmul.f32 %v1116_v56, %v1104_v33 }
 0x45d   : > { %v727_v59 = vpack.c.bf16 %v726_v58, %v725_v57 }
 0x45f   : > { %1032 = vmatmul.mubr.msk.bf16.vlgmr.msra.gmra.mxu0 %vm331_vm2, %v727_v59 }
 0x4e3   : > { %v522_v60 = vpop.f32.mrf.mxu0 }
 0x4e5   : > { %v1009_v61 = vpop.f32.mrf.mxu0 }
 0x4e7   : > { %v525_v62 = vpop.f32.mrf.mxu0 }
 0x4e8   : > { %v1067_v63 = vpack.i.bf16 %v525_v62, %v522_v60 }
 0x4e9   : > { %v1010_v1 = vpop.f32.mrf.mxu0 }
 0x4ea   : > { %1068 = vrot.lane.b32.xlu1 %v1067_v63, %s1146_s29 }
 0x4eb   : > { %v645_v0 = vpop.f32.mrf.mxu0 }
 0x4ed   : > { %v1021_v2 = vpop.f32.mrf.mxu0 }
 0x4ef   : > { %v648_v3 = vpop.f32.mrf.mxu0 }
 0x4f0   : > { %v1072_v4 = vpack.i.bf16 %v648_v3, %v645_v0 }
 0x4f1   : > { %v1022_v5 = vpop.f32.mrf.mxu0 }
 0x4f2   : > { %1073 = vrot.lane.b32.xlu0 %v1072_v4, %s1147_s30 }
 0x51f   : > { %v768_v6 = vpop.f32.mrf.mxu0 }
 0x521   : > { %v1033_v7 = vpop.f32.mrf.mxu0 }
 0x523   : > { %v771_v8 = vpop.f32.mrf.mxu0 }
 0x524   : > { %v1077_v9 = vpack.i.bf16 %v771_v8, %v768_v6 }
 0x525   : > { %v1034_v10 = vpop.f32.mrf.mxu0 }
 0x526   : > { %1078 = vrot.lane.b32.xlu1 %v1077_v9, %s1148_s4 }
 0x55c   : > { %v1069_v11 = vpop.permute.xlu1 %1068 }
 0x55d   : > { %v1071_v13 = vunpack.i.h.bf16 %v1069_v11  ;;  %v1070_v14 = vunpack.i.l.bf16 %v1069_v11 }
 0x55f   : > { %v800_v18 = vsel %vm281_vm1, %v1243_v41, %v1071_v13  ;;  %v799_v19 = vsel %vm281_vm1, %v1241_v39, %v1070_v14 }
 0x564   : > { %v1074_v12 = vpop.permute.xlu0 %1073 }
 0x565   : > { %v1076_v15 = vunpack.i.h.bf16 %v1074_v12  ;;  %v1075_v16 = vunpack.i.l.bf16 %v1074_v12 }
 0x567   : > { %v802_v23 = vsel %vm331_vm2, %v800_v18, %v1076_v15  ;;  %v801_v24 = vsel %vm331_vm2, %v799_v19, %v1075_v16 }
 0x598   : > { %v1079_v17 = vpop.permute.xlu1 %1078 }
 0x599   : > { %v1081_v20 = vunpack.i.h.bf16 %v1079_v17  ;;  %v1080_v21 = vunpack.i.l.bf16 %v1079_v17 }
 0x59b   : > { %v805_v25 = vsel %vm803_vm4, %v802_v23, %v1081_v20  ;;  %v804_v26 = vsel %vm803_vm4, %v801_v24, %v1080_v21 }
 0x59c   : > { %v970_v27 = vpack.c.bf16 %v805_v25, %v805_v25  ;;  %v969_v28 = vpack.c.bf16 %v804_v26, %v804_v26 }
 0x59e   : > { %817 = vst.msk [vmem:[%s263_s7 + $0x4] sm:$0x1] %vm816_vm6, %v970_v27 }
 0x59f   : > { %815 = vst.msk [vmem:[%s263_s7] sm:$0xf] %vm814_vm5, %v969_v28 }
 0x5a0 PF: > { %s13_s14 = sadd.s32 1, %s1139_s14   ;;  %s1295_s12 = smov %s1135_s13 }
 0x5a1   : > { %p10_p5 = scmp.ge.s32.totalorder %s13_s14, 4   ;;  %s1296_s13 = smov %s1298_s15 }
 0x5a3   :  { %12 = sbr.rel (!%p10_p5) target bundleno = 2 (0x2), region = 68 }

// kernel: dcf_sam_forward.109
= control target key start
LH: loop header
LB: loop body
LE: loop exit
PB: predicated region body
PF: predicated region fallthrough
CT: control target
= control target key end

     0   :  { %s1177_s12 = smov 0   ;;  %s1179_s13 = smov 0   ;;  %s1301_s0 = inlined_call_operand.vmem [shape: bf16[2,16,32], index: 0, kind: input, shape index: {}]   ;;  %s1302_s1 = inlined_call_operand.vmem [shape: bf16[2,10,32], index: 1, kind: input, shape index: {}]   ;;  %s1303_s2 = inlined_call_operand.vmem [shape: bf16[2,10,32], index: 2, kind: input, shape index: {}]   ;;  %s1304_s3 = inlined_call_operand.vmem [shape: bf16[2,16,32], index: 3, kind: output, shape index: {}]  }
   0x1   :  { %s1181_s14 = smov 0  }
   0x2 LB: > { %s25_s15 = sadd.s32 1, %s1143_s13  ;;  %p949_p0 = scmp.ge.s32.totalorder %s1147_s14, 1  ;;  %s1147_s14 = sphi %s1181_s14, %s13_s14   ;;  %s1143_s13 = sphi %s1179_s13, %s1306_s13   ;;  %s1139_s12 = sphi %s1177_s12, %s1305_s12  }
   0x3   : > { %p27_p1 = scmp.ge.s32.totalorder %s25_s15, 2  ;;  %p186_p2 = scmp.lt.s32.totalorder %s1147_s14, 3 }
   0x5   : > { %s1308_s15 = smov (%p27_p1, %s25_s15), 0  ;;  %p187_p3 = pnand %p949_p0, %p186_p2 }
   0x6   : > { %p232_p4 = scmp.lt.s32.totalorder (!%p187_p3), %s1139_s12, 1  ;;  %s1151_s23 = smov (!%p187_p3), 120  }
   0x7   : > { %190 = sbr.rel (%p187_p3) target bundleno = 1439 (0x59f), region = 32  ;;  %s1152_s24 = smov (!%p187_p3), 104  }
   0x8   : > { %s1153_s28 = smov (!%p187_p3), 112   ;;  %s1154_s29 = smov (!%p187_p3), 8  }
   0x9   : > { %s1155_s30 = smov (!%p187_p3), 16   ;;  %s1156_s4 = smov (!%p187_p3), 24  }
   0xc   : > { %v1149_v0 = vmov 0.0   ;;  %vm1150_vm0 = vmmov 0   ;;  %s1310_s12 = smov (!%p232_p4, %s1139_s12), 1  ;;  %vm281_vm1 = vcmask 64512   ;;  %vm331_vm2 = vcmask 80896  }
   0xd   : > { %995 = vmatprep.subr.bf16.mxu0 %v1149_v0  ;;  %997 = vmatprep.mubr.msk.bf16.mxu0 %vm1150_vm0, %v1149_v0  ;;  %s1201_s16 = sshll.u32 %s1310_s12, 3  ;;  %vm363_vm3 = vcmask 1044480   ;;  %vm809_vm4 = vcmask 130048   ;;  %vm812_vm5 = vcmask 195584   ;;  %vm823_vm6 = vcmask 257024  }
   0xe   : > { %1001 = vmatprep.subr.bf16.mxu1 %v1149_v0  ;;  %1003 = vmatprep.mubr.msk.bf16.mxu1 %vm1150_vm0, %v1149_v0  ;;  %s247_s19 = scalar_lea.vmem %s1302_s1, %s1201_s16  ;;  %s239_s22 = scalar_lea.vmem %s1301_s0, %s1201_s16 }
   0xf   : > { %v1090_v1 = vld [vmem:[%s247_s19] sm:$0x1f]   ;;  %s255_s27 = scalar_lea.vmem %s1303_s2, %s1201_s16  ;;  %s263_s7 = scalar_lea.vmem %s1304_s3, %s1201_s16 }
  0x10   : > { %v286_v2 = vsel %vm281_vm1, %v1090_v1, 0  ;;  %v1091_v3 = vld [vmem:[%s239_s22] sm:$0xff]  }
  0x11   : > { %996 = vmatpush3.bf16.xpose.msra.mxu0 %v286_v2  ;;  %v1226_v22 = vld [vmem:[%s255_s27] sm:$0x1f]  }
  0x12   : > { %1013 = vmatprep.subr.bf16.mxu0 %v1149_v0  ;;  %v365_v23 = vsel %vm363_vm3, %v1226_v22, 0 }
  0x13   : > { %1002 = vmatpush3.bf16.msra.mxu1 %v365_v23 }
  0x14   : > { %1007 = vmatprep.subr.bf16.mxu1 %v1149_v0 }
  0x18   : > { %998 = vmatmul.mubr.msk.bf16.vlgmr.msra.gmra.mxu0 %vm281_vm1, %v1091_v3 }
  0x19   : > { %1015 = vmatprep.mubr.msk.bf16.mxu0 %vm1150_vm0, %v1149_v0 }
  0xd8   : > { %v322_v4 = vpop.f32.mrf.mxu0 }
  0xd9   : > { %v329_v5 = vmul.f32 0.35355338, %v322_v4 }
  0xda   : > { %v999_v6 = vpop.f32.mrf.mxu0 }
  0xdb   : > { %v332_v7 = vsel %vm331_vm2, %v329_v5, -inf }
  0xdc   : > { %333 = vmax.xlane.f32.xlu0 %v332_v7  ;;  %v325_v8 = vpop.f32.mrf.mxu0 }
  0xdd   : > { %v330_v9 = vmul.f32 0.35355338, %v325_v8 }
  0xde   : > { %v1000_v10 = vpop.f32.mrf.mxu0 }
  0xdf   : > { %v335_v11 = vsel %vm331_vm2, %v330_v9, -inf }
  0xe0   : > { %336 = vmax.xlane.f32.xlu0 %v335_v11 }
  0xf6   : > { %410 = vrot.lane.b32.xlu0 %v1090_v1, %s1151_s23 }
  0xfa   : > { %660 = vrot.lane.b32.xlu0 %v1090_v1, %s1152_s24 }
 0x165   : > { %v334_v12 = vpop.xlane.xlu0 %333 }
 0x166   : > { %v338_v13 = vsub.f32 %v329_v5, %v334_v12 }
 0x168   : > { %v340_v14 = vmul.f32 1.442695, %v338_v13 }
 0x169   : > { %v337_v15 = vpop.xlane.xlu0 %336 }
 0x16a   : > { %1093 = vpow2.f32 %v340_v14  ;;  %v339_v16 = vsub.f32 %v330_v9, %v337_v15 }
 0x16c   : > { %v342_v17 = vmul.f32 1.442695, %v339_v16 }
 0x16d   : > { %v411_v28 = vpop.permute.xlu0 %410 }
 0x16e   : > { %1095 = vpow2.f32 %v342_v17  ;;  %v416_v32 = vsel %vm281_vm1, %v411_v28, 0 }
 0x171   : > { %v661_v36 = vpop.permute.xlu0 %660 }
 0x172   : > { %v666_v38 = vsel %vm281_vm1, %v661_v36, 0 }
 0x177   : > { %v1094_v18 = vpop.eup %1093 }
 0x178   : > { %v344_v19 = vsel %vm331_vm2, %v1094_v18, 0.0 }
 0x179   : > { %345 = vadd.xlane.f32.xlu1 %v344_v19 }
 0x17b   : > { %v1096_v20 = vpop.eup %1095 }
 0x17c   : > { %v347_v21 = vsel %vm331_vm2, %v1096_v20, 0.0 }
 0x17d   : > { %348 = vadd.xlane.f32.xlu1 %v347_v21 }
 0x18e   : > { %408 = vrot.lane.b32.xlu1 %v1091_v3, %s1151_s23 }
 0x192   : > { %535 = vrot.lane.b32.xlu1 %v1090_v1, %s1153_s28 }
 0x196   : > { %533 = vrot.lane.b32.xlu1 %v1091_v3, %s1153_s28 }
 0x19a   : > { %658 = vrot.lane.b32.xlu1 %v1091_v3, %s1152_s24 }
 0x202   : > { %v346_v24 = vpop.xlane.xlu1 %345 }
 0x203   : > { %1097 = vrcp.f32 %v346_v24 }
 0x206   : > { %v349_v25 = vpop.xlane.xlu1 %348 }
 0x207   : > { %1099 = vrcp.f32 %v349_v25 }
 0x20a   : > { %v409_v31 = vpop.permute.xlu1 %408 }
 0x20e   : > { %v536_v34 = vpop.permute.xlu1 %535 }
 0x20f   : > { %v541_v35 = vsel %vm281_vm1, %v536_v34, 0 }
 0x210   : > { %v1098_v26 = vpop.eup %1097 }
 0x211   : > { %v352_v29 = vmul.f32 %v1098_v26, %v1094_v18 }
 0x212   : > { %v534_v37 = vpop.permute.xlu1 %533 }
 0x214   : > { %v1100_v27 = vpop.eup %1099 }
 0x215   : > { %v353_v30 = vmul.f32 %v1100_v27, %v1096_v20 }
 0x216   : > { %v659_v39 = vpop.permute.xlu1 %658 }
 0x217   : > { %v354_v33 = vpack.c.bf16 %v353_v30, %v352_v29 }
 0x219   : > { %1004 = vmatmul.mubr.msk.bf16.vlgmr.msra.gmra.mxu1 %vm331_vm2, %v354_v33 }
 0x21a   : > { %1008 = vmatpush3.bf16.xpose.msra.mxu1 %v416_v32  ;;  %1009 = vmatprep.mubr.msk.bf16.mxu1 %vm1150_vm0, %v1149_v0 }
 0x21b   : > { %1019 = vmatprep.subr.bf16.mxu1 %v1149_v0 }
 0x221   : > { %1010 = vmatmul.mubr.msk.bf16.vlgmr.msra.gmra.mxu1 %vm281_vm1, %v409_v31 }
 0x222   : > { %1020 = vmatpush3.bf16.xpose.msra.mxu1 %v541_v35  ;;  %1021 = vmatprep.mubr.msk.bf16.mxu1 %vm1150_vm0, %v1149_v0 }
 0x223   : > { %1031 = vmatprep.subr.bf16.mxu1 %v1149_v0 }
 0x229   : > { %1022 = vmatmul.mubr.msk.bf16.vlgmr.msra.gmra.mxu1 %vm281_vm1, %v534_v37 }
 0x22a   : > { %1032 = vmatpush3.bf16.xpose.msra.mxu1 %v666_v38  ;;  %1033 = vmatprep.mubr.msk.bf16.mxu1 %vm1150_vm0, %v1149_v0 }
 0x231   : > { %1034 = vmatmul.mubr.msk.bf16.vlgmr.msra.gmra.mxu1 %vm281_vm1, %v659_v39 }
 0x2d9   : > { %v1250_v40 = vpop.f32.mrf.mxu1 }
 0x2db   : > { %v1005_v41 = vpop.f32.mrf.mxu1 }
 0x2dd   : > { %v1252_v42 = vpop.f32.mrf.mxu1 }
 0x2df   : > { %v1006_v43 = vpop.f32.mrf.mxu1 }
 0x2e1   : > { %v452_v44 = vpop.f32.mrf.mxu1 }
 0x2e2   : > { %v459_v45 = vmul.f32 0.35355338, %v452_v44 }
 0x2e3   : > { %v1011_v46 = vpop.f32.mrf.mxu1 }
 0x2e4   : > { %v461_v47 = vsel %vm331_vm2, %v459_v45, -inf }
 0x2e5   : > { %462 = vmax.xlane.f32.xlu0 %v461_v47  ;;  %v455_v48 = vpop.f32.mrf.mxu1 }
 0x2e6   : > { %v460_v49 = vmul.f32 0.35355338, %v455_v48 }
 0x2e7   : > { %v1012_v50 = vpop.f32.mrf.mxu1 }
 0x2e8   : > { %v464_v51 = vsel %vm331_vm2, %v460_v49, -inf }
 0x2e9   : > { %465 = vmax.xlane.f32.xlu1 %v464_v51  ;;  %v577_v52 = vpop.f32.mrf.mxu1 }
 0x2ea   : > { %v584_v53 = vmul.f32 0.35355338, %v577_v52 }
 0x2eb   : > { %v1023_v54 = vpop.f32.mrf.mxu1 }
 0x2ec   : > { %v586_v55 = vsel %vm331_vm2, %v584_v53, -inf }
 0x2ed   : > { %587 = vmax.xlane.f32.xlu0 %v586_v55  ;;  %v580_v56 = vpop.f32.mrf.mxu1 }
 0x2ee   : > { %v585_v57 = vmul.f32 0.35355338, %v580_v56 }
 0x2ef   : > { %v1024_v58 = vpop.f32.mrf.mxu1 }
 0x2f0   : > { %v589_v59 = vsel %vm331_vm2, %v585_v57, -inf }
 0x2f1   : > { %590 = vmax.xlane.f32.xlu0 %v589_v59  ;;  %v702_v60 = vpop.f32.mrf.mxu1 }
 0x2f2   : > { %v709_v61 = vmul.f32 0.35355338, %v702_v60 }
 0x2f3   : > { %v1035_v62 = vpop.f32.mrf.mxu1 }
 0x2f4   : > { %v711_v63 = vsel %vm331_vm2, %v709_v61, -inf }
 0x2f5   : > { %712 = vmax.xlane.f32.xlu0 %v711_v63  ;;  %v705_v1 = vpop.f32.mrf.mxu1 }
 0x2f6   : > { %v710_v2 = vmul.f32 0.35355338, %v705_v1 }
 0x2f7   : > { %v1036_v3 = vpop.f32.mrf.mxu1 }
 0x2f8   : > { %v714_v4 = vsel %vm331_vm2, %v710_v2, -inf }
 0x2f9   : > { %715 = vmax.xlane.f32.xlu1 %v714_v4 }
 0x36e   : > { %v463_v5 = vpop.xlane.xlu0 %462 }
 0x36f   : > { %v467_v6 = vsub.f32 %v459_v45, %v463_v5 }
 0x371   : > { %v469_v7 = vmul.f32 1.442695, %v467_v6 }
 0x372   : > { %v466_v8 = vpop.xlane.xlu1 %465 }
 0x373   : > { %1101 = vpow2.f32 %v469_v7  ;;  %v468_v9 = vsub.f32 %v460_v49, %v466_v8 }
 0x375   : > { %v471_v10 = vmul.f32 1.442695, %v468_v9 }
 0x376   : > { %v588_v11 = vpop.xlane.xlu0 %587 }
 0x377   : > { %1103 = vpow2.f32 %v471_v10  ;;  %v592_v12 = vsub.f32 %v584_v53, %v588_v11 }
 0x379   : > { %v594_v13 = vmul.f32 1.442695, %v592_v12 }
 0x37a   : > { %v591_v14 = vpop.xlane.xlu0 %590 }
 0x37b   : > { %1105 = vpow2.f32 %v594_v13  ;;  %v593_v15 = vsub.f32 %v585_v57, %v591_v14 }
 0x37d   : > { %v596_v16 = vmul.f32 1.442695, %v593_v15 }
 0x37e   : > { %v713_v17 = vpop.xlane.xlu0 %712 }
 0x37f   : > { %1107 = vpow2.f32 %v596_v16  ;;  %v717_v18 = vsub.f32 %v709_v61, %v713_v17 }
 0x380   : > { %v1102_v19 = vpop.eup %1101 }
 0x381   : > { %v719_v20 = vmul.f32 1.442695, %v717_v18  ;;  %v473_v21 = vsel %vm331_vm2, %v1102_v19, 0.0 }
 0x382   : > { %474 = vadd.xlane.f32.xlu0 %v473_v21  ;;  %v716_v31 = vpop.xlane.xlu1 %715 }
 0x383   : > { %1109 = vpow2.f32 %v719_v20  ;;  %v718_v32 = vsub.f32 %v710_v2, %v716_v31 }
 0x384   : > { %v1104_v23 = vpop.eup %1103 }
 0x385   : > { %v476_v24 = vsel %vm331_vm2, %v1104_v23, 0.0  ;;  %v721_v33 = vmul.f32 1.442695, %v718_v32 }
 0x386   : > { %477 = vadd.xlane.f32.xlu1 %v476_v24 }
 0x387   : > { %1111 = vpow2.f32 %v721_v33 }
 0x388   : > { %v1106_v25 = vpop.eup %1105 }
 0x389   : > { %v598_v26 = vsel %vm331_vm2, %v1106_v25, 0.0 }
 0x38a   : > { %599 = vadd.xlane.f32.xlu0 %v598_v26 }
 0x38c   : > { %v1108_v27 = vpop.eup %1107 }
 0x38d   : > { %v601_v28 = vsel %vm331_vm2, %v1108_v27, 0.0 }
 0x38e   : > { %602 = vadd.xlane.f32.xlu1 %v601_v28 }
 0x390   : > { %v1110_v29 = vpop.eup %1109 }
 0x391   : > { %v723_v30 = vsel %vm331_vm2, %v1110_v29, 0.0 }
 0x392   : > { %724 = vadd.xlane.f32.xlu0 %v723_v30 }
 0x394   : > { %v1112_v34 = vpop.eup %1111 }
 0x395   : > { %v726_v35 = vsel %vm331_vm2, %v1112_v34, 0.0 }
 0x39f   : > { %609 = vrot.lane.b32.xlu1 %v1226_v22, %s1153_s28 }
 0x3a8   : > { %484 = vrot.lane.b32.xlu0 %v1226_v22, %s1151_s23 }
 0x3c3   : > { %727 = vadd.xlane.f32.xlu1 %v726_v35 }
 0x3d4   : > { %734 = vrot.lane.b32.xlu1 %v1226_v22, %s1152_s24 }
 0x40b   : > { %v475_v36 = vpop.xlane.xlu0 %474 }
 0x40c   : > { %1113 = vrcp.f32 %v475_v36 }
 0x40f   : > { %v478_v37 = vpop.xlane.xlu1 %477 }
 0x410   : > { %1115 = vrcp.f32 %v478_v37 }
 0x413   : > { %v600_v38 = vpop.xlane.xlu0 %599 }
 0x414   : > { %1117 = vrcp.f32 %v600_v38 }
 0x417   : > { %v603_v39 = vpop.xlane.xlu1 %602 }
 0x418   : > { %1119 = vrcp.f32 %v603_v39 }
 0x419   : > { %v1114_v43 = vpop.eup %1113 }
 0x41a   : > { %v481_v48 = vmul.f32 %v1114_v43, %v1102_v19 }
 0x41b   : > { %v725_v41 = vpop.xlane.xlu0 %724  ;;  %v610_v49 = vpop.permute.xlu1 %609 }
 0x41c   : > { %v615_v51 = vsel %vm363_vm3, %v610_v49, 0  ;;  %1121 = vrcp.f32 %v725_v41 }
 0x41d   : > { %v1116_v44 = vpop.eup %1115 }
 0x41e   : > { %v482_v45 = vmul.f32 %v1116_v44, %v1104_v23 }
 0x41f   : > { %v485_v46 = vpop.permute.xlu0 %484 }
 0x420   : > { %v490_v47 = vsel %vm363_vm3, %v485_v46, 0  ;;  %v483_v50 = vpack.c.bf16 %v482_v45, %v481_v48 }
 0x421   : > { %1014 = vmatpush3.bf16.msra.mxu0 %v490_v47  ;;  %v1118_v22 = vpop.eup %1117 }
 0x422   : > { %1025 = vmatprep.subr.bf16.mxu0 %v1149_v0  ;;  %v606_v54 = vmul.f32 %v1118_v22, %v1106_v25 }
 0x424   : > { %1016 = vmatmul.mubr.msk.bf16.vlgmr.msra.gmra.mxu0 %vm331_vm2, %v483_v50 }
 0x425   : > { %v1120_v52 = vpop.eup %1119  ;;  %1026 = vmatpush3.bf16.msra.mxu0 %v615_v51  ;;  %1027 = vmatprep.mubr.msk.bf16.mxu0 %vm1150_vm0, %v1149_v0 }
 0x426   : > { %v607_v53 = vmul.f32 %v1120_v52, %v1108_v27  ;;  %1037 = vmatprep.subr.bf16.mxu0 %v1149_v0 }
 0x428   : > { %v608_v55 = vpack.c.bf16 %v607_v53, %v606_v54 }
 0x429   : > { %v1122_v59 = vpop.eup %1121 }
 0x42a   : > { %v731_v61 = vmul.f32 %v1122_v59, %v1110_v29 }
 0x42c   : > { %1028 = vmatmul.mubr.msk.bf16.vlgmr.msra.gmra.mxu0 %vm331_vm2, %v608_v55 }
 0x42d   : > { %1039 = vmatprep.mubr.msk.bf16.mxu0 %vm1150_vm0, %v1149_v0 }
 0x44c   : > { %v728_v56 = vpop.xlane.xlu1 %727 }
 0x44d   : > { %1123 = vrcp.f32 %v728_v56 }
 0x450   : > { %v735_v57 = vpop.permute.xlu1 %734 }
 0x451   : > { %v740_v58 = vsel %vm363_vm3, %v735_v57, 0 }
 0x452   : > { %1038 = vmatpush3.bf16.msra.mxu0 %v740_v58 }
 0x45a   : > { %v1124_v60 = vpop.eup %1123 }
 0x45b   : > { %v732_v62 = vmul.f32 %v1124_v60, %v1112_v34 }
 0x45d   : > { %v733_v63 = vpack.c.bf16 %v732_v62, %v731_v61 }
 0x45f   : > { %1040 = vmatmul.mubr.msk.bf16.vlgmr.msra.gmra.mxu0 %vm331_vm2, %v733_v63 }
 0x4e4   : > { %v526_v1 = vpop.f32.mrf.mxu0 }
 0x4e6   : > { %v1017_v2 = vpop.f32.mrf.mxu0 }
 0x4e8   : > { %v529_v3 = vpop.f32.mrf.mxu0 }
 0x4e9   : > { %v1075_v4 = vpack.i.bf16 %v529_v3, %v526_v1 }
 0x4ea   : > { %v1018_v5 = vpop.f32.mrf.mxu0 }
 0x4eb   : > { %1076 = vrot.lane.b32.xlu1 %v1075_v4, %s1154_s29 }
 0x4ec   : > { %v651_v0 = vpop.f32.mrf.mxu0 }
 0x4ee   : > { %v1029_v6 = vpop.f32.mrf.mxu0 }
 0x4f0   : > { %v654_v7 = vpop.f32.mrf.mxu0 }
 0x4f1   : > { %v1080_v8 = vpack.i.bf16 %v654_v7, %v651_v0 }
 0x4f2   : > { %v1030_v9 = vpop.f32.mrf.mxu0 }
 0x4f3   : > { %1081 = vrot.lane.b32.xlu0 %v1080_v8, %s1155_s30 }
 0x51f   : > { %v776_v10 = vpop.f32.mrf.mxu0 }
 0x521   : > { %v1041_v11 = vpop.f32.mrf.mxu0 }
 0x523   : > { %v779_v12 = vpop.f32.mrf.mxu0 }
 0x524   : > { %v1085_v13 = vpack.i.bf16 %v779_v12, %v776_v10 }
 0x525   : > { %v1042_v14 = vpop.f32.mrf.mxu0 }
 0x526   : > { %1086 = vrot.lane.b32.xlu1 %v1085_v13, %s1156_s4 }
 0x55d   : > { %v1077_v15 = vpop.permute.xlu1 %1076 }
 0x55e   : > { %v1079_v17 = vunpack.i.h.bf16 %v1077_v15  ;;  %v1078_v18 = vunpack.i.l.bf16 %v1077_v15 }
 0x560   : > { %v808_v23 = vsel %vm281_vm1, %v1252_v42, %v1079_v17  ;;  %v807_v24 = vsel %vm281_vm1, %v1250_v40, %v1078_v18 }
 0x565   : > { %v1082_v16 = vpop.permute.xlu0 %1081 }
 0x566   : > { %v1084_v19 = vunpack.i.h.bf16 %v1082_v16  ;;  %v1083_v20 = vunpack.i.l.bf16 %v1082_v16 }
 0x568   : > { %v811_v27 = vsel %vm809_vm4, %v808_v23, %v1084_v19  ;;  %v810_v28 = vsel %vm809_vm4, %v807_v24, %v1083_v20 }
 0x598   : > { %v1087_v21 = vpop.permute.xlu1 %1086 }
 0x599   : > { %v1089_v25 = vunpack.i.h.bf16 %v1087_v21  ;;  %v1088_v26 = vunpack.i.l.bf16 %v1087_v21 }
 0x59b   : > { %v814_v29 = vsel %vm812_vm5, %v811_v27, %v1089_v25  ;;  %v813_v30 = vsel %vm812_vm5, %v810_v28, %v1088_v26 }
 0x59c   : > { %v978_v31 = vpack.c.bf16 %v814_v29, %v814_v29  ;;  %v977_v32 = vpack.c.bf16 %v813_v30, %v813_v30 }
 0x59e   : > { %825 = vst.msk [vmem:[%s263_s7 + $0x4] sm:$0xf] %vm823_vm6, %v978_v31  ;;  %824 = vst.msk [vmem:[%s263_s7] sm:$0xf] %vm823_vm6, %v977_v32 }
 0x59f PF: > { %s13_s14 = sadd.s32 1, %s1147_s14   ;;  %s1305_s12 = smov %s1143_s13 }
 0x5a0   : > { %p10_p5 = scmp.ge.s32.totalorder %s13_s14, 4   ;;  %s1306_s13 = smov %s1308_s15 }
 0x5a2   :  { %12 = sbr.rel (!%p10_p5) target bundleno = 2 (0x2), region = 68 }

</bundles_post_ra>
